<compile_context>
chip_gen: v7x
topology: tpu7x:2x2x1
jax: 0.10.0
libtpu: 0.0.40
codegen_flags: <defaults>
</compile_context>

<pallas_src>
import functools

import jax
import jax.numpy as jnp
import numpy as np
from jax.experimental import pallas as pl
from jax.experimental.pallas import tpu as pltpu

# ----------------------------- static config --------------------------------
C = 2                  # audio channels
SAMPLE_RATE = 2176     # "1 second" slice length used by the module (synthetic)
T = 4096               # total joined-signal length
N_FFT = 256
HOP = 128
N_FRAMES = (SAMPLE_RATE - N_FFT) // HOP + 1    # 16
N_FREQ = N_FFT // 2                            # 128 (Nyquist bin dropped)
N_MELS = 128
ROWS_PER_PAIR = N_FRAMES * C                   # 32


# ------------------------------ parameters ----------------------------------
def make_hann_window(n_fft):
    n = np.arange(n_fft, dtype=np.float64)
    return (0.5 - 0.5 * np.cos(2.0 * np.pi * n / n_fft)).astype(np.float32)


def make_dft_matrices(n_fft, n_freq):
    k = np.arange(n_fft, dtype=np.float64)[:, None]
    f = np.arange(n_freq, dtype=np.float64)[None, :]
    ang = 2.0 * np.pi * k * f / n_fft
    return np.cos(ang).astype(np.float32), (-np.sin(ang)).astype(np.float32)


def make_windowed_dft(n_fft, n_freq):
    # Fused [cos | -sin] real-DFT basis with the Hann window folded in.
    win = make_hann_window(n_fft).astype(np.float64)
    cos_m, sin_m = make_dft_matrices(n_fft, n_freq)
    basis = np.concatenate([cos_m, sin_m], axis=1).astype(np.float64)  # (n_fft, 2*n_freq)
    return (win[:, None] * basis).astype(np.float32)


def make_mel_filterbank(sr, n_fft, n_freq, n_mels):
    def hz_to_mel(h):
        return 2595.0 * np.log10(1.0 + h / 700.0)

    def mel_to_hz(m):
        return 700.0 * (10.0 ** (m / 2595.0) - 1.0)

    mels = np.linspace(hz_to_mel(0.0), hz_to_mel(sr / 2.0), n_mels + 2)
    hz_pts = mel_to_hz(mels)
    bin_freqs = np.arange(n_freq, dtype=np.float64) * sr / n_fft
    fb = np.zeros((n_freq, n_mels), dtype=np.float64)
    for m in range(n_mels):
        lo, ctr, hi = hz_pts[m], hz_pts[m + 1], hz_pts[m + 2]
        up = (bin_freqs - lo) / max(ctr - lo, 1e-8)
        down = (hi - bin_freqs) / max(hi - ctr, 1e-8)
        fb[:, m] = np.maximum(0.0, np.minimum(up, down))
    return fb.astype(np.float32)


# ------------------------------- kernel --------------------------------------
def timeshift_melspec_kernel(sig_ref, dft_ref, fb_ref, out_ref, *, roll_amts):
    # sig_ref : (C, T)               joined signal, both channels
    # dft_ref : (N_FFT, 2*N_FREQ)    Hann-windowed [cos | -sin] real-DFT basis
    # fb_ref  : (N_FREQ, N_MELS)     mel filterbank
    # out_ref : (len(roll_amts)*N_FRAMES*C, N_MELS)   lane-dense mel rows
    sig = sig_ref[...]                                            # (C, T)

    # Build all frames for all pairs, then concatenate once.
    frame_slices = []
    for amt in roll_amts:                                         # static unroll
        # torch.roll(sig, shift)[:, start:start+SR] == roll(sig, shift-start)[:, :SR]
        rolled = pltpu.roll(sig, shift=amt, axis=1)               # one XLU rotate / pair
        # frame f = rolled[:, f*HOP : f*HOP + N_FFT]; every start is a multiple
        # of HOP == 128 -> all framing slices are lane-aligned (no rotations).
        for f in range(N_FRAMES):
            frame_slices.append(rolled[:, f * HOP: f * HOP + N_FFT])  # (C, N_FFT)
    frames = jnp.concatenate(frame_slices, axis=0)                # (P*32, 256)

    # Fused windowed real-DFT: one 256-wide MXU matmul ([cos | -sin] halves).
    spec = jnp.dot(frames, dft_ref[...], preferred_element_type=jnp.float32)
    re = spec[:, :N_FREQ]
    im = spec[:, N_FREQ:]
    power = re * re + im * im                                     # (P*32, 128)

    # Mel filterbank matmul; output stays lane-dense (last dim = 128).
    out_ref[...] = jnp.dot(power, fb_ref[...],
                           preferred_element_type=jnp.float32)


def timeshift_melspec(signal, dft_w, mel_fb, pairs):
    """All (shift_samples, start) pairs and both channels in ONE pallas_call."""
    roll_amts = tuple(int((shift - start) % T) for shift, start in pairs)
    n_pairs = len(roll_amts)
    total_rows = n_pairs * ROWS_PER_PAIR

    flops = 2 * total_rows * N_FFT * (2 * N_FREQ) \
        + 2 * total_rows * N_FREQ * N_MELS \
        + 3 * total_rows * N_FREQ
    bytes_accessed = 4 * (signal.size + dft_w.size + mel_fb.size
                          + total_rows * N_MELS)

    kernel = functools.partial(timeshift_melspec_kernel, roll_amts=roll_amts)
    flat = pl.pallas_call(
        kernel,
        out_shape=jax.ShapeDtypeStruct((total_rows, N_MELS), jnp.float32),
        # No grid: the whole problem is VMEM-resident for a single invocation.
        in_specs=[pl.BlockSpec(memory_space=pltpu.MemorySpace.VMEM)] * 3,
        out_specs=pl.BlockSpec(memory_space=pltpu.MemorySpace.VMEM),
        cost_estimate=pl.CostEstimate(flops=flops, transcendentals=0,
                                      bytes_accessed=bytes_accessed),
    )(signal, dft_w, mel_fb)

    # Rows are ordered (pair, frame, channel); reshape/transpose (cheap XLA
    # layout op) into the torchaudio layout (pair, channel, n_mels, time).
    mel = flat.reshape(n_pairs, N_FRAMES, C, N_MELS)
    return jnp.transpose(mel, (0, 2, 3, 1))


# ------------------------------- reference -----------------------------------
def reference(signal, pairs):
    win = jnp.asarray(make_hann_window(N_FFT))
    cos_np, sin_np = make_dft_matrices(N_FFT, N_FREQ)
    cos_m, sin_m = jnp.asarray(cos_np), jnp.asarray(sin_np)
    fb = jnp.asarray(make_mel_filterbank(SAMPLE_RATE, N_FFT, N_FREQ, N_MELS))
    outs = []
    for shift, start in pairs:
        rolled = jnp.roll(signal, shift, axis=1)          # == torch.roll(..., dims=1)
        sliced = rolled[:, start:start + SAMPLE_RATE]
        frames = jnp.stack(
            [sliced[:, f * HOP: f * HOP + N_FFT] for f in range(N_FRAMES)], axis=1)
        w = frames * win[None, None, :]
        re = jnp.einsum("cfk,kq->cfq", w, cos_m)
        im = jnp.einsum("cfk,kq->cfq", w, sin_m)
        mel = jnp.einsum("cfq,qm->cfm", re * re + im * im, fb)
        outs.append(jnp.transpose(mel, (0, 2, 1)))        # (C, n_mels, time)
    return jnp.stack(outs, axis=0)                        # (P, C, n_mels, time)


# --------------------------------- main ---------------------------------------
if __name__ == "__main__":
    key = jax.random.PRNGKey(0)
    signal = jax.random.normal(key, (C, T), dtype=jnp.float32)

    # Module loops: n_shifts = [0.1 .. 0.9], window starts i in range(0, 10).
    # Batch all 9 shifts (the axis forward() randomizes over) x a few window
    # starts into one pallas_call; more (shift, start) pairs just extend the
    # list (each adds ~80 KiB of VMEM-resident rows).
    n_shifts = [round(x * 0.1, 2) for x in range(1, 10)]
    starts = (0, 3, 6)
    pairs = [(int(ns * SAMPLE_RATE), st) for ns in n_shifts for st in starts]

    dft_w = jnp.asarray(make_windowed_dft(N_FFT, N_FREQ))          # (256, 256)
    mel_fb = jnp.asarray(make_mel_filterbank(SAMPLE_RATE, N_FFT, N_FREQ, N_MELS))

    out = jax.block_until_ready(timeshift_melspec(signal, dft_w, mel_fb, pairs))

    ref = jax.block_until_ready(reference(signal, pairs))
    np.testing.assert_allclose(np.asarray(out), np.asarray(ref),
                               rtol=1e-3, atol=1e-2)

    print("KERNEL_OK")
</pallas_src>

<mosaic_0001>
module attributes {stable_mosaic.version = 11 : i64} {
  func.func @timeshift_melspec_kernel(%arg0: memref<2x4096xf32, #tpu.memory_space<vmem>>, %arg1: memref<256x256xf32, #tpu.memory_space<vmem>>, %arg2: memref<128x128xf32, #tpu.memory_space<vmem>>, %arg3: memref<864x128xf32, #tpu.memory_space<vmem>>) attributes {dimension_semantics = [], scalar_prefetch = 0 : i64, scratch_operands = 0 : i64, tpu.core_type = #tpu.core_type<tc>} {
    %c0 = arith.constant 0 : index
    %c0_0 = arith.constant 0 : index
    %0 = vector.load %arg0[%c0, %c0_0] : memref<2x4096xf32, #tpu.memory_space<vmem>>, vector<2x4096xf32>
    %c217_i32 = arith.constant 217 : i32
    %1 = tpu.dynamic_rotate %0 by %c217_i32 dim 1 : vector<2x4096xf32>, i32 -> vector<2x4096xf32>
    %2 = vector.extract_strided_slice %1 {offsets = [0, 0], sizes = [2, 256], strides = [1, 1]} : vector<2x4096xf32> to vector<2x256xf32>
    %3 = vector.extract_strided_slice %1 {offsets = [0, 128], sizes = [2, 256], strides = [1, 1]} : vector<2x4096xf32> to vector<2x256xf32>
    %4 = vector.extract_strided_slice %1 {offsets = [0, 256], sizes = [2, 256], strides = [1, 1]} : vector<2x4096xf32> to vector<2x256xf32>
    %5 = vector.extract_strided_slice %1 {offsets = [0, 384], sizes = [2, 256], strides = [1, 1]} : vector<2x4096xf32> to vector<2x256xf32>
    %6 = vector.extract_strided_slice %1 {offsets = [0, 512], sizes = [2, 256], strides = [1, 1]} : vector<2x4096xf32> to vector<2x256xf32>
    %7 = vector.extract_strided_slice %1 {offsets = [0, 640], sizes = [2, 256], strides = [1, 1]} : vector<2x4096xf32> to vector<2x256xf32>
    %8 = vector.extract_strided_slice %1 {offsets = [0, 768], sizes = [2, 256], strides = [1, 1]} : vector<2x4096xf32> to vector<2x256xf32>
    %9 = vector.extract_strided_slice %1 {offsets = [0, 896], sizes = [2, 256], strides = [1, 1]} : vector<2x4096xf32> to vector<2x256xf32>
    %10 = vector.extract_strided_slice %1 {offsets = [0, 1024], sizes = [2, 256], strides = [1, 1]} : vector<2x4096xf32> to vector<2x256xf32>
    %11 = vector.extract_strided_slice %1 {offsets = [0, 1152], sizes = [2, 256], strides = [1, 1]} : vector<2x4096xf32> to vector<2x256xf32>
    %12 = vector.extract_strided_slice %1 {offsets = [0, 1280], sizes = [2, 256], strides = [1, 1]} : vector<2x4096xf32> to vector<2x256xf32>
    %13 = vector.extract_strided_slice %1 {offsets = [0, 1408], sizes = [2, 256], strides = [1, 1]} : vector<2x4096xf32> to vector<2x256xf32>
    %14 = vector.extract_strided_slice %1 {offsets = [0, 1536], sizes = [2, 256], strides = [1, 1]} : vector<2x4096xf32> to vector<2x256xf32>
    %15 = vector.extract_strided_slice %1 {offsets = [0, 1664], sizes = [2, 256], strides = [1, 1]} : vector<2x4096xf32> to vector<2x256xf32>
    %16 = vector.extract_strided_slice %1 {offsets = [0, 1792], sizes = [2, 256], strides = [1, 1]} : vector<2x4096xf32> to vector<2x256xf32>
    %17 = vector.extract_strided_slice %1 {offsets = [0, 1920], sizes = [2, 256], strides = [1, 1]} : vector<2x4096xf32> to vector<2x256xf32>
    %c214_i32 = arith.constant 214 : i32
    %18 = tpu.dynamic_rotate %0 by %c214_i32 dim 1 : vector<2x4096xf32>, i32 -> vector<2x4096xf32>
    %19 = vector.extract_strided_slice %18 {offsets = [0, 0], sizes = [2, 256], strides = [1, 1]} : vector<2x4096xf32> to vector<2x256xf32>
    %20 = vector.extract_strided_slice %18 {offsets = [0, 128], sizes = [2, 256], strides = [1, 1]} : vector<2x4096xf32> to vector<2x256xf32>
    %21 = vector.extract_strided_slice %18 {offsets = [0, 256], sizes = [2, 256], strides = [1, 1]} : vector<2x4096xf32> to vector<2x256xf32>
    %22 = vector.extract_strided_slice %18 {offsets = [0, 384], sizes = [2, 256], strides = [1, 1]} : vector<2x4096xf32> to vector<2x256xf32>
    %23 = vector.extract_strided_slice %18 {offsets = [0, 512], sizes = [2, 256], strides = [1, 1]} : vector<2x4096xf32> to vector<2x256xf32>
    %24 = vector.extract_strided_slice %18 {offsets = [0, 640], sizes = [2, 256], strides = [1, 1]} : vector<2x4096xf32> to vector<2x256xf32>
    %25 = vector.extract_strided_slice %18 {offsets = [0, 768], sizes = [2, 256], strides = [1, 1]} : vector<2x4096xf32> to vector<2x256xf32>
    %26 = vector.extract_strided_slice %18 {offsets = [0, 896], sizes = [2, 256], strides = [1, 1]} : vector<2x4096xf32> to vector<2x256xf32>
    %27 = vector.extract_strided_slice %18 {offsets = [0, 1024], sizes = [2, 256], strides = [1, 1]} : vector<2x4096xf32> to vector<2x256xf32>
    %28 = vector.extract_strided_slice %18 {offsets = [0, 1152], sizes = [2, 256], strides = [1, 1]} : vector<2x4096xf32> to vector<2x256xf32>
    %29 = vector.extract_strided_slice %18 {offsets = [0, 1280], sizes = [2, 256], strides = [1, 1]} : vector<2x4096xf32> to vector<2x256xf32>
    %30 = vector.extract_strided_slice %18 {offsets = [0, 1408], sizes = [2, 256], strides = [1, 1]} : vector<2x4096xf32> to vector<2x256xf32>
    %31 = vector.extract_strided_slice %18 {offsets = [0, 1536], sizes = [2, 256], strides = [1, 1]} : vector<2x4096xf32> to vector<2x256xf32>
    %32 = vector.extract_strided_slice %18 {offsets = [0, 1664], sizes = [2, 256], strides = [1, 1]} : vector<2x4096xf32> to vector<2x256xf32>
    %33 = vector.extract_strided_slice %18 {offsets = [0, 1792], sizes = [2, 256], strides = [1, 1]} : vector<2x4096xf32> to vector<2x256xf32>
    %34 = vector.extract_strided_slice %18 {offsets = [0, 1920], sizes = [2, 256], strides = [1, 1]} : vector<2x4096xf32> to vector<2x256xf32>
    %c211_i32 = arith.constant 211 : i32
    %35 = tpu.dynamic_rotate %0 by %c211_i32 dim 1 : vector<2x4096xf32>, i32 -> vector<2x4096xf32>
    %36 = vector.extract_strided_slice %35 {offsets = [0, 0], sizes = [2, 256], strides = [1, 1]} : vector<2x4096xf32> to vector<2x256xf32>
    %37 = vector.extract_strided_slice %35 {offsets = [0, 128], sizes = [2, 256], strides = [1, 1]} : vector<2x4096xf32> to vector<2x256xf32>
    %38 = vector.extract_strided_slice %35 {offsets = [0, 256], sizes = [2, 256], strides = [1, 1]} : vector<2x4096xf32> to vector<2x256xf32>
    %39 = vector.extract_strided_slice %35 {offsets = [0, 384], sizes = [2, 256], strides = [1, 1]} : vector<2x4096xf32> to vector<2x256xf32>
    %40 = vector.extract_strided_slice %35 {offsets = [0, 512], sizes = [2, 256], strides = [1, 1]} : vector<2x4096xf32> to vector<2x256xf32>
    %41 = vector.extract_strided_slice %35 {offsets = [0, 640], sizes = [2, 256], strides = [1, 1]} : vector<2x4096xf32> to vector<2x256xf32>
    %42 = vector.extract_strided_slice %35 {offsets = [0, 768], sizes = [2, 256], strides = [1, 1]} : vector<2x4096xf32> to vector<2x256xf32>
    %43 = vector.extract_strided_slice %35 {offsets = [0, 896], sizes = [2, 256], strides = [1, 1]} : vector<2x4096xf32> to vector<2x256xf32>
    %44 = vector.extract_strided_slice %35 {offsets = [0, 1024], sizes = [2, 256], strides = [1, 1]} : vector<2x4096xf32> to vector<2x256xf32>
    %45 = vector.extract_strided_slice %35 {offsets = [0, 1152], sizes = [2, 256], strides = [1, 1]} : vector<2x4096xf32> to vector<2x256xf32>
    %46 = vector.extract_strided_slice %35 {offsets = [0, 1280], sizes = [2, 256], strides = [1, 1]} : vector<2x4096xf32> to vector<2x256xf32>
    %47 = vector.extract_strided_slice %35 {offsets = [0, 1408], sizes = [2, 256], strides = [1, 1]} : vector<2x4096xf32> to vector<2x256xf32>
    %48 = vector.extract_strided_slice %35 {offsets = [0, 1536], sizes = [2, 256], strides = [1, 1]} : vector<2x4096xf32> to vector<2x256xf32>
    %49 = vector.extract_strided_slice %35 {offsets = [0, 1664], sizes = [2, 256], strides = [1, 1]} : vector<2x4096xf32> to vector<2x256xf32>
    %50 = vector.extract_strided_slice %35 {offsets = [0, 1792], sizes = [2, 256], strides = [1, 1]} : vector<2x4096xf32> to vector<2x256xf32>
    %51 = vector.extract_strided_slice %35 {offsets = [0, 1920], sizes = [2, 256], strides = [1, 1]} : vector<2x4096xf32> to vector<2x256xf32>
    %c435_i32 = arith.constant 435 : i32
    %52 = tpu.dynamic_rotate %0 by %c435_i32 dim 1 : vector<2x4096xf32>, i32 -> vector<2x4096xf32>
    %53 = vector.extract_strided_slice %52 {offsets = [0, 0], sizes = [2, 256], strides = [1, 1]} : vector<2x4096xf32> to vector<2x256xf32>
    %54 = vector.extract_strided_slice %52 {offsets = [0, 128], sizes = [2, 256], strides = [1, 1]} : vector<2x4096xf32> to vector<2x256xf32>
    %55 = vector.extract_strided_slice %52 {offsets = [0, 256], sizes = [2, 256], strides = [1, 1]} : vector<2x4096xf32> to vector<2x256xf32>
    %56 = vector.extract_strided_slice %52 {offsets = [0, 384], sizes = [2, 256], strides = [1, 1]} : vector<2x4096xf32> to vector<2x256xf32>
    %57 = vector.extract_strided_slice %52 {offsets = [0, 512], sizes = [2, 256], strides = [1, 1]} : vector<2x4096xf32> to vector<2x256xf32>
    %58 = vector.extract_strided_slice %52 {offsets = [0, 640], sizes = [2, 256], strides = [1, 1]} : vector<2x4096xf32> to vector<2x256xf32>
    %59 = vector.extract_strided_slice %52 {offsets = [0, 768], sizes = [2, 256], strides = [1, 1]} : vector<2x4096xf32> to vector<2x256xf32>
    %60 = vector.extract_strided_slice %52 {offsets = [0, 896], sizes = [2, 256], strides = [1, 1]} : vector<2x4096xf32> to vector<2x256xf32>
    %61 = vector.extract_strided_slice %52 {offsets = [0, 1024], sizes = [2, 256], strides = [1, 1]} : vector<2x4096xf32> to vector<2x256xf32>
    %62 = vector.extract_strided_slice %52 {offsets = [0, 1152], sizes = [2, 256], strides = [1, 1]} : vector<2x4096xf32> to vector<2x256xf32>
    %63 = vector.extract_strided_slice %52 {offsets = [0, 1280], sizes = [2, 256], strides = [1, 1]} : vector<2x4096xf32> to vector<2x256xf32>
    %64 = vector.extract_strided_slice %52 {offsets = [0, 1408], sizes = [2, 256], strides = [1, 1]} : vector<2x4096xf32> to vector<2x256xf32>
    %65 = vector.extract_strided_slice %52 {offsets = [0, 1536], sizes = [2, 256], strides = [1, 1]} : vector<2x4096xf32> to vector<2x256xf32>
    %66 = vector.extract_strided_slice %52 {offsets = [0, 1664], sizes = [2, 256], strides = [1, 1]} : vector<2x4096xf32> to vector<2x256xf32>
    %67 = vector.extract_strided_slice %52 {offsets = [0, 1792], sizes = [2, 256], strides = [1, 1]} : vector<2x4096xf32> to vector<2x256xf32>
    %68 = vector.extract_strided_slice %52 {offsets = [0, 1920], sizes = [2, 256], strides = [1, 1]} : vector<2x4096xf32> to vector<2x256xf32>
    %c432_i32 = arith.constant 432 : i32
    %69 = tpu.dynamic_rotate %0 by %c432_i32 dim 1 : vector<2x4096xf32>, i32 -> vector<2x4096xf32>
    %70 = vector.extract_strided_slice %69 {offsets = [0, 0], sizes = [2, 256], strides = [1, 1]} : vector<2x4096xf32> to vector<2x256xf32>
    %71 = vector.extract_strided_slice %69 {offsets = [0, 128], sizes = [2, 256], strides = [1, 1]} : vector<2x4096xf32> to vector<2x256xf32>
    %72 = vector.extract_strided_slice %69 {offsets = [0, 256], sizes = [2, 256], strides = [1, 1]} : vector<2x4096xf32> to vector<2x256xf32>
    %73 = vector.extract_strided_slice %69 {offsets = [0, 384], sizes = [2, 256], strides = [1, 1]} : vector<2x4096xf32> to vector<2x256xf32>
    %74 = vector.extract_strided_slice %69 {offsets = [0, 512], sizes = [2, 256], strides = [1, 1]} : vector<2x4096xf32> to vector<2x256xf32>
    %75 = vector.extract_strided_slice %69 {offsets = [0, 640], sizes = [2, 256], strides = [1, 1]} : vector<2x4096xf32> to vector<2x256xf32>
    %76 = vector.extract_strided_slice %69 {offsets = [0, 768], sizes = [2, 256], strides = [1, 1]} : vector<2x4096xf32> to vector<2x256xf32>
    %77 = vector.extract_strided_slice %69 {offsets = [0, 896], sizes = [2, 256], strides = [1, 1]} : vector<2x4096xf32> to vector<2x256xf32>
    %78 = vector.extract_strided_slice %69 {offsets = [0, 1024], sizes = [2, 256], strides = [1, 1]} : vector<2x4096xf32> to vector<2x256xf32>
    %79 = vector.extract_strided_slice %69 {offsets = [0, 1152], sizes = [2, 256], strides = [1, 1]} : vector<2x4096xf32> to vector<2x256xf32>
    %80 = vector.extract_strided_slice %69 {offsets = [0, 1280], sizes = [2, 256], strides = [1, 1]} : vector<2x4096xf32> to vector<2x256xf32>
    %81 = vector.extract_strided_slice %69 {offsets = [0, 1408], sizes = [2, 256], strides = [1, 1]} : vector<2x4096xf32> to vector<2x256xf32>
    %82 = vector.extract_strided_slice %69 {offsets = [0, 1536], sizes = [2, 256], strides = [1, 1]} : vector<2x4096xf32> to vector<2x256xf32>
    %83 = vector.extract_strided_slice %69 {offsets = [0, 1664], sizes = [2, 256], strides = [1, 1]} : vector<2x4096xf32> to vector<2x256xf32>
    %84 = vector.extract_strided_slice %69 {offsets = [0, 1792], sizes = [2, 256], strides = [1, 1]} : vector<2x4096xf32> to vector<2x256xf32>
    %85 = vector.extract_strided_slice %69 {offsets = [0, 1920], sizes = [2, 256], strides = [1, 1]} : vector<2x4096xf32> to vector<2x256xf32>
    %c429_i32 = arith.constant 429 : i32
    %86 = tpu.dynamic_rotate %0 by %c429_i32 dim 1 : vector<2x4096xf32>, i32 -> vector<2x4096xf32>
    %87 = vector.extract_strided_slice %86 {offsets = [0, 0], sizes = [2, 256], strides = [1, 1]} : vector<2x4096xf32> to vector<2x256xf32>
    %88 = vector.extract_strided_slice %86 {offsets = [0, 128], sizes = [2, 256], strides = [1, 1]} : vector<2x4096xf32> to vector<2x256xf32>
    %89 = vector.extract_strided_slice %86 {offsets = [0, 256], sizes = [2, 256], strides = [1, 1]} : vector<2x4096xf32> to vector<2x256xf32>
    %90 = vector.extract_strided_slice %86 {offsets = [0, 384], sizes = [2, 256], strides = [1, 1]} : vector<2x4096xf32> to vector<2x256xf32>
    %91 = vector.extract_strided_slice %86 {offsets = [0, 512], sizes = [2, 256], strides = [1, 1]} : vector<2x4096xf32> to vector<2x256xf32>
    %92 = vector.extract_strided_slice %86 {offsets = [0, 640], sizes = [2, 256], strides = [1, 1]} : vector<2x4096xf32> to vector<2x256xf32>
    %93 = vector.extract_strided_slice %86 {offsets = [0, 768], sizes = [2, 256], strides = [1, 1]} : vector<2x4096xf32> to vector<2x256xf32>
    %94 = vector.extract_strided_slice %86 {offsets = [0, 896], sizes = [2, 256], strides = [1, 1]} : vector<2x4096xf32> to vector<2x256xf32>
    %95 = vector.extract_strided_slice %86 {offsets = [0, 1024], sizes = [2, 256], strides = [1, 1]} : vector<2x4096xf32> to vector<2x256xf32>
    %96 = vector.extract_strided_slice %86 {offsets = [0, 1152], sizes = [2, 256], strides = [1, 1]} : vector<2x4096xf32> to vector<2x256xf32>
    %97 = vector.extract_strided_slice %86 {offsets = [0, 1280], sizes = [2, 256], strides = [1, 1]} : vector<2x4096xf32> to vector<2x256xf32>
    %98 = vector.extract_strided_slice %86 {offsets = [0, 1408], sizes = [2, 256], strides = [1, 1]} : vector<2x4096xf32> to vector<2x256xf32>
    %99 = vector.extract_strided_slice %86 {offsets = [0, 1536], sizes = [2, 256], strides = [1, 1]} : vector<2x4096xf32> to vector<2x256xf32>
    %100 = vector.extract_strided_slice %86 {offsets = [0, 1664], sizes = [2, 256], strides = [1, 1]} : vector<2x4096xf32> to vector<2x256xf32>
    %101 = vector.extract_strided_slice %86 {offsets = [0, 1792], sizes = [2, 256], strides = [1, 1]} : vector<2x4096xf32> to vector<2x256xf32>
    %102 = vector.extract_strided_slice %86 {offsets = [0, 1920], sizes = [2, 256], strides = [1, 1]} : vector<2x4096xf32> to vector<2x256xf32>
    %c652_i32 = arith.constant 652 : i32
    %103 = tpu.dynamic_rotate %0 by %c652_i32 dim 1 : vector<2x4096xf32>, i32 -> vector<2x4096xf32>
    %104 = vector.extract_strided_slice %103 {offsets = [0, 0], sizes = [2, 256], strides = [1, 1]} : vector<2x4096xf32> to vector<2x256xf32>
    %105 = vector.extract_strided_slice %103 {offsets = [0, 128], sizes = [2, 256], strides = [1, 1]} : vector<2x4096xf32> to vector<2x256xf32>
    %106 = vector.extract_strided_slice %103 {offsets = [0, 256], sizes = [2, 256], strides = [1, 1]} : vector<2x4096xf32> to vector<2x256xf32>
    %107 = vector.extract_strided_slice %103 {offsets = [0, 384], sizes = [2, 256], strides = [1, 1]} : vector<2x4096xf32> to vector<2x256xf32>
    %108 = vector.extract_strided_slice %103 {offsets = [0, 512], sizes = [2, 256], strides = [1, 1]} : vector<2x4096xf32> to vector<2x256xf32>
    %109 = vector.extract_strided_slice %103 {offsets = [0, 640], sizes = [2, 256], strides = [1, 1]} : vector<2x4096xf32> to vector<2x256xf32>
    %110 = vector.extract_strided_slice %103 {offsets = [0, 768], sizes = [2, 256], strides = [1, 1]} : vector<2x4096xf32> to vector<2x256xf32>
    %111 = vector.extract_strided_slice %103 {offsets = [0, 896], sizes = [2, 256], strides = [1, 1]} : vector<2x4096xf32> to vector<2x256xf32>
    %112 = vector.extract_strided_slice %103 {offsets = [0, 1024], sizes = [2, 256], strides = [1, 1]} : vector<2x4096xf32> to vector<2x256xf32>
    %113 = vector.extract_strided_slice %103 {offsets = [0, 1152], sizes = [2, 256], strides = [1, 1]} : vector<2x4096xf32> to vector<2x256xf32>
    %114 = vector.extract_strided_slice %103 {offsets = [0, 1280], sizes = [2, 256], strides = [1, 1]} : vector<2x4096xf32> to vector<2x256xf32>
    %115 = vector.extract_strided_slice %103 {offsets = [0, 1408], sizes = [2, 256], strides = [1, 1]} : vector<2x4096xf32> to vector<2x256xf32>
    %116 = vector.extract_strided_slice %103 {offsets = [0, 1536], sizes = [2, 256], strides = [1, 1]} : vector<2x4096xf32> to vector<2x256xf32>
    %117 = vector.extract_strided_slice %103 {offsets = [0, 1664], sizes = [2, 256], strides = [1, 1]} : vector<2x4096xf32> to vector<2x256xf32>
    %118 = vector.extract_strided_slice %103 {offsets = [0, 1792], sizes = [2, 256], strides = [1, 1]} : vector<2x4096xf32> to vector<2x256xf32>
    %119 = vector.extract_strided_slice %103 {offsets = [0, 1920], sizes = [2, 256], strides = [1, 1]} : vector<2x4096xf32> to vector<2x256xf32>
    %c649_i32 = arith.constant 649 : i32
    %120 = tpu.dynamic_rotate %0 by %c649_i32 dim 1 : vector<2x4096xf32>, i32 -> vector<2x4096xf32>
    %121 = vector.extract_strided_slice %120 {offsets = [0, 0], sizes = [2, 256], strides = [1, 1]} : vector<2x4096xf32> to vector<2x256xf32>
    %122 = vector.extract_strided_slice %120 {offsets = [0, 128], sizes = [2, 256], strides = [1, 1]} : vector<2x4096xf32> to vector<2x256xf32>
    %123 = vector.extract_strided_slice %120 {offsets = [0, 256], sizes = [2, 256], strides = [1, 1]} : vector<2x4096xf32> to vector<2x256xf32>
    %124 = vector.extract_strided_slice %120 {offsets = [0, 384], sizes = [2, 256], strides = [1, 1]} : vector<2x4096xf32> to vector<2x256xf32>
    %125 = vector.extract_strided_slice %120 {offsets = [0, 512], sizes = [2, 256], strides = [1, 1]} : vector<2x4096xf32> to vector<2x256xf32>
    %126 = vector.extract_strided_slice %120 {offsets = [0, 640], sizes = [2, 256], strides = [1, 1]} : vector<2x4096xf32> to vector<2x256xf32>
    %127 = vector.extract_strided_slice %120 {offsets = [0, 768], sizes = [2, 256], strides = [1, 1]} : vector<2x4096xf32> to vector<2x256xf32>
    %128 = vector.extract_strided_slice %120 {offsets = [0, 896], sizes = [2, 256], strides = [1, 1]} : vector<2x4096xf32> to vector<2x256xf32>
    %129 = vector.extract_strided_slice %120 {offsets = [0, 1024], sizes = [2, 256], strides = [1, 1]} : vector<2x4096xf32> to vector<2x256xf32>
    %130 = vector.extract_strided_slice %120 {offsets = [0, 1152], sizes = [2, 256], strides = [1, 1]} : vector<2x4096xf32> to vector<2x256xf32>
    %131 = vector.extract_strided_slice %120 {offsets = [0, 1280], sizes = [2, 256], strides = [1, 1]} : vector<2x4096xf32> to vector<2x256xf32>
    %132 = vector.extract_strided_slice %120 {offsets = [0, 1408], sizes = [2, 256], strides = [1, 1]} : vector<2x4096xf32> to vector<2x256xf32>
    %133 = vector.extract_strided_slice %120 {offsets = [0, 1536], sizes = [2, 256], strides = [1, 1]} : vector<2x4096xf32> to vector<2x256xf32>
    %134 = vector.extract_strided_slice %120 {offsets = [0, 1664], sizes = [2, 256], strides = [1, 1]} : vector<2x4096xf32> to vector<2x256xf32>
    %135 = vector.extract_strided_slice %120 {offsets = [0, 1792], sizes = [2, 256], strides = [1, 1]} : vector<2x4096xf32> to vector<2x256xf32>
    %136 = vector.extract_strided_slice %120 {offsets = [0, 1920], sizes = [2, 256], strides = [1, 1]} : vector<2x4096xf32> to vector<2x256xf32>
    %c646_i32 = arith.constant 646 : i32
    %137 = tpu.dynamic_rotate %0 by %c646_i32 dim 1 : vector<2x4096xf32>, i32 -> vector<2x4096xf32>
    %138 = vector.extract_strided_slice %137 {offsets = [0, 0], sizes = [2, 256], strides = [1, 1]} : vector<2x4096xf32> to vector<2x256xf32>
    %139 = vector.extract_strided_slice %137 {offsets = [0, 128], sizes = [2, 256], strides = [1, 1]} : vector<2x4096xf32> to vector<2x256xf32>
    %140 = vector.extract_strided_slice %137 {offsets = [0, 256], sizes = [2, 256], strides = [1, 1]} : vector<2x4096xf32> to vector<2x256xf32>
    %141 = vector.extract_strided_slice %137 {offsets = [0, 384], sizes = [2, 256], strides = [1, 1]} : vector<2x4096xf32> to vector<2x256xf32>
    %142 = vector.extract_strided_slice %137 {offsets = [0, 512], sizes = [2, 256], strides = [1, 1]} : vector<2x4096xf32> to vector<2x256xf32>
    %143 = vector.extract_strided_slice %137 {offsets = [0, 640], sizes = [2, 256], strides = [1, 1]} : vector<2x4096xf32> to vector<2x256xf32>
    %144 = vector.extract_strided_slice %137 {offsets = [0, 768], sizes = [2, 256], strides = [1, 1]} : vector<2x4096xf32> to vector<2x256xf32>
    %145 = vector.extract_strided_slice %137 {offsets = [0, 896], sizes = [2, 256], strides = [1, 1]} : vector<2x4096xf32> to vector<2x256xf32>
    %146 = vector.extract_strided_slice %137 {offsets = [0, 1024], sizes = [2, 256], strides = [1, 1]} : vector<2x4096xf32> to vector<2x256xf32>
    %147 = vector.extract_strided_slice %137 {offsets = [0, 1152], sizes = [2, 256], strides = [1, 1]} : vector<2x4096xf32> to vector<2x256xf32>
    %148 = vector.extract_strided_slice %137 {offsets = [0, 1280], sizes = [2, 256], strides = [1, 1]} : vector<2x4096xf32> to vector<2x256xf32>
    %149 = vector.extract_strided_slice %137 {offsets = [0, 1408], sizes = [2, 256], strides = [1, 1]} : vector<2x4096xf32> to vector<2x256xf32>
    %150 = vector.extract_strided_slice %137 {offsets = [0, 1536], sizes = [2, 256], strides = [1, 1]} : vector<2x4096xf32> to vector<2x256xf32>
    %151 = vector.extract_strided_slice %137 {offsets = [0, 1664], sizes = [2, 256], strides = [1, 1]} : vector<2x4096xf32> to vector<2x256xf32>
    %152 = vector.extract_strided_slice %137 {offsets = [0, 1792], sizes = [2, 256], strides = [1, 1]} : vector<2x4096xf32> to vector<2x256xf32>
    %153 = vector.extract_strided_slice %137 {offsets = [0, 1920], sizes = [2, 256], strides = [1, 1]} : vector<2x4096xf32> to vector<2x256xf32>
    %c870_i32 = arith.constant 870 : i32
    %154 = tpu.dynamic_rotate %0 by %c870_i32 dim 1 : vector<2x4096xf32>, i32 -> vector<2x4096xf32>
    %155 = vector.extract_strided_slice %154 {offsets = [0, 0], sizes = [2, 256], strides = [1, 1]} : vector<2x4096xf32> to vector<2x256xf32>
    %156 = vector.extract_strided_slice %154 {offsets = [0, 128], sizes = [2, 256], strides = [1, 1]} : vector<2x4096xf32> to vector<2x256xf32>
    %157 = vector.extract_strided_slice %154 {offsets = [0, 256], sizes = [2, 256], strides = [1, 1]} : vector<2x4096xf32> to vector<2x256xf32>
    %158 = vector.extract_strided_slice %154 {offsets = [0, 384], sizes = [2, 256], strides = [1, 1]} : vector<2x4096xf32> to vector<2x256xf32>
    %159 = vector.extract_strided_slice %154 {offsets = [0, 512], sizes = [2, 256], strides = [1, 1]} : vector<2x4096xf32> to vector<2x256xf32>
    %160 = vector.extract_strided_slice %154 {offsets = [0, 640], sizes = [2, 256], strides = [1, 1]} : vector<2x4096xf32> to vector<2x256xf32>
    %161 = vector.extract_strided_slice %154 {offsets = [0, 768], sizes = [2, 256], strides = [1, 1]} : vector<2x4096xf32> to vector<2x256xf32>
    %162 = vector.extract_strided_slice %154 {offsets = [0, 896], sizes = [2, 256], strides = [1, 1]} : vector<2x4096xf32> to vector<2x256xf32>
    %163 = vector.extract_strided_slice %154 {offsets = [0, 1024], sizes = [2, 256], strides = [1, 1]} : vector<2x4096xf32> to vector<2x256xf32>
    %164 = vector.extract_strided_slice %154 {offsets = [0, 1152], sizes = [2, 256], strides = [1, 1]} : vector<2x4096xf32> to vector<2x256xf32>
    %165 = vector.extract_strided_slice %154 {offsets = [0, 1280], sizes = [2, 256], strides = [1, 1]} : vector<2x4096xf32> to vector<2x256xf32>
    %166 = vector.extract_strided_slice %154 {offsets = [0, 1408], sizes = [2, 256], strides = [1, 1]} : vector<2x4096xf32> to vector<2x256xf32>
    %167 = vector.extract_strided_slice %154 {offsets = [0, 1536], sizes = [2, 256], strides = [1, 1]} : vector<2x4096xf32> to vector<2x256xf32>
    %168 = vector.extract_strided_slice %154 {offsets = [0, 1664], sizes = [2, 256], strides = [1, 1]} : vector<2x4096xf32> to vector<2x256xf32>
    %169 = vector.extract_strided_slice %154 {offsets = [0, 1792], sizes = [2, 256], strides = [1, 1]} : vector<2x4096xf32> to vector<2x256xf32>
    %170 = vector.extract_strided_slice %154 {offsets = [0, 1920], sizes = [2, 256], strides = [1, 1]} : vector<2x4096xf32> to vector<2x256xf32>
    %c867_i32 = arith.constant 867 : i32
    %171 = tpu.dynamic_rotate %0 by %c867_i32 dim 1 : vector<2x4096xf32>, i32 -> vector<2x4096xf32>
    %172 = vector.extract_strided_slice %171 {offsets = [0, 0], sizes = [2, 256], strides = [1, 1]} : vector<2x4096xf32> to vector<2x256xf32>
    %173 = vector.extract_strided_slice %171 {offsets = [0, 128], sizes = [2, 256], strides = [1, 1]} : vector<2x4096xf32> to vector<2x256xf32>
    %174 = vector.extract_strided_slice %171 {offsets = [0, 256], sizes = [2, 256], strides = [1, 1]} : vector<2x4096xf32> to vector<2x256xf32>
    %175 = vector.extract_strided_slice %171 {offsets = [0, 384], sizes = [2, 256], strides = [1, 1]} : vector<2x4096xf32> to vector<2x256xf32>
    %176 = vector.extract_strided_slice %171 {offsets = [0, 512], sizes = [2, 256], strides = [1, 1]} : vector<2x4096xf32> to vector<2x256xf32>
    %177 = vector.extract_strided_slice %171 {offsets = [0, 640], sizes = [2, 256], strides = [1, 1]} : vector<2x4096xf32> to vector<2x256xf32>
    %178 = vector.extract_strided_slice %171 {offsets = [0, 768], sizes = [2, 256], strides = [1, 1]} : vector<2x4096xf32> to vector<2x256xf32>
    %179 = vector.extract_strided_slice %171 {offsets = [0, 896], sizes = [2, 256], strides = [1, 1]} : vector<2x4096xf32> to vector<2x256xf32>
    %180 = vector.extract_strided_slice %171 {offsets = [0, 1024], sizes = [2, 256], strides = [1, 1]} : vector<2x4096xf32> to vector<2x256xf32>
    %181 = vector.extract_strided_slice %171 {offsets = [0, 1152], sizes = [2, 256], strides = [1, 1]} : vector<2x4096xf32> to vector<2x256xf32>
    %182 = vector.extract_strided_slice %171 {offsets = [0, 1280], sizes = [2, 256], strides = [1, 1]} : vector<2x4096xf32> to vector<2x256xf32>
    %183 = vector.extract_strided_slice %171 {offsets = [0, 1408], sizes = [2, 256], strides = [1, 1]} : vector<2x4096xf32> to vector<2x256xf32>
    %184 = vector.extract_strided_slice %171 {offsets = [0, 1536], sizes = [2, 256], strides = [1, 1]} : vector<2x4096xf32> to vector<2x256xf32>
    %185 = vector.extract_strided_slice %171 {offsets = [0, 1664], sizes = [2, 256], strides = [1, 1]} : vector<2x4096xf32> to vector<2x256xf32>
    %186 = vector.extract_strided_slice %171 {offsets = [0, 1792], sizes = [2, 256], strides = [1, 1]} : vector<2x4096xf32> to vector<2x256xf32>
    %187 = vector.extract_strided_slice %171 {offsets = [0, 1920], sizes = [2, 256], strides = [1, 1]} : vector<2x4096xf32> to vector<2x256xf32>
    %c864_i32 = arith.constant 864 : i32
    %188 = tpu.dynamic_rotate %0 by %c864_i32 dim 1 : vector<2x4096xf32>, i32 -> vector<2x4096xf32>
    %189 = vector.extract_strided_slice %188 {offsets = [0, 0], sizes = [2, 256], strides = [1, 1]} : vector<2x4096xf32> to vector<2x256xf32>
    %190 = vector.extract_strided_slice %188 {offsets = [0, 128], sizes = [2, 256], strides = [1, 1]} : vector<2x4096xf32> to vector<2x256xf32>
    %191 = vector.extract_strided_slice %188 {offsets = [0, 256], sizes = [2, 256], strides = [1, 1]} : vector<2x4096xf32> to vector<2x256xf32>
    %192 = vector.extract_strided_slice %188 {offsets = [0, 384], sizes = [2, 256], strides = [1, 1]} : vector<2x4096xf32> to vector<2x256xf32>
    %193 = vector.extract_strided_slice %188 {offsets = [0, 512], sizes = [2, 256], strides = [1, 1]} : vector<2x4096xf32> to vector<2x256xf32>
    %194 = vector.extract_strided_slice %188 {offsets = [0, 640], sizes = [2, 256], strides = [1, 1]} : vector<2x4096xf32> to vector<2x256xf32>
    %195 = vector.extract_strided_slice %188 {offsets = [0, 768], sizes = [2, 256], strides = [1, 1]} : vector<2x4096xf32> to vector<2x256xf32>
    %196 = vector.extract_strided_slice %188 {offsets = [0, 896], sizes = [2, 256], strides = [1, 1]} : vector<2x4096xf32> to vector<2x256xf32>
    %197 = vector.extract_strided_slice %188 {offsets = [0, 1024], sizes = [2, 256], strides = [1, 1]} : vector<2x4096xf32> to vector<2x256xf32>
    %198 = vector.extract_strided_slice %188 {offsets = [0, 1152], sizes = [2, 256], strides = [1, 1]} : vector<2x4096xf32> to vector<2x256xf32>
    %199 = vector.extract_strided_slice %188 {offsets = [0, 1280], sizes = [2, 256], strides = [1, 1]} : vector<2x4096xf32> to vector<2x256xf32>
    %200 = vector.extract_strided_slice %188 {offsets = [0, 1408], sizes = [2, 256], strides = [1, 1]} : vector<2x4096xf32> to vector<2x256xf32>
    %201 = vector.extract_strided_slice %188 {offsets = [0, 1536], sizes = [2, 256], strides = [1, 1]} : vector<2x4096xf32> to vector<2x256xf32>
    %202 = vector.extract_strided_slice %188 {offsets = [0, 1664], sizes = [2, 256], strides = [1, 1]} : vector<2x4096xf32> to vector<2x256xf32>
    %203 = vector.extract_strided_slice %188 {offsets = [0, 1792], sizes = [2, 256], strides = [1, 1]} : vector<2x4096xf32> to vector<2x256xf32>
    %204 = vector.extract_strided_slice %188 {offsets = [0, 1920], sizes = [2, 256], strides = [1, 1]} : vector<2x4096xf32> to vector<2x256xf32>
    %c1088_i32 = arith.constant 1088 : i32
    %205 = tpu.dynamic_rotate %0 by %c1088_i32 dim 1 : vector<2x4096xf32>, i32 -> vector<2x4096xf32>
    %206 = vector.extract_strided_slice %205 {offsets = [0, 0], sizes = [2, 256], strides = [1, 1]} : vector<2x4096xf32> to vector<2x256xf32>
    %207 = vector.extract_strided_slice %205 {offsets = [0, 128], sizes = [2, 256], strides = [1, 1]} : vector<2x4096xf32> to vector<2x256xf32>
    %208 = vector.extract_strided_slice %205 {offsets = [0, 256], sizes = [2, 256], strides = [1, 1]} : vector<2x4096xf32> to vector<2x256xf32>
    %209 = vector.extract_strided_slice %205 {offsets = [0, 384], sizes = [2, 256], strides = [1, 1]} : vector<2x4096xf32> to vector<2x256xf32>
    %210 = vector.extract_strided_slice %205 {offsets = [0, 512], sizes = [2, 256], strides = [1, 1]} : vector<2x4096xf32> to vector<2x256xf32>
    %211 = vector.extract_strided_slice %205 {offsets = [0, 640], sizes = [2, 256], strides = [1, 1]} : vector<2x4096xf32> to vector<2x256xf32>
    %212 = vector.extract_strided_slice %205 {offsets = [0, 768], sizes = [2, 256], strides = [1, 1]} : vector<2x4096xf32> to vector<2x256xf32>
    %213 = vector.extract_strided_slice %205 {offsets = [0, 896], sizes = [2, 256], strides = [1, 1]} : vector<2x4096xf32> to vector<2x256xf32>
    %214 = vector.extract_strided_slice %205 {offsets = [0, 1024], sizes = [2, 256], strides = [1, 1]} : vector<2x4096xf32> to vector<2x256xf32>
    %215 = vector.extract_strided_slice %205 {offsets = [0, 1152], sizes = [2, 256], strides = [1, 1]} : vector<2x4096xf32> to vector<2x256xf32>
    %216 = vector.extract_strided_slice %205 {offsets = [0, 1280], sizes = [2, 256], strides = [1, 1]} : vector<2x4096xf32> to vector<2x256xf32>
    %217 = vector.extract_strided_slice %205 {offsets = [0, 1408], sizes = [2, 256], strides = [1, 1]} : vector<2x4096xf32> to vector<2x256xf32>
    %218 = vector.extract_strided_slice %205 {offsets = [0, 1536], sizes = [2, 256], strides = [1, 1]} : vector<2x4096xf32> to vector<2x256xf32>
    %219 = vector.extract_strided_slice %205 {offsets = [0, 1664], sizes = [2, 256], strides = [1, 1]} : vector<2x4096xf32> to vector<2x256xf32>
    %220 = vector.extract_strided_slice %205 {offsets = [0, 1792], sizes = [2, 256], strides = [1, 1]} : vector<2x4096xf32> to vector<2x256xf32>
    %221 = vector.extract_strided_slice %205 {offsets = [0, 1920], sizes = [2, 256], strides = [1, 1]} : vector<2x4096xf32> to vector<2x256xf32>
    %c1085_i32 = arith.constant 1085 : i32
    %222 = tpu.dynamic_rotate %0 by %c1085_i32 dim 1 : vector<2x4096xf32>, i32 -> vector<2x4096xf32>
    %223 = vector.extract_strided_slice %222 {offsets = [0, 0], sizes = [2, 256], strides = [1, 1]} : vector<2x4096xf32> to vector<2x256xf32>
    %224 = vector.extract_strided_slice %222 {offsets = [0, 128], sizes = [2, 256], strides = [1, 1]} : vector<2x4096xf32> to vector<2x256xf32>
    %225 = vector.extract_strided_slice %222 {offsets = [0, 256], sizes = [2, 256], strides = [1, 1]} : vector<2x4096xf32> to vector<2x256xf32>
    %226 = vector.extract_strided_slice %222 {offsets = [0, 384], sizes = [2, 256], strides = [1, 1]} : vector<2x4096xf32> to vector<2x256xf32>
    %227 = vector.extract_strided_slice %222 {offsets = [0, 512], sizes = [2, 256], strides = [1, 1]} : vector<2x4096xf32> to vector<2x256xf32>
    %228 = vector.extract_strided_slice %222 {offsets = [0, 640], sizes = [2, 256], strides = [1, 1]} : vector<2x4096xf32> to vector<2x256xf32>
    %229 = vector.extract_strided_slice %222 {offsets = [0, 768], sizes = [2, 256], strides = [1, 1]} : vector<2x4096xf32> to vector<2x256xf32>
    %230 = vector.extract_strided_slice %222 {offsets = [0, 896], sizes = [2, 256], strides = [1, 1]} : vector<2x4096xf32> to vector<2x256xf32>
    %231 = vector.extract_strided_slice %222 {offsets = [0, 1024], sizes = [2, 256], strides = [1, 1]} : vector<2x4096xf32> to vector<2x256xf32>
    %232 = vector.extract_strided_slice %222 {offsets = [0, 1152], sizes = [2, 256], strides = [1, 1]} : vector<2x4096xf32> to vector<2x256xf32>
    %233 = vector.extract_strided_slice %222 {offsets = [0, 1280], sizes = [2, 256], strides = [1, 1]} : vector<2x4096xf32> to vector<2x256xf32>
    %234 = vector.extract_strided_slice %222 {offsets = [0, 1408], sizes = [2, 256], strides = [1, 1]} : vector<2x4096xf32> to vector<2x256xf32>
    %235 = vector.extract_strided_slice %222 {offsets = [0, 1536], sizes = [2, 256], strides = [1, 1]} : vector<2x4096xf32> to vector<2x256xf32>
    %236 = vector.extract_strided_slice %222 {offsets = [0, 1664], sizes = [2, 256], strides = [1, 1]} : vector<2x4096xf32> to vector<2x256xf32>
    %237 = vector.extract_strided_slice %222 {offsets = [0, 1792], sizes = [2, 256], strides = [1, 1]} : vector<2x4096xf32> to vector<2x256xf32>
    %238 = vector.extract_strided_slice %222 {offsets = [0, 1920], sizes = [2, 256], strides = [1, 1]} : vector<2x4096xf32> to vector<2x256xf32>
    %c1082_i32 = arith.constant 1082 : i32
    %239 = tpu.dynamic_rotate %0 by %c1082_i32 dim 1 : vector<2x4096xf32>, i32 -> vector<2x4096xf32>
    %240 = vector.extract_strided_slice %239 {offsets = [0, 0], sizes = [2, 256], strides = [1, 1]} : vector<2x4096xf32> to vector<2x256xf32>
    %241 = vector.extract_strided_slice %239 {offsets = [0, 128], sizes = [2, 256], strides = [1, 1]} : vector<2x4096xf32> to vector<2x256xf32>
    %242 = vector.extract_strided_slice %239 {offsets = [0, 256], sizes = [2, 256], strides = [1, 1]} : vector<2x4096xf32> to vector<2x256xf32>
    %243 = vector.extract_strided_slice %239 {offsets = [0, 384], sizes = [2, 256], strides = [1, 1]} : vector<2x4096xf32> to vector<2x256xf32>
    %244 = vector.extract_strided_slice %239 {offsets = [0, 512], sizes = [2, 256], strides = [1, 1]} : vector<2x4096xf32> to vector<2x256xf32>
    %245 = vector.extract_strided_slice %239 {offsets = [0, 640], sizes = [2, 256], strides = [1, 1]} : vector<2x4096xf32> to vector<2x256xf32>
    %246 = vector.extract_strided_slice %239 {offsets = [0, 768], sizes = [2, 256], strides = [1, 1]} : vector<2x4096xf32> to vector<2x256xf32>
    %247 = vector.extract_strided_slice %239 {offsets = [0, 896], sizes = [2, 256], strides = [1, 1]} : vector<2x4096xf32> to vector<2x256xf32>
    %248 = vector.extract_strided_slice %239 {offsets = [0, 1024], sizes = [2, 256], strides = [1, 1]} : vector<2x4096xf32> to vector<2x256xf32>
    %249 = vector.extract_strided_slice %239 {offsets = [0, 1152], sizes = [2, 256], strides = [1, 1]} : vector<2x4096xf32> to vector<2x256xf32>
    %250 = vector.extract_strided_slice %239 {offsets = [0, 1280], sizes = [2, 256], strides = [1, 1]} : vector<2x4096xf32> to vector<2x256xf32>
    %251 = vector.extract_strided_slice %239 {offsets = [0, 1408], sizes = [2, 256], strides = [1, 1]} : vector<2x4096xf32> to vector<2x256xf32>
    %252 = vector.extract_strided_slice %239 {offsets = [0, 1536], sizes = [2, 256], strides = [1, 1]} : vector<2x4096xf32> to vector<2x256xf32>
    %253 = vector.extract_strided_slice %239 {offsets = [0, 1664], sizes = [2, 256], strides = [1, 1]} : vector<2x4096xf32> to vector<2x256xf32>
    %254 = vector.extract_strided_slice %239 {offsets = [0, 1792], sizes = [2, 256], strides = [1, 1]} : vector<2x4096xf32> to vector<2x256xf32>
    %255 = vector.extract_strided_slice %239 {offsets = [0, 1920], sizes = [2, 256], strides = [1, 1]} : vector<2x4096xf32> to vector<2x256xf32>
    %c1305_i32 = arith.constant 1305 : i32
    %256 = tpu.dynamic_rotate %0 by %c1305_i32 dim 1 : vector<2x4096xf32>, i32 -> vector<2x4096xf32>
    %257 = vector.extract_strided_slice %256 {offsets = [0, 0], sizes = [2, 256], strides = [1, 1]} : vector<2x4096xf32> to vector<2x256xf32>
    %258 = vector.extract_strided_slice %256 {offsets = [0, 128], sizes = [2, 256], strides = [1, 1]} : vector<2x4096xf32> to vector<2x256xf32>
    %259 = vector.extract_strided_slice %256 {offsets = [0, 256], sizes = [2, 256], strides = [1, 1]} : vector<2x4096xf32> to vector<2x256xf32>
    %260 = vector.extract_strided_slice %256 {offsets = [0, 384], sizes = [2, 256], strides = [1, 1]} : vector<2x4096xf32> to vector<2x256xf32>
    %261 = vector.extract_strided_slice %256 {offsets = [0, 512], sizes = [2, 256], strides = [1, 1]} : vector<2x4096xf32> to vector<2x256xf32>
    %262 = vector.extract_strided_slice %256 {offsets = [0, 640], sizes = [2, 256], strides = [1, 1]} : vector<2x4096xf32> to vector<2x256xf32>
    %263 = vector.extract_strided_slice %256 {offsets = [0, 768], sizes = [2, 256], strides = [1, 1]} : vector<2x4096xf32> to vector<2x256xf32>
    %264 = vector.extract_strided_slice %256 {offsets = [0, 896], sizes = [2, 256], strides = [1, 1]} : vector<2x4096xf32> to vector<2x256xf32>
    %265 = vector.extract_strided_slice %256 {offsets = [0, 1024], sizes = [2, 256], strides = [1, 1]} : vector<2x4096xf32> to vector<2x256xf32>
    %266 = vector.extract_strided_slice %256 {offsets = [0, 1152], sizes = [2, 256], strides = [1, 1]} : vector<2x4096xf32> to vector<2x256xf32>
    %267 = vector.extract_strided_slice %256 {offsets = [0, 1280], sizes = [2, 256], strides = [1, 1]} : vector<2x4096xf32> to vector<2x256xf32>
    %268 = vector.extract_strided_slice %256 {offsets = [0, 1408], sizes = [2, 256], strides = [1, 1]} : vector<2x4096xf32> to vector<2x256xf32>
    %269 = vector.extract_strided_slice %256 {offsets = [0, 1536], sizes = [2, 256], strides = [1, 1]} : vector<2x4096xf32> to vector<2x256xf32>
    %270 = vector.extract_strided_slice %256 {offsets = [0, 1664], sizes = [2, 256], strides = [1, 1]} : vector<2x4096xf32> to vector<2x256xf32>
    %271 = vector.extract_strided_slice %256 {offsets = [0, 1792], sizes = [2, 256], strides = [1, 1]} : vector<2x4096xf32> to vector<2x256xf32>
    %272 = vector.extract_strided_slice %256 {offsets = [0, 1920], sizes = [2, 256], strides = [1, 1]} : vector<2x4096xf32> to vector<2x256xf32>
    %c1302_i32 = arith.constant 1302 : i32
    %273 = tpu.dynamic_rotate %0 by %c1302_i32 dim 1 : vector<2x4096xf32>, i32 -> vector<2x4096xf32>
    %274 = vector.extract_strided_slice %273 {offsets = [0, 0], sizes = [2, 256], strides = [1, 1]} : vector<2x4096xf32> to vector<2x256xf32>
    %275 = vector.extract_strided_slice %273 {offsets = [0, 128], sizes = [2, 256], strides = [1, 1]} : vector<2x4096xf32> to vector<2x256xf32>
    %276 = vector.extract_strided_slice %273 {offsets = [0, 256], sizes = [2, 256], strides = [1, 1]} : vector<2x4096xf32> to vector<2x256xf32>
    %277 = vector.extract_strided_slice %273 {offsets = [0, 384], sizes = [2, 256], strides = [1, 1]} : vector<2x4096xf32> to vector<2x256xf32>
    %278 = vector.extract_strided_slice %273 {offsets = [0, 512], sizes = [2, 256], strides = [1, 1]} : vector<2x4096xf32> to vector<2x256xf32>
    %279 = vector.extract_strided_slice %273 {offsets = [0, 640], sizes = [2, 256], strides = [1, 1]} : vector<2x4096xf32> to vector<2x256xf32>
    %280 = vector.extract_strided_slice %273 {offsets = [0, 768], sizes = [2, 256], strides = [1, 1]} : vector<2x4096xf32> to vector<2x256xf32>
    %281 = vector.extract_strided_slice %273 {offsets = [0, 896], sizes = [2, 256], strides = [1, 1]} : vector<2x4096xf32> to vector<2x256xf32>
    %282 = vector.extract_strided_slice %273 {offsets = [0, 1024], sizes = [2, 256], strides = [1, 1]} : vector<2x4096xf32> to vector<2x256xf32>
    %283 = vector.extract_strided_slice %273 {offsets = [0, 1152], sizes = [2, 256], strides = [1, 1]} : vector<2x4096xf32> to vector<2x256xf32>
    %284 = vector.extract_strided_slice %273 {offsets = [0, 1280], sizes = [2, 256], strides = [1, 1]} : vector<2x4096xf32> to vector<2x256xf32>
    %285 = vector.extract_strided_slice %273 {offsets = [0, 1408], sizes = [2, 256], strides = [1, 1]} : vector<2x4096xf32> to vector<2x256xf32>
    %286 = vector.extract_strided_slice %273 {offsets = [0, 1536], sizes = [2, 256], strides = [1, 1]} : vector<2x4096xf32> to vector<2x256xf32>
    %287 = vector.extract_strided_slice %273 {offsets = [0, 1664], sizes = [2, 256], strides = [1, 1]} : vector<2x4096xf32> to vector<2x256xf32>
    %288 = vector.extract_strided_slice %273 {offsets = [0, 1792], sizes = [2, 256], strides = [1, 1]} : vector<2x4096xf32> to vector<2x256xf32>
    %289 = vector.extract_strided_slice %273 {offsets = [0, 1920], sizes = [2, 256], strides = [1, 1]} : vector<2x4096xf32> to vector<2x256xf32>
    %c1299_i32 = arith.constant 1299 : i32
    %290 = tpu.dynamic_rotate %0 by %c1299_i32 dim 1 : vector<2x4096xf32>, i32 -> vector<2x4096xf32>
    %291 = vector.extract_strided_slice %290 {offsets = [0, 0], sizes = [2, 256], strides = [1, 1]} : vector<2x4096xf32> to vector<2x256xf32>
    %292 = vector.extract_strided_slice %290 {offsets = [0, 128], sizes = [2, 256], strides = [1, 1]} : vector<2x4096xf32> to vector<2x256xf32>
    %293 = vector.extract_strided_slice %290 {offsets = [0, 256], sizes = [2, 256], strides = [1, 1]} : vector<2x4096xf32> to vector<2x256xf32>
    %294 = vector.extract_strided_slice %290 {offsets = [0, 384], sizes = [2, 256], strides = [1, 1]} : vector<2x4096xf32> to vector<2x256xf32>
    %295 = vector.extract_strided_slice %290 {offsets = [0, 512], sizes = [2, 256], strides = [1, 1]} : vector<2x4096xf32> to vector<2x256xf32>
    %296 = vector.extract_strided_slice %290 {offsets = [0, 640], sizes = [2, 256], strides = [1, 1]} : vector<2x4096xf32> to vector<2x256xf32>
    %297 = vector.extract_strided_slice %290 {offsets = [0, 768], sizes = [2, 256], strides = [1, 1]} : vector<2x4096xf32> to vector<2x256xf32>
    %298 = vector.extract_strided_slice %290 {offsets = [0, 896], sizes = [2, 256], strides = [1, 1]} : vector<2x4096xf32> to vector<2x256xf32>
    %299 = vector.extract_strided_slice %290 {offsets = [0, 1024], sizes = [2, 256], strides = [1, 1]} : vector<2x4096xf32> to vector<2x256xf32>
    %300 = vector.extract_strided_slice %290 {offsets = [0, 1152], sizes = [2, 256], strides = [1, 1]} : vector<2x4096xf32> to vector<2x256xf32>
    %301 = vector.extract_strided_slice %290 {offsets = [0, 1280], sizes = [2, 256], strides = [1, 1]} : vector<2x4096xf32> to vector<2x256xf32>
    %302 = vector.extract_strided_slice %290 {offsets = [0, 1408], sizes = [2, 256], strides = [1, 1]} : vector<2x4096xf32> to vector<2x256xf32>
    %303 = vector.extract_strided_slice %290 {offsets = [0, 1536], sizes = [2, 256], strides = [1, 1]} : vector<2x4096xf32> to vector<2x256xf32>
    %304 = vector.extract_strided_slice %290 {offsets = [0, 1664], sizes = [2, 256], strides = [1, 1]} : vector<2x4096xf32> to vector<2x256xf32>
    %305 = vector.extract_strided_slice %290 {offsets = [0, 1792], sizes = [2, 256], strides = [1, 1]} : vector<2x4096xf32> to vector<2x256xf32>
    %306 = vector.extract_strided_slice %290 {offsets = [0, 1920], sizes = [2, 256], strides = [1, 1]} : vector<2x4096xf32> to vector<2x256xf32>
    %c1523_i32 = arith.constant 1523 : i32
    %307 = tpu.dynamic_rotate %0 by %c1523_i32 dim 1 : vector<2x4096xf32>, i32 -> vector<2x4096xf32>
    %308 = vector.extract_strided_slice %307 {offsets = [0, 0], sizes = [2, 256], strides = [1, 1]} : vector<2x4096xf32> to vector<2x256xf32>
    %309 = vector.extract_strided_slice %307 {offsets = [0, 128], sizes = [2, 256], strides = [1, 1]} : vector<2x4096xf32> to vector<2x256xf32>
    %310 = vector.extract_strided_slice %307 {offsets = [0, 256], sizes = [2, 256], strides = [1, 1]} : vector<2x4096xf32> to vector<2x256xf32>
    %311 = vector.extract_strided_slice %307 {offsets = [0, 384], sizes = [2, 256], strides = [1, 1]} : vector<2x4096xf32> to vector<2x256xf32>
    %312 = vector.extract_strided_slice %307 {offsets = [0, 512], sizes = [2, 256], strides = [1, 1]} : vector<2x4096xf32> to vector<2x256xf32>
    %313 = vector.extract_strided_slice %307 {offsets = [0, 640], sizes = [2, 256], strides = [1, 1]} : vector<2x4096xf32> to vector<2x256xf32>
    %314 = vector.extract_strided_slice %307 {offsets = [0, 768], sizes = [2, 256], strides = [1, 1]} : vector<2x4096xf32> to vector<2x256xf32>
    %315 = vector.extract_strided_slice %307 {offsets = [0, 896], sizes = [2, 256], strides = [1, 1]} : vector<2x4096xf32> to vector<2x256xf32>
    %316 = vector.extract_strided_slice %307 {offsets = [0, 1024], sizes = [2, 256], strides = [1, 1]} : vector<2x4096xf32> to vector<2x256xf32>
    %317 = vector.extract_strided_slice %307 {offsets = [0, 1152], sizes = [2, 256], strides = [1, 1]} : vector<2x4096xf32> to vector<2x256xf32>
    %318 = vector.extract_strided_slice %307 {offsets = [0, 1280], sizes = [2, 256], strides = [1, 1]} : vector<2x4096xf32> to vector<2x256xf32>
    %319 = vector.extract_strided_slice %307 {offsets = [0, 1408], sizes = [2, 256], strides = [1, 1]} : vector<2x4096xf32> to vector<2x256xf32>
    %320 = vector.extract_strided_slice %307 {offsets = [0, 1536], sizes = [2, 256], strides = [1, 1]} : vector<2x4096xf32> to vector<2x256xf32>
    %321 = vector.extract_strided_slice %307 {offsets = [0, 1664], sizes = [2, 256], strides = [1, 1]} : vector<2x4096xf32> to vector<2x256xf32>
    %322 = vector.extract_strided_slice %307 {offsets = [0, 1792], sizes = [2, 256], strides = [1, 1]} : vector<2x4096xf32> to vector<2x256xf32>
    %323 = vector.extract_strided_slice %307 {offsets = [0, 1920], sizes = [2, 256], strides = [1, 1]} : vector<2x4096xf32> to vector<2x256xf32>
    %c1520_i32 = arith.constant 1520 : i32
    %324 = tpu.dynamic_rotate %0 by %c1520_i32 dim 1 : vector<2x4096xf32>, i32 -> vector<2x4096xf32>
    %325 = vector.extract_strided_slice %324 {offsets = [0, 0], sizes = [2, 256], strides = [1, 1]} : vector<2x4096xf32> to vector<2x256xf32>
    %326 = vector.extract_strided_slice %324 {offsets = [0, 128], sizes = [2, 256], strides = [1, 1]} : vector<2x4096xf32> to vector<2x256xf32>
    %327 = vector.extract_strided_slice %324 {offsets = [0, 256], sizes = [2, 256], strides = [1, 1]} : vector<2x4096xf32> to vector<2x256xf32>
    %328 = vector.extract_strided_slice %324 {offsets = [0, 384], sizes = [2, 256], strides = [1, 1]} : vector<2x4096xf32> to vector<2x256xf32>
    %329 = vector.extract_strided_slice %324 {offsets = [0, 512], sizes = [2, 256], strides = [1, 1]} : vector<2x4096xf32> to vector<2x256xf32>
    %330 = vector.extract_strided_slice %324 {offsets = [0, 640], sizes = [2, 256], strides = [1, 1]} : vector<2x4096xf32> to vector<2x256xf32>
    %331 = vector.extract_strided_slice %324 {offsets = [0, 768], sizes = [2, 256], strides = [1, 1]} : vector<2x4096xf32> to vector<2x256xf32>
    %332 = vector.extract_strided_slice %324 {offsets = [0, 896], sizes = [2, 256], strides = [1, 1]} : vector<2x4096xf32> to vector<2x256xf32>
    %333 = vector.extract_strided_slice %324 {offsets = [0, 1024], sizes = [2, 256], strides = [1, 1]} : vector<2x4096xf32> to vector<2x256xf32>
    %334 = vector.extract_strided_slice %324 {offsets = [0, 1152], sizes = [2, 256], strides = [1, 1]} : vector<2x4096xf32> to vector<2x256xf32>
    %335 = vector.extract_strided_slice %324 {offsets = [0, 1280], sizes = [2, 256], strides = [1, 1]} : vector<2x4096xf32> to vector<2x256xf32>
    %336 = vector.extract_strided_slice %324 {offsets = [0, 1408], sizes = [2, 256], strides = [1, 1]} : vector<2x4096xf32> to vector<2x256xf32>
    %337 = vector.extract_strided_slice %324 {offsets = [0, 1536], sizes = [2, 256], strides = [1, 1]} : vector<2x4096xf32> to vector<2x256xf32>
    %338 = vector.extract_strided_slice %324 {offsets = [0, 1664], sizes = [2, 256], strides = [1, 1]} : vector<2x4096xf32> to vector<2x256xf32>
    %339 = vector.extract_strided_slice %324 {offsets = [0, 1792], sizes = [2, 256], strides = [1, 1]} : vector<2x4096xf32> to vector<2x256xf32>
    %340 = vector.extract_strided_slice %324 {offsets = [0, 1920], sizes = [2, 256], strides = [1, 1]} : vector<2x4096xf32> to vector<2x256xf32>
    %c1517_i32 = arith.constant 1517 : i32
    %341 = tpu.dynamic_rotate %0 by %c1517_i32 dim 1 : vector<2x4096xf32>, i32 -> vector<2x4096xf32>
    %342 = vector.extract_strided_slice %341 {offsets = [0, 0], sizes = [2, 256], strides = [1, 1]} : vector<2x4096xf32> to vector<2x256xf32>
    %343 = vector.extract_strided_slice %341 {offsets = [0, 128], sizes = [2, 256], strides = [1, 1]} : vector<2x4096xf32> to vector<2x256xf32>
    %344 = vector.extract_strided_slice %341 {offsets = [0, 256], sizes = [2, 256], strides = [1, 1]} : vector<2x4096xf32> to vector<2x256xf32>
    %345 = vector.extract_strided_slice %341 {offsets = [0, 384], sizes = [2, 256], strides = [1, 1]} : vector<2x4096xf32> to vector<2x256xf32>
    %346 = vector.extract_strided_slice %341 {offsets = [0, 512], sizes = [2, 256], strides = [1, 1]} : vector<2x4096xf32> to vector<2x256xf32>
    %347 = vector.extract_strided_slice %341 {offsets = [0, 640], sizes = [2, 256], strides = [1, 1]} : vector<2x4096xf32> to vector<2x256xf32>
    %348 = vector.extract_strided_slice %341 {offsets = [0, 768], sizes = [2, 256], strides = [1, 1]} : vector<2x4096xf32> to vector<2x256xf32>
    %349 = vector.extract_strided_slice %341 {offsets = [0, 896], sizes = [2, 256], strides = [1, 1]} : vector<2x4096xf32> to vector<2x256xf32>
    %350 = vector.extract_strided_slice %341 {offsets = [0, 1024], sizes = [2, 256], strides = [1, 1]} : vector<2x4096xf32> to vector<2x256xf32>
    %351 = vector.extract_strided_slice %341 {offsets = [0, 1152], sizes = [2, 256], strides = [1, 1]} : vector<2x4096xf32> to vector<2x256xf32>
    %352 = vector.extract_strided_slice %341 {offsets = [0, 1280], sizes = [2, 256], strides = [1, 1]} : vector<2x4096xf32> to vector<2x256xf32>
    %353 = vector.extract_strided_slice %341 {offsets = [0, 1408], sizes = [2, 256], strides = [1, 1]} : vector<2x4096xf32> to vector<2x256xf32>
    %354 = vector.extract_strided_slice %341 {offsets = [0, 1536], sizes = [2, 256], strides = [1, 1]} : vector<2x4096xf32> to vector<2x256xf32>
    %355 = vector.extract_strided_slice %341 {offsets = [0, 1664], sizes = [2, 256], strides = [1, 1]} : vector<2x4096xf32> to vector<2x256xf32>
    %356 = vector.extract_strided_slice %341 {offsets = [0, 1792], sizes = [2, 256], strides = [1, 1]} : vector<2x4096xf32> to vector<2x256xf32>
    %357 = vector.extract_strided_slice %341 {offsets = [0, 1920], sizes = [2, 256], strides = [1, 1]} : vector<2x4096xf32> to vector<2x256xf32>
    %c1740_i32 = arith.constant 1740 : i32
    %358 = tpu.dynamic_rotate %0 by %c1740_i32 dim 1 : vector<2x4096xf32>, i32 -> vector<2x4096xf32>
    %359 = vector.extract_strided_slice %358 {offsets = [0, 0], sizes = [2, 256], strides = [1, 1]} : vector<2x4096xf32> to vector<2x256xf32>
    %360 = vector.extract_strided_slice %358 {offsets = [0, 128], sizes = [2, 256], strides = [1, 1]} : vector<2x4096xf32> to vector<2x256xf32>
    %361 = vector.extract_strided_slice %358 {offsets = [0, 256], sizes = [2, 256], strides = [1, 1]} : vector<2x4096xf32> to vector<2x256xf32>
    %362 = vector.extract_strided_slice %358 {offsets = [0, 384], sizes = [2, 256], strides = [1, 1]} : vector<2x4096xf32> to vector<2x256xf32>
    %363 = vector.extract_strided_slice %358 {offsets = [0, 512], sizes = [2, 256], strides = [1, 1]} : vector<2x4096xf32> to vector<2x256xf32>
    %364 = vector.extract_strided_slice %358 {offsets = [0, 640], sizes = [2, 256], strides = [1, 1]} : vector<2x4096xf32> to vector<2x256xf32>
    %365 = vector.extract_strided_slice %358 {offsets = [0, 768], sizes = [2, 256], strides = [1, 1]} : vector<2x4096xf32> to vector<2x256xf32>
    %366 = vector.extract_strided_slice %358 {offsets = [0, 896], sizes = [2, 256], strides = [1, 1]} : vector<2x4096xf32> to vector<2x256xf32>
    %367 = vector.extract_strided_slice %358 {offsets = [0, 1024], sizes = [2, 256], strides = [1, 1]} : vector<2x4096xf32> to vector<2x256xf32>
    %368 = vector.extract_strided_slice %358 {offsets = [0, 1152], sizes = [2, 256], strides = [1, 1]} : vector<2x4096xf32> to vector<2x256xf32>
    %369 = vector.extract_strided_slice %358 {offsets = [0, 1280], sizes = [2, 256], strides = [1, 1]} : vector<2x4096xf32> to vector<2x256xf32>
    %370 = vector.extract_strided_slice %358 {offsets = [0, 1408], sizes = [2, 256], strides = [1, 1]} : vector<2x4096xf32> to vector<2x256xf32>
    %371 = vector.extract_strided_slice %358 {offsets = [0, 1536], sizes = [2, 256], strides = [1, 1]} : vector<2x4096xf32> to vector<2x256xf32>
    %372 = vector.extract_strided_slice %358 {offsets = [0, 1664], sizes = [2, 256], strides = [1, 1]} : vector<2x4096xf32> to vector<2x256xf32>
    %373 = vector.extract_strided_slice %358 {offsets = [0, 1792], sizes = [2, 256], strides = [1, 1]} : vector<2x4096xf32> to vector<2x256xf32>
    %374 = vector.extract_strided_slice %358 {offsets = [0, 1920], sizes = [2, 256], strides = [1, 1]} : vector<2x4096xf32> to vector<2x256xf32>
    %c1737_i32 = arith.constant 1737 : i32
    %375 = tpu.dynamic_rotate %0 by %c1737_i32 dim 1 : vector<2x4096xf32>, i32 -> vector<2x4096xf32>
    %376 = vector.extract_strided_slice %375 {offsets = [0, 0], sizes = [2, 256], strides = [1, 1]} : vector<2x4096xf32> to vector<2x256xf32>
    %377 = vector.extract_strided_slice %375 {offsets = [0, 128], sizes = [2, 256], strides = [1, 1]} : vector<2x4096xf32> to vector<2x256xf32>
    %378 = vector.extract_strided_slice %375 {offsets = [0, 256], sizes = [2, 256], strides = [1, 1]} : vector<2x4096xf32> to vector<2x256xf32>
    %379 = vector.extract_strided_slice %375 {offsets = [0, 384], sizes = [2, 256], strides = [1, 1]} : vector<2x4096xf32> to vector<2x256xf32>
    %380 = vector.extract_strided_slice %375 {offsets = [0, 512], sizes = [2, 256], strides = [1, 1]} : vector<2x4096xf32> to vector<2x256xf32>
    %381 = vector.extract_strided_slice %375 {offsets = [0, 640], sizes = [2, 256], strides = [1, 1]} : vector<2x4096xf32> to vector<2x256xf32>
    %382 = vector.extract_strided_slice %375 {offsets = [0, 768], sizes = [2, 256], strides = [1, 1]} : vector<2x4096xf32> to vector<2x256xf32>
    %383 = vector.extract_strided_slice %375 {offsets = [0, 896], sizes = [2, 256], strides = [1, 1]} : vector<2x4096xf32> to vector<2x256xf32>
    %384 = vector.extract_strided_slice %375 {offsets = [0, 1024], sizes = [2, 256], strides = [1, 1]} : vector<2x4096xf32> to vector<2x256xf32>
    %385 = vector.extract_strided_slice %375 {offsets = [0, 1152], sizes = [2, 256], strides = [1, 1]} : vector<2x4096xf32> to vector<2x256xf32>
    %386 = vector.extract_strided_slice %375 {offsets = [0, 1280], sizes = [2, 256], strides = [1, 1]} : vector<2x4096xf32> to vector<2x256xf32>
    %387 = vector.extract_strided_slice %375 {offsets = [0, 1408], sizes = [2, 256], strides = [1, 1]} : vector<2x4096xf32> to vector<2x256xf32>
    %388 = vector.extract_strided_slice %375 {offsets = [0, 1536], sizes = [2, 256], strides = [1, 1]} : vector<2x4096xf32> to vector<2x256xf32>
    %389 = vector.extract_strided_slice %375 {offsets = [0, 1664], sizes = [2, 256], strides = [1, 1]} : vector<2x4096xf32> to vector<2x256xf32>
    %390 = vector.extract_strided_slice %375 {offsets = [0, 1792], sizes = [2, 256], strides = [1, 1]} : vector<2x4096xf32> to vector<2x256xf32>
    %391 = vector.extract_strided_slice %375 {offsets = [0, 1920], sizes = [2, 256], strides = [1, 1]} : vector<2x4096xf32> to vector<2x256xf32>
    %c1734_i32 = arith.constant 1734 : i32
    %392 = tpu.dynamic_rotate %0 by %c1734_i32 dim 1 : vector<2x4096xf32>, i32 -> vector<2x4096xf32>
    %393 = vector.extract_strided_slice %392 {offsets = [0, 0], sizes = [2, 256], strides = [1, 1]} : vector<2x4096xf32> to vector<2x256xf32>
    %394 = vector.extract_strided_slice %392 {offsets = [0, 128], sizes = [2, 256], strides = [1, 1]} : vector<2x4096xf32> to vector<2x256xf32>
    %395 = vector.extract_strided_slice %392 {offsets = [0, 256], sizes = [2, 256], strides = [1, 1]} : vector<2x4096xf32> to vector<2x256xf32>
    %396 = vector.extract_strided_slice %392 {offsets = [0, 384], sizes = [2, 256], strides = [1, 1]} : vector<2x4096xf32> to vector<2x256xf32>
    %397 = vector.extract_strided_slice %392 {offsets = [0, 512], sizes = [2, 256], strides = [1, 1]} : vector<2x4096xf32> to vector<2x256xf32>
    %398 = vector.extract_strided_slice %392 {offsets = [0, 640], sizes = [2, 256], strides = [1, 1]} : vector<2x4096xf32> to vector<2x256xf32>
    %399 = vector.extract_strided_slice %392 {offsets = [0, 768], sizes = [2, 256], strides = [1, 1]} : vector<2x4096xf32> to vector<2x256xf32>
    %400 = vector.extract_strided_slice %392 {offsets = [0, 896], sizes = [2, 256], strides = [1, 1]} : vector<2x4096xf32> to vector<2x256xf32>
    %401 = vector.extract_strided_slice %392 {offsets = [0, 1024], sizes = [2, 256], strides = [1, 1]} : vector<2x4096xf32> to vector<2x256xf32>
    %402 = vector.extract_strided_slice %392 {offsets = [0, 1152], sizes = [2, 256], strides = [1, 1]} : vector<2x4096xf32> to vector<2x256xf32>
    %403 = vector.extract_strided_slice %392 {offsets = [0, 1280], sizes = [2, 256], strides = [1, 1]} : vector<2x4096xf32> to vector<2x256xf32>
    %404 = vector.extract_strided_slice %392 {offsets = [0, 1408], sizes = [2, 256], strides = [1, 1]} : vector<2x4096xf32> to vector<2x256xf32>
    %405 = vector.extract_strided_slice %392 {offsets = [0, 1536], sizes = [2, 256], strides = [1, 1]} : vector<2x4096xf32> to vector<2x256xf32>
    %406 = vector.extract_strided_slice %392 {offsets = [0, 1664], sizes = [2, 256], strides = [1, 1]} : vector<2x4096xf32> to vector<2x256xf32>
    %407 = vector.extract_strided_slice %392 {offsets = [0, 1792], sizes = [2, 256], strides = [1, 1]} : vector<2x4096xf32> to vector<2x256xf32>
    %408 = vector.extract_strided_slice %392 {offsets = [0, 1920], sizes = [2, 256], strides = [1, 1]} : vector<2x4096xf32> to vector<2x256xf32>
    %c1958_i32 = arith.constant 1958 : i32
    %409 = tpu.dynamic_rotate %0 by %c1958_i32 dim 1 : vector<2x4096xf32>, i32 -> vector<2x4096xf32>
    %410 = vector.extract_strided_slice %409 {offsets = [0, 0], sizes = [2, 256], strides = [1, 1]} : vector<2x4096xf32> to vector<2x256xf32>
    %411 = vector.extract_strided_slice %409 {offsets = [0, 128], sizes = [2, 256], strides = [1, 1]} : vector<2x4096xf32> to vector<2x256xf32>
    %412 = vector.extract_strided_slice %409 {offsets = [0, 256], sizes = [2, 256], strides = [1, 1]} : vector<2x4096xf32> to vector<2x256xf32>
    %413 = vector.extract_strided_slice %409 {offsets = [0, 384], sizes = [2, 256], strides = [1, 1]} : vector<2x4096xf32> to vector<2x256xf32>
    %414 = vector.extract_strided_slice %409 {offsets = [0, 512], sizes = [2, 256], strides = [1, 1]} : vector<2x4096xf32> to vector<2x256xf32>
    %415 = vector.extract_strided_slice %409 {offsets = [0, 640], sizes = [2, 256], strides = [1, 1]} : vector<2x4096xf32> to vector<2x256xf32>
    %416 = vector.extract_strided_slice %409 {offsets = [0, 768], sizes = [2, 256], strides = [1, 1]} : vector<2x4096xf32> to vector<2x256xf32>
    %417 = vector.extract_strided_slice %409 {offsets = [0, 896], sizes = [2, 256], strides = [1, 1]} : vector<2x4096xf32> to vector<2x256xf32>
    %418 = vector.extract_strided_slice %409 {offsets = [0, 1024], sizes = [2, 256], strides = [1, 1]} : vector<2x4096xf32> to vector<2x256xf32>
    %419 = vector.extract_strided_slice %409 {offsets = [0, 1152], sizes = [2, 256], strides = [1, 1]} : vector<2x4096xf32> to vector<2x256xf32>
    %420 = vector.extract_strided_slice %409 {offsets = [0, 1280], sizes = [2, 256], strides = [1, 1]} : vector<2x4096xf32> to vector<2x256xf32>
    %421 = vector.extract_strided_slice %409 {offsets = [0, 1408], sizes = [2, 256], strides = [1, 1]} : vector<2x4096xf32> to vector<2x256xf32>
    %422 = vector.extract_strided_slice %409 {offsets = [0, 1536], sizes = [2, 256], strides = [1, 1]} : vector<2x4096xf32> to vector<2x256xf32>
    %423 = vector.extract_strided_slice %409 {offsets = [0, 1664], sizes = [2, 256], strides = [1, 1]} : vector<2x4096xf32> to vector<2x256xf32>
    %424 = vector.extract_strided_slice %409 {offsets = [0, 1792], sizes = [2, 256], strides = [1, 1]} : vector<2x4096xf32> to vector<2x256xf32>
    %425 = vector.extract_strided_slice %409 {offsets = [0, 1920], sizes = [2, 256], strides = [1, 1]} : vector<2x4096xf32> to vector<2x256xf32>
    %c1955_i32 = arith.constant 1955 : i32
    %426 = tpu.dynamic_rotate %0 by %c1955_i32 dim 1 : vector<2x4096xf32>, i32 -> vector<2x4096xf32>
    %427 = vector.extract_strided_slice %426 {offsets = [0, 0], sizes = [2, 256], strides = [1, 1]} : vector<2x4096xf32> to vector<2x256xf32>
    %428 = vector.extract_strided_slice %426 {offsets = [0, 128], sizes = [2, 256], strides = [1, 1]} : vector<2x4096xf32> to vector<2x256xf32>
    %429 = vector.extract_strided_slice %426 {offsets = [0, 256], sizes = [2, 256], strides = [1, 1]} : vector<2x4096xf32> to vector<2x256xf32>
    %430 = vector.extract_strided_slice %426 {offsets = [0, 384], sizes = [2, 256], strides = [1, 1]} : vector<2x4096xf32> to vector<2x256xf32>
    %431 = vector.extract_strided_slice %426 {offsets = [0, 512], sizes = [2, 256], strides = [1, 1]} : vector<2x4096xf32> to vector<2x256xf32>
    %432 = vector.extract_strided_slice %426 {offsets = [0, 640], sizes = [2, 256], strides = [1, 1]} : vector<2x4096xf32> to vector<2x256xf32>
    %433 = vector.extract_strided_slice %426 {offsets = [0, 768], sizes = [2, 256], strides = [1, 1]} : vector<2x4096xf32> to vector<2x256xf32>
    %434 = vector.extract_strided_slice %426 {offsets = [0, 896], sizes = [2, 256], strides = [1, 1]} : vector<2x4096xf32> to vector<2x256xf32>
    %435 = vector.extract_strided_slice %426 {offsets = [0, 1024], sizes = [2, 256], strides = [1, 1]} : vector<2x4096xf32> to vector<2x256xf32>
    %436 = vector.extract_strided_slice %426 {offsets = [0, 1152], sizes = [2, 256], strides = [1, 1]} : vector<2x4096xf32> to vector<2x256xf32>
    %437 = vector.extract_strided_slice %426 {offsets = [0, 1280], sizes = [2, 256], strides = [1, 1]} : vector<2x4096xf32> to vector<2x256xf32>
    %438 = vector.extract_strided_slice %426 {offsets = [0, 1408], sizes = [2, 256], strides = [1, 1]} : vector<2x4096xf32> to vector<2x256xf32>
    %439 = vector.extract_strided_slice %426 {offsets = [0, 1536], sizes = [2, 256], strides = [1, 1]} : vector<2x4096xf32> to vector<2x256xf32>
    %440 = vector.extract_strided_slice %426 {offsets = [0, 1664], sizes = [2, 256], strides = [1, 1]} : vector<2x4096xf32> to vector<2x256xf32>
    %441 = vector.extract_strided_slice %426 {offsets = [0, 1792], sizes = [2, 256], strides = [1, 1]} : vector<2x4096xf32> to vector<2x256xf32>
    %442 = vector.extract_strided_slice %426 {offsets = [0, 1920], sizes = [2, 256], strides = [1, 1]} : vector<2x4096xf32> to vector<2x256xf32>
    %c1952_i32 = arith.constant 1952 : i32
    %443 = tpu.dynamic_rotate %0 by %c1952_i32 dim 1 : vector<2x4096xf32>, i32 -> vector<2x4096xf32>
    %444 = vector.extract_strided_slice %443 {offsets = [0, 0], sizes = [2, 256], strides = [1, 1]} : vector<2x4096xf32> to vector<2x256xf32>
    %445 = vector.extract_strided_slice %443 {offsets = [0, 128], sizes = [2, 256], strides = [1, 1]} : vector<2x4096xf32> to vector<2x256xf32>
    %446 = vector.extract_strided_slice %443 {offsets = [0, 256], sizes = [2, 256], strides = [1, 1]} : vector<2x4096xf32> to vector<2x256xf32>
    %447 = vector.extract_strided_slice %443 {offsets = [0, 384], sizes = [2, 256], strides = [1, 1]} : vector<2x4096xf32> to vector<2x256xf32>
    %448 = vector.extract_strided_slice %443 {offsets = [0, 512], sizes = [2, 256], strides = [1, 1]} : vector<2x4096xf32> to vector<2x256xf32>
    %449 = vector.extract_strided_slice %443 {offsets = [0, 640], sizes = [2, 256], strides = [1, 1]} : vector<2x4096xf32> to vector<2x256xf32>
    %450 = vector.extract_strided_slice %443 {offsets = [0, 768], sizes = [2, 256], strides = [1, 1]} : vector<2x4096xf32> to vector<2x256xf32>
    %451 = vector.extract_strided_slice %443 {offsets = [0, 896], sizes = [2, 256], strides = [1, 1]} : vector<2x4096xf32> to vector<2x256xf32>
    %452 = vector.extract_strided_slice %443 {offsets = [0, 1024], sizes = [2, 256], strides = [1, 1]} : vector<2x4096xf32> to vector<2x256xf32>
    %453 = vector.extract_strided_slice %443 {offsets = [0, 1152], sizes = [2, 256], strides = [1, 1]} : vector<2x4096xf32> to vector<2x256xf32>
    %454 = vector.extract_strided_slice %443 {offsets = [0, 1280], sizes = [2, 256], strides = [1, 1]} : vector<2x4096xf32> to vector<2x256xf32>
    %455 = vector.extract_strided_slice %443 {offsets = [0, 1408], sizes = [2, 256], strides = [1, 1]} : vector<2x4096xf32> to vector<2x256xf32>
    %456 = vector.extract_strided_slice %443 {offsets = [0, 1536], sizes = [2, 256], strides = [1, 1]} : vector<2x4096xf32> to vector<2x256xf32>
    %457 = vector.extract_strided_slice %443 {offsets = [0, 1664], sizes = [2, 256], strides = [1, 1]} : vector<2x4096xf32> to vector<2x256xf32>
    %458 = vector.extract_strided_slice %443 {offsets = [0, 1792], sizes = [2, 256], strides = [1, 1]} : vector<2x4096xf32> to vector<2x256xf32>
    %459 = vector.extract_strided_slice %443 {offsets = [0, 1920], sizes = [2, 256], strides = [1, 1]} : vector<2x4096xf32> to vector<2x256xf32>
    %460 = tpu.concatenate %2, %3, %4, %5, %6, %7, %8, %9, %10, %11, %12, %13, %14, %15, %16, %17 in 0 : vector<2x256xf32>, vector<2x256xf32>, vector<2x256xf32>, vector<2x256xf32>, vector<2x256xf32>, vector<2x256xf32>, vector<2x256xf32>, vector<2x256xf32>, vector<2x256xf32>, vector<2x256xf32>, vector<2x256xf32>, vector<2x256xf32>, vector<2x256xf32>, vector<2x256xf32>, vector<2x256xf32>, vector<2x256xf32> -> vector<32x256xf32>
    %461 = tpu.concatenate %19, %20, %21, %22, %23, %24, %25, %26, %27, %28, %29, %30, %31, %32, %33, %34 in 0 : vector<2x256xf32>, vector<2x256xf32>, vector<2x256xf32>, vector<2x256xf32>, vector<2x256xf32>, vector<2x256xf32>, vector<2x256xf32>, vector<2x256xf32>, vector<2x256xf32>, vector<2x256xf32>, vector<2x256xf32>, vector<2x256xf32>, vector<2x256xf32>, vector<2x256xf32>, vector<2x256xf32>, vector<2x256xf32> -> vector<32x256xf32>
    %462 = tpu.concatenate %36, %37, %38, %39, %40, %41, %42, %43, %44, %45, %46, %47, %48, %49, %50, %51 in 0 : vector<2x256xf32>, vector<2x256xf32>, vector<2x256xf32>, vector<2x256xf32>, vector<2x256xf32>, vector<2x256xf32>, vector<2x256xf32>, vector<2x256xf32>, vector<2x256xf32>, vector<2x256xf32>, vector<2x256xf32>, vector<2x256xf32>, vector<2x256xf32>, vector<2x256xf32>, vector<2x256xf32>, vector<2x256xf32> -> vector<32x256xf32>
    %463 = tpu.concatenate %53, %54, %55, %56, %57, %58, %59, %60, %61, %62, %63, %64, %65, %66, %67, %68 in 0 : vector<2x256xf32>, vector<2x256xf32>, vector<2x256xf32>, vector<2x256xf32>, vector<2x256xf32>, vector<2x256xf32>, vector<2x256xf32>, vector<2x256xf32>, vector<2x256xf32>, vector<2x256xf32>, vector<2x256xf32>, vector<2x256xf32>, vector<2x256xf32>, vector<2x256xf32>, vector<2x256xf32>, vector<2x256xf32> -> vector<32x256xf32>
    %464 = tpu.concatenate %70, %71, %72, %73, %74, %75, %76, %77, %78, %79, %80, %81, %82, %83, %84, %85 in 0 : vector<2x256xf32>, vector<2x256xf32>, vector<2x256xf32>, vector<2x256xf32>, vector<2x256xf32>, vector<2x256xf32>, vector<2x256xf32>, vector<2x256xf32>, vector<2x256xf32>, vector<2x256xf32>, vector<2x256xf32>, vector<2x256xf32>, vector<2x256xf32>, vector<2x256xf32>, vector<2x256xf32>, vector<2x256xf32> -> vector<32x256xf32>
    %465 = tpu.concatenate %87, %88, %89, %90, %91, %92, %93, %94, %95, %96, %97, %98, %99, %100, %101, %102 in 0 : vector<2x256xf32>, vector<2x256xf32>, vector<2x256xf32>, vector<2x256xf32>, vector<2x256xf32>, vector<2x256xf32>, vector<2x256xf32>, vector<2x256xf32>, vector<2x256xf32>, vector<2x256xf32>, vector<2x256xf32>, vector<2x256xf32>, vector<2x256xf32>, vector<2x256xf32>, vector<2x256xf32>, vector<2x256xf32> -> vector<32x256xf32>
    %466 = tpu.concatenate %104, %105, %106, %107, %108, %109, %110, %111, %112, %113, %114, %115, %116, %117, %118, %119 in 0 : vector<2x256xf32>, vector<2x256xf32>, vector<2x256xf32>, vector<2x256xf32>, vector<2x256xf32>, vector<2x256xf32>, vector<2x256xf32>, vector<2x256xf32>, vector<2x256xf32>, vector<2x256xf32>, vector<2x256xf32>, vector<2x256xf32>, vector<2x256xf32>, vector<2x256xf32>, vector<2x256xf32>, vector<2x256xf32> -> vector<32x256xf32>
    %467 = tpu.concatenate %121, %122, %123, %124, %125, %126, %127, %128, %129, %130, %131, %132, %133, %134, %135, %136 in 0 : vector<2x256xf32>, vector<2x256xf32>, vector<2x256xf32>, vector<2x256xf32>, vector<2x256xf32>, vector<2x256xf32>, vector<2x256xf32>, vector<2x256xf32>, vector<2x256xf32>, vector<2x256xf32>, vector<2x256xf32>, vector<2x256xf32>, vector<2x256xf32>, vector<2x256xf32>, vector<2x256xf32>, vector<2x256xf32> -> vector<32x256xf32>
    %468 = tpu.concatenate %138, %139, %140, %141, %142, %143, %144, %145, %146, %147, %148, %149, %150, %151, %152, %153 in 0 : vector<2x256xf32>, vector<2x256xf32>, vector<2x256xf32>, vector<2x256xf32>, vector<2x256xf32>, vector<2x256xf32>, vector<2x256xf32>, vector<2x256xf32>, vector<2x256xf32>, vector<2x256xf32>, vector<2x256xf32>, vector<2x256xf32>, vector<2x256xf32>, vector<2x256xf32>, vector<2x256xf32>, vector<2x256xf32> -> vector<32x256xf32>
    %469 = tpu.concatenate %155, %156, %157, %158, %159, %160, %161, %162, %163, %164, %165, %166, %167, %168, %169, %170 in 0 : vector<2x256xf32>, vector<2x256xf32>, vector<2x256xf32>, vector<2x256xf32>, vector<2x256xf32>, vector<2x256xf32>, vector<2x256xf32>, vector<2x256xf32>, vector<2x256xf32>, vector<2x256xf32>, vector<2x256xf32>, vector<2x256xf32>, vector<2x256xf32>, vector<2x256xf32>, vector<2x256xf32>, vector<2x256xf32> -> vector<32x256xf32>
    %470 = tpu.concatenate %172, %173, %174, %175, %176, %177, %178, %179, %180, %181, %182, %183, %184, %185, %186, %187 in 0 : vector<2x256xf32>, vector<2x256xf32>, vector<2x256xf32>, vector<2x256xf32>, vector<2x256xf32>, vector<2x256xf32>, vector<2x256xf32>, vector<2x256xf32>, vector<2x256xf32>, vector<2x256xf32>, vector<2x256xf32>, vector<2x256xf32>, vector<2x256xf32>, vector<2x256xf32>, vector<2x256xf32>, vector<2x256xf32> -> vector<32x256xf32>
    %471 = tpu.concatenate %189, %190, %191, %192, %193, %194, %195, %196, %197, %198, %199, %200, %201, %202, %203, %204 in 0 : vector<2x256xf32>, vector<2x256xf32>, vector<2x256xf32>, vector<2x256xf32>, vector<2x256xf32>, vector<2x256xf32>, vector<2x256xf32>, vector<2x256xf32>, vector<2x256xf32>, vector<2x256xf32>, vector<2x256xf32>, vector<2x256xf32>, vector<2x256xf32>, vector<2x256xf32>, vector<2x256xf32>, vector<2x256xf32> -> vector<32x256xf32>
    %472 = tpu.concatenate %206, %207, %208, %209, %210, %211, %212, %213, %214, %215, %216, %217, %218, %219, %220, %221 in 0 : vector<2x256xf32>, vector<2x256xf32>, vector<2x256xf32>, vector<2x256xf32>, vector<2x256xf32>, vector<2x256xf32>, vector<2x256xf32>, vector<2x256xf32>, vector<2x256xf32>, vector<2x256xf32>, vector<2x256xf32>, vector<2x256xf32>, vector<2x256xf32>, vector<2x256xf32>, vector<2x256xf32>, vector<2x256xf32> -> vector<32x256xf32>
    %473 = tpu.concatenate %223, %224, %225, %226, %227, %228, %229, %230, %231, %232, %233, %234, %235, %236, %237, %238 in 0 : vector<2x256xf32>, vector<2x256xf32>, vector<2x256xf32>, vector<2x256xf32>, vector<2x256xf32>, vector<2x256xf32>, vector<2x256xf32>, vector<2x256xf32>, vector<2x256xf32>, vector<2x256xf32>, vector<2x256xf32>, vector<2x256xf32>, vector<2x256xf32>, vector<2x256xf32>, vector<2x256xf32>, vector<2x256xf32> -> vector<32x256xf32>
    %474 = tpu.concatenate %240, %241, %242, %243, %244, %245, %246, %247, %248, %249, %250, %251, %252, %253, %254, %255 in 0 : vector<2x256xf32>, vector<2x256xf32>, vector<2x256xf32>, vector<2x256xf32>, vector<2x256xf32>, vector<2x256xf32>, vector<2x256xf32>, vector<2x256xf32>, vector<2x256xf32>, vector<2x256xf32>, vector<2x256xf32>, vector<2x256xf32>, vector<2x256xf32>, vector<2x256xf32>, vector<2x256xf32>, vector<2x256xf32> -> vector<32x256xf32>
    %475 = tpu.concatenate %257, %258, %259, %260, %261, %262, %263, %264, %265, %266, %267, %268, %269, %270, %271, %272 in 0 : vector<2x256xf32>, vector<2x256xf32>, vector<2x256xf32>, vector<2x256xf32>, vector<2x256xf32>, vector<2x256xf32>, vector<2x256xf32>, vector<2x256xf32>, vector<2x256xf32>, vector<2x256xf32>, vector<2x256xf32>, vector<2x256xf32>, vector<2x256xf32>, vector<2x256xf32>, vector<2x256xf32>, vector<2x256xf32> -> vector<32x256xf32>
    %476 = tpu.concatenate %274, %275, %276, %277, %278, %279, %280, %281, %282, %283, %284, %285, %286, %287, %288, %289 in 0 : vector<2x256xf32>, vector<2x256xf32>, vector<2x256xf32>, vector<2x256xf32>, vector<2x256xf32>, vector<2x256xf32>, vector<2x256xf32>, vector<2x256xf32>, vector<2x256xf32>, vector<2x256xf32>, vector<2x256xf32>, vector<2x256xf32>, vector<2x256xf32>, vector<2x256xf32>, vector<2x256xf32>, vector<2x256xf32> -> vector<32x256xf32>
    %477 = tpu.concatenate %291, %292, %293, %294, %295, %296, %297, %298, %299, %300, %301, %302, %303, %304, %305, %306 in 0 : vector<2x256xf32>, vector<2x256xf32>, vector<2x256xf32>, vector<2x256xf32>, vector<2x256xf32>, vector<2x256xf32>, vector<2x256xf32>, vector<2x256xf32>, vector<2x256xf32>, vector<2x256xf32>, vector<2x256xf32>, vector<2x256xf32>, vector<2x256xf32>, vector<2x256xf32>, vector<2x256xf32>, vector<2x256xf32> -> vector<32x256xf32>
    %478 = tpu.concatenate %308, %309, %310, %311, %312, %313, %314, %315, %316, %317, %318, %319, %320, %321, %322, %323 in 0 : vector<2x256xf32>, vector<2x256xf32>, vector<2x256xf32>, vector<2x256xf32>, vector<2x256xf32>, vector<2x256xf32>, vector<2x256xf32>, vector<2x256xf32>, vector<2x256xf32>, vector<2x256xf32>, vector<2x256xf32>, vector<2x256xf32>, vector<2x256xf32>, vector<2x256xf32>, vector<2x256xf32>, vector<2x256xf32> -> vector<32x256xf32>
    %479 = tpu.concatenate %325, %326, %327, %328, %329, %330, %331, %332, %333, %334, %335, %336, %337, %338, %339, %340 in 0 : vector<2x256xf32>, vector<2x256xf32>, vector<2x256xf32>, vector<2x256xf32>, vector<2x256xf32>, vector<2x256xf32>, vector<2x256xf32>, vector<2x256xf32>, vector<2x256xf32>, vector<2x256xf32>, vector<2x256xf32>, vector<2x256xf32>, vector<2x256xf32>, vector<2x256xf32>, vector<2x256xf32>, vector<2x256xf32> -> vector<32x256xf32>
    %480 = tpu.concatenate %342, %343, %344, %345, %346, %347, %348, %349, %350, %351, %352, %353, %354, %355, %356, %357 in 0 : vector<2x256xf32>, vector<2x256xf32>, vector<2x256xf32>, vector<2x256xf32>, vector<2x256xf32>, vector<2x256xf32>, vector<2x256xf32>, vector<2x256xf32>, vector<2x256xf32>, vector<2x256xf32>, vector<2x256xf32>, vector<2x256xf32>, vector<2x256xf32>, vector<2x256xf32>, vector<2x256xf32>, vector<2x256xf32> -> vector<32x256xf32>
    %481 = tpu.concatenate %359, %360, %361, %362, %363, %364, %365, %366, %367, %368, %369, %370, %371, %372, %373, %374 in 0 : vector<2x256xf32>, vector<2x256xf32>, vector<2x256xf32>, vector<2x256xf32>, vector<2x256xf32>, vector<2x256xf32>, vector<2x256xf32>, vector<2x256xf32>, vector<2x256xf32>, vector<2x256xf32>, vector<2x256xf32>, vector<2x256xf32>, vector<2x256xf32>, vector<2x256xf32>, vector<2x256xf32>, vector<2x256xf32> -> vector<32x256xf32>
    %482 = tpu.concatenate %376, %377, %378, %379, %380, %381, %382, %383, %384, %385, %386, %387, %388, %389, %390, %391 in 0 : vector<2x256xf32>, vector<2x256xf32>, vector<2x256xf32>, vector<2x256xf32>, vector<2x256xf32>, vector<2x256xf32>, vector<2x256xf32>, vector<2x256xf32>, vector<2x256xf32>, vector<2x256xf32>, vector<2x256xf32>, vector<2x256xf32>, vector<2x256xf32>, vector<2x256xf32>, vector<2x256xf32>, vector<2x256xf32> -> vector<32x256xf32>
    %483 = tpu.concatenate %393, %394, %395, %396, %397, %398, %399, %400, %401, %402, %403, %404, %405, %406, %407, %408 in 0 : vector<2x256xf32>, vector<2x256xf32>, vector<2x256xf32>, vector<2x256xf32>, vector<2x256xf32>, vector<2x256xf32>, vector<2x256xf32>, vector<2x256xf32>, vector<2x256xf32>, vector<2x256xf32>, vector<2x256xf32>, vector<2x256xf32>, vector<2x256xf32>, vector<2x256xf32>, vector<2x256xf32>, vector<2x256xf32> -> vector<32x256xf32>
    %484 = tpu.concatenate %410, %411, %412, %413, %414, %415, %416, %417, %418, %419, %420, %421, %422, %423, %424, %425 in 0 : vector<2x256xf32>, vector<2x256xf32>, vector<2x256xf32>, vector<2x256xf32>, vector<2x256xf32>, vector<2x256xf32>, vector<2x256xf32>, vector<2x256xf32>, vector<2x256xf32>, vector<2x256xf32>, vector<2x256xf32>, vector<2x256xf32>, vector<2x256xf32>, vector<2x256xf32>, vector<2x256xf32>, vector<2x256xf32> -> vector<32x256xf32>
    %485 = tpu.concatenate %427, %428, %429, %430, %431, %432, %433, %434, %435, %436, %437, %438, %439, %440, %441, %442 in 0 : vector<2x256xf32>, vector<2x256xf32>, vector<2x256xf32>, vector<2x256xf32>, vector<2x256xf32>, vector<2x256xf32>, vector<2x256xf32>, vector<2x256xf32>, vector<2x256xf32>, vector<2x256xf32>, vector<2x256xf32>, vector<2x256xf32>, vector<2x256xf32>, vector<2x256xf32>, vector<2x256xf32>, vector<2x256xf32> -> vector<32x256xf32>
    %486 = tpu.concatenate %444, %445, %446, %447, %448, %449, %450, %451, %452, %453, %454, %455, %456, %457, %458, %459 in 0 : vector<2x256xf32>, vector<2x256xf32>, vector<2x256xf32>, vector<2x256xf32>, vector<2x256xf32>, vector<2x256xf32>, vector<2x256xf32>, vector<2x256xf32>, vector<2x256xf32>, vector<2x256xf32>, vector<2x256xf32>, vector<2x256xf32>, vector<2x256xf32>, vector<2x256xf32>, vector<2x256xf32>, vector<2x256xf32> -> vector<32x256xf32>
    %487 = tpu.concatenate %460, %461, %462, %463, %464, %465, %466, %467, %468, %469, %470, %471, %472, %473, %474, %475 in 0 : vector<32x256xf32>, vector<32x256xf32>, vector<32x256xf32>, vector<32x256xf32>, vector<32x256xf32>, vector<32x256xf32>, vector<32x256xf32>, vector<32x256xf32>, vector<32x256xf32>, vector<32x256xf32>, vector<32x256xf32>, vector<32x256xf32>, vector<32x256xf32>, vector<32x256xf32>, vector<32x256xf32>, vector<32x256xf32> -> vector<512x256xf32>
    %488 = tpu.concatenate %476, %477, %478, %479, %480, %481, %482, %483, %484, %485, %486 in 0 : vector<32x256xf32>, vector<32x256xf32>, vector<32x256xf32>, vector<32x256xf32>, vector<32x256xf32>, vector<32x256xf32>, vector<32x256xf32>, vector<32x256xf32>, vector<32x256xf32>, vector<32x256xf32>, vector<32x256xf32> -> vector<352x256xf32>
    %489 = tpu.concatenate %487, %488 in 0 : vector<512x256xf32>, vector<352x256xf32> -> vector<864x256xf32>
    %c0_1 = arith.constant 0 : index
    %c0_2 = arith.constant 0 : index
    %490 = vector.load %arg1[%c0_1, %c0_2] : memref<256x256xf32, #tpu.memory_space<vmem>>, vector<256x256xf32>
    %cst = arith.constant dense<0.000000e+00> : vector<864x256xf32>
    %491 = tpu.matmul %489, %490, %cst {dimension_numbers = #tpu.dot_dimension_numbers<[1], [0], [0], [1], [0, 0, 1, 1], [], []>} : vector<864x256xf32>, vector<256x256xf32>, vector<864x256xf32> -> vector<864x256xf32>
    %492 = vector.extract_strided_slice %491 {offsets = [0, 0], sizes = [864, 128], strides = [1, 1]} : vector<864x256xf32> to vector<864x128xf32>
    %493 = vector.extract_strided_slice %491 {offsets = [0, 128], sizes = [864, 128], strides = [1, 1]} : vector<864x256xf32> to vector<864x128xf32>
    %494 = arith.mulf %492, %492 : vector<864x128xf32>
    %495 = arith.mulf %493, %493 : vector<864x128xf32>
    %496 = arith.addf %494, %495 : vector<864x128xf32>
    %c0_3 = arith.constant 0 : index
    %c0_4 = arith.constant 0 : index
    %497 = vector.load %arg2[%c0_3, %c0_4] : memref<128x128xf32, #tpu.memory_space<vmem>>, vector<128x128xf32>
    %cst_5 = arith.constant dense<0.000000e+00> : vector<864x128xf32>
    %498 = tpu.matmul %496, %497, %cst_5 {dimension_numbers = #tpu.dot_dimension_numbers<[1], [0], [0], [1], [0, 0, 1, 1], [], []>} : vector<864x128xf32>, vector<128x128xf32>, vector<864x128xf32> -> vector<864x128xf32>
    %c0_6 = arith.constant 0 : index
    %c0_7 = arith.constant 0 : index
    %499 = vector.load %arg3[%c0_6, %c0_7] : memref<864x128xf32, #tpu.memory_space<vmem>>, vector<864x128xf32>
    tpu.vector_store %arg3[%c0_6, %c0_7], %498 {strides = array<i32>} : memref<864x128xf32, #tpu.memory_space<vmem>>, vector<864x128xf32>,
    return
  }
}

</mosaic_0001>

<bundles_post_ra>
// kernel: tpu_custom_call.1
= control target key start
LH: loop header
LB: loop body
LE: loop exit
PB: predicated region body
PF: predicated region fallthrough
CT: control target
= control target key end

     0   :  { %8 = vsyncpa [#allocation3], 0  ;;  %s14069_s0 = inlined_call_operand.hbm [shape: f32[2,4096], index: 0, kind: input, shape index: {}]   ;;  %s14070_s1 = inlined_call_operand.hbm [shape: f32[256,256], index: 1, kind: input, shape index: {}]   ;;  %s14071_s2 = inlined_call_operand.hbm [shape: f32[128,128], index: 2, kind: input, shape index: {}]   ;;  %s14072_s3 = inlined_call_operand.hbm [shape: f32[864,128], index: 3, kind: output, shape index: {}]  }
   0x1   :  { %9 = vsyncpa [#allocation6], 0 }
   0x2   :  { %10 = vsyncpa [#allocation4], 0  ;;  %s7728_s12 = smov [#allocation5]   ;;  %s7634_s16 = scalar_lea.hbm %s14070_s1, 8192 }
   0x3   :  { %s26_s13 = sshll.u32 %s7728_s12, 4  ;;  %p7635_p0 = scmp.ne.s32.totalorder %s14070_s1, %s7634_s16  ;;  %s27_s13 = int_to_ptr.vmem [resolvable:$true] %s26_s13 }
   0x4   :  { %p7638_p1 = scmp.lt.u32.totalorder %s7634_s16, %s14070_s1 }
   0x6   :  { %p7640_p2 = pnand %p7638_p1, %p7635_p0 }
   0x8   :  { %7643 = shalt.err (!%p7640_p2)
}
   0x9   :  { %s7644_s21 = scalar_lea.vmem %s27_s13, 8192  ;;  %p7649_p4 = scmp.lt.s32.totalorder %s27_s13, %s27_s13 }
   0xa   :  { %p7645_p3 = scmp.ne.s32.totalorder %s27_s13, %s7644_s21  ;;  %p7650_p5 = scmp.lt.s32.totalorder %s7644_s21, %s7644_s21 }
   0xc   :  { %p7651_p6 = por %p7650_p5, %p7649_p4 }
   0xe   :  { %p7652_p7 = pnand %p7651_p6, %p7645_p3 }
  0x10   :  { %7655 = shalt.err (!%p7652_p7)
}
  0x11   :  { %s7729_s22 = smov 256   ;;  %s7730_s23 = smov 16  }
  0x12   :  { %32 = dma.hbm_to_vmem [thread:$0]  %s14070_s1, 8192, %s27_s13, [#allocation6], %s7729_s22, %s7729_s22, %s7730_s23  }
  0x13   :  { %s7731_s26 = smov [#allocation2]   ;;  %s7732_s28 = smov [#allocation7]  }
  0x14   :  { %s17_s27 = sshll.u32 %s7731_s26, 4  ;;  %s38_s29 = sshll.u32 %s7732_s28, 4  ;;  %s18_s27 = int_to_ptr.vmem [resolvable:$true] %s17_s27  ;;  %s39_s29 = int_to_ptr.vmem [resolvable:$true] %s38_s29 }
  0x15   :  { %s7656_s5 = scalar_lea.hbm %s14069_s0, 1024 }
  0x16   :  { %p7657_p8 = scmp.ne.s32.totalorder %s14069_s0, %s7656_s5  ;;  %p7660_p9 = scmp.lt.u32.totalorder %s7656_s5, %s14069_s0 }
  0x18   :  { %p7662_p10 = pnand %p7660_p9, %p7657_p8 }
  0x1a   :  { %7665 = shalt.err (!%p7662_p10)
}
  0x1b   :  { %s7666_s1 = scalar_lea.vmem %s18_s27, 1024  ;;  %p7671_p12 = scmp.lt.s32.totalorder %s18_s27, %s18_s27 }
  0x1c   :  { %p7667_p11 = scmp.ne.s32.totalorder %s18_s27, %s7666_s1  ;;  %p7672_p13 = scmp.lt.s32.totalorder %s7666_s1, %s7666_s1 }
  0x1e   :  { %p7673_p0 = por %p7672_p13, %p7671_p12 }
  0x20   :  { %p7674_p1 = pnand %p7673_p0, %p7667_p11 }
  0x22   :  { %7677 = shalt.err (!%p7674_p1)
}
  0x23   :  { %20 = dma.hbm_to_vmem [thread:$0]  %s14069_s0, 1024, %s18_s27, [#allocation3]  }
  0x24   :  { %s7678_s14 = scalar_lea.hbm %s14071_s2, 2048 }
  0x25   :  { %p7679_p2 = scmp.ne.s32.totalorder %s14071_s2, %s7678_s14  ;;  %p7682_p3 = scmp.lt.u32.totalorder %s7678_s14, %s14071_s2 }
  0x27   :  { %p7684_p4 = pnand %p7682_p3, %p7679_p2 }
  0x29   :  { %7687 = shalt.err (!%p7684_p4)
}
  0x2a   :  { %s7688_s19 = scalar_lea.vmem %s39_s29, 2048  ;;  %p7693_p6 = scmp.lt.s32.totalorder %s39_s29, %s39_s29 }
  0x2b   :  { %p7689_p5 = scmp.ne.s32.totalorder %s39_s29, %s7688_s19  ;;  %p7694_p7 = scmp.lt.s32.totalorder %s7688_s19, %s7688_s19 }
  0x2d   :  { %p7695_p8 = por %p7694_p7, %p7693_p6 }
  0x2f   :  { %p7696_p9 = pnand %p7695_p8, %p7689_p5 }
  0x31   :  { %7699 = shalt.err (!%p7696_p9)
}
  0x32   :  { %s7733_s0 = smov 128   ;;  %s7734_s20 = smov 8  }
  0x33   :  { %44 = dma.hbm_to_vmem [thread:$0]  %s14071_s2, 2048, %s39_s29, [#allocation6], %s7733_s0, %s7733_s0, %s7734_s20  }
  0x34   :  { %7722 = dma.done.wait [#allocation3], 1024  }
  0x35   :  { %7723 = vsyncadd [#allocation3], 4294966272 }
  0x36   :  { %7724 = dma.done.wait [#allocation6], 10240  }
  0x37   :  { %7725 = vsyncadd [#allocation6], 4294957056  ;;  %v74_v0 = vlaneseq  ;;  %v7735_v1 = vmov 1983009808   ;;  %v55_v6 = vld [vmem:[#allocation2 + $0x8] sm:$0xff]  ;;  %v54_v7 = vld [vmem:[#allocation2] sm:$0xff] }
  0x38   :  { %v72_v2 = vunpack.c.l.s4 %v7735_v1  ;;  %v56_v8 = vld [vmem:[#allocation2 + $0x10] sm:$0xff]  ;;  %v87_v11 = vcombine.high %v55_v6, %v55_v6  ;;  %v57_v13 = vld [vmem:[#allocation2 + $0x18] sm:$0xff]  ;;  %v70_v17 = vcombine.high %v54_v7, %v54_v7  ;;  %s7736_s2 = smov 89   ;;  %v4078_v39 = vld [vmem:[#allocation5 + $0x8] sm:$0xff]  ;;  %s7737_s23 = smov 86   ;;  %vm1762_vm1 = vcmask 1041408  }
  0x39   :  { %v75_v3 = vshrl.u32 %v74_v0, 7  ;;  %v104_v14 = vcombine.high %v56_v8, %v56_v8  ;;  %v121_v16 = vcombine.high %v57_v13, %v57_v13  ;;  %v7854_v23 = vld [vmem:[#allocation2 + $0x38] sm:$0xff]  ;;  %v4077_v41 = vld [vmem:[#allocation5] sm:$0xff]  ;;  %v4079_v42 = vld [vmem:[#allocation5 + $0x10] sm:$0xff]  ;;  %s7738_s24 = smov 83   ;;  %s7739_s25 = smov 51  }
  0x3a   :  { %v73_v4 = vunpack.c.0.s8 %v72_v2  ;;  %v159_v33 = vcombine.high %v7854_v23, %v7854_v23  ;;  %v4080_v40 = vld [vmem:[#allocation5 + $0x18] sm:$0xff]  ;;  %v4082_v46 = vld [vmem:[#allocation5 + $0x28] sm:$0xff]  ;;  %v6245_v49 = vpack.c.bf16 %v4079_v42, %v4077_v41  ;;  %v4081_v51 = vld [vmem:[#allocation5 + $0x20] sm:$0xff]  ;;  %s7740_s26 = smov 48   ;;  %s7741_s27 = smov 45   ;;  %vm1765_vm2 = vcmask 1043456  }
  0x3b   :  { %v4084_v47 = vld [vmem:[#allocation5 + $0x38] sm:$0xff]  ;;  %v6243_v48 = vpack.c.bf16 %v4080_v40, %v4078_v39  ;;  %v4083_v52 = vld [vmem:[#allocation5 + $0x30] sm:$0xff]  ;;  %v4086_v54 = vld [vmem:[#allocation5 + $0x48] sm:$0xff]  ;;  %s7742_s28 = smov 12   ;;  %vm1768_vm3 = vcmask 1045504   ;;  %s7743_s29 = smov 9  }
  0x3c   :  { %v7824_v5 = vsub.s32 %v73_v4, %v75_v3  ;;  %v6247_v50 = vpack.c.bf16 %v4084_v47, %v4082_v46  ;;  %v4088_v55 = vld [vmem:[#allocation5 + $0x58] sm:$0xff]  ;;  %v6249_v56 = vpack.c.bf16 %v4083_v52, %v4081_v51  ;;  %v4085_v58 = vld [vmem:[#allocation5 + $0x40] sm:$0xff]  ;;  %v4087_v59 = vld [vmem:[#allocation5 + $0x50] sm:$0xff]  ;;  %s7744_s30 = smov 6   ;;  %s7745_s4 = smov 102  }
  0x3d   :  { %6244 = vmatprep.subr.bf16.mxu0 %v6243_v48  ;;  %v6251_v57 = vpack.c.bf16 %v4088_v55, %v4086_v54  ;;  %v4090_v60 = vld [vmem:[#allocation5 + $0x68] sm:$0xff]  ;;  %v4092_v61 = vld [vmem:[#allocation5 + $0x78] sm:$0xff]  ;;  %6339 = vmatprep.subr.bf16.mxu1 %v6243_v48  ;;  %v6253_v62 = vpack.c.bf16 %v4087_v59, %v4085_v58  ;;  %v4089_v1 = vld [vmem:[#allocation5 + $0x60] sm:$0xff]  ;;  %s7746_s5 = smov 99   ;;  %s7747_s6 = smov 96  }
  0x3e   :  { %14132 = vst [vmem:[#allocation12_spill] sm:$0xff] %v7824_v5  ;;  %v7827_v9 = vrot.slane %v55_v6, %v7824_v5  ;;  %v7830_v10 = vrot.slane %v54_v7, %v7824_v5  ;;  %v7833_v12 = vrot.slane %v56_v8, %v7824_v5  ;;  %v128_v15 = vrot.slane %v57_v13, %v7824_v5  ;;  %v4091_v2 = vld [vmem:[#allocation5 + $0x70] sm:$0xff]  ;;  %v4094_v3 = vld [vmem:[#allocation5 + $0x88] sm:$0xff]  ;;  %v4096_v4 = vld [vmem:[#allocation5 + $0x98] sm:$0xff]  ;;  %s7748_s7 = smov 64   ;;  %s7749_s8 = smov 61  }
  0x3f   :  { %v7845_v20 = vrot.slane %v87_v11, %v7824_v5  ;;  %v7852_v22 = vrot.slane %v104_v14, %v7824_v5  ;;  %v135_v29 = vrot.slane %v121_v16, %v7824_v5  ;;  %v7874_v30 = vrot.slane %v70_v17, %v7824_v5  ;;  %6246 = vmatpush1.bf16.msra.mxu0 %v6245_v49  ;;  %v4093_v8 = vld [vmem:[#allocation5 + $0x80] sm:$0xff]  ;;  %v4095_v11 = vld [vmem:[#allocation5 + $0x90] sm:$0xff]  ;;  %v4098_v13 = vld [vmem:[#allocation5 + $0xa8] sm:$0xff]  ;;  %s7750_s9 = smov 58   ;;  %s7751_s1 = smov 25  }
  0x40   :  { %v7838_v18 = vcombine.high %v7827_v9, %v7827_v9  ;;  %v7842_v19 = vcombine.high %v7830_v10, %v7830_v10  ;;  %v7849_v21 = vcombine.high %v7833_v12, %v7833_v12  ;;  %v136_v28 = vcombine.high %v128_v15, %v128_v15  ;;  %6248 = vmatprep.subr.bf16.mxu0 %v6247_v50  ;;  %v4100_v14 = vld [vmem:[#allocation5 + $0xb8] sm:$0xff]  ;;  %v4097_v17 = vld [vmem:[#allocation5 + $0xa0] sm:$0xff]  ;;  %v4103_v40 = vld [vmem:[#allocation5 + $0xd0] sm:$0xff]  ;;  %s7752_s10 = smov 22   ;;  %s7753_s11 = smov 109  }
  0x41   :  { %v7866_v26 = vcombine.high %v7845_v20, %v7845_v20  ;;  %v120_v32 = vcombine.high %v7852_v22, %v7852_v22  ;;  %v137_v35 = vcombine.high %v135_v29, %v135_v29  ;;  %v7899_v37 = vcombine.high %v7874_v30, %v7874_v30  ;;  %6355 = vmatpush1.bf16.msra.mxu1 %v6245_v49  ;;  %v4101_v39 = vld [vmem:[#allocation5 + $0xc0] sm:$0xff]  ;;  %v4106_v41 = vld [vmem:[#allocation5 + $0xe8] sm:$0xff]  ;;  %v4108_v42 = vld [vmem:[#allocation5 + $0xf8] sm:$0xff]  ;;  %s7754_s12 = smov 19   ;;  %s7755_s13 = smov 76  }
  0x42   :  { %v7858_v24 = vpack.i.bf16 %v7838_v18, %v7827_v9  ;;  %v7862_v25 = vpack.i.bf16 %v7842_v19, %v7830_v10  ;;  %v7870_v27 = vpack.i.bf16 %v7849_v21, %v7833_v12  ;;  %v7888_v34 = vpack.i.bf16 %v136_v28, %v128_v15  ;;  %6340 = vmatprep.subr.bf16.mxu1 %v6247_v50  ;;  %v4099_v28 = vld [vmem:[#allocation5 + $0xb0] sm:$0xff]  ;;  %v4105_v48 = vld [vmem:[#allocation5 + $0xe0] sm:$0xff]  ;;  %v4110_v50 = vld [vmem:[#allocation5 + $0x108] sm:$0xff]  ;;  %s7756_s14 = smov 115   ;;  %s7757_s15 = smov 73  }
  0x43   :  { %v7882_v31 = vpack.i.bf16 %v7866_v26, %v7845_v20  ;;  %v7895_v36 = vpack.i.bf16 %v120_v32, %v7852_v22  ;;  %v7902_v38 = vrot.slane %v159_v33, %v7824_v5  ;;  %v7908_v43 = vpack.i.bf16 %v137_v35, %v135_v29  ;;  %6250 = vmatpush1.bf16.msra.mxu0 %v6249_v56  ;;  %v4102_v29 = vld [vmem:[#allocation5 + $0xc8] sm:$0xff]  ;;  %v4104_v32 = vld [vmem:[#allocation5 + $0xd8] sm:$0xff]  ;;  %v4107_v49 = vld [vmem:[#allocation5 + $0xf0] sm:$0xff]  ;;  %s7758_s16 = smov 112   ;;  %s7759_s17 = smov 70  }
  0x44   :  { %14133 = vst [vmem:[#allocation13_spill] sm:$0xff] %v7858_v24  ;;  %6413 = vrot.lane.b32.xlu1 %v7858_v24, %s7736_s2  ;;  %6408 = vrot.lane.b32.xlu0 %v7862_v25, %s7736_s2  ;;  %v7912_v44 = vpack.i.bf16 %v7899_v37, %v7874_v30  ;;  %v6255_v63 = vpack.c.bf16 %v4092_v61, %v4090_v60  ;;  %v4112_v51 = vld [vmem:[#allocation5 + $0x118] sm:$0xff]  ;;  %v4109_v55 = vld [vmem:[#allocation5 + $0x100] sm:$0xff]  ;;  %s7760_s18 = smov 38   ;;  %s7761_s19 = smov 35  }
  0x45   :  { %v7916_v45 = vcombine.high %v7902_v38, %v7902_v38  ;;  %6252 = vmatprep.subr.bf16.mxu0 %v6251_v57  ;;  %v6257_v6 = vpack.c.bf16 %v4091_v2, %v4089_v1  ;;  %v6259_v7 = vpack.c.bf16 %v4096_v4, %v4094_v3  ;;  %v6261_v15 = vpack.c.bf16 %v4095_v11, %v4093_v8  ;;  %v4116_v58 = vld [vmem:[#allocation5 + $0x138] sm:$0xff]  ;;  %v4113_v61 = vld [vmem:[#allocation5 + $0x120] sm:$0xff]  ;;  %s7762_s21 = smov 32   ;;  %s7763_s22 = smov [#allocation8]  }
  0x46   :  { %v6263_v16 = vpack.c.bf16 %v4100_v14, %v4098_v13  ;;  %6356 = vmatpush1.bf16.msra.mxu1 %v6249_v56  ;;  %v6265_v33 = vpack.c.bf16 %v4099_v28, %v4097_v17  ;;  %v6267_v35 = vpack.c.bf16 %v4104_v32, %v4102_v29  ;;  %v6269_v46 = vpack.c.bf16 %v4103_v40, %v4101_v39  ;;  %v4111_v56 = vld [vmem:[#allocation5 + $0x110] sm:$0xff]  ;;  %v4120_v1 = vld [vmem:[#allocation5 + $0x158] sm:$0xff]  ;;  %v4117_v4 = vld [vmem:[#allocation5 + $0x140] sm:$0xff] }
  0x47   :  { %v7924_v53 = vpack.i.bf16 %v7916_v45, %v7902_v38  ;;  %6254 = vmatpush1.bf16.msra.mxu0 %v6253_v62  ;;  %6341 = vmatprep.subr.bf16.mxu1 %v6251_v57  ;;  %v6271_v47 = vpack.c.bf16 %v4108_v42, %v4106_v41  ;;  %v6273_v52 = vpack.c.bf16 %v4107_v49, %v4105_v48  ;;  %v4114_v57 = vld [vmem:[#allocation5 + $0x128] sm:$0xff]  ;;  %v4124_v8 = vld [vmem:[#allocation5 + $0x178] sm:$0xff]  ;;  %v4121_v14 = vld [vmem:[#allocation5 + $0x160] sm:$0xff] }
  0x48   :  { %6433 = vrot.lane.b32.xlu1 %v7882_v31, %s7736_s2  ;;  %6418 = vrot.lane.b32.xlu0 %v7870_v27, %s7736_s2  ;;  %v6275_v54 = vpack.c.bf16 %v4112_v51, %v4110_v50  ;;  %v6277_v59 = vpack.c.bf16 %v4111_v56, %v4109_v55  ;;  %v6279_v60 = vpack.c.bf16 %v4116_v58, %v4114_v57  ;;  %v4125_v29 = vld [vmem:[#allocation5 + $0x180] sm:$0xff]  ;;  %v4127_v32 = vld [vmem:[#allocation5 + $0x190] sm:$0xff]  ;;  %v4132_v39 = vld [vmem:[#allocation5 + $0x1b8] sm:$0xff] }
  0x49   :  { %14134 = vst [vmem:[#allocation14_spill] sm:$0xff] %v7924_v53  ;;  %6256 = vmatprep.subr.bf16.mxu0 %v6255_v63  ;;  %v6293_v40 = vpack.c.bf16 %v4127_v32, %v4125_v29  ;;  %v4129_v42 = vld [vmem:[#allocation5 + $0x1a0] sm:$0xff]  ;;  %v4136_v48 = vld [vmem:[#allocation5 + $0x1d8] sm:$0xff]  ;;  %v4138_v55 = vld [vmem:[#allocation5 + $0x1e8] sm:$0xff] }
  0x4a   :  { %6357 = vmatpush1.bf16.msra.mxu1 %v6253_v62  ;;  %v4115_v62 = vld [vmem:[#allocation5 + $0x130] sm:$0xff]  ;;  %v4133_v51 = vld [vmem:[#allocation5 + $0x1c0] sm:$0xff]  ;;  %v4140_v56 = vld [vmem:[#allocation5 + $0x1f8] sm:$0xff] }
  0x4b   :  { %6258 = vmatpush1.bf16.msra.mxu0 %v6257_v6  ;;  %6342 = vmatprep.subr.bf16.mxu1 %v6255_v63  ;;  %v4118_v63 = vld [vmem:[#allocation5 + $0x148] sm:$0xff]  ;;  %v6281_v2 = vpack.c.bf16 %v4115_v62, %v4113_v61  ;;  %v6303_v58 = vpack.c.bf16 %v4140_v56, %v4138_v55 }
  0x4c   :  { %6438 = vrot.lane.b32.xlu1 %v7895_v36, %s7736_s2  ;;  %6423 = vrot.lane.b32.xlu0 %v7888_v34, %s7736_s2  ;;  %v6283_v3 = vpack.c.bf16 %v4120_v1, %v4118_v63  ;;  %v60_v63 = vld [vmem:[#allocation2 + $0x30] sm:$0xff] }
  0x4d   :  { %6260 = vmatprep.subr.bf16.mxu0 %v6259_v7  ;;  %v522_v1 = vcombine.high %v60_v63, %v60_v63 }
  0x4e   :  { %6358 = vmatpush1.bf16.msra.mxu1 %v6257_v6  ;;  %v4119_v6 = vld [vmem:[#allocation5 + $0x150] sm:$0xff] }
  0x4f   :  { %6262 = vmatpush1.bf16.msra.mxu0 %v6261_v15  ;;  %6343 = vmatprep.subr.bf16.mxu1 %v6259_v7  ;;  %v4122_v7 = vld [vmem:[#allocation5 + $0x168] sm:$0xff]  ;;  %v6285_v11 = vpack.c.bf16 %v4119_v6, %v4117_v4  ;;  %v8016_v4 = vrot.slane %v60_v63, %v7824_v5 }
  0x50   :  { %6443 = vrot.lane.b32.xlu1 %v7908_v43, %s7736_s2  ;;  %6428 = vrot.lane.b32.xlu0 %v7912_v44, %s7736_s2  ;;  %v6287_v13 = vpack.c.bf16 %v4124_v8, %v4122_v7 }
  0x51   :  { %6264 = vmatprep.subr.bf16.mxu0 %v6263_v16  ;;  %14139 = vst [vmem:[#allocation19_spill] sm:$0xff] %v8016_v4  ;;  %v8030_v8 = vcombine.high %v8016_v4, %v8016_v4 }
  0x52   :  { %6359 = vmatpush1.bf16.msra.mxu1 %v6261_v15  ;;  %v4123_v15 = vld [vmem:[#allocation5 + $0x170] sm:$0xff] }
  0x53   :  { %6266 = vmatpush1.bf16.msra.mxu0 %v6265_v33  ;;  %6344 = vmatprep.subr.bf16.mxu1 %v6263_v16  ;;  %v4128_v16 = vld [vmem:[#allocation5 + $0x198] sm:$0xff]  ;;  %v6289_v17 = vpack.c.bf16 %v4123_v15, %v4121_v14  ;;  %14140 = vst [vmem:[#allocation20_spill] sm:$0xff] %v8030_v8  ;;  %v8040_v15 = vpack.i.bf16 %v8030_v8, %v7902_v38 }
  0x54   :  { %6453 = vrot.lane.b32.xlu1 %v7862_v25, %s7737_s23  ;;  %6448 = vrot.lane.b32.xlu0 %v7924_v53, %s7736_s2  ;;  %s5912_s2 = sshll.u32 %s7763_s22, 4  ;;  %s5913_s2 = int_to_ptr.vmem [resolvable:$true] %s5912_s2 }
  0x55   :  { %6268 = vmatprep.subr.bf16.mxu0 %v6267_v35  ;;  %p7705_p11 = scmp.lt.s32.totalorder %s5913_s2, %s5913_s2 }
  0x56   :  { %6360 = vmatpush1.bf16.msra.mxu1 %v6265_v33  ;;  %v7972_v33 = vrot.slane %v7854_v23, %v7824_v5 }
  0x57   :  { %6270 = vmatpush1.bf16.msra.mxu0 %v6269_v46  ;;  %6345 = vmatprep.subr.bf16.mxu1 %v6267_v35  ;;  %v4130_v35 = vld [vmem:[#allocation5 + $0x1a8] sm:$0xff] }
  0x58   :  { %6463 = vrot.lane.b32.xlu1 %v7858_v24, %s7737_s23  ;;  %6458 = vrot.lane.b32.xlu0 %v7912_v44, %s7737_s23  ;;  %14135 = vst [vmem:[#allocation15_spill] sm:$0xff] %v7972_v33  ;;  %v6295_v41 = vpack.c.bf16 %v4132_v39, %v4130_v35  ;;  %v7980_v23 = vcombine.high %v7972_v33, %v7972_v33 }
  0x59   :  { %6272 = vmatprep.subr.bf16.mxu0 %v6271_v47 }
  0x5a   :  { %6361 = vmatpush1.bf16.msra.mxu1 %v6269_v46  ;;  %v4131_v46 = vld [vmem:[#allocation5 + $0x1b0] sm:$0xff]  ;;  %14136 = vst [vmem:[#allocation16_spill] sm:$0xff] %v7980_v23  ;;  %v6622_v62 = vpack.i.bf16 %v7972_v33, %v7980_v23  ;;  %v8111_v35 = vpack.i.bf16 %v7902_v38, %v7980_v23 }
  0x5b   :  { %6274 = vmatpush1.bf16.msra.mxu0 %v6273_v52  ;;  %6346 = vmatprep.subr.bf16.mxu1 %v6271_v47  ;;  %v4134_v47 = vld [vmem:[#allocation5 + $0x1c8] sm:$0xff]  ;;  %v6297_v49 = vpack.c.bf16 %v4131_v46, %v4129_v42 }
  0x5c   :  { %6473 = vrot.lane.b32.xlu1 %v7870_v27, %s7737_s23  ;;  %6468 = vrot.lane.b32.xlu0 %v7882_v31, %s7737_s23  ;;  %v6299_v50 = vpack.c.bf16 %v4136_v48, %v4134_v47 }
  0x5d   :  { %6276 = vmatprep.subr.bf16.mxu0 %v6275_v54 }
  0x5e   :  { %6362 = vmatpush1.bf16.msra.mxu1 %v6273_v52  ;;  %v4135_v52 = vld [vmem:[#allocation5 + $0x1d0] sm:$0xff] }
  0x5f   :  { %6278 = vmatpush1.bf16.msra.mxu0 %v6277_v59  ;;  %6347 = vmatprep.subr.bf16.mxu1 %v6275_v54  ;;  %v7988_v54 = vpack.i.bf16 %v7980_v23, %v7972_v33  ;;  %v6301_v57 = vpack.c.bf16 %v4135_v52, %v4133_v51 }
  0x60   :  { %6483 = vrot.lane.b32.xlu1 %v7888_v34, %s7737_s23  ;;  %6478 = vrot.lane.b32.xlu0 %v7895_v36, %s7737_s23 }
  0x61   :  { %6280 = vmatprep.subr.bf16.mxu0 %v6279_v60 }
  0x62   :  { %6363 = vmatpush1.bf16.msra.mxu1 %v6277_v59  ;;  %v4137_v59 = vld [vmem:[#allocation5 + $0x1e0] sm:$0xff] }
  0x63   :  { %6282 = vmatpush1.bf16.msra.mxu0 %v6281_v2  ;;  %6348 = vmatprep.subr.bf16.mxu1 %v6279_v60  ;;  %v4139_v60 = vld [vmem:[#allocation5 + $0x1f0] sm:$0xff] }
  0x64   :  { %6493 = vrot.lane.b32.xlu1 %v7924_v53, %s7737_s23  ;;  %6488 = vrot.lane.b32.xlu0 %v7908_v43, %s7737_s23  ;;  %v6305_v61 = vpack.c.bf16 %v4139_v60, %v4137_v59  ;;  %s7700_s23 = scalar_lea.vmem %s5913_s2, 13824 }
  0x65   :  { %6284 = vmatprep.subr.bf16.mxu0 %v6283_v3  ;;  %p7701_p10 = scmp.ne.s32.totalorder %s5913_s2, %s7700_s23  ;;  %p7706_p12 = scmp.lt.s32.totalorder %s7700_s23, %s7700_s23 }
  0x66   :  { %6364 = vmatpush1.bf16.msra.mxu1 %v6281_v2  ;;  %v8007_v2 = vrot.slane %v522_v1, %v7824_v5 }
  0x67   :  { %6286 = vmatpush1.bf16.msra.mxu0 %v6285_v11  ;;  %6349 = vmatprep.subr.bf16.mxu1 %v6283_v3  ;;  %p7707_p13 = por %p7706_p12, %p7705_p11 }
  0x68   :  { %6503 = vrot.lane.b32.xlu1 %v7912_v44, %s7738_s24  ;;  %6498 = vrot.lane.b32.xlu0 %v7862_v25, %s7738_s24  ;;  %14137 = vst [vmem:[#allocation17_spill] sm:$0xff] %v8007_v2  ;;  %v8013_v3 = vcombine.high %v8007_v2, %v8007_v2  ;;  %v8022_v6 = vpack.i.bf16 %v8007_v2, %v7916_v45 }
  0x69   :  { %6288 = vmatprep.subr.bf16.mxu0 %v6287_v13  ;;  %v8107_v32 = vpack.i.bf16 %v8007_v2, %v8030_v8  ;;  %p7708_p0 = pnand %p7707_p13, %p7701_p10 }
  0x6a   :  { %6365 = vmatpush1.bf16.msra.mxu1 %v6285_v11  ;;  %14138 = vst [vmem:[#allocation18_spill] sm:$0xff] %v8013_v3  ;;  %v8026_v7 = vpack.i.bf16 %v7902_v38, %v8013_v3  ;;  %v59_v11 = vld [vmem:[#allocation2 + $0x28] sm:$0xff]  ;;  %v8036_v14 = vpack.i.bf16 %v7972_v33, %v8013_v3  ;;  %v8133_v38 = vpack.i.bf16 %v7830_v10, %v7916_v45 }
  0x6b   :  { %6290 = vmatpush1.bf16.msra.mxu0 %v6289_v17  ;;  %6350 = vmatprep.subr.bf16.mxu1 %v6287_v13  ;;  %v859_v13 = vcombine.high %v59_v11, %v59_v11 }
  0x6c   :  { %6513 = vrot.lane.b32.xlu1 %v7882_v31, %s7738_s24  ;;  %6508 = vrot.lane.b32.xlu0 %v7858_v24, %s7738_s24 }
  0x6d   :  { %v8078_v29 = vrot.slane %v859_v13, %v7824_v5 }
  0x6e   :  { %6366 = vmatpush1.bf16.msra.mxu1 %v6289_v17  ;;  %v8059_v17 = vpack.i.bf16 %v7916_v45, %v7830_v10 }
  0x6f   :  { %14141 = vst [vmem:[#allocation21_spill] sm:$0xff] %v8078_v29 }
  0x70   :  { %6523 = vrot.lane.b32.xlu1 %v7895_v36, %s7738_s24  ;;  %6518 = vrot.lane.b32.xlu0 %v7870_v27, %s7738_s24 }
  0x74   :  { %6533 = vrot.lane.b32.xlu1 %v7908_v43, %s7738_s24  ;;  %6528 = vrot.lane.b32.xlu0 %v7888_v34, %s7738_s24  ;;  %v4126_v43 = vld [vmem:[#allocation5 + $0x188] sm:$0xff] }
  0x75   :  { %v6291_v28 = vpack.c.bf16 %v4128_v16, %v4126_v43  ;;  %v8044_v43 = vpack.i.bf16 %v7980_v23, %v8007_v2  ;;  %v8048_v16 = vpack.i.bf16 %v7874_v30, %v7842_v19  ;;  %v8067_v19 = vpack.i.bf16 %v7827_v9, %v7899_v37 }
  0x76   :  { %v8075_v30 = vpack.i.bf16 %v7833_v12, %v7866_v26  ;;  %v8087_v9 = vcombine.high %v8078_v29, %v8078_v29  ;;  %v8095_v12 = vpack.i.bf16 %v8013_v3, %v8016_v4 }
  0x77   :  { %6292 = vmatprep.subr.bf16.mxu0 %v6291_v28  ;;  %6351 = vmatprep.subr.bf16.mxu1 %v6291_v28  ;;  %v8063_v28 = vpack.i.bf16 %v7845_v20, %v7838_v18 }
  0x78   :  { %6543 = vrot.lane.b32.xlu1 %v7862_v25, %s7739_s25  ;;  %6538 = vrot.lane.b32.xlu0 %v7924_v53, %s7738_s24 }
  0x79   :  { %6294 = vmatpush1.bf16.msra.mxu0 %v6293_v40  ;;  %6367 = vmatpush1.bf16.msra.mxu1 %v6293_v40 }
  0x7a   :  { %6296 = vmatprep.subr.bf16.mxu0 %v6295_v41  ;;  %6352 = vmatprep.subr.bf16.mxu1 %v6295_v41  ;;  %v8129_v41 = vpack.i.bf16 %v8087_v9, %v7972_v33 }
  0x7c   :  { %6553 = vrot.lane.b32.xlu1 %v7858_v24, %s7739_s25  ;;  %6548 = vrot.lane.b32.xlu0 %v7912_v44, %s7739_s25 }
  0x7d   :  { %6298 = vmatpush1.bf16.msra.mxu0 %v6297_v49  ;;  %6368 = vmatpush1.bf16.msra.mxu1 %v6297_v49 }
  0x7e   :  { %6300 = vmatprep.subr.bf16.mxu0 %v6299_v50  ;;  %6353 = vmatprep.subr.bf16.mxu1 %v6299_v50 }
  0x80   :  { %6563 = vrot.lane.b32.xlu1 %v7870_v27, %s7739_s25  ;;  %6558 = vrot.lane.b32.xlu0 %v7882_v31, %s7739_s25 }
  0x81   :  { %6302 = vmatpush1.bf16.msra.mxu0 %v6301_v57  ;;  %6369 = vmatpush1.bf16.msra.mxu1 %v6301_v57 }
  0x82   :  { %6304 = vmatprep.subr.bf16.mxu0 %v6303_v58  ;;  %6354 = vmatprep.subr.bf16.mxu1 %v6303_v58 }
  0x84   :  { %6573 = vrot.lane.b32.xlu1 %v7888_v34, %s7739_s25  ;;  %6568 = vrot.lane.b32.xlu0 %v7895_v36, %s7739_s25 }
  0x85   :  { %6306 = vmatpush1.bf16.msra.mxu0 %v6305_v61  ;;  %6370 = vmatpush1.bf16.msra.mxu1 %v6305_v61 }
  0x88   :  { %6583 = vrot.lane.b32.xlu1 %v7924_v53, %s7739_s25  ;;  %6578 = vrot.lane.b32.xlu0 %v7988_v54, %s7739_s25 }
  0x8c   :  { %6593 = vrot.lane.b32.xlu1 %v7912_v44, %s7740_s26  ;;  %6588 = vrot.lane.b32.xlu0 %v7862_v25, %s7740_s26 }
  0x90   :  { %6603 = vrot.lane.b32.xlu1 %v7882_v31, %s7740_s26  ;;  %6598 = vrot.lane.b32.xlu0 %v7858_v24, %s7740_s26 }
  0x94   :  { %6613 = vrot.lane.b32.xlu1 %v7895_v36, %s7740_s26  ;;  %6608 = vrot.lane.b32.xlu0 %v7870_v27, %s7740_s26 }
  0x98   :  { %6623 = vrot.lane.b32.xlu1 %v6622_v62, %s7740_s26  ;;  %6618 = vrot.lane.b32.xlu0 %v7924_v53, %s7740_s26 }
  0x9c   :  { %6633 = vrot.lane.b32.xlu1 %v7862_v25, %s7741_s27  ;;  %6628 = vrot.lane.b32.xlu0 %v7888_v34, %s7740_s26 }
  0xa0   :  { %6643 = vrot.lane.b32.xlu1 %v6622_v62, %s7741_s27  ;;  %6638 = vrot.lane.b32.xlu0 %v7924_v53, %s7741_s27 }
  0xa4   :  { %6653 = vrot.lane.b32.xlu1 %v7858_v24, %s7741_s27  ;;  %6648 = vrot.lane.b32.xlu0 %v7912_v44, %s7741_s27 }
  0xa8   :  { %6663 = vrot.lane.b32.xlu1 %v7870_v27, %s7741_s27  ;;  %6658 = vrot.lane.b32.xlu0 %v7882_v31, %s7741_s27 }
  0xac   :  { %6673 = vrot.lane.b32.xlu1 %v7888_v34, %s7741_s27  ;;  %6668 = vrot.lane.b32.xlu0 %v7895_v36, %s7741_s27  ;;  %v8051_v34 = vand.u32 127, %v74_v0  ;;  %v8071_v0 = vpack.i.bf16 %v7852_v22, %v7849_v21 }
  0xae   :  { %vm231_vm0 = vcmp.lt.s32.totalorder %v8051_v34, 89  ;;  %vm285_vm4 = vcmp.lt.s32.totalorder %v8051_v34, 86  ;;  %vm339_vm5 = vcmp.lt.s32.totalorder %v8051_v34, 83  ;;  %vm396_vm6 = vcmp.lt.s32.totalorder %v8051_v34, 51 }
  0xaf   :  { %vm450_vm7 = vcmp.lt.s32.totalorder %v8051_v34, 48  ;;  %vm504_vm8 = vcmp.lt.s32.totalorder %v8051_v34, 45  ;;  %vm569_vm9 = vcmp.lt.s32.totalorder %v8051_v34, 12  ;;  %vm623_vm10 = vcmp.lt.s32.totalorder %v8051_v34, 9 }
  0xb0   :  { %6683 = vrot.lane.b32.xlu1 %v8026_v7, %s7742_s28  ;;  %6678 = vrot.lane.b32.xlu0 %v7988_v54, %s7742_s28  ;;  %vm677_vm11 = vcmp.lt.s32.totalorder %v8051_v34, 6  ;;  %vm733_vm12 = vcmp.lt.s32.totalorder %v8051_v34, 102  ;;  %vm787_vm13 = vcmp.lt.s32.totalorder %v8051_v34, 99  ;;  %vm841_vm14 = vcmp.lt.s32.totalorder %v8051_v34, 96 }
  0xb1   :  { %vm906_vm15 = vcmp.lt.s32.totalorder %v8051_v34, 64 }
  0xb4   :  { %6693 = vrot.lane.b32.xlu1 %v7862_v25, %s7742_s28  ;;  %6688 = vrot.lane.b32.xlu0 %v8022_v6, %s7742_s28 }
  0xb6   :  { %v8089_v18 = vpop.permute.xlu1 %6413  ;;  %v8091_v20 = vpop.permute.xlu0 %6408 }
  0xb7   :  { %v6416_v21 = vunpack.i.h.bf16 %v8089_v18  ;;  %v6415_v22 = vunpack.i.l.bf16 %v8089_v18  ;;  %v6411_v26 = vunpack.i.h.bf16 %v8091_v20  ;;  %v14073_v37 = vunpack.i.l.bf16 %v8091_v20 }
  0xb8   :  { %6703 = vrot.lane.b32.xlu1 %v7858_v24, %s7742_s28  ;;  %6698 = vrot.lane.b32.xlu0 %v7912_v44, %s7742_s28  ;;  %v14143_v3 = vunpack.i.l.bf16 %v8091_v20 }
  0xb9   :  { %v8117_v39 = vsel %vm231_vm0, %v6415_v22, %v6416_v21  ;;  %v8125_v40 = vsel %vm231_vm0, %v14073_v37, %v6411_v26 }
  0xba   :  { %v6434_v42 = vpop.permute.xlu1 %6433  ;;  %v6419_v46 = vpop.permute.xlu0 %6418  ;;  %v14144_v2 = vrot.slane %v8125_v40, 6 }
  0xbb   :  { %v6436_v47 = vunpack.i.h.bf16 %v6434_v42  ;;  %v6435_v48 = vunpack.i.l.bf16 %v6434_v42  ;;  %v6421_v49 = vunpack.i.h.bf16 %v6419_v46  ;;  %v6420_v50 = vunpack.i.l.bf16 %v6419_v46 }
  0xbc   :  { %6713 = vrot.lane.b32.xlu1 %v7870_v27, %s7742_s28  ;;  %6708 = vrot.lane.b32.xlu0 %v7882_v31, %s7742_s28 }
  0xbd   :  { %v8145_v45 = vsel %vm231_vm0, %v6416_v21, %v6435_v48  ;;  %v239_v56 = vsel %vm231_vm0, %v6420_v50, %v6421_v49  ;;  %v240_v57 = vsel %vm231_vm0, %v6436_v47, %v6420_v50  ;;  %v8153_v58 = vsel %vm231_vm0, %v6435_v48, %v6436_v47 }
  0xbe   :  { %v1732_v59 = vrot.slane %v240_v57, 6  ;;  %v1733_v60 = vrot.slane %v239_v56, 6  ;;  %v6439_v61 = vpop.permute.xlu1 %6438  ;;  %v6424_v62 = vpop.permute.xlu0 %6423  ;;  %v1722_v63 = vrot.slane %v8145_v45, 4  ;;  %v1727_v1 = vrot.slane %v8153_v58, 2 }
  0xbf   :  { %v6441_v11 = vunpack.i.h.bf16 %v6439_v61  ;;  %v6440_v13 = vunpack.i.l.bf16 %v6439_v61  ;;  %v6426_v21 = vunpack.i.h.bf16 %v6424_v62  ;;  %v6425_v42 = vunpack.i.l.bf16 %v6424_v62 }
  0xc0   :  { %6723 = vrot.lane.b32.xlu1 %v7988_v54, %s7743_s29  ;;  %6718 = vrot.lane.b32.xlu0 %v7895_v36, %s7742_s28  ;;  %v1778_v47 = vsel %vm1762_vm1, %v240_v57, %v1733_v60  ;;  %v1737_v48 = vrot.slane %v239_v56, 4  ;;  %v1777_v50 = vsel %vm1762_vm1, %v8153_v58, %v1732_v59 }
  0xc1   :  { %v8168_v61 = vsel %vm231_vm0, %v6421_v49, %v6440_v13  ;;  %v8172_v62 = vsel %vm231_vm0, %v6425_v42, %v6426_v21  ;;  %v8176_v55 = vsel %vm231_vm0, %v6441_v11, %v6425_v42  ;;  %v8180_v46 = vsel %vm231_vm0, %v6440_v13, %v6441_v11 }
  0xc2   :  { %v1749_v57 = vrot.slane %v8172_v62, 6  ;;  %v8184_v58 = vpop.permute.xlu1 %6443  ;;  %v6429_v49 = vpop.permute.xlu0 %6428  ;;  %v1738_v59 = vrot.slane %v8168_v61, 4  ;;  %v1743_v60 = vrot.slane %v8180_v46, 2  ;;  %v1742_v13 = vrot.slane %v8168_v61, 2 }
  0xc3   :  { %v14074_v42 = vunpack.i.l.bf16 %v8184_v58  ;;  %v6431_v52 = vunpack.i.h.bf16 %v6429_v49  ;;  %v6430_v37 = vunpack.i.l.bf16 %v6429_v49  ;;  %v1779_v56 = vsel %vm1765_vm2, %v1777_v50, %v1737_v48 }
  0xc4   :  { %6733 = vrot.lane.b32.xlu1 %v8022_v6, %s7743_s29  ;;  %6728 = vrot.lane.b32.xlu0 %v8026_v7, %s7743_s29  ;;  %v1780_v11 = vsel %vm1765_vm2, %v1778_v47, %v1738_v59  ;;  %v8199_v51 = vsel %vm1762_vm1, %v8176_v55, %v1749_v57 }
  0xc5   :  { %v8205_v49 = vsel %vm231_vm0, %v6426_v21, %v14074_v42  ;;  %v244_v10 = vsel %vm231_vm0, %v6431_v52, %v6415_v22  ;;  %v245_v47 = vsel %vm231_vm0, %v6430_v37, %v6431_v52  ;;  %v246_v48 = vsel %vm231_vm0, %v6411_v26, %v6430_v37 }
  0xc6   :  { %v1716_v50 = vrot.slane %v244_v10, 6  ;;  %v8217_v61 = vpop.permute.xlu1 %6453  ;;  %v6449_v57 = vpop.permute.xlu0 %6448  ;;  %v1706_v59 = vrot.slane %v246_v48, 4  ;;  %v1711_v21 = vrot.slane %v245_v47, 2  ;;  %v1710_v42 = vrot.slane %v246_v48, 2 }
  0xc7   :  { %v6456_v18 = vunpack.i.h.bf16 %v8217_v61  ;;  %v14083_v5 = vunpack.i.l.bf16 %v8217_v61  ;;  %v6451_v22 = vunpack.i.h.bf16 %v6449_v57  ;;  %v6450_v53 = vunpack.i.l.bf16 %v6449_v57 }
  0xc8   :  { %6743 = vrot.lane.b32.xlu1 %v7912_v44, %s7743_s29  ;;  %6738 = vrot.lane.b32.xlu0 %v7862_v25, %s7743_s29  ;;  %v14142_v26 = vrot.slane %v8117_v39, 6  ;;  %v1771_v52 = vsel %vm1762_vm1, %v245_v47, %v1716_v50  ;;  %v8230_v48 = vsel %vm1768_vm3, %v1780_v11, %v1743_v60  ;;  %v1754_v33 = vrot.slane %v8205_v49, 4 }
  0xc9   :  { %v8237_v57 = vsel %vm285_vm4, %v14083_v5, %v6456_v18  ;;  %v232_v23 = vsel %vm231_vm0, %v6450_v53, %v6451_v22 }
  0xca   :  { %v1772_v37 = vsel %vm1762_vm1, %v244_v10, %v14142_v26  ;;  %v248_v10 = vsel %vm231_vm0, %v6451_v22, %v14143_v3  ;;  %v6464_v11 = vpop.permute.xlu1 %6463  ;;  %v6459_v50 = vpop.permute.xlu0 %6458  ;;  %v14145_v22 = vrot.slane %v8117_v39, 4 }
  0xcb   :  { %v1774_v47 = vsel %vm1765_vm2, %v1772_v37, %v1722_v63  ;;  %v1700_v26 = vrot.slane %v248_v10, 6  ;;  %v1764_v5 = vsel %vm1762_vm1, %v248_v10, %v14144_v2  ;;  %v6466_v29 = vunpack.i.h.bf16 %v6464_v11 }
  0xcc   :  { %v1776_v8 = vsel %vm1768_vm3, %v1774_v47, %v1727_v1  ;;  %v6465_v53 = vunpack.i.l.bf16 %v6464_v11  ;;  %v6461_v4 = vunpack.i.h.bf16 %v6459_v50  ;;  %v6460_v20 = vunpack.i.l.bf16 %v6459_v50  ;;  %6753 = vrot.lane.b32.xlu1 %v7882_v31, %s7743_s29  ;;  %6748 = vrot.lane.b32.xlu0 %v7858_v24, %s7743_s29 }
  0xcd   :  { %v1767_v3 = vsel %vm1765_vm2, %v1764_v5, %v1706_v59  ;;  %v1763_v63 = vsel %vm1762_vm1, %v232_v23, %v1700_v26  ;;  %v1773_v2 = vsel %vm1765_vm2, %v1771_v52, %v14145_v22  ;;  %v1753_v1 = vrot.slane %v8172_v62, 4 }
  0xce   :  { %v8263_v37 = vsel %vm285_vm4, %v6465_v53, %v6466_v29  ;;  %v8267_v10 = vsel %vm285_vm4, %v6461_v4, %v6465_v53  ;;  %v8271_v47 = vsel %vm285_vm4, %v6456_v18, %v6460_v20  ;;  %v1770_v5 = vsel %vm1768_vm3, %v1767_v3, %v1711_v21  ;;  %v6474_v62 = vpop.permute.xlu1 %6473  ;;  %v6469_v59 = vpop.permute.xlu0 %6468 }
  0xcf   :  { %v1808_v23 = vrot.slane %v8263_v37, 6  ;;  %v1807_v39 = vrot.slane %v8267_v10, 6  ;;  %4205 = vmatprep.mubr.f32.mxu0 %v1770_v5  ;;  %v14146_v52 = vrot.slane %v8125_v40, 4  ;;  %v14147_v50 = vrot.slane %v8145_v45, 2 }
  0xd0   :  { %v6476_v53 = vunpack.i.h.bf16 %v6474_v62  ;;  %v6475_v18 = vunpack.i.l.bf16 %v6474_v62  ;;  %v6471_v22 = vunpack.i.h.bf16 %v6469_v59  ;;  %v6470_v60 = vunpack.i.l.bf16 %v6469_v59  ;;  %6763 = vrot.lane.b32.xlu1 %v7895_v36, %s7743_s29  ;;  %6758 = vrot.lane.b32.xlu0 %v7870_v27, %s7743_s29 }
  0xd1   :  { %v1766_v11 = vsel %vm1765_vm2, %v1763_v63, %v14146_v52  ;;  %v1775_v26 = vsel %vm1768_vm3, %v1773_v2, %v14147_v50  ;;  %v1781_v40 = vsel %vm1768_vm3, %v1779_v56, %v1742_v13  ;;  %v14148_v3 = vunpack.i.h.bf16 %v8184_v58 }
  0xd2   :  { %v1769_v21 = vsel %vm1768_vm3, %v1766_v11, %v1710_v42  ;;  %v14149_v45 = vunpack.i.l.bf16 %v8184_v58  ;;  %v1758_v2 = vrot.slane %v8205_v49, 2  ;;  %v8297_v42 = vsel %vm285_vm4, %v6475_v18, %v6476_v53  ;;  %v6484_v49 = vpop.permute.xlu1 %6483  ;;  %v8309_v59 = vpop.permute.xlu0 %6478 }
  0xd3   :  { %v8301_v5 = vsel %vm285_vm4, %v6471_v22, %v6475_v18  ;;  %v8305_v56 = vsel %vm285_vm4, %v6466_v29, %v6470_v60  ;;  %4206 = vmatmul.mubr.f32.vlgmr.msra.gmra.mrb[0].mxu0 %v1769_v21  ;;  %v1824_v58 = vrot.slane %v8297_v42, 6  ;;  %v1786_v52 = vsel %vm1765_vm2, %v8199_v51, %v1754_v33 }
  0xd4   :  { %v233_v63 = vsel %vm231_vm0, %v14149_v45, %v14148_v3  ;;  %v1823_v62 = vrot.slane %v8301_v5, 6  ;;  %4211 = vmatprep.mubr.f32.mxu0 %v1776_v8  ;;  %v14150_v11 = vrot.slane %v8176_v55, 6  ;;  %v6486_v50 = vunpack.i.h.bf16 %v6484_v49  ;;  %6773 = vrot.lane.b32.xlu1 %v8026_v7, %s7744_s30 }
  0xd5   :  { %v1759_v13 = vrot.slane %v233_v63, 2  ;;  %v6485_v18 = vunpack.i.l.bf16 %v6484_v49  ;;  %v6481_v21 = vunpack.i.h.bf16 %v8309_v59  ;;  %v6480_v3 = vunpack.i.l.bf16 %v8309_v59  ;;  %6768 = vrot.lane.b32.xlu0 %v7988_v54, %s7744_s30 }
  0xd6   :  { %v1783_v29 = vsel %vm1762_vm1, %v8180_v46, %v14150_v11  ;;  %v299_v51 = vsel %vm285_vm4, %v6460_v20, %v6461_v4  ;;  %v1797_v55 = vrot.slane %v8271_v47, 4  ;;  %v6494_v63 = vpop.permute.xlu1 %6493  ;;  %v14151_v45 = vunpack.i.l.bf16 %v8217_v61 }
  0xd7   :  { %v1788_v33 = vsel %vm1768_vm3, %v1786_v52, %v1759_v13  ;;  %v1785_v8 = vsel %vm1765_vm2, %v1783_v29, %v1753_v1  ;;  %v8331_v46 = vsel %vm285_vm4, %v6485_v18, %v6486_v50  ;;  %v8337_v7 = vsel %vm285_vm4, %v6481_v21, %v6485_v18  ;;  %4212 = vmatmul.mubr.f32.gmra.mrb[2].mxu0 %v1775_v26  ;;  %v8349_v13 = vpop.permute.xlu0 %6488 }
  0xd8   :  { %v8343_v1 = vsel %vm285_vm4, %v6476_v53, %v6480_v3  ;;  %v1787_v4 = vsel %vm1768_vm3, %v1785_v8, %v1758_v2  ;;  %4217 = vmatprep.mubr.f32.mxu0 %v8230_v48  ;;  %v1802_v49 = vrot.slane %v299_v51, 2  ;;  %v1796_v52 = vrot.slane %v8237_v57, 4  ;;  %6783 = vrot.lane.b32.xlu1 %v7862_v25, %s7744_s30 }
  0xd9   :  { %v6496_v11 = vunpack.i.h.bf16 %v6494_v63  ;;  %v6495_v29 = vunpack.i.l.bf16 %v6494_v63  ;;  %v6491_v53 = vunpack.i.h.bf16 %v8349_v13  ;;  %v14090_v26 = vunpack.i.l.bf16 %v8349_v13  ;;  %6778 = vrot.lane.b32.xlu0 %v8022_v6, %s7744_s30 }
  0xda   :  { %v1801_v48 = vrot.slane %v8271_v47, 2  ;;  %v8361_v2 = vsel %vm285_vm4, %v6470_v60, %v6471_v22  ;;  %v1813_v18 = vrot.slane %v8305_v56, 4  ;;  %v1860_v8 = vsel %vm1762_vm1, %v8267_v10, %v1808_v23  ;;  %v8381_v23 = vpop.permute.xlu1 %6503 }
  0xdb   :  { %v286_v63 = vsel %vm285_vm4, %v6495_v29, %v6496_v11  ;;  %v302_v6 = vsel %vm285_vm4, %v6496_v11, %v14151_v45  ;;  %v8378_v60 = vsel %vm285_vm4, %v6486_v50, %v14090_v26  ;;  %4218 = vmatmul.mubr.f32.gmra.mrb[4].mxu0 %v1781_v40  ;;  %v1818_v47 = vrot.slane %v8361_v2, 2  ;;  %v8383_v20 = vpop.permute.xlu0 %6498 }
  0xdc   :  { %v1791_v22 = vrot.slane %v302_v6, 6  ;;  %4223 = vmatprep.mubr.f32.mxu0 %v1788_v33  ;;  %v14152_v61 = vrot.slane %v8237_v57, 6  ;;  %v1862_v45 = vsel %vm1765_vm2, %v1860_v8, %v1813_v18  ;;  %v1812_v11 = vrot.slane %v8263_v37, 4  ;;  %6793 = vrot.lane.b32.xlu1 %v7858_v24, %s7744_s30 }
  0xdd   :  { %v6506_v50 = vunpack.i.h.bf16 %v8381_v23  ;;  %v6505_v40 = vunpack.i.l.bf16 %v8381_v23  ;;  %v6501_v26 = vunpack.i.h.bf16 %v8383_v20  ;;  %v6500_v33 = vunpack.i.l.bf16 %v8383_v20  ;;  %6788 = vrot.lane.b32.xlu0 %v7912_v44, %s7744_s30 }
  0xde   :  { %v1854_v29 = vsel %vm1762_vm1, %v302_v6, %v14152_v61  ;;  %v1853_v18 = vsel %vm1762_vm1, %v286_v63, %v1791_v22  ;;  %v1864_v37 = vsel %vm1768_vm3, %v1862_v45, %v1818_v47  ;;  %v1817_v8 = vrot.slane %v8305_v56, 2  ;;  %v8417_v56 = vpop.permute.xlu1 %6513 }
  0xdf   :  { %v1856_v57 = vsel %vm1765_vm2, %v1854_v29, %v1797_v55  ;;  %v8406_v6 = vsel %vm339_vm5, %v6501_v26, %v6505_v40  ;;  %v8412_v61 = vsel %vm339_vm5, %v6500_v33, %v6501_v26  ;;  %4224 = vmatmul.mubr.f32.gmra.mrb[6].mxu0 %v1787_v4  ;;  %v1855_v63 = vsel %vm1765_vm2, %v1853_v18, %v1796_v52  ;;  %v6509_v22 = vpop.permute.xlu0 %6508 }
  0xe0   :  { %v1858_v55 = vsel %vm1768_vm3, %v1856_v57, %v1802_v49  ;;  %v1880_v47 = vrot.slane %v8412_v61, 6  ;;  %v1857_v29 = vsel %vm1768_vm3, %v1855_v63, %v1801_v48  ;;  %v1859_v45 = vsel %vm1762_vm1, %v299_v51, %v1807_v39  ;;  %6803 = vrot.lane.b32.xlu1 %v7870_v27, %s7744_s30 }
  0xe1   :  { %4229 = vmatprep.mubr.f32.mxu0 %v1858_v55  ;;  %v8429_v4 = vsel %vm285_vm4, %v6480_v3, %v6481_v21  ;;  %v6516_v49 = vunpack.i.h.bf16 %v8417_v56  ;;  %v6515_v52 = vunpack.i.l.bf16 %v8417_v56  ;;  %v6511_v26 = vunpack.i.h.bf16 %v6509_v22  ;;  %6798 = vrot.lane.b32.xlu0 %v7882_v31, %s7744_s30 }
  0xe2   :  { %v6510_v57 = vunpack.i.l.bf16 %v6509_v22  ;;  %v1861_v10 = vsel %vm1765_vm2, %v1859_v45, %v1812_v11  ;;  %v1829_v39 = vrot.slane %v8343_v1, 4  ;;  %v1834_v59 = vrot.slane %v8429_v4, 2  ;;  %v8463_v11 = vpop.permute.xlu1 %6523 }
  0xe3   :  { %v1866_v21 = vsel %vm1762_vm1, %v8301_v5, %v1824_v58  ;;  %v8448_v3 = vsel %vm339_vm5, %v6511_v26, %v6515_v52  ;;  %4230 = vmatmul.mubr.f32.gmra.mrb[8].mxu0 %v1857_v29  ;;  %v1863_v51 = vsel %vm1768_vm3, %v1861_v10, %v1817_v8  ;;  %v6519_v18 = vpop.permute.xlu0 %6518  ;;  %v1828_v63 = vrot.slane %v8297_v42, 4 }
  0xe4   :  { %v8452_v27 = vsel %vm339_vm5, %v6510_v57, %v6511_v26  ;;  %v8458_v31 = vsel %vm339_vm5, %v6506_v50, %v6510_v57  ;;  %4235 = vmatprep.mubr.f32.mxu0 %v1864_v37  ;;  %v1868_v55 = vsel %vm1765_vm2, %v1866_v21, %v1829_v39  ;;  %v6526_v22 = vunpack.i.h.bf16 %v8463_v11  ;;  %6813 = vrot.lane.b32.xlu1 %v8036_v14, %s7745_s4 }
  0xe5   :  { %v1895_v58 = vrot.slane %v8458_v31, 6  ;;  %v1896_v48 = vrot.slane %v8452_v27, 6  ;;  %v6525_v45 = vunpack.i.l.bf16 %v8463_v11  ;;  %v6521_v26 = vunpack.i.h.bf16 %v6519_v18  ;;  %6808 = vrot.lane.b32.xlu0 %v7895_v36, %s7744_s30 }
  0xe6   :  { %v6520_v29 = vunpack.i.l.bf16 %v6519_v18  ;;  %v1870_v37 = vsel %vm1768_vm3, %v1868_v55, %v1834_v59  ;;  %v1833_v8 = vrot.slane %v8343_v1, 2  ;;  %v1865_v42 = vsel %vm1762_vm1, %v8361_v2, %v1823_v62  ;;  %v8504_v2 = vpop.permute.xlu1 %6533 }
  0xe7   :  { %v14153_v57 = vunpack.i.l.bf16 %v8349_v13  ;;  %v8489_v36 = vsel %vm339_vm5, %v6521_v26, %v6525_v45  ;;  %4236 = vmatmul.mubr.f32.gmra.mrb[10].mxu0 %v1863_v51  ;;  %v1867_v62 = vsel %vm1765_vm2, %v1865_v42, %v1828_v63  ;;  %v6529_v39 = vpop.permute.xlu0 %6528  ;;  %v1845_v21 = vrot.slane %v8378_v60, 4 }
  0xe8   :  { %v8493_v1 = vsel %vm339_vm5, %v6520_v29, %v6521_v26  ;;  %v8499_v5 = vsel %vm339_vm5, %v6516_v49, %v6520_v29  ;;  %4241 = vmatprep.mubr.f32.mxu0 %v1870_v37  ;;  %v1869_v59 = vsel %vm1768_vm3, %v1867_v62, %v1833_v8  ;;  %v14091_v51 = vunpack.i.l.bf16 %v8504_v2  ;;  %6823 = vrot.lane.b32.xlu1 %v8040_v15, %s7745_s4 }
  0xe9   :  { %v287_v10 = vsel %vm285_vm4, %v14153_v57, %v6491_v53  ;;  %v1912_v53 = vrot.slane %v8493_v1, 6  ;;  %v6531_v55 = vunpack.i.h.bf16 %v6529_v39  ;;  %v6530_v63 = vunpack.i.l.bf16 %v6529_v39  ;;  %6818 = vrot.lane.b32.xlu0 %v8044_v43, %s7745_s4 }
  0xea   :  { %v1850_v26 = vrot.slane %v287_v10, 2  ;;  %v14154_v29 = vrot.slane %v8331_v46, 6  ;;  %v1844_v8 = vrot.slane %v8331_v46, 4  ;;  %v1849_v42 = vrot.slane %v8378_v60, 2 }
  0xeb   :  { %v8525_v57 = vsel %vm339_vm5, %v6531_v55, %v14091_v51  ;;  %v8529_v62 = vsel %vm339_vm5, %v6530_v63, %v6531_v55  ;;  %v8535_v10 = vsel %vm339_vm5, %v6526_v22, %v6530_v63  ;;  %4242 = vmatmul.mubr.f32.gmra.mrb[12].mxu0 %v1869_v59  ;;  %v8541_v51 = vpop.permute.xlu1 %6543  ;;  %v6539_v18 = vpop.permute.xlu0 %6538  ;;  %v14155_v55 = vrot.slane %v8337_v7, 6 }
  0xec   :  { %v1872_v37 = vsel %vm1762_vm1, %v8337_v7, %v14154_v29  ;;  %v1928_v39 = vrot.slane %v8529_v62, 6  ;;  %v6546_v63 = vunpack.i.h.bf16 %v8541_v51  ;;  %v6545_v59 = vunpack.i.l.bf16 %v8541_v51  ;;  %6833 = vrot.lane.b32.xlu1 %v8048_v16, %s7745_s4 }
  0xed   :  { %v1874_v46 = vsel %vm1765_vm2, %v1872_v37, %v1845_v21  ;;  %v1871_v13 = vsel %vm1762_vm1, %v8429_v4, %v14155_v55  ;;  %v6541_v21 = vunpack.i.h.bf16 %v6539_v18  ;;  %v6540_v37 = vunpack.i.l.bf16 %v6539_v18  ;;  %6828 = vrot.lane.b32.xlu0 %v8059_v17, %s7745_s4 }
  0xee   :  { %v1876_v29 = vsel %vm1768_vm3, %v1874_v46, %v1850_v26  ;;  %v1873_v60 = vsel %vm1765_vm2, %v1871_v13, %v1844_v8  ;;  %v353_v7 = vsel %vm339_vm5, %v6505_v40, %v6506_v50  ;;  %v1885_v4 = vrot.slane %v8406_v6, 4 }
  0xef   :  { %4247 = vmatprep.mubr.f32.mxu0 %v1876_v29  ;;  %v1884_v26 = vrot.slane %v8412_v61, 4  ;;  %v340_v13 = vsel %vm339_vm5, %v6540_v37, %v6541_v21  ;;  %v356_v18 = vsel %vm339_vm5, %v6541_v21, %v6500_v33  ;;  %v1875_v8 = vsel %vm1768_vm3, %v1873_v60, %v1849_v42  ;;  %v8569_v23 = vpop.permute.xlu1 %6553  ;;  %v6549_v50 = vpop.permute.xlu0 %6548 }
  0xf0   :  { %v1890_v46 = vrot.slane %v353_v7, 2  ;;  %v1879_v29 = vrot.slane %v356_v18, 6  ;;  %4248 = vmatmul.mubr.f32.gmra.mrb[14].mxu0 %v1875_v8  ;;  %v1942_v40 = vsel %vm1762_vm1, %v356_v18, %v1880_v47  ;;  %v1889_v55 = vrot.slane %v8406_v6, 2  ;;  %6843 = vrot.lane.b32.xlu1 %v8063_v28, %s7745_s4 }
  0xf1   :  { %v8581_v20 = vsel %vm339_vm5, %v6515_v52, %v6516_v49  ;;  %v6556_v33 = vunpack.i.h.bf16 %v8569_v23  ;;  %v14094_v42 = vunpack.i.l.bf16 %v8569_v23  ;;  %v6551_v60 = vunpack.i.h.bf16 %v6549_v50  ;;  %6838 = vrot.lane.b32.xlu0 %v8067_v19, %s7745_s4 }
  0xf2   :  { %v6550_v21 = vunpack.i.l.bf16 %v6549_v50  ;;  %v1944_v6 = vsel %vm1765_vm2, %v1942_v40, %v1885_v4  ;;  %v1941_v61 = vsel %vm1762_vm1, %v340_v13, %v1879_v29  ;;  %v1901_v47 = vrot.slane %v8448_v3, 4 }
  0xf3   :  { %v1906_v56 = vrot.slane %v8581_v20, 2  ;;  %v8597_v49 = vsel %vm396_vm6, %v6551_v60, %v14094_v42  ;;  %v1946_v4 = vsel %vm1768_vm3, %v1944_v6, %v1890_v46  ;;  %v8612_v8 = vpop.permute.xlu1 %6563  ;;  %v6559_v29 = vpop.permute.xlu0 %6558  ;;  %v1943_v50 = vsel %vm1765_vm2, %v1941_v61, %v1884_v26 }
  0xf4   :  { %v8601_v52 = vsel %vm396_vm6, %v6550_v21, %v6551_v60  ;;  %v8607_v37 = vsel %vm396_vm6, %v6546_v63, %v6550_v21  ;;  %4253 = vmatprep.mubr.f32.mxu0 %v1946_v4  ;;  %v1948_v40 = vsel %vm1762_vm1, %v8458_v31, %v1896_v48  ;;  %v6566_v60 = vunpack.i.h.bf16 %v8612_v8  ;;  %6853 = vrot.lane.b32.xlu1 %v8071_v0, %s7745_s4 }
  0xf5   :  { %v14093_v21 = vunpack.i.l.bf16 %v8612_v8  ;;  %v6561_v46 = vunpack.i.h.bf16 %v6559_v29  ;;  %v6560_v6 = vunpack.i.l.bf16 %v6559_v29  ;;  %v1945_v13 = vsel %vm1768_vm3, %v1943_v50, %v1889_v55  ;;  %6848 = vrot.lane.b32.xlu0 %v8075_v30, %s7745_s4 }
  0xf6   :  { %v1950_v26 = vsel %vm1765_vm2, %v1948_v40, %v1901_v47  ;;  %v1900_v61 = vrot.slane %v8452_v27, 4  ;;  %v1905_v48 = vrot.slane %v8448_v3, 2  ;;  %4254 = vmatmul.mubr.f32.gmra.mrb[16].mxu0 %v1945_v13  ;;  %v345_v13 = vsel %vm339_vm5, %v6525_v45, %v6526_v22 }
  0xf7   :  { %v8633_v4 = vsel %vm396_vm6, %v6561_v46, %v14093_v21  ;;  %v8637_v55 = vsel %vm396_vm6, %v6560_v6, %v6561_v46  ;;  %v8643_v29 = vsel %vm396_vm6, %v6556_v33, %v6560_v6  ;;  %v1952_v27 = vsel %vm1768_vm3, %v1950_v26, %v1906_v56  ;;  %v8648_v50 = vpop.permute.xlu1 %6573  ;;  %v6569_v40 = vpop.permute.xlu0 %6568 }
  0xf8   :  { %4259 = vmatprep.mubr.f32.mxu0 %v1952_v27  ;;  %v1947_v46 = vsel %vm1762_vm1, %v353_v7, %v1895_v58  ;;  %v14092_v6 = vunpack.i.l.bf16 %v8648_v50  ;;  %v6571_v26 = vunpack.i.h.bf16 %v6569_v40  ;;  %v6570_v27 = vunpack.i.l.bf16 %v6569_v40  ;;  %6863 = vrot.lane.b32.xlu1 %v8044_v43, %s7746_s5 }
  0xf9   :  { %v1949_v3 = vsel %vm1765_vm2, %v1947_v46, %v1900_v61  ;;  %6858 = vrot.lane.b32.xlu0 %v8036_v14, %s7746_s5  ;;  %v1917_v31 = vrot.slane %v8489_v36, 4  ;;  %v1922_v58 = vrot.slane %v345_v13, 2  ;;  %v1954_v11 = vsel %vm1762_vm1, %v8499_v5, %v1912_v53 }
  0xfa   :  { %v8676_v22 = vsel %vm396_vm6, %v6571_v26, %v14092_v6  ;;  %v8680_v45 = vsel %vm396_vm6, %v6570_v27, %v6571_v26  ;;  %v8686_v7 = vsel %vm396_vm6, %v6566_v60, %v6570_v27  ;;  %v1951_v61 = vsel %vm1768_vm3, %v1949_v3, %v1905_v48 }
  0xfb   :  { %v2015_v53 = vrot.slane %v8686_v7, 6  ;;  %v2016_v40 = vrot.slane %v8680_v45, 6  ;;  %4260 = vmatmul.mubr.f32.gmra.mrb[18].mxu0 %v1951_v61  ;;  %v1956_v46 = vsel %vm1765_vm2, %v1954_v11, %v1917_v31  ;;  %v6584_v6 = vpop.permute.xlu1 %6583  ;;  %v6579_v56 = vpop.permute.xlu0 %6578  ;;  %v1916_v26 = vrot.slane %v8493_v1, 4 }
  0xfc   :  { %v1958_v47 = vsel %vm1768_vm3, %v1956_v46, %v1922_v58  ;;  %v6586_v21 = vunpack.i.h.bf16 %v6584_v6  ;;  %v6585_v18 = vunpack.i.l.bf16 %v6584_v6  ;;  %v6581_v42 = vunpack.i.h.bf16 %v6579_v56  ;;  %6873 = vrot.lane.b32.xlu1 %v8059_v17, %s7746_s5 }
  0xfd   :  { %4265 = vmatprep.mubr.f32.mxu0 %v1958_v47  ;;  %v6580_v27 = vunpack.i.l.bf16 %v6579_v56  ;;  %v1921_v48 = vrot.slane %v8489_v36, 2  ;;  %v14156_v3 = vrot.slane %v8499_v5, 6  ;;  %v14157_v31 = vunpack.i.h.bf16 %v8504_v2  ;;  %6868 = vrot.lane.b32.xlu0 %v8040_v15, %s7746_s5 }
  0xfe   :  { %v14158_v1 = vunpack.i.l.bf16 %v8504_v2  ;;  %v397_v47 = vsel %vm396_vm6, %v6585_v18, %v6586_v21  ;;  %v8713_v36 = vsel %vm396_vm6, %v6586_v21, %v6545_v59  ;;  %v398_v5 = vsel %vm396_vm6, %v6581_v42, %v6585_v18 }
  0xff   :  { %v1953_v61 = vsel %vm1762_vm1, %v8581_v20, %v14156_v3  ;;  %v1968_v2 = vrot.slane %v397_v47, 6  ;;  %v1967_v56 = vrot.slane %v398_v5, 6  ;;  %v399_v58 = vsel %vm396_vm6, %v6580_v27, %v6581_v42  ;;  %v6594_v46 = vpop.permute.xlu1 %6593  ;;  %v8723_v3 = vpop.permute.xlu0 %6588 }
 0x100   :  { %v341_v6 = vsel %vm339_vm5, %v14158_v1, %v14157_v31  ;;  %v1955_v20 = vsel %vm1765_vm2, %v1953_v61, %v1916_v26  ;;  %v1933_v21 = vrot.slane %v8525_v57, 4  ;;  %v1960_v18 = vsel %vm1762_vm1, %v8535_v10, %v1928_v39  ;;  %6883 = vrot.lane.b32.xlu1 %v8067_v19, %s7746_s5 }
 0x101   :  { %v1957_v11 = vsel %vm1768_vm3, %v1955_v20, %v1921_v48  ;;  %v1938_v31 = vrot.slane %v341_v6, 2  ;;  %v6596_v26 = vunpack.i.h.bf16 %v6594_v46  ;;  %v6595_v61 = vunpack.i.l.bf16 %v6594_v46  ;;  %6878 = vrot.lane.b32.xlu0 %v8048_v16, %s7746_s5 }
 0x102   :  { %4266 = vmatmul.mubr.f32.gmra.mrb[20].mxu0 %v1957_v11  ;;  %v6591_v1 = vunpack.i.h.bf16 %v8723_v3  ;;  %v6590_v42 = vunpack.i.l.bf16 %v8723_v3  ;;  %v1932_v27 = vrot.slane %v8529_v62, 4  ;;  %v1962_v48 = vsel %vm1765_vm2, %v1960_v18, %v1933_v21 }
 0x103   :  { %v1937_v6 = vrot.slane %v8525_v57, 2  ;;  %v14159_v20 = vrot.slane %v8535_v10, 6  ;;  %v412_v62 = vsel %vm396_vm6, %v6545_v59, %v6546_v63  ;;  %v1964_v39 = vsel %vm1768_vm3, %v1962_v48, %v1938_v31  ;;  %v8760_v21 = vpop.permute.xlu0 %6598 }
 0x104   :  { %v8751_v46 = vsel %vm450_vm7, %v6595_v61, %v6596_v26  ;;  %v8757_v57 = vsel %vm450_vm7, %v6591_v1, %v6595_v61  ;;  %4271 = vmatprep.mubr.f32.mxu0 %v1964_v39  ;;  %v14095_v48 = vunpack.i.h.bf16 %v8760_v21  ;;  %v6600_v61 = vunpack.i.l.bf16 %v8760_v21  ;;  %6893 = vrot.lane.b32.xlu1 %v8075_v30, %s7746_s5 }
 0x105   :  { %v1959_v11 = vsel %vm1762_vm1, %v345_v13, %v14159_v20  ;;  %v6604_v13 = vpop.permute.xlu1 %6603  ;;  %v1973_v20 = vrot.slane %v8713_v36, 4  ;;  %6888 = vrot.lane.b32.xlu0 %v8063_v28, %s7746_s5  ;;  %v1972_v39 = vrot.slane %v397_v47, 4  ;;  %vm960_vm0 = vcmp.lt.s32.totalorder %v8051_v34, 61 }
 0x106   :  { %v1961_v10 = vsel %vm1765_vm2, %v1959_v11, %v1932_v27  ;;  %v6606_v31 = vunpack.i.h.bf16 %v6604_v13  ;;  %v6605_v18 = vunpack.i.l.bf16 %v6604_v13  ;;  %v1978_v27 = vrot.slane %v412_v62, 2 }
 0x107   :  { %v1963_v59 = vsel %vm1768_vm3, %v1961_v10, %v1937_v6  ;;  %v2030_v11 = vsel %vm1762_vm1, %v398_v5, %v1968_v2  ;;  %v1977_v6 = vrot.slane %v8713_v36, 2  ;;  %v8788_v5 = vsel %vm450_vm7, %v6596_v26, %v6600_v61  ;;  %v8793_v36 = vpop.permute.xlu0 %6608 }
 0x108   :  { %4272 = vmatmul.mubr.f32.gmra.mrb[22].mxu0 %v1963_v59  ;;  %v8776_v10 = vsel %vm450_vm7, %v6605_v18, %v6606_v31  ;;  %v8782_v13 = vsel %vm450_vm7, %v14095_v48, %v6605_v18  ;;  %v2032_v47 = vsel %vm1765_vm2, %v2030_v11, %v1973_v20  ;;  %v2029_v18 = vsel %vm1762_vm1, %v399_v58, %v1967_v56 }
 0x109   :  { %v8791_v2 = vpop.permute.xlu1 %6613  ;;  %v2034_v51 = vsel %vm1768_vm3, %v2032_v47, %v1978_v27  ;;  %v2031_v48 = vsel %vm1765_vm2, %v2029_v18, %v1972_v39  ;;  %v14160_v26 = vunpack.i.l.bf16 %v8569_v23  ;;  %v1989_v11 = vrot.slane %v8597_v49, 4  ;;  %6903 = vrot.lane.b32.xlu1 %v8036_v14, %s7747_s6  ;;  %6898 = vrot.lane.b32.xlu0 %v8071_v0, %s7746_s5 }
 0x10a   :  { %4277 = vmatprep.mubr.f32.mxu0 %v2034_v51  ;;  %v14161_v59 = vrot.slane %v8601_v52, 6  ;;  %v2033_v56 = vsel %vm1768_vm3, %v2031_v48, %v1977_v6  ;;  %v6616_v51 = vunpack.i.h.bf16 %v8791_v2  ;;  %v6615_v23 = vunpack.i.l.bf16 %v8791_v2 }
 0x10b   :  { %v408_v20 = vsel %vm396_vm6, %v14160_v26, %v6556_v33  ;;  %v6611_v27 = vunpack.i.h.bf16 %v8793_v36  ;;  %v6610_v39 = vunpack.i.l.bf16 %v8793_v36  ;;  %v1988_v47 = vrot.slane %v8601_v52, 4  ;;  %v6619_v18 = vpop.permute.xlu0 %6618 }
 0x10c   :  { %v2036_v63 = vsel %vm1762_vm1, %v8607_v37, %v14161_v59  ;;  %v1994_v58 = vrot.slane %v408_v20, 2  ;;  %4278 = vmatmul.mubr.f32.gmra.mrb[24].mxu0 %v2033_v56  ;;  %v8827_v6 = vsel %vm450_vm7, %v6615_v23, %v6616_v51  ;;  %v1993_v26 = vrot.slane %v8597_v49, 2 }
 0x10d   :  { %v2038_v33 = vsel %vm1765_vm2, %v2036_v63, %v1989_v11  ;;  %v6624_v59 = vpop.permute.xlu1 %6623  ;;  %v14162_v63 = vrot.slane %v8607_v37, 6  ;;  %v8838_v52 = vsel %vm450_vm7, %v6611_v27, %v6615_v23  ;;  %6913 = vrot.lane.b32.xlu1 %v8040_v15, %s7747_s6  ;;  %v14163_v23 = vunpack.i.l.bf16 %v8612_v8  ;;  %6908 = vrot.lane.b32.xlu0 %v8044_v43, %s7747_s6 }
 0x10e   :  { %v2040_v48 = vsel %vm1768_vm3, %v2038_v33, %v1994_v58  ;;  %v8844_v58 = vsel %vm450_vm7, %v6606_v31, %v6610_v39  ;;  %v14164_v15 = vrot.slane %v8637_v55, 6  ;;  %v2004_v43 = vrot.slane %v8637_v55, 4 }
 0x10f   :  { %v2035_v11 = vsel %vm1762_vm1, %v412_v62, %v14162_v63  ;;  %4283 = vmatprep.mubr.f32.mxu0 %v2040_v48  ;;  %v404_v33 = vsel %vm396_vm6, %v14163_v23, %v6566_v60  ;;  %v2005_v48 = vrot.slane %v8633_v4, 4  ;;  %v6625_v63 = vunpack.i.l.bf16 %v6624_v59  ;;  %v8866_v8 = vpop.permute.xlu0 %6628 }
 0x110   :  { %v2037_v49 = vsel %vm1765_vm2, %v2035_v11, %v1988_v47  ;;  %v2010_v31 = vrot.slane %v404_v33, 2  ;;  %v2042_v47 = vsel %vm1762_vm1, %v8643_v29, %v14164_v15  ;;  %v6620_v23 = vunpack.i.l.bf16 %v6619_v18 }
 0x111   :  { %v2039_v62 = vsel %vm1768_vm3, %v2037_v49, %v1993_v26  ;;  %v6626_v26 = vunpack.i.h.bf16 %v6624_v59  ;;  %v8864_v11 = vpop.permute.xlu1 %6633  ;;  %v2044_v60 = vsel %vm1765_vm2, %v2042_v47, %v2005_v48  ;;  %v6621_v49 = vunpack.i.h.bf16 %v6619_v18  ;;  %6923 = vrot.lane.b32.xlu1 %v8048_v16, %s7747_s6  ;;  %6918 = vrot.lane.b32.xlu0 %v8059_v17, %s7747_s6 }
 0x112   :  { %4284 = vmatmul.mubr.f32.gmra.mrb[26].mxu0 %v2039_v62  ;;  %v2046_v62 = vsel %vm1768_vm3, %v2044_v60, %v2010_v31  ;;  %v2009_v15 = vrot.slane %v8633_v4, 2  ;;  %v14165_v59 = vrot.slane %v8643_v29, 6  ;;  %v452_v55 = vsel %vm450_vm7, %v6625_v63, %v6620_v23 }
 0x113   :  { %v453_v37 = vsel %vm450_vm7, %v6626_v26, %v6625_v63  ;;  %4289 = vmatprep.mubr.f32.mxu0 %v2046_v62  ;;  %v451_v18 = vsel %vm450_vm7, %v6620_v23, %v6621_v49  ;;  %v8888_v48 = vsel %vm450_vm7, %v6621_v49, %v6590_v42  ;;  %v2055_v29 = vrot.slane %v452_v55, 6  ;;  %v6639_v23 = vpop.permute.xlu0 %6638 }
 0x114   :  { %v2041_v56 = vsel %vm1762_vm1, %v408_v20, %v14165_v59  ;;  %v2056_v20 = vrot.slane %v451_v18, 6  ;;  %v14166_v47 = vunpack.i.h.bf16 %v8648_v50  ;;  %v14167_v26 = vunpack.i.l.bf16 %v8648_v50 }
 0x115   :  { %v2043_v4 = vsel %vm1765_vm2, %v2041_v56, %v2004_v43  ;;  %v6644_v63 = vpop.permute.xlu1 %6643  ;;  %v2021_v49 = vrot.slane %v8676_v22, 4  ;;  %v2048_v43 = vsel %vm1762_vm1, %v8686_v7, %v2016_v40  ;;  %v6636_v62 = vunpack.i.h.bf16 %v8864_v11  ;;  %6933 = vrot.lane.b32.xlu1 %v8063_v28, %s7747_s6  ;;  %6928 = vrot.lane.b32.xlu0 %v8067_v19, %s7747_s6 }
 0x116   :  { %v2045_v31 = vsel %vm1768_vm3, %v2043_v4, %v2009_v15  ;;  %v400_v60 = vsel %vm396_vm6, %v14167_v26, %v14166_v47  ;;  %v6635_v50 = vunpack.i.l.bf16 %v8864_v11  ;;  %v6630_v59 = vunpack.i.l.bf16 %v8866_v8 }
 0x117   :  { %4290 = vmatmul.mubr.f32.gmra.mrb[28].mxu0 %v2045_v31  ;;  %v2026_v56 = vrot.slane %v400_v60, 2  ;;  %v2020_v4 = vrot.slane %v8680_v45, 4  ;;  %v2050_v31 = vsel %vm1765_vm2, %v2048_v43, %v2021_v49  ;;  %v2025_v47 = vrot.slane %v8676_v22, 2  ;;  %v6649_v7 = vpop.permute.xlu0 %6648 }
 0x118   :  { %v2047_v40 = vsel %vm1762_vm1, %v404_v33, %v2015_v53  ;;  %v6646_v26 = vunpack.i.h.bf16 %v6644_v63  ;;  %v8924_v45 = vsel %vm450_vm7, %v6616_v51, %v6630_v59  ;;  %v6645_v49 = vunpack.i.l.bf16 %v6644_v63 }
 0x119   :  { %v2052_v60 = vsel %vm1768_vm3, %v2050_v31, %v2026_v56  ;;  %v2049_v15 = vsel %vm1765_vm2, %v2047_v40, %v2020_v4  ;;  %v8929_v22 = vpop.permute.xlu1 %6653  ;;  %v6641_v33 = vunpack.i.h.bf16 %v6639_v23  ;;  %v6640_v56 = vunpack.i.l.bf16 %v6639_v23  ;;  %6943 = vrot.lane.b32.xlu1 %v8071_v0, %s7747_s6  ;;  %6938 = vrot.lane.b32.xlu0 %v8075_v30, %s7747_s6 }
 0x11a   :  { %4295 = vmatprep.mubr.f32.mxu0 %v2052_v60  ;;  %v2051_v53 = vsel %vm1768_vm3, %v2049_v15, %v2025_v47  ;;  %v466_v2 = vsel %vm450_vm7, %v6590_v42, %v6591_v1  ;;  %v8940_v51 = vsel %vm504_vm8, %v6646_v26, %v6645_v49  ;;  %v2061_v63 = vrot.slane %v8888_v48, 4 }
 0x11b   :  { %4296 = vmatmul.mubr.f32.gmra.mrb[30].mxu0 %v2051_v53  ;;  %v2066_v43 = vrot.slane %v466_v2, 2  ;;  %v2118_v4 = vsel %vm1762_vm1, %v452_v55, %v2056_v20  ;;  %v8950_v3 = vsel %vm504_vm8, %v6641_v33, %v6635_v50  ;;  %v8954_v1 = vsel %vm504_vm8, %v6640_v56, %v6641_v33  ;;  %v6659_v47 = vpop.permute.xlu0 %6658 }
 0x11c   :  { %v8958_v42 = vsel %vm504_vm8, %v6645_v49, %v6640_v56  ;;  %v2060_v23 = vrot.slane %v451_v18, 4  ;;  %v2144_v20 = vrot.slane %v8954_v1, 6  ;;  %v2120_v0 = vsel %vm1765_vm2, %v2118_v4, %v2061_v63 }
 0x11d   :  { %v2143_v55 = vrot.slane %v8958_v42, 6  ;;  %v2065_v15 = vrot.slane %v8888_v48, 2  ;;  %v8966_v31 = vpop.permute.xlu1 %6663  ;;  %v2122_v40 = vsel %vm1768_vm3, %v2120_v0, %v2066_v43  ;;  %v2117_v26 = vsel %vm1762_vm1, %v453_v37, %v2055_v29  ;;  %6953 = vrot.lane.b32.xlu1 %v8095_v12, %s7748_s7  ;;  %6948 = vrot.lane.b32.xlu0 %v8107_v32, %s7748_s7 }
 0x11e   :  { %v14168_v18 = vunpack.i.h.bf16 %v8760_v21  ;;  %v2077_v49 = vrot.slane %v8788_v5, 4  ;;  %4301 = vmatprep.mubr.f32.mxu0 %v2122_v40  ;;  %v2119_v48 = vsel %vm1765_vm2, %v2117_v26, %v2060_v23  ;;  %v14169_v33 = vrot.slane %v8751_v46, 6 }
 0x11f   :  { %v6656_v37 = vunpack.i.h.bf16 %v8929_v22  ;;  %v2121_v21 = vsel %vm1768_vm3, %v2119_v48, %v2065_v15  ;;  %v6655_v29 = vunpack.i.l.bf16 %v8929_v22  ;;  %v6651_v63 = vunpack.i.h.bf16 %v6649_v7  ;;  %v8995_v26 = vpop.permute.xlu0 %6668 }
 0x120   :  { %v462_v60 = vsel %vm450_vm7, %v6600_v61, %v14168_v18  ;;  %v2124_v56 = vsel %vm1762_vm1, %v8757_v57, %v14169_v33  ;;  %4302 = vmatmul.mubr.f32.gmra.mrb[32].mxu0 %v2121_v21  ;;  %v6650_v4 = vunpack.i.l.bf16 %v6649_v7  ;;  %v2076_v23 = vrot.slane %v8751_v46, 4 }
 0x121   :  { %v2082_v53 = vrot.slane %v462_v60, 2  ;;  %v2126_v61 = vsel %vm1765_vm2, %v2124_v56, %v2077_v49  ;;  %v2081_v0 = vrot.slane %v8788_v5, 2  ;;  %v8993_v40 = vpop.permute.xlu1 %6673  ;;  %v9001_v15 = vsel %vm504_vm8, %v6651_v63, %v6655_v29  ;;  %6963 = vrot.lane.b32.xlu1 %v8111_v35, %s7748_s7  ;;  %6958 = vrot.lane.b32.xlu0 %v8129_v41, %s7748_s7 }
 0x122   :  { %v14170_v7 = vrot.slane %v8757_v57, 6  ;;  %v458_v5 = vsel %vm450_vm7, %v6610_v39, %v6611_v27  ;;  %v2093_v18 = vrot.slane %v8844_v58, 4  ;;  %v9015_v49 = vsel %vm504_vm8, %v6650_v4, %v6651_v63 }
 0x123   :  { %v2128_v43 = vsel %vm1768_vm3, %v2126_v61, %v2082_v53  ;;  %v9021_v57 = vsel %vm504_vm8, %v6636_v62, %v6650_v4  ;;  %v2098_v48 = vrot.slane %v458_v5, 2  ;;  %v2160_v27 = vrot.slane %v9015_v49, 6  ;;  %v9040_v4 = vpop.permute.xlu0 %6678 }
 0x124   :  { %4307 = vmatprep.mubr.f32.mxu0 %v2128_v43  ;;  %v2123_v46 = vsel %vm1762_vm1, %v466_v2, %v14170_v7  ;;  %v2159_v36 = vrot.slane %v9021_v57, 6  ;;  %v14171_v53 = vrot.slane %v8776_v10, 6  ;;  %v6666_v21 = vunpack.i.h.bf16 %v8966_v31 }
 0x125   :  { %v2125_v2 = vsel %vm1765_vm2, %v2123_v46, %v2076_v23  ;;  %v6665_v61 = vunpack.i.l.bf16 %v8966_v31  ;;  %v6661_v63 = vunpack.i.h.bf16 %v6659_v47  ;;  %v9038_v43 = vpop.permute.xlu1 %6683  ;;  %v2092_v7 = vrot.slane %v8776_v10, 4  ;;  %6973 = vrot.lane.b32.xlu1 %v8048_v16, %s7748_s7  ;;  %6968 = vrot.lane.b32.xlu0 %v8133_v38, %s7748_s7 }
 0x126   :  { %v2127_v39 = vsel %vm1768_vm3, %v2125_v2, %v2081_v0  ;;  %v2130_v33 = vsel %vm1762_vm1, %v8782_v13, %v14171_v53  ;;  %v6660_v0 = vunpack.i.l.bf16 %v6659_v47  ;;  %v2097_v46 = vrot.slane %v8844_v58, 2 }
 0x127   :  { %4308 = vmatmul.mubr.f32.gmra.mrb[34].mxu0 %v2127_v39  ;;  %v2132_v56 = vsel %vm1765_vm2, %v2130_v33, %v2093_v18  ;;  %v9050_v18 = vsel %vm504_vm8, %v6661_v63, %v6665_v61  ;;  %v14172_v2 = vrot.slane %v8782_v13, 6  ;;  %v2109_v58 = vrot.slane %v8924_v45, 4 }
 0x128   :  { %v2134_v23 = vsel %vm1768_vm3, %v2132_v56, %v2098_v48  ;;  %v14173_v48 = vunpack.i.h.bf16 %v8866_v8  ;;  %v9066_v47 = vsel %vm504_vm8, %v6660_v0, %v6661_v63  ;;  %v9072_v13 = vsel %vm504_vm8, %v6656_v37, %v6660_v0  ;;  %v9086_v0 = vpop.permute.xlu0 %6688 }
 0x129   :  { %4313 = vmatprep.mubr.f32.mxu0 %v2134_v23  ;;  %v2129_v39 = vsel %vm1762_vm1, %v462_v60, %v14172_v2  ;;  %v2176_v53 = vrot.slane %v9066_v47, 6  ;;  %v14174_v56 = vrot.slane %v8827_v6, 6  ;;  %v9084_v23 = vpop.permute.xlu1 %6693  ;;  %v6676_v2 = vunpack.i.h.bf16 %v8993_v40  ;;  %6983 = vrot.lane.b32.xlu1 %v8063_v28, %s7748_s7 }
 0x12a   :  { %v454_v10 = vsel %vm450_vm7, %v6630_v59, %v14173_v48  ;;  %v2131_v8 = vsel %vm1765_vm2, %v2129_v39, %v2092_v7  ;;  %v2175_v59 = vrot.slane %v9072_v13, 6  ;;  %v6675_v39 = vunpack.i.l.bf16 %v8993_v40  ;;  %6978 = vrot.lane.b32.xlu0 %v8067_v19, %s7748_s7 }
 0x12b   :  { %v2114_v60 = vrot.slane %v454_v10, 2  ;;  %v2133_v33 = vsel %vm1768_vm3, %v2131_v8, %v2097_v46  ;;  %v2136_v63 = vsel %vm1762_vm1, %v8838_v52, %v14174_v56  ;;  %v6671_v46 = vunpack.i.h.bf16 %v8995_v26 }
 0x12c   :  { %4314 = vmatmul.mubr.f32.gmra.mrb[36].mxu0 %v2133_v33  ;;  %v2138_v7 = vsel %vm1765_vm2, %v2136_v63, %v2109_v58  ;;  %v6670_v10 = vunpack.i.l.bf16 %v8995_v26  ;;  %v2108_v8 = vrot.slane %v8827_v6, 4  ;;  %v2113_v56 = vrot.slane %v8924_v45, 2 }
 0x12d   :  { %v2140_v48 = vsel %vm1768_vm3, %v2138_v7, %v2114_v60  ;;  %v9102_v58 = vsel %vm504_vm8, %v6671_v46, %v6675_v39  ;;  %v14175_v33 = vrot.slane %v8838_v52, 6  ;;  %v520_v6 = vsel %vm504_vm8, %v6635_v50, %v6636_v62  ;;  %v9127_v11 = vpop.permute.xlu1 %6703  ;;  %v9129_v62 = vpop.permute.xlu0 %6698  ;;  %6993 = vrot.lane.b32.xlu1 %v8107_v32, %s7749_s8 }
 0x12e   :  { %4319 = vmatprep.mubr.f32.mxu0 %v2140_v48  ;;  %v2149_v45 = vrot.slane %v8950_v3, 4  ;;  %v9116_v26 = vsel %vm504_vm8, %v6670_v10, %v6671_v46  ;;  %v9122_v52 = vsel %vm504_vm8, %v6666_v21, %v6670_v10  ;;  %v2154_v63 = vrot.slane %v520_v6, 2  ;;  %6988 = vrot.lane.b32.xlu0 %v8075_v30, %s7748_s7 }
 0x12f   :  { %v2135_v60 = vsel %vm1762_vm1, %v458_v5, %v14175_v33  ;;  %v2192_v7 = vrot.slane %v9116_v26, 6  ;;  %v2206_v48 = vsel %vm1762_vm1, %v8958_v42, %v2144_v20  ;;  %v6685_v33 = vunpack.i.l.bf16 %v9038_v43 }
 0x130   :  { %v2137_v5 = vsel %vm1765_vm2, %v2135_v60, %v2108_v8  ;;  %v2208_v10 = vsel %vm1765_vm2, %v2206_v48, %v2149_v45  ;;  %v6686_v8 = vunpack.i.h.bf16 %v9038_v43  ;;  %v6681_v60 = vunpack.i.h.bf16 %v9040_v4 }
 0x131   :  { %v2139_v46 = vsel %vm1768_vm3, %v2137_v5, %v2113_v56  ;;  %v2210_v56 = vsel %vm1768_vm3, %v2208_v10, %v2154_v63  ;;  %v6680_v5 = vunpack.i.l.bf16 %v9040_v4  ;;  %v2148_v50 = vrot.slane %v8954_v1, 4  ;;  %v9167_v4 = vpop.permute.xlu1 %6713  ;;  %v9169_v63 = vpop.permute.xlu0 %6708  ;;  %7003 = vrot.lane.b32.xlu1 %v8129_v41, %s7749_s8 }
 0x132   :  { %4320 = vmatmul.mubr.f32.gmra.mrb[38].mxu0 %v2139_v46  ;;  %v2153_v20 = vrot.slane %v8950_v3, 2  ;;  %v9152_v45 = vsel %vm569_vm9, %v6681_v60, %v6686_v8  ;;  %v2205_v46 = vsel %vm1762_vm1, %v8940_v51, %v2143_v55  ;;  %v516_v1 = vsel %vm504_vm8, %v6655_v29, %v6656_v37  ;;  %6998 = vrot.lane.b32.xlu0 %v8095_v12, %s7749_s8 }
 0x133   :  { %4325 = vmatprep.mubr.f32.mxu0 %v2210_v56  ;;  %v2165_v3 = vrot.slane %v9001_v15, 4  ;;  %v9173_v42 = vsel %vm569_vm9, %v6680_v5, %v6681_v60  ;;  %v9177_v51 = vsel %vm569_vm9, %v6685_v33, %v6680_v5  ;;  %v2207_v22 = vsel %vm1765_vm2, %v2205_v46, %v2148_v50 }
 0x134   :  { %v2170_v55 = vrot.slane %v516_v1, 2  ;;  %v2209_v48 = vsel %vm1768_vm3, %v2207_v22, %v2153_v20  ;;  %v2212_v10 = vsel %vm1762_vm1, %v9021_v57, %v2160_v27  ;;  %v6696_v56 = vunpack.i.h.bf16 %v9084_v23 }
 0x135   :  { %v2214_v60 = vsel %vm1765_vm2, %v2212_v10, %v2165_v3  ;;  %v6695_v5 = vunpack.i.l.bf16 %v9084_v23  ;;  %v6691_v50 = vunpack.i.h.bf16 %v9086_v0  ;;  %v6690_v37 = vunpack.i.l.bf16 %v9086_v0  ;;  %v9195_v29 = vpop.permute.xlu1 %6723  ;;  %v9197_v27 = vpop.permute.xlu0 %6718  ;;  %7013 = vrot.lane.b32.xlu1 %v8133_v38, %s7749_s8 }
 0x136   :  { %4326 = vmatmul.mubr.f32.gmra.mrb[40].mxu0 %v2209_v48  ;;  %v2216_v46 = vsel %vm1768_vm3, %v2214_v60, %v2170_v55  ;;  %v2164_v20 = vrot.slane %v9015_v49, 4  ;;  %v2169_v22 = vrot.slane %v9001_v15, 2  ;;  %v2211_v55 = vsel %vm1762_vm1, %v520_v6, %v2159_v36  ;;  %7008 = vrot.lane.b32.xlu0 %v8111_v35, %s7749_s8 }
 0x137   :  { %4331 = vmatprep.mubr.f32.mxu0 %v2216_v46  ;;  %v9201_v3 = vsel %vm569_vm9, %v6695_v5, %v6696_v56  ;;  %v9205_v23 = vsel %vm569_vm9, %v6691_v50, %v6685_v33  ;;  %v512_v15 = vsel %vm504_vm8, %v6665_v61, %v6666_v21  ;;  %v9221_v48 = vsel %vm569_vm9, %v6690_v37, %v6695_v5 }
 0x138   :  { %v2248_v49 = vrot.slane %v9201_v3, 6  ;;  %v2213_v33 = vsel %vm1765_vm2, %v2211_v55, %v2164_v20  ;;  %v2181_v57 = vrot.slane %v9050_v18, 4  ;;  %v2247_v36 = vrot.slane %v9221_v48, 6 }
 0x139   :  { %v2215_v6 = vsel %vm1768_vm3, %v2213_v33, %v2169_v22  ;;  %v2186_v31 = vrot.slane %v512_v15, 2  ;;  %v2218_v21 = vsel %vm1762_vm1, %v9072_v13, %v2176_v53  ;;  %v6706_v10 = vunpack.i.h.bf16 %v9127_v11  ;;  %v9235_v50 = vpop.permute.xlu1 %6733  ;;  %v9237_v46 = vpop.permute.xlu0 %6728  ;;  %7023 = vrot.lane.b32.xlu1 %v8067_v19, %s7749_s8 }
 0x13a   :  { %4332 = vmatmul.mubr.f32.gmra.mrb[42].mxu0 %v2215_v6  ;;  %v2220_v61 = vsel %vm1765_vm2, %v2218_v21, %v2181_v57  ;;  %v6705_v60 = vunpack.i.l.bf16 %v9127_v11  ;;  %v6701_v5 = vunpack.i.h.bf16 %v9129_v62  ;;  %v6700_v22 = vunpack.i.l.bf16 %v9129_v62  ;;  %7018 = vrot.lane.b32.xlu0 %v8048_v16, %s7749_s8 }
 0x13b   :  { %v2222_v20 = vsel %vm1768_vm3, %v2220_v61, %v2186_v31  ;;  %v2180_v55 = vrot.slane %v9066_v47, 4  ;;  %v2185_v53 = vrot.slane %v9050_v18, 2  ;;  %v2217_v57 = vsel %vm1762_vm1, %v516_v1, %v2175_v59 }
 0x13c   :  { %4337 = vmatprep.mubr.f32.mxu0 %v2222_v20  ;;  %v9245_v33 = vsel %vm569_vm9, %v6705_v60, %v6706_v10  ;;  %v9251_v11 = vsel %vm569_vm9, %v6701_v5, %v6705_v60  ;;  %v508_v18 = vsel %vm504_vm8, %v6675_v39, %v6676_v2  ;;  %v9268_v31 = vsel %vm569_vm9, %v6696_v56, %v6700_v22 }
 0x13d   :  { %v2264_v47 = vrot.slane %v9245_v33, 6  ;;  %v2263_v6 = vrot.slane %v9251_v11, 6  ;;  %v2219_v13 = vsel %vm1765_vm2, %v2217_v57, %v2180_v55  ;;  %v2197_v1 = vrot.slane %v9102_v58, 4  ;;  %v9277_v39 = vpop.permute.xlu1 %6743  ;;  %v9279_v21 = vpop.permute.xlu0 %6738  ;;  %7033 = vrot.lane.b32.xlu1 %v8075_v30, %s7749_s8 }
 0x13e   :  { %v2221_v59 = vsel %vm1768_vm3, %v2219_v13, %v2185_v53  ;;  %v2202_v40 = vrot.slane %v508_v18, 2  ;;  %v2224_v2 = vsel %vm1762_vm1, %v9122_v52, %v2192_v7  ;;  %v6716_v56 = vunpack.i.h.bf16 %v9167_v4  ;;  %7028 = vrot.lane.b32.xlu0 %v8063_v28, %s7749_s8 }
 0x13f   :  { %4338 = vmatmul.mubr.f32.gmra.mrb[44].mxu0 %v2221_v59  ;;  %v6715_v61 = vunpack.i.l.bf16 %v9167_v4  ;;  %v6711_v60 = vunpack.i.h.bf16 %v9169_v63  ;;  %v6710_v20 = vunpack.i.l.bf16 %v9169_v63  ;;  %v2226_v55 = vsel %vm1765_vm2, %v2224_v2, %v2197_v1 }
 0x140   :  { %v2196_v53 = vrot.slane %v9116_v26, 4  ;;  %v2228_v57 = vsel %vm1768_vm3, %v2226_v55, %v2202_v40  ;;  %v2201_v59 = vrot.slane %v9102_v58, 2  ;;  %v14176_v1 = vrot.slane %v9122_v52, 6 }
 0x141   :  { %v9290_v7 = vsel %vm569_vm9, %v6715_v61, %v6716_v56  ;;  %v9296_v18 = vsel %vm569_vm9, %v6711_v60, %v6715_v61  ;;  %v9302_v4 = vsel %vm569_vm9, %v6706_v10, %v6710_v20  ;;  %4343 = vmatprep.mubr.f32.mxu0 %v2228_v57  ;;  %v9312_v2 = vpop.permute.xlu1 %6753  ;;  %v9314_v61 = vpop.permute.xlu0 %6748  ;;  %v570_v58 = vsel %vm569_vm9, %v6686_v8, %v6690_v37 }
 0x142   :  { %v2280_v26 = vrot.slane %v9290_v7, 6  ;;  %v2223_v40 = vsel %vm1762_vm1, %v512_v15, %v14176_v1  ;;  %v2237_v52 = vrot.slane %v9152_v45, 4  ;;  %v14177_v15 = vrot.slane %v9173_v42, 6  ;;  %7043 = vrot.lane.b32.xlu1 %v8095_v12, %s7750_s9  ;;  %7038 = vrot.lane.b32.xlu0 %v8107_v32, %s7750_s9 }
 0x143   :  { %v2225_v10 = vsel %vm1765_vm2, %v2223_v40, %v2196_v53  ;;  %v2242_v1 = vrot.slane %v570_v58, 2  ;;  %v6726_v53 = vunpack.i.h.bf16 %v9195_v29  ;;  %v6725_v0 = vunpack.i.l.bf16 %v9195_v29 }
 0x144   :  { %v2294_v55 = vsel %vm1762_vm1, %v9177_v51, %v14177_v15  ;;  %v2227_v57 = vsel %vm1768_vm3, %v2225_v10, %v2201_v59  ;;  %v6721_v8 = vunpack.i.h.bf16 %v9197_v27  ;;  %v6720_v37 = vunpack.i.l.bf16 %v9197_v27 }
 0x145   :  { %4344 = vmatmul.mubr.f32.gmra.mrb[46].mxu0 %v2227_v57  ;;  %v2296_v43 = vsel %vm1765_vm2, %v2294_v55, %v2237_v52  ;;  %v2236_v15 = vrot.slane %v9173_v42, 4  ;;  %v9339_v13 = vpop.permute.xlu1 %6763  ;;  %v9341_v59 = vpop.permute.xlu0 %6758  ;;  %v9345_v10 = vsel %vm623_vm10, %v6725_v0, %v6726_v53  ;;  %v2241_v52 = vrot.slane %v9152_v45, 2 }
 0x146   :  { %v2298_v40 = vsel %vm1768_vm3, %v2296_v43, %v2242_v1  ;;  %v9351_v29 = vsel %vm569_vm9, %v6716_v56, %v6720_v37  ;;  %v14178_v55 = vrot.slane %v9177_v51, 6  ;;  %v2320_v57 = vrot.slane %v9345_v10, 6  ;;  %7053 = vrot.lane.b32.xlu1 %v8111_v35, %s7750_s9  ;;  %7048 = vrot.lane.b32.xlu0 %v8129_v41, %s7750_s9 }
 0x147   :  { %4349 = vmatprep.mubr.f32.mxu0 %v2298_v40  ;;  %v583_v45 = vsel %vm569_vm9, %v6700_v22, %v6701_v5  ;;  %v2253_v51 = vrot.slane %v9268_v31, 4  ;;  %v2300_v43 = vsel %vm1762_vm1, %v9221_v48, %v2248_v49  ;;  %v6736_v40 = vunpack.i.h.bf16 %v9235_v50 }
 0x148   :  { %v2293_v42 = vsel %vm1762_vm1, %v9205_v23, %v14178_v55  ;;  %v2258_v56 = vrot.slane %v583_v45, 2  ;;  %v6735_v62 = vunpack.i.l.bf16 %v9235_v50  ;;  %v6731_v55 = vunpack.i.h.bf16 %v9237_v46 }
 0x149   :  { %v2295_v1 = vsel %vm1765_vm2, %v2293_v42, %v2236_v15  ;;  %v2302_v15 = vsel %vm1765_vm2, %v2300_v43, %v2253_v51  ;;  %v6730_v5 = vunpack.i.l.bf16 %v9237_v46  ;;  %v9381_v22 = vpop.permute.xlu1 %6773  ;;  %v2257_v43 = vrot.slane %v9268_v31, 2 }
 0x14a   :  { %v2297_v23 = vsel %vm1768_vm3, %v2295_v1, %v2241_v52  ;;  %v9383_v52 = vpop.permute.xlu0 %6768  ;;  %v2304_v42 = vsel %vm1768_vm3, %v2302_v15, %v2258_v56  ;;  %v2252_v1 = vrot.slane %v9201_v3, 4  ;;  %v9391_v49 = vsel %vm623_vm10, %v6726_v53, %v6731_v55  ;;  %7063 = vrot.lane.b32.xlu1 %v8048_v16, %s7750_s9  ;;  %7058 = vrot.lane.b32.xlu0 %v8133_v38, %s7750_s9 }
 0x14b   :  { %4350 = vmatmul.mubr.f32.gmra.mrb[48].mxu0 %v2297_v23  ;;  %v9395_v51 = vsel %vm623_vm10, %v6730_v5, %v6725_v0  ;;  %v9399_v23 = vsel %vm623_vm10, %v6736_v40, %v6730_v5  ;;  %v2299_v3 = vsel %vm1762_vm1, %v570_v58, %v2247_v36  ;;  %v579_v53 = vsel %vm569_vm9, %v6710_v20, %v6711_v60 }
 0x14c   :  { %4355 = vmatprep.mubr.f32.mxu0 %v2304_v42  ;;  %v2319_v56 = vrot.slane %v9395_v51, 6  ;;  %v2269_v31 = vrot.slane %v9302_v4, 4  ;;  %v2301_v0 = vsel %vm1765_vm2, %v2299_v3, %v2252_v1  ;;  %v2274_v40 = vrot.slane %v579_v53, 2 }
 0x14d   :  { %v2306_v15 = vsel %vm1762_vm1, %v9251_v11, %v2264_v47  ;;  %v6746_v48 = vunpack.i.h.bf16 %v9277_v39  ;;  %v9423_v36 = vpop.permute.xlu1 %6783  ;;  %v2303_v63 = vsel %vm1768_vm3, %v2301_v0, %v2257_v43  ;;  %v6745_v20 = vunpack.i.l.bf16 %v9277_v39 }
 0x14e   :  { %v9425_v58 = vpop.permute.xlu0 %6778  ;;  %v2308_v60 = vsel %vm1765_vm2, %v2306_v15, %v2269_v31  ;;  %v6741_v5 = vunpack.i.h.bf16 %v9279_v21  ;;  %v6740_v1 = vunpack.i.l.bf16 %v9279_v21  ;;  %v2268_v43 = vrot.slane %v9245_v33, 4  ;;  %7073 = vrot.lane.b32.xlu1 %v8063_v28, %s7750_s9  ;;  %7068 = vrot.lane.b32.xlu0 %v8067_v19, %s7750_s9 }
 0x14f   :  { %4356 = vmatmul.mubr.f32.gmra.mrb[50].mxu0 %v2303_v63  ;;  %v2310_v42 = vsel %vm1768_vm3, %v2308_v60, %v2274_v40  ;;  %v2273_v3 = vrot.slane %v9302_v4, 2  ;;  %v2305_v31 = vsel %vm1762_vm1, %v583_v45, %v2263_v6  ;;  %v575_v33 = vsel %vm569_vm9, %v6720_v37, %v6721_v8 }
 0x150   :  { %4361 = vmatprep.mubr.f32.mxu0 %v2310_v42  ;;  %v9437_v47 = vsel %vm623_vm10, %v6741_v5, %v6745_v20  ;;  %v9446_v0 = vsel %vm623_vm10, %v6740_v1, %v6741_v5  ;;  %v9452_v21 = vsel %vm623_vm10, %v6735_v62, %v6740_v1  ;;  %v2285_v11 = vrot.slane %v9351_v29, 4 }
 0x151   :  { %v9465_v6 = vpop.permute.xlu1 %6793  ;;  %v2335_v45 = vrot.slane %v9452_v21, 6  ;;  %v2336_v40 = vrot.slane %v9446_v0, 6  ;;  %v2307_v15 = vsel %vm1765_vm2, %v2305_v31, %v2268_v43  ;;  %v2290_v63 = vrot.slane %v575_v33, 2 }
 0x152   :  { %v9467_v4 = vpop.permute.xlu0 %6788  ;;  %v2309_v60 = vsel %vm1768_vm3, %v2307_v15, %v2273_v3  ;;  %v2312_v27 = vsel %vm1762_vm1, %v9296_v18, %v2280_v26  ;;  %v6756_v8 = vunpack.i.h.bf16 %v9312_v2  ;;  %v6755_v37 = vunpack.i.l.bf16 %v9312_v2  ;;  %7078 = vrot.lane.b32.xlu0 %v8075_v30, %s7750_s9 }
 0x153   :  { %4362 = vmatmul.mubr.f32.gmra.mrb[52].mxu0 %v2309_v60  ;;  %v2314_v5 = vsel %vm1765_vm2, %v2312_v27, %v2285_v11  ;;  %v6751_v42 = vunpack.i.h.bf16 %v9314_v61  ;;  %v6750_v1 = vunpack.i.l.bf16 %v9314_v61  ;;  %v2284_v3 = vrot.slane %v9290_v7, 4 }
 0x154   :  { %v2316_v43 = vsel %vm1768_vm3, %v2314_v5, %v2290_v63  ;;  %v2289_v31 = vrot.slane %v9351_v29, 2  ;;  %v2325_v29 = vrot.slane %v9391_v49, 4  ;;  %v14179_v60 = vrot.slane %v9296_v18, 6 }
 0x155   :  { %v9485_v33 = vpop.permute.xlu1 %6803  ;;  %4367 = vmatprep.mubr.f32.mxu0 %v2316_v43  ;;  %v9493_v11 = vsel %vm623_vm10, %v6751_v42, %v6755_v37  ;;  %v9497_v61 = vsel %vm623_vm10, %v6750_v1, %v6751_v42  ;;  %v9503_v7 = vsel %vm623_vm10, %v6746_v48, %v6750_v1  ;;  %v624_v12 = vsel %vm623_vm10, %v6731_v55, %v6735_v62 }
 0x156   :  { %v9487_v26 = vpop.permute.xlu0 %6798  ;;  %v2351_v15 = vrot.slane %v9503_v7, 6  ;;  %v2352_v63 = vrot.slane %v9497_v61, 6  ;;  %v2311_v27 = vsel %vm1762_vm1, %v579_v53, %v14179_v60  ;;  %v2330_v42 = vrot.slane %v624_v12, 2 }
 0x157   :  { %v2313_v5 = vsel %vm1765_vm2, %v2311_v27, %v2284_v3  ;;  %v2382_v1 = vsel %vm1762_vm1, %v9395_v51, %v2320_v57  ;;  %v6766_v32 = vunpack.i.h.bf16 %v9339_v13  ;;  %v6765_v50 = vunpack.i.l.bf16 %v9339_v13 }
 0x158   :  { %v2315_v18 = vsel %vm1768_vm3, %v2313_v5, %v2289_v31  ;;  %v2384_v53 = vsel %vm1765_vm2, %v2382_v1, %v2325_v29  ;;  %v6761_v46 = vunpack.i.h.bf16 %v9341_v59  ;;  %v6760_v3 = vunpack.i.l.bf16 %v9341_v59 }
 0x159   :  { %v9531_v43 = vpop.permute.xlu1 %6813  ;;  %4368 = vmatmul.mubr.f32.gmra.mrb[54].mxu0 %v2315_v18  ;;  %v2386_v55 = vsel %vm1768_vm3, %v2384_v53, %v2330_v42  ;;  %v2324_v31 = vrot.slane %v9345_v10, 4  ;;  %v2329_v29 = vrot.slane %v9391_v49, 2  ;;  %v2381_v60 = vsel %vm1762_vm1, %v9399_v23, %v2319_v56 }
 0x15a   :  { %v9533_v62 = vpop.permute.xlu0 %6808  ;;  %4373 = vmatprep.mubr.f32.mxu0 %v2386_v55  ;;  %v9541_v57 = vsel %vm623_vm10, %v6761_v46, %v6765_v50  ;;  %v9551_v27 = vsel %vm623_vm10, %v6760_v3, %v6761_v46  ;;  %v9557_v59 = vsel %vm623_vm10, %v6756_v8, %v6760_v3  ;;  %v637_v10 = vsel %vm623_vm10, %v6745_v20, %v6746_v48 }
 0x15b   :  { %v2341_v49 = vrot.slane %v9437_v47, 4  ;;  %v2367_v51 = vrot.slane %v9557_v59, 6  ;;  %v2368_v23 = vrot.slane %v9551_v27, 6  ;;  %v2383_v56 = vsel %vm1765_vm2, %v2381_v60, %v2324_v31 }
 0x15c   :  { %v2346_v5 = vrot.slane %v637_v10, 2  ;;  %v2385_v41 = vsel %vm1768_vm3, %v2383_v56, %v2329_v29  ;;  %v2388_v39 = vsel %vm1762_vm1, %v9452_v21, %v2336_v40  ;;  %v6776_v48 = vunpack.i.h.bf16 %v9381_v22 }
 0x15d   :  { %v9573_v42 = vpop.permute.xlu1 %6823  ;;  %v6775_v20 = vunpack.i.l.bf16 %v9381_v22  ;;  %4374 = vmatmul.mubr.f32.gmra.mrb[56].mxu0 %v2385_v41  ;;  %v2390_v18 = vsel %vm1765_vm2, %v2388_v39, %v2341_v49  ;;  %v6771_v53 = vunpack.i.h.bf16 %v9383_v52  ;;  %v6770_v46 = vunpack.i.l.bf16 %v9383_v52 }
 0x15e   :  { %v9575_v1 = vpop.permute.xlu0 %6818  ;;  %v2392_v55 = vsel %vm1768_vm3, %v2390_v18, %v2346_v5  ;;  %v2340_v3 = vrot.slane %v9446_v0, 4  ;;  %v2345_v52 = vrot.slane %v9437_v47, 2  ;;  %v2387_v5 = vsel %vm1762_vm1, %v624_v12, %v2335_v45 }
 0x15f   :  { %4379 = vmatprep.mubr.f32.mxu0 %v2392_v55  ;;  %v9592_v40 = vsel %vm677_vm11, %v6771_v53, %v6776_v48  ;;  %v9596_v31 = vsel %vm677_vm11, %v6770_v46, %v6771_v53  ;;  %v9600_v29 = vsel %vm677_vm11, %v6775_v20, %v6770_v46  ;;  %v633_v47 = vsel %vm623_vm10, %v6755_v37, %v6756_v8 }
 0x160   :  { %v2407_v49 = vrot.slane %v9600_v29, 6  ;;  %v2408_v56 = vrot.slane %v9596_v31, 6  ;;  %v2389_v41 = vsel %vm1765_vm2, %v2387_v5, %v2340_v3  ;;  %v2357_v39 = vrot.slane %v9493_v11, 4 }
 0x161   :  { %v9603_v60 = vpop.permute.xlu1 %6833  ;;  %v2362_v18 = vrot.slane %v633_v47, 2  ;;  %v2394_v53 = vsel %vm1762_vm1, %v9503_v7, %v2352_v63  ;;  %v2391_v38 = vsel %vm1768_vm3, %v2389_v41, %v2345_v52  ;;  %v6786_v21 = vunpack.i.h.bf16 %v9423_v36 }
 0x162   :  { %v9605_v0 = vpop.permute.xlu0 %6828  ;;  %v6785_v45 = vunpack.i.l.bf16 %v9423_v36  ;;  %v6781_v12 = vunpack.i.h.bf16 %v9425_v58  ;;  %4380 = vmatmul.mubr.f32.gmra.mrb[58].mxu0 %v2391_v38  ;;  %v2396_v2 = vsel %vm1765_vm2, %v2394_v53, %v2357_v39  ;;  %v6780_v8 = vunpack.i.l.bf16 %v9425_v58 }
 0x163   :  { %v2398_v55 = vsel %vm1768_vm3, %v2396_v2, %v2362_v18  ;;  %v2356_v3 = vrot.slane %v9497_v61, 4  ;;  %v2361_v5 = vrot.slane %v9493_v11, 2  ;;  %v2393_v41 = vsel %vm1762_vm1, %v637_v10, %v2351_v15  ;;  %v14180_v2 = vld [vmem:[#allocation19_spill] sm:$0xff] }
 0x164   :  { %v9639_v63 = vsel %vm677_vm11, %v6785_v45, %v6786_v21  ;;  %v9643_v36 = vsel %vm677_vm11, %v6781_v12, %v6775_v20  ;;  %4385 = vmatprep.mubr.f32.mxu0 %v2398_v55  ;;  %v9649_v58 = vsel %vm677_vm11, %v6780_v8, %v6785_v45  ;;  %v629_v39 = vsel %vm623_vm10, %v6765_v50, %v6766_v32 }
 0x165   :  { %v9632_v37 = vpop.permute.xlu1 %6843  ;;  %v2424_v52 = vrot.slane %v9639_v63, 6  ;;  %v2423_v20 = vrot.slane %v9649_v58, 6  ;;  %v2395_v61 = vsel %vm1765_vm2, %v2393_v41, %v2356_v3  ;;  %v2373_v11 = vrot.slane %v9541_v57, 4 }
 0x166   :  { %v9634_v46 = vpop.permute.xlu0 %6838  ;;  %v2397_v7 = vsel %vm1768_vm3, %v2395_v61, %v2361_v5  ;;  %v2378_v18 = vrot.slane %v629_v39, 2  ;;  %v2400_v15 = vsel %vm1762_vm1, %v9557_v59, %v2368_v23  ;;  %v6796_v10 = vunpack.i.h.bf16 %v9465_v6 }
 0x167   :  { %4386 = vmatmul.mubr.f32.gmra.mrb[60].mxu0 %v2397_v7  ;;  %v2402_v13 = vsel %vm1765_vm2, %v2400_v15, %v2373_v11  ;;  %v6795_v45 = vunpack.i.l.bf16 %v9465_v6  ;;  %v6791_v32 = vunpack.i.h.bf16 %v9467_v4  ;;  %v6790_v50 = vunpack.i.l.bf16 %v9467_v4  ;;  %v9728_v15 = vld.sshfl [vmem:[#allocation2 + $0x28] sm:$0xff pattern:$0x76325410] }
 0x168   :  { %v2404_v12 = vsel %vm1768_vm3, %v2402_v13, %v2378_v18  ;;  %v9683_v23 = vpack.i.bf16 %v14180_v2, %v8087_v9  ;;  %v2372_v55 = vrot.slane %v9551_v27, 4  ;;  %v2377_v5 = vrot.slane %v9541_v57, 2  ;;  %14181 = vst [vmem:[#allocation19_spill] sm:$0xff] %v9728_v15  ;;  %v14182_v13 = vld [vmem:[#allocation21_spill] sm:$0xff] }
 0x169   :  { %v9672_v53 = vpop.permute.xlu1 %6853  ;;  %4391 = vmatprep.mubr.f32.mxu0 %v2404_v12  ;;  %v9688_v3 = vsel %vm677_vm11, %v6795_v45, %v6796_v10  ;;  %v9692_v6 = vsel %vm677_vm11, %v6791_v32, %v6795_v45  ;;  %v9696_v4 = vsel %vm677_vm11, %v6786_v21, %v6790_v50  ;;  %v2399_v27 = vsel %vm1762_vm1, %v633_v47, %v2367_v51  ;;  %v14183_v45 = vld [vmem:[#allocation20_spill] sm:$0xff] }
 0x16a   :  { %v9674_v38 = vpop.permute.xlu0 %6848  ;;  %7083 = vrot.lane.b32.xlu1 %v9683_v23, %s7751_s1  ;;  %v678_v57 = vsel %vm677_vm11, %v6776_v48, %v6780_v8  ;;  %v2401_v11 = vsel %vm1765_vm2, %v2399_v27, %v2372_v55  ;;  %v2413_v7 = vrot.slane %v9592_v40, 4  ;;  %v2470_v30 = vsel %vm1762_vm1, %v9600_v29, %v2408_v56 }
 0x16b   :  { %v2418_v18 = vrot.slane %v678_v57, 2  ;;  %v2403_v59 = vsel %vm1768_vm3, %v2401_v11, %v2377_v5  ;;  %v6806_v22 = vunpack.i.h.bf16 %v9485_v33  ;;  %v6805_v51 = vunpack.i.l.bf16 %v9485_v33 }
 0x16c   :  { %v6801_v48 = vunpack.i.h.bf16 %v9487_v26  ;;  %4392 = vmatmul.mubr.f32.gmra.mrb[62].mxu0 %v2403_v59  ;;  %v2472_v47 = vsel %vm1765_vm2, %v2470_v30, %v2413_v7  ;;  %v6800_v8 = vunpack.i.l.bf16 %v9487_v26  ;;  %v9732_v12 = vpack.i.bf16 %v14183_v45, %v14182_v13 }
 0x16d   :  { %v9712_v21 = vpop.permute.xlu1 %6863  ;;  %v2474_v56 = vsel %vm1768_vm3, %v2472_v47, %v2418_v18  ;;  %v9737_v55 = vsel %vm677_vm11, %v6805_v51, %v6806_v22  ;;  %v2412_v5 = vrot.slane %v9596_v31, 4  ;;  %v9752_v7 = vcombine.high %v9728_v15, %v9728_v15 }
 0x16e   :  { %v9714_v39 = vpop.permute.xlu0 %6858  ;;  %v9741_v33 = vsel %vm677_vm11, %v6801_v48, %v6805_v51  ;;  %4397 = vmatprep.mubr.f32.mxu0 %v2474_v56  ;;  %v9748_v11 = vsel %vm677_vm11, %v6796_v10, %v6800_v8  ;;  %7088 = vrot.lane.b32.xlu0 %v9732_v12, %s7751_s1  ;;  %v2417_v31 = vrot.slane %v9592_v40, 2  ;;  %v2469_v30 = vsel %vm1762_vm1, %v9643_v36, %v2407_v49  ;;  %v14185_v51 = vld [vmem:[#allocation17_spill] sm:$0xff] }
 0x16f   :  { %14184 = vst [vmem:[#allocation21_spill] sm:$0xff] %v9752_v7  ;;  %v6816_v10 = vunpack.i.h.bf16 %v9531_v43  ;;  %v9769_v47 = vpack.i.bf16 %v9752_v7, %v14185_v51  ;;  %v2471_v56 = vsel %vm1765_vm2, %v2469_v30, %v2412_v5  ;;  %v6815_v27 = vunpack.i.l.bf16 %v9531_v43 }
 0x170   :  { %v6811_v40 = vunpack.i.h.bf16 %v9533_v62  ;;  %v2473_v29 = vsel %vm1768_vm3, %v2471_v56, %v2417_v31  ;;  %v6810_v49 = vunpack.i.l.bf16 %v9533_v62  ;;  %v691_v36 = vsel %vm677_vm11, %v6790_v50, %v6791_v32 }
 0x171   :  { %v9756_v18 = vpop.permute.xlu1 %6873  ;;  %v2429_v26 = vrot.slane %v9696_v4, 4  ;;  %7093 = vrot.lane.b32.xlu1 %v9769_v47, %s7751_s1  ;;  %4398 = vmatmul.mubr.f32.gmra.mrb[64].mxu0 %v2473_v29  ;;  %v9783_v5 = vsel %vm733_vm12, %v6815_v27, %v6816_v10  ;;  %v2434_v43 = vrot.slane %v691_v36, 2  ;;  %v2476_v31 = vsel %vm1762_vm1, %v9649_v58, %v2424_v52 }
 0x172   :  { %v9765_v59 = vpop.permute.xlu0 %6868  ;;  %v2496_v62 = vrot.slane %v9783_v5, 6  ;;  %v9792_v32 = vsel %vm677_vm11, %v6806_v22, %v6810_v49  ;;  %v2428_v56 = vrot.slane %v9639_v63, 4  ;;  %v2433_v29 = vrot.slane %v9696_v4, 2  ;;  %7098 = vrot.lane.b32.xlu0 %v8036_v14, %s7751_s1 }
 0x173   :  { %v2478_v50 = vsel %vm1765_vm2, %v2476_v31, %v2429_v26  ;;  %v2475_v61 = vsel %vm1762_vm1, %v678_v57, %v2423_v20  ;;  %v6826_v52 = vunpack.i.h.bf16 %v9573_v42  ;;  %v6825_v22 = vunpack.i.l.bf16 %v9573_v42 }
 0x174   :  { %v2480_v30 = vsel %vm1768_vm3, %v2478_v50, %v2434_v43  ;;  %v6821_v26 = vunpack.i.h.bf16 %v9575_v1  ;;  %v6820_v63 = vunpack.i.l.bf16 %v9575_v1  ;;  %v2477_v58 = vsel %vm1765_vm2, %v2475_v61, %v2428_v56 }
 0x175   :  { %v9801_v41 = vpop.permute.xlu1 %6883  ;;  %4403 = vmatprep.mubr.f32.mxu0 %v2480_v30  ;;  %7103 = vrot.lane.b32.xlu1 %v8111_v35, %s7751_s1  ;;  %v687_v20 = vsel %vm677_vm11, %v6800_v8, %v6801_v48  ;;  %v2445_v4 = vrot.slane %v9748_v11, 4  ;;  %v14186_v57 = vrot.slane %v9688_v3, 6  ;;  %v2479_v31 = vsel %vm1768_vm3, %v2477_v58, %v2433_v29 }
 0x176   :  { %v9809_v43 = vpop.permute.xlu0 %6878  ;;  %v9824_v1 = vsel %vm733_vm12, %v6816_v10, %v6821_v26  ;;  %v9828_v50 = vsel %vm733_vm12, %v6820_v63, %v6815_v27  ;;  %v9832_v61 = vsel %vm733_vm12, %v6826_v52, %v6820_v63  ;;  %4404 = vmatmul.mubr.f32.gmra.mrb[66].mxu0 %v2479_v31  ;;  %v2450_v8 = vrot.slane %v687_v20, 2  ;;  %7108 = vrot.lane.b32.xlu0 %v8059_v17, %s7751_s1 }
 0x177   :  { %v2482_v42 = vsel %vm1762_vm1, %v9692_v6, %v14186_v57  ;;  %v2495_v48 = vrot.slane %v9828_v50, 6  ;;  %v2444_v56 = vrot.slane %v9688_v3, 4  ;;  %v2449_v29 = vrot.slane %v9748_v11, 2 }
 0x178   :  { %v2484_v30 = vsel %vm1765_vm2, %v2482_v42, %v2445_v4  ;;  %v14187_v10 = vrot.slane %v9692_v6, 6  ;;  %v6836_v52 = vunpack.i.h.bf16 %v9603_v60  ;;  %v6835_v63 = vunpack.i.l.bf16 %v9603_v60 }
 0x179   :  { %v2486_v27 = vsel %vm1768_vm3, %v2484_v30, %v2450_v8  ;;  %7113 = vrot.lane.b32.xlu1 %v8048_v16, %s7751_s1  ;;  %v6831_v57 = vunpack.i.h.bf16 %v9605_v0  ;;  %v9847_v4 = vpop.permute.xlu1 %6893  ;;  %v6830_v6 = vunpack.i.l.bf16 %v9605_v0  ;;  %v683_v11 = vsel %vm677_vm11, %v6810_v49, %v6811_v40 }
 0x17a   :  { %v2481_v58 = vsel %vm1762_vm1, %v691_v36, %v14187_v10  ;;  %4409 = vmatprep.mubr.f32.mxu0 %v2486_v27  ;;  %v2461_v36 = vrot.slane %v9792_v32, 4  ;;  %v9856_v42 = vpop.permute.xlu0 %6888  ;;  %v2466_v8 = vrot.slane %v683_v11, 2  ;;  %v14188_v30 = vrot.slane %v9737_v55, 6  ;;  %7118 = vrot.lane.b32.xlu0 %v8067_v19, %s7751_s1 }
 0x17b   :  { %v2483_v3 = vsel %vm1765_vm2, %v2481_v58, %v2444_v56  ;;  %v9861_v31 = vsel %vm733_vm12, %v6825_v22, %v6831_v57  ;;  %v9870_v40 = vsel %vm733_vm12, %v6830_v6, %v6835_v63  ;;  %v9874_v49 = vsel %vm733_vm12, %v6831_v57, %v6830_v6 }
 0x17c   :  { %v2485_v60 = vsel %vm1768_vm3, %v2483_v3, %v2449_v29  ;;  %v2488_v56 = vsel %vm1762_vm1, %v9741_v33, %v14188_v30  ;;  %v2511_v0 = vrot.slane %v9861_v31, 6  ;;  %v2512_v10 = vrot.slane %v9874_v49, 6 }
 0x17d   :  { %4410 = vmatmul.mubr.f32.gmra.mrb[68].mxu0 %v2485_v60  ;;  %v2490_v29 = vsel %vm1765_vm2, %v2488_v56, %v2461_v36  ;;  %v2460_v27 = vrot.slane %v9737_v55, 4  ;;  %v2465_v3 = vrot.slane %v9792_v32, 2  ;;  %v14189_v11 = vrot.slane %v9741_v33, 6  ;;  %7123 = vrot.lane.b32.xlu1 %v8063_v28, %s7751_s1  ;;  %v9894_v33 = vpop.permute.xlu1 %6903 }
 0x17e   :  { %v2492_v58 = vsel %vm1768_vm3, %v2490_v29, %v2466_v8  ;;  %v6846_v30 = vunpack.i.h.bf16 %v9632_v37  ;;  %v6845_v57 = vunpack.i.l.bf16 %v9632_v37  ;;  %v6841_v6 = vunpack.i.h.bf16 %v9634_v46  ;;  %v9902_v37 = vpop.permute.xlu0 %6898  ;;  %7128 = vrot.lane.b32.xlu0 %v9683_v23, %s7752_s10 }
 0x17f   :  { %4415 = vmatprep.mubr.f32.mxu0 %v2492_v58  ;;  %v2487_v60 = vsel %vm1762_vm1, %v687_v20, %v14189_v11  ;;  %v6840_v55 = vunpack.i.l.bf16 %v9634_v46  ;;  %v735_v32 = vsel %vm733_vm12, %v6821_v26, %v6825_v22  ;;  %v2501_v36 = vrot.slane %v9824_v1, 4 }
 0x180   :  { %v2489_v20 = vsel %vm1765_vm2, %v2487_v60, %v2460_v27  ;;  %v2506_v8 = vrot.slane %v735_v32, 2  ;;  %v2558_v56 = vsel %vm1762_vm1, %v9828_v50, %v2496_v62  ;;  %v9907_v46 = vsel %vm733_vm12, %v6841_v6, %v6845_v57 }
 0x181   :  { %v2491_v29 = vsel %vm1768_vm3, %v2489_v20, %v2465_v3  ;;  %v9911_v22 = vsel %vm733_vm12, %v6840_v55, %v6841_v6  ;;  %v9915_v26 = vsel %vm733_vm12, %v6836_v52, %v6840_v55  ;;  %v2560_v50 = vsel %vm1765_vm2, %v2558_v56, %v2501_v36  ;;  %7133 = vrot.lane.b32.xlu1 %v9732_v12, %s7752_s10  ;;  %v9937_v56 = vpop.permute.xlu1 %6913 }
 0x182   :  { %4416 = vmatmul.mubr.f32.gmra.mrb[70].mxu0 %v2491_v29  ;;  %v2527_v58 = vrot.slane %v9915_v26, 6  ;;  %v2528_v62 = vrot.slane %v9911_v22, 6  ;;  %v2562_v27 = vsel %vm1768_vm3, %v2560_v50, %v2506_v8  ;;  %v2500_v3 = vrot.slane %v9783_v5, 4  ;;  %v9946_v50 = vpop.permute.xlu0 %6908  ;;  %7138 = vrot.lane.b32.xlu0 %v9769_v47, %s7752_s10 }
 0x183   :  { %v2505_v11 = vrot.slane %v9824_v1, 2  ;;  %4421 = vmatprep.mubr.f32.mxu0 %v2562_v27  ;;  %v2557_v60 = vsel %vm1762_vm1, %v9832_v61, %v2495_v48  ;;  %v6856_v6 = vunpack.i.h.bf16 %v9672_v53  ;;  %v6855_v55 = vunpack.i.l.bf16 %v9672_v53 }
 0x184   :  { %v6851_v20 = vunpack.i.h.bf16 %v9674_v38  ;;  %v2559_v5 = vsel %vm1765_vm2, %v2557_v60, %v2500_v3  ;;  %v6850_v1 = vunpack.i.l.bf16 %v9674_v38  ;;  %v748_v36 = vsel %vm733_vm12, %v6835_v63, %v6836_v52 }
 0x185   :  { %v2517_v8 = vrot.slane %v9870_v40, 4  ;;  %v2561_v61 = vsel %vm1768_vm3, %v2559_v5, %v2505_v11  ;;  %v2522_v48 = vrot.slane %v748_v36, 2  ;;  %v2564_v29 = vsel %vm1762_vm1, %v9861_v31, %v2512_v10  ;;  %7143 = vrot.lane.b32.xlu1 %v8036_v14, %s7752_s10 }
 0x186   :  { %v9942_v53 = vsel %vm733_vm12, %v6851_v20, %v6855_v55  ;;  %4422 = vmatmul.mubr.f32.gmra.mrb[72].mxu0 %v2561_v61  ;;  %v9950_v38 = vsel %vm733_vm12, %v6850_v1, %v6851_v20  ;;  %v743_v52 = vsel %vm733_vm12, %v6846_v30, %v6850_v1  ;;  %v2516_v10 = vrot.slane %v9874_v49, 4  ;;  %7148 = vrot.lane.b32.xlu0 %v8111_v35, %s7752_s10 }
 0x187   :  { %v2566_v63 = vsel %vm1765_vm2, %v2564_v29, %v2517_v8  ;;  %v2543_v27 = vrot.slane %v743_v52, 6  ;;  %v2544_v3 = vrot.slane %v9950_v38, 6  ;;  %v2521_v60 = vrot.slane %v9870_v40, 2 }
 0x188   :  { %v2568_v11 = vsel %vm1768_vm3, %v2566_v63, %v2522_v48  ;;  %v2563_v20 = vsel %vm1762_vm1, %v735_v32, %v2511_v0  ;;  %v6866_v5 = vunpack.i.h.bf16 %v9712_v21  ;;  %v6865_v1 = vunpack.i.l.bf16 %v9712_v21  ;;  %v9977_v32 = vpop.permute.xlu1 %6923 }
 0x189   :  { %4427 = vmatprep.mubr.f32.mxu0 %v2568_v11  ;;  %v6861_v8 = vunpack.i.h.bf16 %v9714_v39  ;;  %v6860_v61 = vunpack.i.l.bf16 %v9714_v39  ;;  %v2565_v49 = vsel %vm1765_vm2, %v2563_v20, %v2516_v10  ;;  %v744_v31 = vsel %vm733_vm12, %v6845_v57, %v6846_v30  ;;  %v9992_v57 = vpop.permute.xlu0 %6918  ;;  %7153 = vrot.lane.b32.xlu1 %v8059_v17, %s7752_s10 }
 0x18a   :  { %v2533_v0 = vrot.slane %v9907_v46, 4  ;;  %v2570_v40 = vsel %vm1762_vm1, %v9915_v26, %v2528_v62  ;;  %v2567_v21 = vsel %vm1768_vm3, %v2565_v49, %v2521_v60  ;;  %v2538_v29 = vrot.slane %v744_v31, 2  ;;  %7158 = vrot.lane.b32.xlu0 %v8048_v16, %s7752_s10 }
 0x18b   :  { %v9982_v48 = vsel %vm787_vm13, %v6861_v8, %v6866_v5  ;;  %v9986_v39 = vsel %vm787_vm13, %v6860_v61, %v6861_v8  ;;  %v9990_v30 = vsel %vm787_vm13, %v6865_v1, %v6860_v61  ;;  %4428 = vmatmul.mubr.f32.gmra.mrb[74].mxu0 %v2567_v21  ;;  %v2532_v11 = vrot.slane %v9911_v22, 4 }
 0x18c   :  { %v2583_v26 = vrot.slane %v9990_v30, 6  ;;  %v2584_v62 = vrot.slane %v9986_v39, 6  ;;  %v2572_v63 = vsel %vm1765_vm2, %v2570_v40, %v2533_v0  ;;  %v2537_v10 = vrot.slane %v9907_v46, 2  ;;  %v10018_v21 = vpop.permute.xlu1 %6933 }
 0x18d   :  { %v2574_v60 = vsel %vm1768_vm3, %v2572_v63, %v2538_v29  ;;  %v2569_v20 = vsel %vm1762_vm1, %v748_v36, %v2527_v58  ;;  %v6876_v8 = vunpack.i.h.bf16 %v9756_v18  ;;  %v6875_v61 = vunpack.i.l.bf16 %v9756_v18  ;;  %v10028_v63 = vpop.permute.xlu0 %6928  ;;  %7163 = vrot.lane.b32.xlu1 %v8067_v19, %s7752_s10 }
 0x18e   :  { %4433 = vmatprep.mubr.f32.mxu0 %v2574_v60  ;;  %v2571_v49 = vsel %vm1765_vm2, %v2569_v20, %v2532_v11  ;;  %v6871_v0 = vunpack.i.h.bf16 %v9765_v59  ;;  %v6870_v22 = vunpack.i.l.bf16 %v9765_v59  ;;  %v740_v46 = vsel %vm733_vm12, %v6855_v55, %v6856_v6  ;;  %7168 = vrot.lane.b32.xlu0 %v8063_v28, %s7752_s10 }
 0x18f   :  { %v2573_v58 = vsel %vm1768_vm3, %v2571_v49, %v2537_v10  ;;  %v10015_v18 = vsel %vm787_vm13, %v6876_v8, %v6875_v61  ;;  %v2549_v36 = vrot.slane %v9942_v53, 4  ;;  %v2554_v40 = vrot.slane %v740_v46, 2 }
 0x190   :  { %4434 = vmatmul.mubr.f32.gmra.mrb[76].mxu0 %v2573_v58  ;;  %v2600_v59 = vrot.slane %v10015_v18, 6  ;;  %v793_v6 = vsel %vm787_vm13, %v6871_v0, %v6865_v1  ;;  %v10025_v55 = vsel %vm787_vm13, %v6870_v22, %v6876_v8  ;;  %v2576_v29 = vsel %vm1762_vm1, %v743_v52, %v2544_v3 }
 0x191   :  { %v2599_v11 = vrot.slane %v10025_v55, 6  ;;  %v2578_v10 = vsel %vm1765_vm2, %v2576_v29, %v2549_v36  ;;  %v2548_v20 = vrot.slane %v9950_v38, 4  ;;  %v2553_v49 = vrot.slane %v9942_v53, 2  ;;  %v14190_v53 = vld [vmem:[#allocation18_spill] sm:$0xff]  ;;  %v10062_v36 = vpop.permute.xlu1 %6943  ;;  %v10067_v29 = vpop.permute.xlu0 %6938 }
 0x192   :  { %v2580_v60 = vsel %vm1768_vm3, %v2578_v10, %v2554_v40  ;;  %v2575_v1 = vsel %vm1762_vm1, %v744_v31, %v2543_v27  ;;  %v6886_v52 = vunpack.i.h.bf16 %v9801_v41  ;;  %v6885_v3 = vunpack.i.l.bf16 %v9801_v41 }
 0x193   :  { %4439 = vmatprep.mubr.f32.mxu0 %v2580_v60  ;;  %v6881_v8 = vunpack.i.h.bf16 %v9809_v43  ;;  %v6880_v0 = vunpack.i.l.bf16 %v9809_v43  ;;  %v2577_v38 = vsel %vm1765_vm2, %v2575_v1, %v2548_v20  ;;  %v10047_v27 = vpack.i.bf16 %v14190_v53, %v14185_v51 }
 0x194   :  { %v789_v31 = vsel %vm787_vm13, %v6866_v5, %v6870_v22  ;;  %v2579_v46 = vsel %vm1768_vm3, %v2577_v38, %v2553_v49  ;;  %v10054_v41 = vsel %vm787_vm13, %v6885_v3, %v6886_v52  ;;  %v2589_v22 = vrot.slane %v9982_v48, 4 }
 0x195   :  { %v10058_v43 = vsel %vm787_vm13, %v6881_v8, %v6885_v3  ;;  %v803_v58 = vsel %vm787_vm13, %v6875_v61, %v6880_v0  ;;  %4440 = vmatmul.mubr.f32.gmra.mrb[78].mxu0 %v2579_v46  ;;  %v2616_v51 = vrot.slane %v10054_v41, 6  ;;  %v2594_v40 = vrot.slane %v789_v31, 2  ;;  %7173 = vrot.lane.b32.xlu1 %v10047_v27, %s7753_s11 }
 0x196   :  { %v2615_v5 = vrot.slane %v10058_v43, 6  ;;  %v2646_v10 = vsel %vm1762_vm1, %v9990_v30, %v2584_v62  ;;  %v6896_v61 = vunpack.i.h.bf16 %v9847_v4  ;;  %v6895_v60 = vunpack.i.l.bf16 %v9847_v4 }
 0x197   :  { %v6891_v20 = vunpack.i.h.bf16 %v9856_v42  ;;  %v2648_v49 = vsel %vm1765_vm2, %v2646_v10, %v2589_v22  ;;  %v6890_v1 = vunpack.i.l.bf16 %v9856_v42  ;;  %v2588_v3 = vrot.slane %v9986_v39, 4  ;;  %v14191_v10 = vld [vmem:[#allocation16_spill] sm:$0xff] }
 0x198   :  { %v2593_v38 = vrot.slane %v9982_v48, 2  ;;  %v2650_v53 = vsel %vm1768_vm3, %v2648_v49, %v2594_v40  ;;  %v10085_v62 = vsel %vm787_vm13, %v6895_v60, %v6896_v61  ;;  %v2645_v46 = vsel %vm1762_vm1, %v793_v6, %v2583_v26  ;;  %v14192_v49 = vld [vmem:[#allocation15_spill] sm:$0xff]  ;;  %v10105_v26 = vpop.permute.xlu1 %6953 }
 0x199   :  { %v10089_v4 = vsel %vm787_vm13, %v6891_v20, %v6895_v60  ;;  %4445 = vmatprep.mubr.f32.mxu0 %v2650_v53  ;;  %v799_v48 = vsel %vm787_vm13, %v6886_v52, %v6890_v1  ;;  %v2647_v22 = vsel %vm1765_vm2, %v2645_v46, %v2588_v3  ;;  %v7182_v60 = vpack.i.bf16 %v14180_v2, %v14191_v10 }
 0x19a   :  { %v2649_v40 = vsel %vm1768_vm3, %v2647_v22, %v2593_v38  ;;  %v7177_v30 = vpack.i.bf16 %v14192_v49, %v14183_v45  ;;  %v6906_v6 = vunpack.i.h.bf16 %v9894_v33  ;;  %v6905_v53 = vunpack.i.l.bf16 %v9894_v33  ;;  %v10111_v38 = vpop.permute.xlu0 %6948 }
 0x19b   :  { %4446 = vmatmul.mubr.f32.gmra.mrb[80].mxu0 %v2649_v40  ;;  %v6901_v52 = vunpack.i.h.bf16 %v9902_v37  ;;  %v6900_v3 = vunpack.i.l.bf16 %v9902_v37  ;;  %7183 = vrot.lane.b32.xlu1 %v7182_v60, %s7753_s11  ;;  %v802_v46 = vsel %vm787_vm13, %v6880_v0, %v6881_v8  ;;  %v2605_v22 = vrot.slane %v803_v58, 4 }
 0x19c   :  { %7178 = vrot.lane.b32.xlu0 %v7177_v30, %s7753_s11  ;;  %v2652_v40 = vsel %vm1762_vm1, %v10025_v55, %v2600_v59  ;;  %v2604_v33 = vrot.slane %v10015_v18, 4  ;;  %v10124_v37 = vsel %vm841_vm14, %v6905_v53, %v6906_v6  ;;  %v2610_v60 = vrot.slane %v802_v46, 2 }
 0x19d   :  { %v10128_v10 = vsel %vm787_vm13, %v6896_v61, %v6900_v3  ;;  %v2609_v49 = vrot.slane %v803_v58, 2  ;;  %v2672_v8 = vrot.slane %v10124_v37, 6  ;;  %v2654_v0 = vsel %vm1765_vm2, %v2652_v40, %v2605_v22 }
 0x19e   :  { %v2651_v59 = vsel %vm1762_vm1, %v789_v31, %v2599_v11  ;;  %v2656_v18 = vsel %vm1768_vm3, %v2654_v0, %v2610_v60  ;;  %v6916_v39 = vunpack.i.h.bf16 %v9937_v56  ;;  %v6915_v58 = vunpack.i.l.bf16 %v9937_v56  ;;  %v10146_v31 = vpop.permute.xlu1 %6963 }
 0x19f   :  { %v2653_v30 = vsel %vm1765_vm2, %v2651_v59, %v2604_v33  ;;  %4451 = vmatprep.mubr.f32.mxu0 %v2656_v18  ;;  %7193 = vrot.lane.b32.xlu1 %v9732_v12, %s7754_s12  ;;  %v6911_v55 = vunpack.i.h.bf16 %v9946_v50  ;;  %v6910_v11 = vunpack.i.l.bf16 %v9946_v50  ;;  %v798_v40 = vsel %vm787_vm13, %v6890_v1, %v6891_v20  ;;  %v10159_v50 = vpop.permute.xlu0 %6958 }
 0x1a0   :  { %v2655_v61 = vsel %vm1768_vm3, %v2653_v30, %v2609_v49  ;;  %7188 = vrot.lane.b32.xlu0 %v9683_v23, %s7754_s12  ;;  %v2621_v33 = vrot.slane %v799_v48, 4  ;;  %v2658_v12 = vsel %vm1762_vm1, %v10058_v43, %v2616_v51  ;;  %v2620_v56 = vrot.slane %v10054_v41, 4 }
 0x1a1   :  { %4452 = vmatmul.mubr.f32.gmra.mrb[82].mxu0 %v2655_v61  ;;  %v10163_v60 = vsel %vm841_vm14, %v6906_v6, %v6911_v55  ;;  %v10167_v23 = vsel %vm841_vm14, %v6910_v11, %v6905_v53  ;;  %v10171_v20 = vsel %vm841_vm14, %v6916_v39, %v6910_v11  ;;  %v2626_v1 = vrot.slane %v798_v40, 2 }
 0x1a2   :  { %v2671_v49 = vrot.slane %v10167_v23, 6  ;;  %v2660_v51 = vsel %vm1765_vm2, %v2658_v12, %v2621_v33  ;;  %v2625_v41 = vrot.slane %v799_v48, 2  ;;  %v2657_v0 = vsel %vm1762_vm1, %v802_v46, %v2615_v5  ;;  %v10198_v12 = vpop.permute.xlu1 %6973 }
 0x1a3   :  { %v2662_v59 = vsel %vm1768_vm3, %v2660_v51, %v2626_v1  ;;  %v2659_v53 = vsel %vm1765_vm2, %v2657_v0, %v2620_v56  ;;  %v14098_v30 = vunpack.i.h.bf16 %v9977_v32  ;;  %v14096_v61 = vunpack.i.l.bf16 %v9977_v32  ;;  %7203 = vrot.lane.b32.xlu1 %v9769_v47, %s7754_s12  ;;  %v14194_v56 = vld [vmem:[#allocation14_spill] sm:$0xff] }
 0x1a4   :  { %4457 = vmatprep.mubr.f32.mxu0 %v2662_v59  ;;  %v2661_v39 = vsel %vm1768_vm3, %v2659_v53, %v2625_v41  ;;  %v6921_v48 = vunpack.i.h.bf16 %v9992_v57  ;;  %v6920_v43 = vunpack.i.l.bf16 %v9992_v57  ;;  %v794_v5 = vsel %vm787_vm13, %v6900_v3, %v6901_v52  ;;  %7198 = vrot.lane.b32.xlu0 %v14194_v56, %s7753_s11  ;;  %v10208_v3 = vpop.permute.xlu0 %6968 }
 0x1a5   :  { %4458 = vmatmul.mubr.f32.gmra.mrb[84].mxu0 %v2661_v39  ;;  %v2637_v46 = vrot.slane %v10128_v10, 4  ;;  %v14193_v11 = vrot.slane %v10085_v62, 6  ;;  %v2642_v57 = vrot.slane %v794_v5, 2  ;;  %v2636_v1 = vrot.slane %v10085_v62, 4 }
 0x1a6   :  { %v10138_v42 = vpop.f32.mrb[0].mxu0  ;;  %v10204_v47 = vsel %vm841_vm14, %v6915_v58, %v6921_v48  ;;  %v2641_v52 = vrot.slane %v10128_v10, 2  ;;  %v10217_v0 = vsel %vm841_vm14, %v6920_v43, %v14096_v61  ;;  %v10221_v59 = vsel %vm841_vm14, %v6921_v48, %v6920_v43 }
 0x1a7   :  { %v10148_v22 = vpop.f32.mrb[1].mxu0  ;;  %v2664_v33 = vsel %vm1762_vm1, %v10089_v4, %v14193_v11  ;;  %v2688_v10 = vrot.slane %v10221_v59, 6  ;;  %v14195_v5 = vrot.slane %v10089_v4, 6  ;;  %v14097_v48 = vunpack.i.l.bf16 %v10018_v21  ;;  %7213 = vrot.lane.b32.xlu1 %v8036_v14, %s7754_s12 }
 0x1a8   :  { %v2666_v62 = vsel %vm1765_vm2, %v2664_v33, %v2637_v46  ;;  %v6931_v46 = vunpack.i.h.bf16 %v10028_v63  ;;  %v6930_v33 = vunpack.i.l.bf16 %v10028_v63  ;;  %v843_v4 = vsel %vm841_vm14, %v6911_v55, %v6915_v58  ;;  %7208 = vrot.lane.b32.xlu0 %v7862_v25, %s7753_s11  ;;  %v10251_v63 = vpop.permute.xlu1 %6983 }
 0x1a9   :  { %v2668_v39 = vsel %vm1768_vm3, %v2666_v62, %v2642_v57  ;;  %v2663_v11 = vsel %vm1762_vm1, %v798_v40, %v14195_v5  ;;  %v2677_v57 = vrot.slane %v10163_v60, 4  ;;  %v2734_v14 = vsel %vm1762_vm1, %v10167_v23, %v2672_v8  ;;  %v10272_v23 = vpop.permute.xlu0 %6978 }
 0x1aa   :  { %v10178_v6 = vpop.f32.mrb[2].mxu0  ;;  %4463 = vmatprep.mubr.f32.mxu0 %v2668_v39  ;;  %v2665_v41 = vsel %vm1765_vm2, %v2663_v11, %v2636_v1  ;;  %v2682_v1 = vrot.slane %v843_v4, 2  ;;  %v10259_v58 = vsel %vm841_vm14, %v6931_v46, %v14097_v48  ;;  %v10263_v55 = vsel %vm841_vm14, %v6930_v33, %v6931_v46 }
 0x1ab   :  { %v10182_v18 = vpop.f32.mrb[3].mxu0  ;;  %v2667_v43 = vsel %vm1768_vm3, %v2665_v41, %v2641_v52  ;;  %v2676_v52 = vrot.slane %v10124_v37, 4  ;;  %v10269_v8 = vsel %vm841_vm14, %v14098_v30, %v6930_v33  ;;  %v2681_v37 = vrot.slane %v10163_v60, 2  ;;  %7223 = vrot.lane.b32.xlu1 %v7912_v44, %s7753_s11 }
 0x1ac   :  { %4464 = vmatmul.mubr.f32.gmra.mrb[86].mxu0 %v2667_v43  ;;  %v2704_v39 = vrot.slane %v10263_v55, 6  ;;  %v2736_v5 = vsel %vm1765_vm2, %v2734_v14, %v2677_v57  ;;  %v2733_v11 = vsel %vm1762_vm1, %v10171_v20, %v2671_v49  ;;  %v14099_v62 = vunpack.i.l.bf16 %v10062_v36  ;;  %7218 = vrot.lane.b32.xlu0 %v8111_v35, %s7754_s12 }
 0x1ad   :  { %v2738_v43 = vsel %vm1768_vm3, %v2736_v5, %v2682_v1  ;;  %v2735_v46 = vsel %vm1765_vm2, %v2733_v11, %v2676_v52  ;;  %v6941_v61 = vunpack.i.h.bf16 %v10067_v29  ;;  %v6940_v20 = vunpack.i.l.bf16 %v10067_v29  ;;  %v10309_v5 = vpop.permute.xlu1 %6993 }
 0x1ae   :  { %v10210_v51 = vpop.f32.mrb[4].mxu0  ;;  %4469 = vmatprep.mubr.f32.mxu0 %v2738_v43  ;;  %v2737_v60 = vsel %vm1768_vm3, %v2735_v46, %v2681_v37  ;;  %v14196_v49 = vunpack.i.h.bf16 %v9977_v32  ;;  %v14197_v57 = vunpack.i.l.bf16 %v9977_v32  ;;  %v2693_v14 = vrot.slane %v10217_v0, 4  ;;  %v10323_v46 = vpop.permute.xlu0 %6988 }
 0x1af   :  { %v10224_v53 = vpop.f32.mrb[5].mxu0  ;;  %v2740_v52 = vsel %vm1762_vm1, %v10204_v47, %v2688_v10  ;;  %v10307_v29 = vsel %vm841_vm14, %v6941_v61, %v14099_v62  ;;  %v10313_v32 = vsel %vm841_vm14, %v6940_v20, %v6941_v61  ;;  %v14198_v11 = vunpack.i.h.bf16 %v10018_v21  ;;  %7233 = vrot.lane.b32.xlu1 %v8059_v17, %s7754_s12 }
 0x1b0   :  { %4470 = vmatmul.mubr.f32.gmra.mrb[88].mxu0 %v2737_v60  ;;  %v856_v1 = vsel %vm841_vm14, %v14197_v57, %v14196_v49  ;;  %v2742_v35 = vsel %vm1765_vm2, %v2740_v52, %v2693_v14  ;;  %v2692_v43 = vrot.slane %v10221_v59, 4  ;;  %v2720_v57 = vrot.slane %v10313_v32, 6  ;;  %7228 = vrot.lane.b32.xlu0 %v7858_v24, %s7753_s11 }
 0x1b1   :  { %v2698_v37 = vrot.slane %v856_v1, 2  ;;  %v10319_v10 = vsel %vm841_vm14, %v14198_v11, %v6940_v20  ;;  %v2697_v62 = vrot.slane %v10217_v0, 2  ;;  %v14200_v59 = vrot.slane %v10204_v47, 6 }
 0x1b2   :  { %v10241_v40 = vpop.f32.mrb[6].mxu0  ;;  %v14100_v14 = vunpack.i.h.bf16 %v10105_v26  ;;  %v6955_v52 = vunpack.i.l.bf16 %v10105_v26  ;;  %v6950_v11 = vunpack.i.l.bf16 %v10111_v38  ;;  %v14201_v17 = vunpack.i.h.bf16 %v10018_v21 }
 0x1b3   :  { %v10253_v41 = vpop.f32.mrb[7].mxu0  ;;  %v2744_v61 = vsel %vm1768_vm3, %v2742_v35, %v2698_v37  ;;  %v2739_v20 = vsel %vm1762_vm1, %v843_v4, %v14200_v59  ;;  %v6951_v37 = vunpack.i.h.bf16 %v10111_v38  ;;  %v14202_v47 = vunpack.i.l.bf16 %v10018_v21 }
 0x1b4   :  { %4475 = vmatprep.mubr.f32.mxu0 %v2744_v61  ;;  %v2741_v0 = vsel %vm1765_vm2, %v2739_v20, %v2692_v43  ;;  %v2709_v61 = vrot.slane %v10259_v58, 4  ;;  %v2746_v49 = vsel %vm1762_vm1, %v10269_v8, %v2704_v39  ;;  %v10374_v39 = vpack.i.bf16 %v9752_v7, %v9728_v15  ;;  %v10376_v20 = vpop.permute.xlu1 %7003  ;;  %7238 = vrot.lane.b32.xlu0 %v8048_v16, %s7754_s12 }
 0x1b5   :  { %v852_v4 = vsel %vm841_vm14, %v14202_v47, %v14201_v17  ;;  %v2743_v35 = vsel %vm1768_vm3, %v2741_v0, %v2697_v62  ;;  %v10362_v38 = vsel %vm906_vm15, %v6951_v37, %v14100_v14  ;;  %v10366_v21 = vsel %vm906_vm15, %v6950_v11, %v6951_v37  ;;  %v10383_v37 = vpop.permute.xlu0 %6998 }
 0x1b6   :  { %v10281_v48 = vpop.f32.mrb[8].mxu0  ;;  %v2714_v59 = vrot.slane %v852_v4, 2  ;;  %4476 = vmatmul.mubr.f32.gmra.mrb[90].mxu0 %v2743_v35  ;;  %v10370_v62 = vsel %vm906_vm15, %v6955_v52, %v6950_v11  ;;  %v2760_v47 = vrot.slane %v10366_v21, 6  ;;  %v2748_v35 = vsel %vm1765_vm2, %v2746_v49, %v2709_v61  ;;  %7243 = vrot.lane.b32.xlu1 %v10374_v39, %s7755_s13 }
 0x1b7   :  { %v10287_v30 = vpop.f32.mrb[9].mxu0  ;;  %v2708_v11 = vrot.slane %v10263_v55, 4  ;;  %v2713_v24 = vrot.slane %v10259_v58, 2  ;;  %v6966_v49 = vunpack.i.h.bf16 %v10146_v31  ;;  %v6965_v61 = vunpack.i.l.bf16 %v10146_v31 }
 0x1b8   :  { %v2750_v14 = vsel %vm1768_vm3, %v2748_v35, %v2714_v59  ;;  %v6961_v59 = vunpack.i.h.bf16 %v10159_v50  ;;  %v6960_v35 = vunpack.i.l.bf16 %v10159_v50  ;;  %v14206_v58 = vunpack.i.h.bf16 %v10062_v36 }
 0x1b9   :  { %4481 = vmatprep.mubr.f32.mxu0 %v2750_v14  ;;  %v2725_v14 = vrot.slane %v10307_v29, 4  ;;  %v2752_v16 = vsel %vm1762_vm1, %v10319_v10, %v2720_v57  ;;  %v10414_v50 = vsel %vm906_vm15, %v6965_v61, %v6966_v49  ;;  %v2764_v57 = vrot.slane %v10366_v21, 4 }
 0x1ba   :  { %v10325_v60 = vpop.f32.mrb[10].mxu0  ;;  %vm1014_vm4 = vcmp.lt.s32.totalorder %v8051_v34, 58  ;;  %vm1071_vm5 = vcmp.lt.s32.totalorder %v8051_v34, 25  ;;  %vm1125_vm6 = vcmp.lt.s32.totalorder %v8051_v34, 22  ;;  %vm1342_vm7 = vcmp.lt.s32.totalorder %v8051_v34, 109 }
 0x1bb   :  { %v10331_v33 = vpop.f32.mrb[11].mxu0  ;;  %vm1179_vm8 = vcmp.lt.s32.totalorder %v8051_v34, 19  ;;  %vm1407_vm9 = vcmp.lt.s32.totalorder %v8051_v34, 76  ;;  %vm1234_vm10 = vcmp.lt.s32.totalorder %v8051_v34, 115  ;;  %vm1461_vm11 = vcmp.lt.s32.totalorder %v8051_v34, 73 }
 0x1bc   :  { %14199 = vst [vmem:[#allocation20_spill] sm:$0xff] %v10331_v33  ;;  %v2724_v33 = vrot.slane %v10313_v32, 4  ;;  %v6970_v32 = vunpack.i.l.bf16 %v10208_v3  ;;  %vm1288_vm12 = vcmp.lt.s32.totalorder %v8051_v34, 112  ;;  %vm1515_vm13 = vcmp.lt.s32.totalorder %v8051_v34, 70 }
 0x1be   :  { %v10356_v43 = vpop.f32.mrb[12].mxu0 }
 0x1bf   :  { %14203 = vst [vmem:[#allocation17_spill] sm:$0xff] %v10356_v43  ;;  %v10378_v0 = vpop.f32.mrb[13].mxu0 }
 0x1c0   :  { %14204 = vst [vmem:[#allocation18_spill] sm:$0xff] %v10378_v0  ;;  %v14205_v0 = vrot.slane %v10269_v8, 6  ;;  %v14207_v8 = vunpack.i.l.bf16 %v10062_v36  ;;  %v914_v36 = vsel %vm906_vm15, %v6961_v59, %v6955_v52  ;;  %v2729_v52 = vrot.slane %v10307_v29, 2 }
 0x1c2   :  { %v2745_v17 = vsel %vm1762_vm1, %v856_v1, %v14205_v0  ;;  %v848_v1 = vsel %vm841_vm14, %v14207_v8, %v14206_v58  ;;  %v58_v0 = vld [vmem:[#allocation2 + $0x20] sm:$0xff]  ;;  %v6976_v58 = vunpack.i.h.bf16 %v10198_v12  ;;  %vm1572_vm14 = vcmp.lt.s32.totalorder %v8051_v34, 38 }
 0x1c3   :  { %v2747_v55 = vsel %vm1765_vm2, %v2745_v17, %v2708_v11  ;;  %v10409_v31 = vpop.f32.mrb[14].mxu0  ;;  %v10420_v17 = vsel %vm906_vm15, %v6960_v35, %v6965_v61  ;;  %v2730_v8 = vrot.slane %v848_v1, 2  ;;  %v14210_v61 = vrot.slane %v10319_v10, 6 }
 0x1c4   :  { %14208 = vst [vmem:[#allocation16_spill] sm:$0xff] %v10409_v31  ;;  %v2749_v43 = vsel %vm1768_vm3, %v2747_v55, %v2713_v24  ;;  %v10422_v11 = vpop.f32.mrb[15].mxu0  ;;  %v2754_v24 = vsel %vm1765_vm2, %v2752_v16, %v2725_v14  ;;  %v10427_v55 = vpop.permute.xlu1 %7013  ;;  %v1360_v31 = vcombine.high %v58_v0, %v58_v0  ;;  %v6975_v1 = vunpack.i.l.bf16 %v10198_v12  ;;  %v14211_v16 = vld [vmem:[#allocation12_spill] sm:$0xff] }
 0x1c5   :  { %14209 = vst [vmem:[#allocation15_spill] sm:$0xff] %v10422_v11  ;;  %4482 = vmatmul.mubr.f32.gmra.mrb[92].mxu0 %v2749_v43  ;;  %v2751_v59 = vsel %vm1762_vm1, %v852_v4, %v14210_v61  ;;  %v10434_v11 = vpop.permute.xlu0 %7008  ;;  %v2756_v43 = vsel %vm1768_vm3, %v2754_v24, %v2730_v8  ;;  %v6971_v14 = vunpack.i.h.bf16 %v10208_v3  ;;  %v14215_v61 = vunpack.i.h.bf16 %v10105_v26 }
 0x1c6   :  { %4487 = vmatprep.mubr.f32.mxu0 %v2756_v43  ;;  %v10441_v0 = vrot.slane %v1360_v31, %v14211_v16  ;;  %v2753_v29 = vsel %vm1765_vm2, %v2751_v59, %v2724_v33  ;;  %v10448_v4 = vsel %vm906_vm15, %v6975_v1, %v6976_v58  ;;  %v2765_v43 = vrot.slane %v10362_v38, 4 }
 0x1c7   :  { %v2755_v10 = vsel %vm1768_vm3, %v2753_v29, %v2729_v52  ;;  %v10452_v8 = vsel %vm906_vm15, %v6971_v14, %v6975_v1  ;;  %v10468_v52 = vsel %vm906_vm15, %v6966_v49, %v6970_v32  ;;  %v910_v59 = vsel %vm906_vm15, %v14215_v61, %v6960_v35 }
 0x1c8   :  { %14212 = vst [vmem:[#allocation14_spill] sm:$0xff] %v10441_v0  ;;  %v10456_v12 = vpack.i.bf16 %v10441_v0, %v8087_v9  ;;  %v10460_v31 = vcombine.high %v10441_v0, %v10441_v0  ;;  %v2822_v1 = vsel %vm1762_vm1, %v10370_v62, %v2760_v47  ;;  %v10477_v16 = vpop.permute.xlu1 %7023  ;;  %v2770_v26 = vrot.slane %v910_v59, 2 }
 0x1c9   :  { %4488 = vmatmul.mubr.f32.gmra.mrb[94].mxu0 %v2755_v10  ;;  %v10464_v24 = vpop.f32.mrb[16].mxu0  ;;  %v6986_v10 = vunpack.i.h.bf16 %v10251_v63  ;;  %v6985_v35 = vunpack.i.l.bf16 %v10251_v63  ;;  %v10489_v61 = vpop.permute.xlu0 %7018  ;;  %v2824_v47 = vsel %vm1765_vm2, %v2822_v1, %v2765_v43  ;;  %v6981_v33 = vunpack.i.h.bf16 %v10272_v23 }
 0x1ca   :  { %14213 = vst [vmem:[#allocation12_spill] sm:$0xff] %v10460_v31  ;;  %14214 = vst [vmem:[#allocation22_spill] sm:$0xff] %v10464_v24  ;;  %v10479_v29 = vpop.f32.mrb[17].mxu0  ;;  %7253 = vrot.lane.b32.xlu1 %v10456_v12, %s7755_s13  ;;  %v10485_v49 = vpack.i.bf16 %v14182_v13, %v10460_v31  ;;  %v6980_v3 = vunpack.i.l.bf16 %v10272_v23  ;;  %v2826_v31 = vsel %vm1768_vm3, %v2824_v47, %v2770_v26  ;;  %v2769_v63 = vrot.slane %v10362_v38, 2 }
 0x1cb   :  { %14216 = vst [vmem:[#allocation23_spill] sm:$0xff] %v10479_v29  ;;  %v10500_v0 = vsel %vm906_vm15, %v6985_v35, %v6986_v10  ;;  %v14218_v29 = vrot.slane %v10370_v62, 6  ;;  %4493 = vmatprep.mubr.f32.mxu0 %v2826_v31  ;;  %v10509_v21 = vsel %vm906_vm15, %v6981_v33, %v6985_v35  ;;  %v6990_v35 = vunpack.i.l.bf16 %v10323_v46 }
 0x1cc   :  { %14217 = vst [vmem:[#allocation24_spill] sm:$0xff] %v10485_v49  ;;  %7248 = vrot.lane.b32.xlu0 %v10485_v49, %s7755_s13  ;;  %v10513_v1 = vsel %vm906_vm15, %v6976_v58, %v6980_v3  ;;  %v6995_v58 = vunpack.i.l.bf16 %v10309_v5  ;;  %v10569_v49 = vpack.i.bf16 %v14180_v2, %v9752_v7 }
 0x1cd   :  { %v2821_v43 = vsel %vm1762_vm1, %v914_v36, %v14218_v29  ;;  %v10524_v36 = vpack.i.bf16 %v14183_v45, %v14180_v2  ;;  %v2785_v29 = vrot.slane %v10468_v52, 2  ;;  %v7000_v2 = vunpack.i.l.bf16 %v10383_v37 }
 0x1ce   :  { %v2823_v26 = vsel %vm1765_vm2, %v2821_v43, %v2764_v57  ;;  %v10516_v47 = vpop.f32.mrb[18].mxu0  ;;  %7263 = vrot.lane.b32.xlu1 %v8063_v28, %s7754_s12  ;;  %v6996_v57 = vunpack.i.h.bf16 %v10309_v5  ;;  %v10532_v28 = vpop.permute.xlu1 %7033  ;;  %v2781_v43 = vrot.slane %v10468_v52, 4 }
 0x1cf   :  { %14219 = vst [vmem:[#allocation25_spill] sm:$0xff] %v10516_v47  ;;  %v2825_v62 = vsel %vm1768_vm3, %v2823_v26, %v2769_v63  ;;  %v10526_v31 = vpop.f32.mrb[19].mxu0  ;;  %v923_v63 = vsel %vm906_vm15, %v6970_v32, %v6971_v14  ;;  %v14221_v26 = vrot.slane %v10414_v50, 6  ;;  %v10544_v5 = vpop.permute.xlu0 %7028  ;;  %v10557_v32 = vsel %vm906_vm15, %v6986_v10, %v6990_v35 }
 0x1d0   :  { %14220 = vst [vmem:[#allocation26_spill] sm:$0xff] %v10526_v31  ;;  %4494 = vmatmul.mubr.f32.gmra.mrb[96].mxu0 %v2825_v62  ;;  %7258 = vrot.lane.b32.xlu0 %v8067_v19, %s7754_s12  ;;  %v10548_v38 = vsel %vm960_vm0, %v6995_v58, %v6996_v57  ;;  %v2786_v23 = vrot.slane %v923_v63, 2  ;;  %v2780_v19 = vrot.slane %v10414_v50, 4  ;;  %v14222_v31 = vrot.slane %v10420_v17, 6 }
 0x1d1   :  { %v2828_v62 = vsel %vm1762_vm1, %v10420_v17, %v14221_v26  ;;  %v10573_v10 = vpack.i.bf16 %v8087_v9, %v14182_v13  ;;  %v4854_v9 = vmul.f32 %v10138_v42, %v10138_v42  ;;  %v919_v13 = vsel %vm906_vm15, %v6980_v3, %v6981_v33 }
 0x1d2   :  { %7273 = vrot.lane.b32.xlu1 %v10047_v27, %s7755_s13  ;;  %v2830_v26 = vsel %vm1765_vm2, %v2828_v62, %v2781_v43  ;;  %v2827_v47 = vsel %vm1762_vm1, %v910_v59, %v14222_v31  ;;  %v7006_v59 = vunpack.i.h.bf16 %v10376_v20  ;;  %v2797_v31 = vrot.slane %v10513_v1, 4  ;;  %v10589_v43 = vpop.permute.xlu1 %7043 }
 0x1d3   :  { %v2832_v50 = vsel %vm1768_vm3, %v2830_v26, %v2786_v23  ;;  %v2829_v52 = vsel %vm1765_vm2, %v2827_v47, %v2780_v19  ;;  %v14107_v47 = vunpack.i.h.bf16 %v10383_v37  ;;  %v2802_v62 = vrot.slane %v919_v13, 2  ;;  %v10605_v19 = vpop.permute.xlu0 %7038 }
 0x1d4   :  { %7268 = vrot.lane.b32.xlu0 %v10524_v36, %s7755_s13  ;;  %4499 = vmatprep.mubr.f32.mxu0 %v2832_v50  ;;  %v2831_v17 = vsel %vm1768_vm3, %v2829_v52, %v2785_v29  ;;  %v14223_v42 = vrot.slane %v10448_v4, 6  ;;  %v4962_v33 = vmul.f32 %v10148_v22, %v10148_v22  ;;  %v10609_v26 = vsel %vm960_vm0, %v7000_v2, %v6995_v58 }
 0x1d5   :  { %v10563_v24 = vpop.f32.mrb[20].mxu0  ;;  %4500 = vmatmul.mubr.f32.gmra.mrb[98].mxu0 %v2831_v17  ;;  %v10597_v29 = vsel %vm960_vm0, %v6996_v57, %v14107_v47  ;;  %v10613_v50 = vsel %vm960_vm0, %v7006_v59, %v7000_v2  ;;  %v2796_v52 = vrot.slane %v10448_v4, 4  ;;  %v2801_v58 = vrot.slane %v10513_v1, 2 }
 0x1d6   :  { %v10575_v14 = vpop.f32.mrb[21].mxu0  ;;  %7283 = vrot.lane.b32.xlu1 %v10569_v49, %s7756_s14  ;;  %v2834_v3 = vsel %vm1762_vm1, %v10452_v8, %v14223_v42  ;;  %v10623_v47 = vadd.f32 %v4962_v33, %v4854_v9  ;;  %v14225_v59 = vrot.slane %v10452_v8, 6  ;;  %v10633_v2 = vpack.i.bf16 %v9728_v15, %v14183_v45  ;;  %v14270_v15 = vld [vmem:[#allocation15_spill] sm:$0xff] }
 0x1d7   :  { %v2836_v57 = vsel %vm1765_vm2, %v2834_v3, %v2797_v31  ;;  %v14108_v9 = vunpack.i.l.bf16 %v10427_v55  ;;  %v7010_v1 = vunpack.i.l.bf16 %v10434_v11  ;;  %v4855_v8 = vmul.f32 %v10178_v6, %v10178_v6 }
 0x1d8   :  { %7278 = vrot.lane.b32.xlu0 %v10573_v10, %s7756_s14  ;;  %v2838_v42 = vsel %vm1768_vm3, %v2836_v57, %v2802_v62  ;;  %14224 = vst [vmem:[#allocation27_spill] sm:$0xff] %v10623_v47  ;;  %v2833_v4 = vsel %vm1762_vm1, %v923_v63, %v14225_v59  ;;  %v7011_v62 = vunpack.i.h.bf16 %v10434_v11  ;;  %v14226_v45 = vunpack.i.h.bf16 %v10323_v46 }
 0x1d9   :  { %4505 = vmatprep.mubr.f32.mxu0 %v2838_v42  ;;  %v2835_v3 = vsel %vm1765_vm2, %v2833_v4, %v2796_v52  ;;  %v2813_v57 = vrot.slane %v10557_v32, 4  ;;  %v10650_v52 = vpop.permute.xlu1 %7053  ;;  %v14227_v46 = vunpack.i.l.bf16 %v10376_v20  ;;  %v14229_v59 = vrot.slane %v10509_v21, 6 }
 0x1da   :  { %v2837_v33 = vsel %vm1768_vm3, %v2835_v3, %v2801_v58  ;;  %7293 = vrot.lane.b32.xlu1 %v10633_v2, %s7756_s14  ;;  %v915_v63 = vsel %vm906_vm15, %v6990_v35, %v14226_v45  ;;  %v10658_v11 = vsel %vm960_vm0, %v7011_v62, %v14108_v9  ;;  %v10662_v6 = vsel %vm960_vm0, %v7010_v1, %v7011_v62  ;;  %v10670_v58 = vpop.permute.xlu0 %7048 }
 0x1db   :  { %v10617_v17 = vpop.f32.mrb[22].mxu0  ;;  %4506 = vmatmul.mubr.f32.gmra.mrb[100].mxu0 %v2837_v33  ;;  %v10668_v35 = vsel %vm960_vm0, %v14227_v46, %v7010_v1  ;;  %v2818_v42 = vrot.slane %v915_v63, 2  ;;  %v2864_v4 = vrot.slane %v10662_v6, 6  ;;  %v14228_v3 = vrot.slane %v10500_v0, 6 }
 0x1dc   :  { %v10626_v23 = vpop.f32.mrb[23].mxu0  ;;  %7288 = vrot.lane.b32.xlu0 %v7988_v54, %s7755_s13  ;;  %v4963_v62 = vmul.f32 %v10182_v18, %v10182_v18  ;;  %v2812_v63 = vrot.slane %v10500_v0, 4  ;;  %v2817_v46 = vrot.slane %v10557_v32, 2  ;;  %v2839_v9 = vsel %vm1762_vm1, %v919_v13, %v14229_v59 }
 0x1dd   :  { %v2840_v33 = vsel %vm1762_vm1, %v10509_v21, %v14228_v3  ;;  %v7021_v0 = vunpack.i.h.bf16 %v10489_v61  ;;  %v7020_v21 = vunpack.i.l.bf16 %v10489_v61  ;;  %v4856_v13 = vmul.f32 %v10210_v51, %v10210_v51 }
 0x1de   :  { %v2842_v1 = vsel %vm1765_vm2, %v2840_v33, %v2813_v57  ;;  %v10691_v3 = vadd.f32 %v4963_v62, %v4855_v8  ;;  %v2841_v18 = vsel %vm1765_vm2, %v2839_v9, %v2812_v63  ;;  %v14109_v57 = vunpack.i.l.bf16 %v10477_v16  ;;  %7303 = vrot.lane.b32.xlu1 %v10047_v27, %s7756_s14  ;;  %v10726_v62 = vpop.permute.xlu0 %7058 }
 0x1df   :  { %v10680_v45 = vpop.f32.mrb[24].mxu0  ;;  %v2844_v31 = vsel %vm1768_vm3, %v2842_v1, %v2818_v42  ;;  %v2843_v32 = vsel %vm1768_vm3, %v2841_v18, %v2817_v46  ;;  %v14232_v9 = vunpack.i.h.bf16 %v10383_v37  ;;  %v10711_v42 = vpop.permute.xlu1 %7063  ;;  %v2853_v51 = vrot.slane %v10597_v29, 4 }
 0x1e0   :  { %v10688_v22 = vpop.f32.mrb[25].mxu0  ;;  %14230 = vst [vmem:[#allocation28_spill] sm:$0xff] %v10691_v3  ;;  %4511 = vmatprep.mubr.f32.mxu0 %v2844_v31  ;;  %7298 = vrot.lane.b32.xlu0 %v14194_v56, %s7755_s13  ;;  %v14231_v31 = vunpack.i.l.bf16 %v10376_v20  ;;  %v10719_v61 = vsel %vm960_vm0, %v7021_v0, %v14109_v57  ;;  %v14233_v20 = vrot.slane %v10548_v38, 6  ;;  %v10732_v63 = vsel %vm960_vm0, %v7020_v21, %v7021_v0 }
 0x1e1   :  { %4512 = vmatmul.mubr.f32.gmra.mrb[102].mxu0 %v2843_v32  ;;  %v14234_v46 = vunpack.i.h.bf16 %v10427_v55  ;;  %v4964_v32 = vmul.f32 %v10224_v53, %v10224_v53  ;;  %v2857_v0 = vrot.slane %v10597_v29, 2  ;;  %v4969_v7 = vmul.f32 %v14270_v15, %v14270_v15 }
 0x1e2   :  { %v964_v8 = vsel %vm960_vm0, %v14232_v9, %v14231_v31  ;;  %v2910_v37 = vsel %vm1762_vm1, %v10609_v26, %v14233_v20  ;;  %v2852_v31 = vrot.slane %v10548_v38, 4  ;;  %v14110_v9 = vunpack.i.l.bf16 %v10532_v28  ;;  %7313 = vrot.lane.b32.xlu1 %v7862_v25, %s7755_s13 }
 0x1e3   :  { %v2858_v33 = vrot.slane %v964_v8, 2  ;;  %v10738_v18 = vsel %vm960_vm0, %v14234_v46, %v7020_v21  ;;  %v2912_v57 = vsel %vm1765_vm2, %v2910_v37, %v2853_v51  ;;  %v10748_v3 = vadd.f32 %v4964_v32, %v4856_v13 }
 0x1e4   :  { %v14236_v21 = vrot.slane %v10609_v26, 6  ;;  %v7030_v26 = vunpack.i.l.bf16 %v10544_v5  ;;  %7308 = vrot.lane.b32.xlu0 %v7988_v54, %s7756_s14  ;;  %v4965_v51 = vmul.f32 %v10253_v41, %v10253_v41  ;;  %v14238_v37 = vunpack.i.l.bf16 %v10427_v55 }
 0x1e5   :  { %v10713_v59 = vpop.f32.mrb[26].mxu0  ;;  %v2914_v47 = vsel %vm1768_vm3, %v2912_v57, %v2858_v33  ;;  %14235 = vst [vmem:[#allocation29_spill] sm:$0xff] %v10748_v3  ;;  %v7031_v57 = vunpack.i.h.bf16 %v10544_v5  ;;  %v14237_v33 = vunpack.i.h.bf16 %v10427_v55  ;;  %v2916_v32 = vsel %vm1762_vm1, %v10668_v35, %v2864_v4 }
 0x1e6   :  { %v10728_v1 = vpop.f32.mrb[27].mxu0  ;;  %v2909_v46 = vsel %vm1762_vm1, %v10613_v50, %v14236_v21  ;;  %4517 = vmatprep.mubr.f32.mxu0 %v2914_v47  ;;  %v4857_v47 = vmul.f32 %v10241_v40, %v10241_v40  ;;  %v10766_v50 = vpop.permute.xlu1 %7073  ;;  %v2869_v40 = vrot.slane %v10658_v11, 4  ;;  %v14239_v55 = vunpack.i.h.bf16 %v10477_v16  ;;  %7323 = vrot.lane.b32.xlu1 %v14194_v56, %s7756_s14 }
 0x1e7   :  { %v2911_v53 = vsel %vm1765_vm2, %v2909_v46, %v2852_v31  ;;  %v977_v5 = vsel %vm960_vm0, %v14238_v37, %v14237_v33  ;;  %v10783_v31 = vpop.permute.xlu0 %7068  ;;  %v10793_v41 = vsel %vm960_vm0, %v7030_v26, %v7031_v57  ;;  %v2873_v38 = vrot.slane %v10658_v11, 2 }
 0x1e8   :  { %v2913_v29 = vsel %vm1768_vm3, %v2911_v53, %v2857_v0  ;;  %v10789_v0 = vsel %vm960_vm0, %v7031_v57, %v14110_v9  ;;  %v10799_v21 = vsel %vm960_vm0, %v14239_v55, %v7030_v26  ;;  %v2874_v46 = vrot.slane %v977_v5, 2  ;;  %7318 = vrot.lane.b32.xlu0 %v7912_v44, %s7755_s13 }
 0x1e9   :  { %4518 = vmatmul.mubr.f32.gmra.mrb[104].mxu0 %v2913_v29  ;;  %v10803_v29 = vadd.f32 %v4965_v51, %v4857_v47  ;;  %v2918_v33 = vsel %vm1765_vm2, %v2916_v32, %v2869_v40  ;;  %v2868_v57 = vrot.slane %v10662_v6, 4  ;;  %v14241_v26 = vrot.slane %v10668_v35, 6 }
 0x1ea   :  { %v10757_v20 = vpop.f32.mrb[28].mxu0  ;;  %v2920_v37 = vsel %vm1768_vm3, %v2918_v33, %v2874_v46  ;;  %v14111_v4 = vunpack.i.h.bf16 %v10589_v43  ;;  %v7045_v47 = vunpack.i.l.bf16 %v10589_v43  ;;  %v7041_v11 = vunpack.i.h.bf16 %v10605_v19  ;;  %7333 = vrot.lane.b32.xlu1 %v10374_v39, %s7757_s15 }
 0x1eb   :  { %v10768_v13 = vpop.f32.mrb[29].mxu0  ;;  %14240 = vst [vmem:[#allocation30_spill] sm:$0xff] %v10803_v29  ;;  %4523 = vmatprep.mubr.f32.mxu0 %v2920_v37  ;;  %v2915_v55 = vsel %vm1762_vm1, %v964_v8, %v14241_v26  ;;  %v7040_v35 = vunpack.i.l.bf16 %v10605_v19  ;;  %v10826_v8 = vpop.permute.xlu1 %7083  ;;  %v4858_v32 = vmul.f32 %v10281_v48, %v10281_v48  ;;  %v4966_v46 = vmul.f32 %v10287_v30, %v10287_v30 }
 0x1ec   :  { %v2917_v6 = vsel %vm1765_vm2, %v2915_v55, %v2868_v57  ;;  %v14242_v33 = vunpack.i.h.bf16 %v10477_v16  ;;  %v14243_v37 = vunpack.i.l.bf16 %v10477_v16  ;;  %v10839_v26 = vpop.permute.xlu0 %7078  ;;  %v10845_v19 = vsel %vm1014_vm4, %v7041_v11, %v14111_v4  ;;  %7328 = vrot.lane.b32.xlu0 %v7862_v25, %s7756_s14 }
 0x1ed   :  { %v2919_v40 = vsel %vm1768_vm3, %v2917_v6, %v2873_v38  ;;  %v10849_v48 = vsel %vm1014_vm4, %v7040_v35, %v7041_v11  ;;  %v10853_v30 = vsel %vm1014_vm4, %v7045_v47, %v7040_v35  ;;  %v2885_v16 = vrot.slane %v10719_v61, 4 }
 0x1ee   :  { %v10808_v9 = vpop.f32.mrb[30].mxu0  ;;  %v973_v57 = vsel %vm960_vm0, %v14243_v37, %v14242_v33  ;;  %4524 = vmatmul.mubr.f32.gmra.mrb[106].mxu0 %v2919_v40  ;;  %v10858_v6 = vadd.f32 %v4966_v46, %v4858_v32  ;;  %v14245_v33 = vrot.slane %v10732_v63, 6  ;;  %v2884_v11 = vrot.slane %v10732_v63, 4  ;;  %7343 = vrot.lane.b32.xlu1 %v10456_v12, %s7757_s15 }
 0x1ef   :  { %v10816_v51 = vpop.f32.mrb[31].mxu0  ;;  %v2890_v40 = vrot.slane %v973_v57, 2  ;;  %v2889_v53 = vrot.slane %v10719_v61, 2  ;;  %v14247_v38 = vrot.slane %v10738_v18, 6  ;;  %v7056_v32 = vunpack.i.h.bf16 %v10650_v52 }
 0x1f0   :  { %14244 = vst [vmem:[#allocation31_spill] sm:$0xff] %v10858_v6  ;;  %v2922_v37 = vsel %vm1762_vm1, %v10738_v18, %v14245_v33  ;;  %v7055_v61 = vunpack.i.l.bf16 %v10650_v52  ;;  %v7051_v18 = vunpack.i.h.bf16 %v10670_v58  ;;  %v14249_v33 = vld [vmem:[#allocation20_spill] sm:$0xff]  ;;  %v14255_v29 = vrot.slane %v10793_v41, 6 }
 0x1f1   :  { %v2924_v35 = vsel %vm1765_vm2, %v2922_v37, %v2885_v16  ;;  %v2921_v55 = vsel %vm1762_vm1, %v977_v5, %v14247_v38  ;;  %v10883_v5 = vpop.permute.xlu1 %7093  ;;  %v7050_v38 = vunpack.i.l.bf16 %v10670_v58  ;;  %v4967_v37 = vmul.f32 %v14249_v33, %v14249_v33 }
 0x1f2   :  { %v2926_v6 = vsel %vm1768_vm3, %v2924_v35, %v2890_v40  ;;  %v2923_v63 = vsel %vm1765_vm2, %v2921_v55, %v2884_v11  ;;  %v4859_v40 = vmul.f32 %v10325_v60, %v10325_v60  ;;  %v10891_v35 = vpop.permute.xlu0 %7088  ;;  %v10895_v52 = vsel %vm1014_vm4, %v7055_v61, %v7056_v32 }
 0x1f3   :  { %v10865_v4 = vpop.f32.mrb[32].mxu0  ;;  %4529 = vmatprep.mubr.f32.mxu0 %v2926_v6  ;;  %v2925_v16 = vsel %vm1768_vm3, %v2923_v63, %v2889_v53  ;;  %v10899_v55 = vsel %vm1014_vm4, %v7051_v18, %v7045_v47  ;;  %v14250_v53 = vunpack.i.h.bf16 %v10532_v28  ;;  %v14251_v58 = vunpack.i.l.bf16 %v10532_v28 }
 0x1f4   :  { %14246 = vst [vmem:[#allocation32_spill] sm:$0xff] %v10865_v4  ;;  %v10873_v46 = vpop.f32.mrb[33].mxu0  ;;  %4530 = vmatmul.mubr.f32.gmra.mrb[108].mxu0 %v2925_v16  ;;  %v2901_v6 = vrot.slane %v10789_v0, 4  ;;  %v10913_v16 = vsel %vm1014_vm4, %v7050_v38, %v7055_v61  ;;  %v10915_v33 = vadd.f32 %v4967_v37, %v4859_v40  ;;  %v2900_v63 = vrot.slane %v10793_v41, 4 }
 0x1f5   :  { %14248 = vst [vmem:[#allocation33_spill] sm:$0xff] %v10873_v46  ;;  %v969_v60 = vsel %vm960_vm0, %v14251_v58, %v14250_v53  ;;  %v2928_v53 = vsel %vm1762_vm1, %v10799_v21, %v14255_v29  ;;  %v2905_v3 = vrot.slane %v10789_v0, 2  ;;  %v14256_v61 = vrot.slane %v10799_v21, 6 }
 0x1f6   :  { %14253 = vst [vmem:[#allocation34_spill] sm:$0xff] %v10915_v33  ;;  %v2906_v47 = vrot.slane %v969_v60, 2  ;;  %v2930_v58 = vsel %vm1765_vm2, %v2928_v53, %v2901_v6  ;;  %v14257_v60 = vld [vmem:[#allocation24_spill] sm:$0xff]  ;;  %v7066_v29 = vunpack.i.h.bf16 %v10711_v42  ;;  %v7065_v6 = vunpack.i.l.bf16 %v10711_v42  ;;  %v10938_v53 = vpop.permute.xlu1 %7103  ;;  %v10946_v28 = vpop.permute.xlu0 %7098 }
 0x1f7   :  { %v2927_v40 = vsel %vm1762_vm1, %v973_v57, %v14256_v61  ;;  %7338 = vrot.lane.b32.xlu0 %v14257_v60, %s7757_s15  ;;  %v7061_v41 = vunpack.i.h.bf16 %v10726_v62  ;;  %v7060_v21 = vunpack.i.l.bf16 %v10726_v62  ;;  %v14258_v57 = vld [vmem:[#allocation17_spill] sm:$0xff]  ;;  %v7096_v4 = vunpack.i.h.bf16 %v10883_v5 }
 0x1f8   :  { %v2932_v37 = vsel %vm1768_vm3, %v2930_v58, %v2906_v47  ;;  %v2929_v0 = vsel %vm1765_vm2, %v2927_v40, %v2900_v63  ;;  %v4860_v47 = vmul.f32 %v14258_v57, %v14258_v57  ;;  %v14259_v58 = vld [vmem:[#allocation18_spill] sm:$0xff]  ;;  %vm1626_vm15 = vcmp.lt.s32.totalorder %v8051_v34, 35 }
 0x1f9   :  { %4535 = vmatprep.mubr.f32.mxu0 %v2932_v37  ;;  %v4968_v61 = vmul.f32 %v14259_v58, %v14259_v58  ;;  %v2931_v42 = vsel %vm1768_vm3, %v2929_v0, %v2905_v3  ;;  %v10957_v63 = vsel %vm1014_vm4, %v7061_v41, %v7065_v6  ;;  %v1015_v57 = vsel %vm1014_vm4, %v7056_v32, %v7060_v21  ;;  %v14263_v3 = vld [vmem:[#allocation13_spill] sm:$0xff] }
 0x1fa   :  { %v10908_v11 = vpop.f32.mrb[34].mxu0  ;;  %4536 = vmatmul.mubr.f32.gmra.mrb[110].mxu0 %v2931_v42  ;;  %7353 = vrot.lane.b32.xlu1 %v14263_v3, %s7756_s14  ;;  %v14264_v0 = vunpack.i.h.bf16 %v10589_v43  ;;  %v14265_v42 = vrot.slane %v10849_v48, 6  ;;  %v7076_v32 = vunpack.i.h.bf16 %v10766_v50  ;;  %v1031_v15 = vsel %vm1014_vm4, %v7060_v21, %v7061_v41 }
 0x1fb   :  { %14252 = vst [vmem:[#allocation20_spill] sm:$0xff] %v10908_v11  ;;  %v10917_v18 = vpop.f32.mrb[35].mxu0  ;;  %v10965_v58 = vadd.f32 %v4968_v61, %v4860_v47  ;;  %v7075_v47 = vunpack.i.l.bf16 %v10766_v50  ;;  %v7071_v61 = vunpack.i.h.bf16 %v10783_v31  ;;  %7348 = vrot.lane.b32.xlu0 %v7912_v44, %s7756_s14  ;;  %vm1680_vm0 = vcmp.lt.s32.totalorder %v8051_v34, 32 }
 0x1fc   :  { %14254 = vst [vmem:[#allocation35_spill] sm:$0xff] %v10917_v18  ;;  %v10953_v18 = vsel %vm1014_vm4, %v7065_v6, %v7066_v29  ;;  %v1018_v6 = vsel %vm1014_vm4, %v14264_v0, %v7050_v38  ;;  %v2998_v37 = vsel %vm1762_vm1, %v10853_v30, %v14265_v42  ;;  %v7070_v38 = vunpack.i.l.bf16 %v10783_v31  ;;  %v14266_v0 = vld [vmem:[#allocation16_spill] sm:$0xff]  ;;  %v10988_v42 = vpop.permute.xlu1 %7113 }
 0x1fd   :  { %14262 = vst [vmem:[#allocation18_spill] sm:$0xff] %v10965_v58  ;;  %v2946_v40 = vrot.slane %v1018_v6, 2  ;;  %v4861_v58 = vmul.f32 %v14266_v0, %v14266_v0  ;;  %v10995_v46 = vsel %vm1014_vm4, %v7075_v47, %v7076_v32  ;;  %v2945_v31 = vrot.slane %v10845_v19, 2 }
 0x1fe   :  { %7363 = vrot.lane.b32.xlu1 %v10047_v27, %s7757_s15 }
 0x1ff   :  { %v10948_v33 = vpop.f32.mrb[36].mxu0  ;;  %7358 = vrot.lane.b32.xlu0 %v10524_v36, %s7757_s15 }
 0x200   :  { %14260 = vst [vmem:[#allocation24_spill] sm:$0xff] %v10948_v33  ;;  %v10959_v62 = vpop.f32.mrb[37].mxu0  ;;  %v2940_v33 = vrot.slane %v10849_v48, 4  ;;  %v7085_v48 = vunpack.i.l.bf16 %v10826_v8 }
 0x201   :  { %14261 = vst [vmem:[#allocation17_spill] sm:$0xff] %v10959_v62  ;;  %v2941_v62 = vrot.slane %v10845_v19, 4 }
 0x202   :  { %7373 = vrot.lane.b32.xlu1 %v10569_v49, %s7758_s16  ;;  %v14277_v49 = vrot.slane %v10953_v18, 6 }
 0x203   :  { %v3000_v43 = vsel %vm1765_vm2, %v2998_v37, %v2941_v62  ;;  %v10999_v62 = vsel %vm1014_vm4, %v7071_v61, %v7075_v47  ;;  %v11002_v37 = vpop.permute.xlu0 %7108  ;;  %7368 = vrot.lane.b32.xlu0 %v10573_v10, %s7758_s16 }
 0x204   :  { %v3002_v50 = vsel %vm1768_vm3, %v3000_v43, %v2946_v40  ;;  %v11010_v40 = vsel %vm1014_vm4, %v7066_v29, %v7070_v38  ;;  %v14269_v43 = vrot.slane %v10853_v30, 6  ;;  %v11023_v29 = vadd.f32 %v4969_v7, %v4861_v58 }
 0x205   :  { %v10990_v11 = vpop.f32.mrb[38].mxu0  ;;  %4541 = vmatprep.mubr.f32.mxu0 %v3002_v50  ;;  %v2957_v7 = vrot.slane %v1015_v57, 4  ;;  %v2962_v58 = vrot.slane %v1031_v15, 2  ;;  %v2961_v30 = vrot.slane %v1015_v57, 2  ;;  %v14116_v57 = vunpack.i.h.bf16 %v10891_v35 }
 0x206   :  { %14267 = vst [vmem:[#allocation13_spill] sm:$0xff] %v10990_v11  ;;  %v11004_v0 = vpop.f32.mrb[39].mxu0  ;;  %v2997_v47 = vsel %vm1762_vm1, %v10899_v55, %v14269_v43  ;;  %v7086_v11 = vunpack.i.h.bf16 %v10826_v8  ;;  %14271 = vst [vmem:[#allocation15_spill] sm:$0xff] %v11023_v29  ;;  %v14117_v55 = vunpack.i.l.bf16 %v10839_v26  ;;  %7383 = vrot.lane.b32.xlu1 %v10633_v2, %s7758_s16 }
 0x207   :  { %14268 = vst [vmem:[#allocation16_spill] sm:$0xff] %v11004_v0  ;;  %v2999_v19 = vsel %vm1765_vm2, %v2997_v47, %v2940_v33  ;;  %v11043_v47 = vpop.permute.xlu1 %7123  ;;  %v11055_v29 = vpop.permute.xlu0 %7118  ;;  %7378 = vrot.lane.b32.xlu0 %v7988_v54, %s7757_s15 }
 0x208   :  { %v3001_v50 = vsel %vm1768_vm3, %v2999_v19, %v2945_v31  ;;  %v11037_v8 = vsel %vm1071_vm5, %v7085_v48, %v7086_v11  ;;  %v14273_v31 = vrot.slane %v10895_v52, 6  ;;  %v11052_v21 = vsel %vm1014_vm4, %v7076_v32, %v14117_v55 }
 0x209   :  { %4542 = vmatmul.mubr.f32.gmra.mrb[112].mxu0 %v3001_v50  ;;  %v11031_v33 = vpop.f32.mrb[40].mxu0  ;;  %v2956_v50 = vrot.slane %v10895_v52, 4  ;;  %v2977_v32 = vrot.slane %v11010_v40, 2 }
 0x20a   :  { %14272 = vst [vmem:[#allocation36_spill] sm:$0xff] %v11031_v33  ;;  %v3004_v43 = vsel %vm1762_vm1, %v10913_v16, %v14273_v31  ;;  %v11045_v19 = vpop.f32.mrb[41].mxu0  ;;  %v14275_v31 = vrot.slane %v10913_v16, 6  ;;  %v7090_v16 = vunpack.i.l.bf16 %v10891_v35  ;;  %7393 = vrot.lane.b32.xlu1 %v10047_v27, %s7758_s16 }
 0x20b   :  { %14274 = vst [vmem:[#allocation37_spill] sm:$0xff] %v11045_v19  ;;  %v3006_v33 = vsel %vm1765_vm2, %v3004_v43, %v2957_v7  ;;  %v14278_v43 = vld [vmem:[#allocation23_spill] sm:$0xff]  ;;  %7388 = vrot.lane.b32.xlu0 %v14194_v56, %s7757_s15 }
 0x20c   :  { %v3003_v0 = vsel %vm1762_vm1, %v1018_v6, %v14275_v31  ;;  %v3008_v19 = vsel %vm1768_vm3, %v3006_v33, %v2962_v58  ;;  %v14276_v6 = vld [vmem:[#allocation22_spill] sm:$0xff]  ;;  %v3010_v58 = vsel %vm1762_vm1, %v10957_v63, %v14277_v49 }
 0x20d   :  { %v3005_v41 = vsel %vm1765_vm2, %v3003_v0, %v2956_v50  ;;  %4547 = vmatprep.mubr.f32.mxu0 %v3008_v19  ;;  %v4862_v33 = vmul.f32 %v14276_v6, %v14276_v6  ;;  %v11072_v7 = vpop.f32.mrb[42].mxu0  ;;  %v1027_v0 = vsel %vm1014_vm4, %v7070_v38, %v7071_v61  ;;  %v4970_v19 = vmul.f32 %v14278_v43, %v14278_v43 }
 0x20e   :  { %v3007_v52 = vsel %vm1768_vm3, %v3005_v41, %v2961_v30  ;;  %v2973_v30 = vrot.slane %v11010_v40, 4  ;;  %v11085_v41 = vpop.f32.mrb[43].mxu0  ;;  %v11091_v50 = vsel %vm1071_vm5, %v7086_v11, %v14116_v57  ;;  %v11095_v61 = vsel %vm1071_vm5, %v7090_v16, %v7085_v48  ;;  %v11108_v57 = vpop.permute.xlu0 %7128  ;;  %7403 = vrot.lane.b32.xlu1 %v7862_v25, %s7757_s15 }
 0x20f   :  { %4548 = vmatmul.mubr.f32.gmra.mrb[114].mxu0 %v3007_v52  ;;  %v11099_v38 = vsel %vm1071_vm5, %v7096_v4, %v7090_v16  ;;  %v2978_v31 = vrot.slane %v1027_v0, 2  ;;  %v11101_v52 = vpop.permute.xlu1 %7133  ;;  %v11105_v43 = vadd.f32 %v4970_v19, %v4862_v33  ;;  %v2972_v11 = vrot.slane %v10953_v18, 4  ;;  %7398 = vrot.lane.b32.xlu0 %v7988_v54, %s7758_s16 }
 0x210   :  { %v3012_v49 = vsel %vm1765_vm2, %v3010_v58, %v2973_v30  ;;  %v14280_v4 = vrot.slane %v10957_v63, 6  ;;  %v14118_v33 = vunpack.i.l.bf16 %v10938_v53  ;;  %v7101_v40 = vunpack.i.h.bf16 %v10946_v28  ;;  %v14281_v58 = vld [vmem:[#allocation25_spill] sm:$0xff] }
 0x211   :  { %14279 = vst [vmem:[#allocation22_spill] sm:$0xff] %v11105_v43  ;;  %v3014_v48 = vsel %vm1768_vm3, %v3012_v49, %v2978_v31  ;;  %v7100_v63 = vunpack.i.l.bf16 %v10946_v28  ;;  %v14282_v31 = vunpack.i.h.bf16 %v10839_v26  ;;  %v14284_v28 = vrot.slane %v10995_v46, 6 }
 0x212   :  { %v3009_v16 = vsel %vm1762_vm1, %v1031_v15, %v14280_v4  ;;  %4553 = vmatprep.mubr.f32.mxu0 %v3014_v48  ;;  %v11118_v30 = vpop.f32.mrb[44].mxu0  ;;  %v4863_v15 = vmul.f32 %v14281_v58, %v14281_v58  ;;  %v11148_v4 = vsel %vm1071_vm5, %v7101_v40, %v14118_v33  ;;  %v11167_v6 = vpop.permute.xlu0 %7138  ;;  %v2988_v43 = vrot.slane %v10995_v46, 4  ;;  %7413 = vrot.lane.b32.xlu1 %v14194_v56, %s7758_s16 }
 0x213   :  { %v3011_v55 = vsel %vm1765_vm2, %v3009_v16, %v2972_v11  ;;  %v11127_v19 = vpop.f32.mrb[45].mxu0  ;;  %v3016_v49 = vsel %vm1762_vm1, %v10999_v62, %v14284_v28  ;;  %v14285_v11 = vld [vmem:[#allocation26_spill] sm:$0xff]  ;;  %v14286_v16 = vunpack.i.l.bf16 %v10883_v5  ;;  %v14119_v28 = vunpack.i.l.bf16 %v10988_v42  ;;  %7408 = vrot.lane.b32.xlu0 %v7912_v44, %s7757_s15 }
 0x214   :  { %v3013_v18 = vsel %vm1768_vm3, %v3011_v55, %v2977_v32  ;;  %v14283_v55 = vunpack.i.l.bf16 %v10839_v26  ;;  %v2989_v32 = vrot.slane %v11052_v21, 4  ;;  %v4971_v48 = vmul.f32 %v14285_v11, %v14285_v11 }
 0x215   :  { %4554 = vmatmul.mubr.f32.gmra.mrb[116].mxu0 %v3013_v18  ;;  %v11152_v26 = vsel %vm1071_vm5, %v7100_v63, %v7101_v40  ;;  %v11158_v18 = vsel %vm1071_vm5, %v14286_v16, %v7100_v63  ;;  %v2993_v63 = vrot.slane %v11052_v21, 2  ;;  %v4864_v46 = vmul.f32 %v10563_v24, %v10563_v24 }
 0x216   :  { %v1023_v2 = vsel %vm1014_vm4, %v14283_v55, %v14282_v31  ;;  %v11160_v31 = vpop.permute.xlu1 %7143  ;;  %v3018_v11 = vsel %vm1765_vm2, %v3016_v49, %v2989_v32  ;;  %v11165_v33 = vadd.f32 %v4971_v48, %v4863_v15  ;;  %v7111_v49 = vunpack.i.h.bf16 %v11002_v37  ;;  %7423 = vrot.lane.b32.xlu1 %v10374_v39, %s7759_s17 }
 0x217   :  { %v2994_v58 = vrot.slane %v1023_v2, 2  ;;  %v14288_v2 = vrot.slane %v10999_v62, 6  ;;  %v7110_v48 = vunpack.i.l.bf16 %v11002_v37  ;;  %v14291_v24 = vrot.slane %v11037_v8, 6  ;;  %7418 = vrot.lane.b32.xlu0 %v7862_v25, %s7758_s16 }
 0x218   :  { %14287 = vst [vmem:[#allocation23_spill] sm:$0xff] %v11165_v33  ;;  %v11177_v32 = vpop.f32.mrb[46].mxu0  ;;  %v7146_v39 = vunpack.i.h.bf16 %v11160_v31 }
 0x219   :  { %v3020_v40 = vsel %vm1768_vm3, %v3018_v11, %v2994_v58  ;;  %v3015_v16 = vsel %vm1762_vm1, %v1027_v0, %v14288_v2  ;;  %v11184_v21 = vpop.f32.mrb[47].mxu0  ;;  %v14289_v0 = vunpack.i.l.bf16 %v10883_v5  ;;  %v3029_v58 = vrot.slane %v11091_v50, 4 }
 0x21a   :  { %4559 = vmatprep.mubr.f32.mxu0 %v3020_v40  ;;  %v3017_v15 = vsel %vm1765_vm2, %v3015_v16, %v2988_v43  ;;  %v14290_v43 = vunpack.i.h.bf16 %v10891_v35  ;;  %v3086_v11 = vsel %vm1762_vm1, %v11095_v61, %v14291_v24  ;;  %v14292_v40 = vunpack.i.h.bf16 %v10938_v53  ;;  %v11218_v16 = vpop.permute.xlu1 %7153  ;;  %v11225_v24 = vpop.permute.xlu0 %7148  ;;  %7433 = vrot.lane.b32.xlu1 %v10456_v12, %s7759_s17 }
 0x21b   :  { %v3019_v62 = vsel %vm1768_vm3, %v3017_v15, %v2993_v63  ;;  %v11212_v5 = vsel %vm1071_vm5, %v7110_v48, %v14119_v28  ;;  %v11216_v35 = vsel %vm1071_vm5, %v7111_v49, %v7110_v48  ;;  %v3028_v28 = vrot.slane %v11037_v8, 4  ;;  %7428 = vrot.lane.b32.xlu0 %v14257_v60, %s7759_s17 }
 0x21c   :  { %v1077_v37 = vsel %vm1071_vm5, %v14290_v43, %v14289_v0  ;;  %4560 = vmatmul.mubr.f32.gmra.mrb[118].mxu0 %v3019_v62  ;;  %v11206_v63 = vsel %vm1071_vm5, %v14292_v40, %v7111_v49  ;;  %v3056_v62 = vrot.slane %v11216_v35, 6  ;;  %v3088_v0 = vsel %vm1765_vm2, %v3086_v11, %v3029_v58 }
 0x21d   :  { %v3034_v2 = vrot.slane %v1077_v37, 2  ;;  %v4972_v43 = vmul.f32 %v10575_v14, %v10575_v14  ;;  %v3033_v49 = vrot.slane %v11091_v50, 2  ;;  %v14293_v48 = vrot.slane %v11095_v61, 6 }
 0x21e   :  { %v11234_v55 = vpop.f32.mrb[48].mxu0  ;;  %v14120_v8 = vunpack.i.l.bf16 %v11043_v47  ;;  %v7121_v50 = vunpack.i.h.bf16 %v11055_v29  ;;  %v7120_v61 = vunpack.i.l.bf16 %v11055_v29  ;;  %v11283_v14 = vpop.permute.xlu0 %7158  ;;  %v3065_v33 = vrot.slane %v11212_v5, 2  ;;  %7443 = vrot.lane.b32.xlu1 %v14263_v3, %s7758_s16 }
 0x21f   :  { %v3090_v40 = vsel %vm1768_vm3, %v3088_v0, %v3034_v2  ;;  %v3085_v15 = vsel %vm1762_vm1, %v11099_v38, %v14293_v48  ;;  %v11236_v58 = vadd.f32 %v4972_v43, %v4864_v46  ;;  %v11239_v11 = vpop.f32.mrb[49].mxu0  ;;  %v4865_v38 = vmul.f32 %v10617_v17, %v10617_v17  ;;  %v11277_v48 = vpop.permute.xlu1 %7163  ;;  %7438 = vrot.lane.b32.xlu0 %v7912_v44, %s7758_s16 }
 0x220   :  { %4565 = vmatprep.mubr.f32.mxu0 %v3090_v40  ;;  %v3087_v2 = vsel %vm1765_vm2, %v3085_v15, %v3028_v28  ;;  %v4973_v28 = vmul.f32 %v10626_v23, %v10626_v23  ;;  %v3045_v46 = vrot.slane %v11148_v4, 4  ;;  %v11259_v29 = vsel %vm1071_vm5, %v7121_v50, %v14120_v8 }
 0x221   :  { %14294 = vst [vmem:[#allocation25_spill] sm:$0xff] %v11236_v58  ;;  %v3089_v0 = vsel %vm1768_vm3, %v3087_v2, %v3033_v49  ;;  %v11263_v15 = vsel %vm1071_vm5, %v7120_v61, %v7121_v50  ;;  %v14295_v43 = vunpack.i.h.bf16 %v10988_v42  ;;  %v14296_v23 = vunpack.i.h.bf16 %v10938_v53 }
 0x222   :  { %4566 = vmatmul.mubr.f32.gmra.mrb[120].mxu0 %v3089_v0  ;;  %v14297_v40 = vunpack.i.l.bf16 %v10938_v53  ;;  %v11281_v0 = vadd.f32 %v4973_v28, %v4865_v38  ;;  %v3044_v53 = vrot.slane %v11152_v26, 4  ;;  %v11290_v58 = vpop.f32.mrb[50].mxu0  ;;  %v14300_v2 = vrot.slane %v11158_v18, 6  ;;  %7453 = vrot.lane.b32.xlu1 %v10047_v27, %s7759_s17 }
 0x223   :  { %v11269_v17 = vsel %vm1071_vm5, %v14295_v43, %v7120_v61  ;;  %v14299_v61 = vrot.slane %v11152_v26, 6  ;;  %v7136_v28 = vunpack.i.h.bf16 %v11101_v52  ;;  %v11298_v50 = vpop.f32.mrb[51].mxu0  ;;  %7448 = vrot.lane.b32.xlu0 %v10524_v36, %s7759_s17 }
 0x224   :  { %v1073_v49 = vsel %vm1071_vm5, %v14297_v40, %v14296_v23  ;;  %14298 = vst [vmem:[#allocation26_spill] sm:$0xff] %v11281_v0  ;;  %v3049_v40 = vrot.slane %v11148_v4, 2  ;;  %v3091_v38 = vsel %vm1762_vm1, %v1077_v37, %v14300_v2  ;;  %v7135_v4 = vunpack.i.l.bf16 %v11101_v52 }
 0x225   :  { %v3050_v8 = vrot.slane %v1073_v49, 2  ;;  %v3092_v43 = vsel %vm1762_vm1, %v11158_v18, %v14299_v61  ;;  %v3093_v26 = vsel %vm1765_vm2, %v3091_v38, %v3044_v53  ;;  %v7131_v37 = vunpack.i.h.bf16 %v11108_v57  ;;  %v11322_v53 = vpop.permute.xlu1 %7173 }
 0x226   :  { %v3094_v23 = vsel %vm1765_vm2, %v3092_v43, %v3045_v46  ;;  %v3095_v18 = vsel %vm1768_vm3, %v3093_v26, %v3049_v40  ;;  %v7130_v46 = vunpack.i.l.bf16 %v11108_v57  ;;  %v14301_v2 = vunpack.i.h.bf16 %v10988_v42  ;;  %v11336_v40 = vpop.permute.xlu0 %7168  ;;  %v11338_v38 = vpop.f32.mrb[52].mxu0 }
 0x227   :  { %v3096_v0 = vsel %vm1768_vm3, %v3094_v23, %v3050_v8  ;;  %v4866_v8 = vmul.f32 %v10680_v45, %v10680_v45  ;;  %v14302_v61 = vunpack.i.l.bf16 %v10988_v42  ;;  %v3061_v43 = vrot.slane %v11212_v5, 4  ;;  %7458 = vrot.lane.b32.xlu0 %v10573_v10, %s7753_s11 }
 0x228   :  { %4571 = vmatprep.mubr.f32.mxu0 %v3096_v0  ;;  %v3098_v0 = vsel %vm1762_vm1, %v11206_v63, %v3056_v62  ;;  %v11326_v57 = vsel %vm1125_vm6, %v7131_v37, %v7136_v28  ;;  %v11330_v45 = vsel %vm1125_vm6, %v7130_v46, %v7131_v37  ;;  %v11334_v42 = vsel %vm1125_vm6, %v7135_v4, %v7130_v46  ;;  %v11345_v37 = vpop.f32.mrb[53].mxu0 }
 0x229   :  { %4572 = vmatmul.mubr.f32.gmra.mrb[122].mxu0 %v3095_v18  ;;  %v1086_v52 = vsel %vm1071_vm5, %v14302_v61, %v14301_v2  ;;  %v3100_v18 = vsel %vm1765_vm2, %v3098_v0, %v3061_v43  ;;  %v4974_v2 = vmul.f32 %v10688_v22, %v10688_v22  ;;  %v3060_v61 = vrot.slane %v11216_v35, 4 }
 0x22a   :  { %v3066_v23 = vrot.slane %v1086_v52, 2  ;;  %v14303_v43 = vrot.slane %v11206_v63, 6  ;;  %v7145_v62 = vunpack.i.l.bf16 %v11160_v31  ;;  %v7140_v5 = vunpack.i.l.bf16 %v11167_v6 }
 0x22b   :  { %v4867_v35 = vmul.f32 %v10713_v59, %v10713_v59  ;;  %v7156_v59 = vunpack.i.h.bf16 %v11218_v16  ;;  %7468 = vrot.lane.b32.xlu0 %v7988_v54, %s7759_s17 }
 0x22c   :  { %v3102_v46 = vsel %vm1768_vm3, %v3100_v18, %v3066_v23  ;;  %v3097_v0 = vsel %vm1762_vm1, %v1073_v49, %v14303_v43  ;;  %v7141_v23 = vunpack.i.h.bf16 %v11167_v6  ;;  %v11360_v18 = vadd.f32 %v4974_v2, %v4866_v8  ;;  %v11379_v6 = vpop.permute.xlu1 %7183  ;;  %v11391_v43 = vpop.permute.xlu0 %7178 }
 0x22d   :  { %4577 = vmatprep.mubr.f32.mxu0 %v3102_v46  ;;  %v3099_v22 = vsel %vm1765_vm2, %v3097_v0, %v3060_v61  ;;  %v11369_v63 = vsel %vm1125_vm6, %v7145_v62, %v7146_v39  ;;  %v14305_v49 = vunpack.i.h.bf16 %v11043_v47  ;;  %v14306_v8 = vunpack.i.l.bf16 %v11043_v47  ;;  %14307 = vst [vmem:[#allocation39_spill] sm:$0xff] %v11379_v6  ;;  %v11393_v47 = vpop.f32.mrb[54].mxu0 }
 0x22e   :  { %14304 = vst [vmem:[#allocation38_spill] sm:$0xff] %v11360_v18  ;;  %v3101_v46 = vsel %vm1768_vm3, %v3099_v22, %v3065_v33  ;;  %v1135_v31 = vsel %vm1125_vm6, %v7141_v23, %v7135_v4  ;;  %v11385_v61 = vsel %vm1125_vm6, %v7140_v5, %v7145_v62  ;;  %v11389_v4 = vsel %vm1125_vm6, %v7136_v28, %v7140_v5  ;;  %v11401_v62 = vpop.f32.mrb[55].mxu0 }
 0x22f   :  { %v1082_v2 = vsel %vm1071_vm5, %v14306_v8, %v14305_v49  ;;  %4578 = vmatmul.mubr.f32.gmra.mrb[124].mxu0 %v3101_v46  ;;  %v3077_v23 = vrot.slane %v11259_v29, 4  ;;  %v14308_v46 = vrot.slane %v11263_v15, 6  ;;  %v4975_v28 = vmul.f32 %v10728_v1, %v10728_v1  ;;  %7478 = vrot.lane.b32.xlu0 %v7862_v25, %s7759_s17 }
 0x230   :  { %v3082_v22 = vrot.slane %v1082_v2, 2  ;;  %v3076_v5 = vrot.slane %v11263_v15, 4  ;;  %v3081_v33 = vrot.slane %v11259_v29, 2  ;;  %v14309_v0 = vrot.slane %v11269_v17, 6  ;;  %v11426_v12 = vpop.permute.xlu1 %7193 }
 0x231   :  { %v3104_v49 = vsel %vm1762_vm1, %v11269_v17, %v14308_v46  ;;  %v11417_v1 = vadd.f32 %v4975_v28, %v4867_v35  ;;  %v7155_v29 = vunpack.i.l.bf16 %v11218_v16  ;;  %v4976_v16 = vmul.f32 %v10768_v13, %v10768_v13 }
 0x232   :  { %v3106_v8 = vsel %vm1765_vm2, %v3104_v49, %v3077_v23  ;;  %v3103_v2 = vsel %vm1762_vm1, %v1086_v52, %v14309_v0  ;;  %v7151_v52 = vunpack.i.h.bf16 %v11225_v24  ;;  %v7150_v0 = vunpack.i.l.bf16 %v11225_v24 }
 0x233   :  { %v3108_v26 = vsel %vm1768_vm3, %v3106_v8, %v3082_v22  ;;  %14310 = vst [vmem:[#allocation40_spill] sm:$0xff] %v11417_v1  ;;  %v3105_v15 = vsel %vm1765_vm2, %v3103_v2, %v3076_v5  ;;  %v4868_v23 = vmul.f32 %v10757_v20, %v10757_v20  ;;  %v11428_v22 = vpop.f32.mrb[56].mxu0  ;;  %v11432_v60 = vsel %vm1125_vm6, %v7156_v59, %v7155_v29 }
 0x234   :  { %4583 = vmatprep.mubr.f32.mxu0 %v3108_v26  ;;  %v3107_v17 = vsel %vm1768_vm3, %v3105_v15, %v3081_v33  ;;  %v11436_v26 = vpop.permute.xlu0 %7188  ;;  %v11438_v35 = vpop.f32.mrb[57].mxu0  ;;  %v11444_v33 = vsel %vm1125_vm6, %v7151_v52, %v7156_v59  ;;  %v11448_v46 = vsel %vm1125_vm6, %v7150_v0, %v7151_v52  ;;  %v11453_v13 = vsel %vm1125_vm6, %v7146_v39, %v7150_v0 }
 0x235   :  { %4584 = vmatmul.mubr.f32.gmra.mrb[126].mxu0 %v3107_v17  ;;  %v11459_v28 = vadd.f32 %v4976_v16, %v4868_v23  ;;  %v3117_v59 = vrot.slane %v11326_v57, 4  ;;  %v3133_v5 = vrot.slane %v11453_v13, 4  ;;  %v3122_v8 = vrot.slane %v11389_v4, 2  ;;  %v11479_v24 = vpop.permute.xlu1 %7203 }
 0x236   :  { %v14312_v2 = vrot.slane %v11330_v45, 6  ;;  %v7166_v15 = vunpack.i.h.bf16 %v11277_v48  ;;  %v7165_v17 = vunpack.i.l.bf16 %v11277_v48  ;;  %v7161_v52 = vunpack.i.h.bf16 %v11283_v14 }
 0x237   :  { %14311 = vst [vmem:[#allocation41_spill] sm:$0xff] %v11459_v28  ;;  %v7160_v0 = vunpack.i.l.bf16 %v11283_v14  ;;  %v3116_v16 = vrot.slane %v11330_v45, 4  ;;  %v3121_v20 = vrot.slane %v11326_v57, 2  ;;  %v14313_v49 = vrot.slane %v11334_v42, 6  ;;  %v11481_v28 = vpop.f32.mrb[58].mxu0 }
 0x238   :  { %v3174_v39 = vsel %vm1762_vm1, %v11334_v42, %v14312_v2  ;;  %14314 = vst [vmem:[#allocation42_spill] sm:$0xff] %v11481_v28  ;;  %v11485_v48 = vsel %vm1125_vm6, %v7165_v17, %v7166_v15  ;;  %v11489_v14 = vsel %vm1125_vm6, %v7161_v52, %v7165_v17  ;;  %v11499_v42 = vpop.permute.xlu0 %7198  ;;  %v4869_v17 = vmul.f32 %v10808_v9, %v10808_v9 }
 0x239   :  { %v3176_v3 = vsel %vm1765_vm2, %v3174_v39, %v3117_v59  ;;  %v3173_v2 = vsel %vm1762_vm1, %v1135_v31, %v14313_v49  ;;  %v11493_v57 = vsel %vm1125_vm6, %v7160_v0, %v7161_v52  ;;  %v11497_v45 = vsel %vm1125_vm6, %v7155_v29, %v7160_v0  ;;  %v11501_v31 = vpop.f32.mrb[59].mxu0  ;;  %v14319_v59 = vld [vmem:[#allocation32_spill] sm:$0xff] }
 0x23a   :  { %v3178_v23 = vsel %vm1768_vm3, %v3176_v3, %v3122_v8  ;;  %14315 = vst [vmem:[#allocation43_spill] sm:$0xff] %v11501_v31  ;;  %v3149_v39 = vrot.slane %v11497_v45, 4  ;;  %v3175_v3 = vsel %vm1765_vm2, %v3173_v2, %v3116_v16  ;;  %v4977_v52 = vmul.f32 %v10816_v51, %v10816_v51 }
 0x23b   :  { %4589 = vmatprep.mubr.f32.mxu0 %v3178_v23  ;;  %v3177_v29 = vsel %vm1768_vm3, %v3175_v3, %v3121_v20  ;;  %v7176_v0 = vunpack.i.h.bf16 %v11322_v53  ;;  %v7175_v23 = vunpack.i.l.bf16 %v11322_v53  ;;  %v7171_v16 = vunpack.i.h.bf16 %v11336_v40  ;;  %v11521_v20 = vpop.f32.mrb[60].mxu0 }
 0x23c   :  { %4590 = vmatmul.mubr.f32.gmra.mrb[128].mxu0 %v3177_v29  ;;  %v7170_v2 = vunpack.i.l.bf16 %v11336_v40  ;;  %v3138_v9 = vrot.slane %v11448_v46, 2  ;;  %14316 = vst [vmem:[#allocation44_spill] sm:$0xff] %v11521_v20  ;;  %v11525_v51 = vadd.f32 %v4977_v52, %v4869_v17  ;;  %v14318_v3 = vrot.slane %v11369_v63, 6  ;;  %v11534_v40 = vpop.permute.xlu1 %7213  ;;  %v11536_v49 = vpop.f32.mrb[61].mxu0 }
 0x23d   :  { %v4870_v53 = vmul.f32 %v14319_v59, %v14319_v59  ;;  %v3137_v8 = vrot.slane %v11453_v13, 2  ;;  %14320 = vst [vmem:[#allocation32_spill] sm:$0xff] %v11536_v49  ;;  %v11540_v1 = vsel %vm1342_vm7, %v7175_v23, %v7176_v0  ;;  %v14325_v13 = vrot.slane %v11369_v63, 4 }
 0x23e   :  { %14317 = vst [vmem:[#allocation45_spill] sm:$0xff] %v11525_v51  ;;  %v3180_v29 = vsel %vm1762_vm1, %v11385_v61, %v14318_v3  ;;  %v11544_v17 = vsel %vm1125_vm6, %v7170_v2, %v7171_v16  ;;  %v11548_v52 = vsel %vm1125_vm6, %v7166_v15, %v7170_v2  ;;  %v11551_v3 = vpop.permute.xlu0 %7208  ;;  %v14321_v16 = vrot.slane %v11385_v61, 6  ;;  %v14322_v15 = vld [vmem:[#allocation21_spill] sm:$0xff]  ;;  %v14323_v2 = vld [vmem:[#allocation19_spill] sm:$0xff] }
 0x23f   :  { %v3182_v59 = vsel %vm1765_vm2, %v3180_v29, %v3133_v5  ;;  %v3165_v18 = vrot.slane %v11548_v52, 4  ;;  %v7462_v31 = vpack.i.bf16 %v14323_v2, %v14322_v15  ;;  %v14324_v5 = vld [vmem:[#allocation33_spill] sm:$0xff]  ;;  %v14122_v28 = vunpack.i.h.bf16 %v11379_v6 }
 0x240   :  { %v3184_v49 = vsel %vm1768_vm3, %v3182_v59, %v3138_v9  ;;  %v3179_v20 = vsel %vm1762_vm1, %v11389_v4, %v14321_v16  ;;  %v4978_v29 = vmul.f32 %v14324_v5, %v14324_v5  ;;  %v7180_v59 = vunpack.i.l.bf16 %v11391_v43  ;;  %v11594_v5 = vpop.permute.xlu1 %7223 }
 0x241   :  { %4595 = vmatprep.mubr.f32.mxu0 %v3184_v49  ;;  %v3181_v51 = vsel %vm1765_vm2, %v3179_v20, %v14325_v13  ;;  %v14121_v49 = vunpack.i.h.bf16 %v11391_v43  ;;  %7463 = vrot.lane.b32.xlu1 %v7462_v31, %s7753_s11  ;;  %v3154_v63 = vrot.slane %v11493_v57, 2  ;;  %v11579_v20 = vpop.f32.mrb[62].mxu0  ;;  %v14328_v31 = vrot.slane %v11432_v60, 6 }
 0x242   :  { %v3183_v61 = vsel %vm1768_vm3, %v3181_v51, %v3137_v8  ;;  %v11575_v4 = vadd.f32 %v4978_v29, %v4870_v53  ;;  %14327 = vst [vmem:[#allocation19_spill] sm:$0xff] %v11579_v20  ;;  %v14329_v51 = vld [vmem:[#allocation20_spill] sm:$0xff]  ;;  %v3153_v16 = vrot.slane %v11497_v45, 2  ;;  %v11596_v29 = vpop.f32.mrb[63].mxu0 }
 0x243   :  { %4596 = vmatmul.mubr.f32.gmra.mrb[130].mxu0 %v3183_v61  ;;  %v11585_v13 = vsel %vm1342_vm7, %v7176_v0, %v14121_v49  ;;  %v3186_v8 = vsel %vm1762_vm1, %v11444_v33, %v14328_v31  ;;  %v4871_v53 = vmul.f32 %v14329_v51, %v14329_v51  ;;  %14330 = vst [vmem:[#allocation33_spill] sm:$0xff] %v11596_v29  ;;  %v14332_v51 = vrot.slane %v11444_v33, 6  ;;  %v11613_v49 = vpop.permute.xlu0 %7218 }
 0x244   :  { %14326 = vst [vmem:[#allocation21_spill] sm:$0xff] %v11575_v4  ;;  %v11600_v61 = vsel %vm1342_vm7, %v7180_v59, %v7175_v23  ;;  %v11606_v0 = vsel %vm1342_vm7, %v14122_v28, %v7180_v59  ;;  %v3188_v31 = vsel %vm1765_vm2, %v3186_v8, %v3149_v39  ;;  %v14333_v4 = vrot.slane %v11432_v60, 4  ;;  %v14334_v28 = vld [vmem:[#allocation35_spill] sm:$0xff] }
 0x245   :  { %14331 = vst [vmem:[#allocation20_spill] sm:$0xff] %v11606_v0  ;;  %v3185_v45 = vsel %vm1762_vm1, %v11448_v46, %v14332_v51  ;;  %v3190_v23 = vsel %vm1768_vm3, %v3188_v31, %v3154_v63  ;;  %v4979_v39 = vmul.f32 %v14334_v28, %v14334_v28  ;;  %v7196_v33 = vunpack.i.h.bf16 %v11426_v12  ;;  %7473 = vrot.lane.b32.xlu1 %v14194_v56, %s7759_s17  ;;  %v11641_v31 = vpop.f32.mrb[64].mxu0 }
 0x246   :  { %v3187_v29 = vsel %vm1765_vm2, %v3185_v45, %v14333_v4  ;;  %4601 = vmatprep.mubr.f32.mxu0 %v3190_v23  ;;  %v7195_v46 = vunpack.i.l.bf16 %v11426_v12  ;;  %v7191_v60 = vunpack.i.h.bf16 %v11436_v26  ;;  %v7190_v4 = vunpack.i.l.bf16 %v11436_v26  ;;  %v11656_v45 = vpop.permute.xlu1 %7233  ;;  %v11658_v23 = vpop.f32.mrb[65].mxu0 }
 0x247   :  { %v3189_v59 = vsel %vm1768_vm3, %v3187_v29, %v3153_v16  ;;  %v11632_v63 = vadd.f32 %v4979_v39, %v4871_v53  ;;  %v3170_v28 = vrot.slane %v11544_v17, 2  ;;  %v14336_v8 = vrot.slane %v11485_v48, 6  ;;  %v14337_v29 = vld [vmem:[#allocation24_spill] sm:$0xff]  ;;  %14339 = vst [vmem:[#allocation46_spill] sm:$0xff] %v11658_v23 }
 0x248   :  { %4602 = vmatmul.mubr.f32.gmra.mrb[132].mxu0 %v3189_v59  ;;  %v4872_v12 = vmul.f32 %v14337_v29, %v14337_v29  ;;  %14338 = vst [vmem:[#allocation24_spill] sm:$0xff] %v11641_v31  ;;  %v11645_v26 = vsel %vm1179_vm8, %v7191_v60, %v7196_v33  ;;  %v11649_v53 = vsel %vm1179_vm8, %v7190_v4, %v7191_v60  ;;  %v11664_v60 = vpop.permute.xlu0 %7228  ;;  %v14341_v59 = vrot.slane %v11485_v48, 4 }
 0x249   :  { %14335 = vst [vmem:[#allocation35_spill] sm:$0xff] %v11632_v63  ;;  %v3192_v16 = vsel %vm1762_vm1, %v11489_v14, %v14336_v8  ;;  %v11653_v17 = vsel %vm1179_vm8, %v7195_v46, %v7190_v4  ;;  %v3169_v4 = vrot.slane %v11548_v52, 2  ;;  %v14342_v63 = vld [vmem:[#allocation17_spill] sm:$0xff]  ;;  %v7206_v29 = vunpack.i.h.bf16 %v11479_v24  ;;  %7483 = vrot.lane.b32.xlu1 %v7912_v44, %s7759_s17 }
 0x24a   :  { %v3194_v51 = vsel %vm1765_vm2, %v3192_v16, %v3165_v18  ;;  %v14340_v18 = vrot.slane %v11489_v14, 6  ;;  %v4980_v8 = vmul.f32 %v14342_v63, %v14342_v63  ;;  %v7205_v14 = vunpack.i.l.bf16 %v11479_v24 }
 0x24b   :  { %v3196_v9 = vsel %vm1768_vm3, %v3194_v51, %v3170_v28  ;;  %v7201_v52 = vunpack.i.h.bf16 %v11499_v42  ;;  %v14344_v63 = vunpack.i.l.bf16 %v11379_v6  ;;  %v14345_v44 = vunpack.i.h.bf16 %v11391_v43  ;;  %v11701_v28 = vpop.f32.mrb[66].mxu0  ;;  %v7633_v6 = vld.sshfl [vmem:[#allocation2 + $0x20] sm:$0xff pattern:$0x76325410] }
 0x24c   :  { %v3191_v16 = vsel %vm1762_vm1, %v11493_v57, %v14340_v18  ;;  %4607 = vmatprep.mubr.f32.mxu0 %v3196_v9  ;;  %v7200_v57 = vunpack.i.l.bf16 %v11499_v42  ;;  %v11686_v48 = vadd.f32 %v4980_v8, %v4872_v12  ;;  %v11690_v9 = vsel %vm1179_vm8, %v7206_v29, %v7195_v46  ;;  %14346 = vst [vmem:[#allocation47_spill] sm:$0xff] %v11701_v28  ;;  %v14354_v28 = vld [vmem:[#allocation12_spill] sm:$0xff] }
 0x24d   :  { %v3193_v39 = vsel %vm1765_vm2, %v3191_v16, %v14341_v59  ;;  %v11698_v24 = vsel %vm1342_vm7, %v14345_v44, %v14344_v63  ;;  %v3485_v42 = vrot.slane %v11585_v13, 4  ;;  %v11705_v12 = vsel %vm1179_vm8, %v7196_v33, %v7205_v14  ;;  %v11718_v59 = vpop.permute.xlu1 %7243  ;;  %v11729_v16 = vpop.permute.xlu0 %7238 }
 0x24e   :  { %v3195_v23 = vsel %vm1768_vm3, %v3193_v39, %v3169_v4  ;;  %14343 = vst [vmem:[#allocation17_spill] sm:$0xff] %v11686_v48  ;;  %v11709_v46 = vsel %vm1342_vm7, %v7200_v57, %v7201_v52  ;;  %v14347_v51 = vmov %v14344_v63  ;;  %v11720_v39 = vpop.f32.mrb[67].mxu0  ;;  %v14349_v4 = vrot.slane %v11540_v1, 6  ;;  %v14350_v63 = vld [vmem:[#allocation13_spill] sm:$0xff] }
 0x24f   :  { %4608 = vmatmul.mubr.f32.gmra.mrb[134].mxu0 %v3195_v23  ;;  %v11715_v43 = vsel %vm1342_vm7, %v14347_v51, %v7200_v57  ;;  %v3490_v23 = vrot.slane %v11698_v24, 2  ;;  %14348 = vst [vmem:[#allocation48_spill] sm:$0xff] %v11720_v39  ;;  %v4873_v44 = vmul.f32 %v14350_v63, %v14350_v63  ;;  %v3489_v51 = vrot.slane %v11585_v13, 2  ;;  %v14353_v39 = vld [vmem:[#allocation14_spill] sm:$0xff]  ;;  %v14355_v13 = vld [vmem:[#allocation16_spill] sm:$0xff] }
 0x250   :  { %v3532_v18 = vsel %vm1762_vm1, %v11600_v61, %v14349_v4  ;;  %v14351_v8 = vrot.slane %v11600_v61, 6  ;;  %v14352_v48 = vrot.slane %v11540_v1, 4  ;;  %v4981_v61 = vmul.f32 %v14355_v13, %v14355_v13 }
 0x251   :  { %v3534_v57 = vsel %vm1765_vm2, %v3532_v18, %v3485_v42  ;;  %v11745_v42 = vpack.i.bf16 %v14354_v28, %v14353_v39  ;;  %v7216_v63 = vunpack.i.h.bf16 %v11534_v40  ;;  %v1533_v1 = vcombine.high %v7633_v6, %v7633_v6  ;;  %v14357_v39 = vld [vmem:[#allocation36_spill] sm:$0xff] }
 0x252   :  { %v3531_v33 = vsel %vm1762_vm1, %v11606_v0, %v14351_v8  ;;  %v3536_v29 = vsel %vm1768_vm3, %v3534_v57, %v3490_v23  ;;  %v7215_v8 = vunpack.i.l.bf16 %v11534_v40  ;;  %v11752_v23 = vpop.f32.mrb[68].mxu0  ;;  %v7210_v28 = vunpack.i.l.bf16 %v11551_v3 }
 0x253   :  { %v3533_v4 = vsel %vm1765_vm2, %v3531_v33, %v14352_v48  ;;  %4691 = vmatprep.mubr.f32.mxu1 %v3536_v29  ;;  %14356 = vst [vmem:[#allocation13_spill] sm:$0xff] %v11752_v23  ;;  %7488 = vrot.lane.b32.xlu0 %v11745_v42, %s7760_s18  ;;  %v7211_v48 = vunpack.i.h.bf16 %v11551_v3  ;;  %v4874_v33 = vmul.f32 %v14357_v39, %v14357_v39  ;;  %v11760_v29 = vpop.f32.mrb[69].mxu0  ;;  %v3210_v3 = vrot.slane %v11705_v12, 2 }
 0x254   :  { %v3535_v18 = vsel %vm1768_vm3, %v3533_v4, %v3489_v51  ;;  %14358 = vst [vmem:[#allocation14_spill] sm:$0xff] %v11760_v29  ;;  %v11762_v57 = vadd.f32 %v4981_v61, %v4873_v44  ;;  %v11766_v40 = vsel %vm1179_vm8, %v7215_v8, %v7216_v63  ;;  %v11770_v51 = vsel %vm1179_vm8, %v7205_v14, %v7215_v8  ;;  %v11772_v4 = vpop.permute.xlu1 %7253  ;;  %v11780_v61 = vpop.permute.xlu0 %7248 }
 0x255   :  { %4692 = vmatmul.mubr.f32.vlgmr.msra.gmra.mrb[0].mxu1 %v3535_v18  ;;  %v11775_v18 = vpack.i.bf16 %v14323_v2, %v1533_v1  ;;  %v11784_v39 = vsel %vm1342_vm7, %v7210_v28, %v7211_v48  ;;  %v11788_v14 = vsel %vm1342_vm7, %v7201_v52, %v7210_v28  ;;  %v11791_v8 = vpack.i.bf16 %v7633_v6, %v14322_v15  ;;  %v14360_v2 = vld [vmem:[#allocation37_spill] sm:$0xff]  ;;  %v11813_v29 = vpop.f32.mrb[70].mxu0 }
 0x256   :  { %14359 = vst [vmem:[#allocation12_spill] sm:$0xff] %v11762_v57  ;;  %v4982_v1 = vmul.f32 %v14360_v2, %v14360_v2  ;;  %v3501_v44 = vrot.slane %v11788_v14, 4  ;;  %v14361_v13 = vrot.slane %v11649_v53, 6  ;;  %v7226_v52 = vunpack.i.h.bf16 %v11594_v5 }
 0x257   :  { %7493 = vrot.lane.b32.xlu1 %v11775_v18, %s7760_s18  ;;  %7498 = vrot.lane.b32.xlu0 %v11791_v8, %s7760_s18  ;;  %v14363_v15 = vrot.slane %v11645_v26, 4  ;;  %v7225_v2 = vunpack.i.l.bf16 %v11594_v5  ;;  %v7221_v0 = vunpack.i.h.bf16 %v11613_v49  ;;  %v3209_v31 = vrot.slane %v11645_v26, 2 }
 0x258   :  { %v3262_v57 = vsel %vm1762_vm1, %v11653_v17, %v14361_v13  ;;  %v11806_v6 = vadd.f32 %v4982_v1, %v4874_v33  ;;  %v7220_v13 = vunpack.i.l.bf16 %v11613_v49  ;;  %v14364_v20 = vrot.slane %v11653_v17, 6  ;;  %v11822_v1 = vpop.f32.mrb[71].mxu0 }
 0x259   :  { %v3264_v28 = vsel %vm1765_vm2, %v3262_v57, %v14363_v15  ;;  %v11826_v5 = vsel %vm1342_vm7, %v7225_v2, %v7226_v52  ;;  %v11830_v57 = vsel %vm1342_vm7, %v7211_v48, %v7225_v2  ;;  %v14365_v49 = vrot.slane %v11649_v53, 4  ;;  %v11848_v53 = vpop.permute.xlu0 %7258 }
 0x25a   :  { %14362 = vst [vmem:[#allocation16_spill] sm:$0xff] %v11806_v6  ;;  %v3266_v23 = vsel %vm1768_vm3, %v3264_v28, %v3210_v3  ;;  %v3261_v33 = vsel %vm1762_vm1, %v11690_v9, %v14364_v20  ;;  %v4875_v17 = vmul.f32 %v11072_v7, %v11072_v7  ;;  %v11837_v3 = vpop.permute.xlu1 %7263  ;;  %v11846_v48 = vsel %vm1179_vm8, %v7220_v13, %v7221_v0 }
 0x25b   :  { %4613 = vmatprep.mubr.f32.mxu0 %v3266_v23  ;;  %v3263_v26 = vsel %vm1765_vm2, %v3261_v33, %v14365_v49  ;;  %7503 = vrot.lane.b32.xlu1 %v10573_v10, %s7760_s18  ;;  %v11852_v7 = vsel %vm1179_vm8, %v7216_v63, %v7220_v13  ;;  %v4983_v2 = vmul.f32 %v11085_v41, %v11085_v41  ;;  %v7236_v33 = vunpack.i.h.bf16 %v11656_v45  ;;  %v11860_v23 = vpop.f32.mrb[72].mxu0 }
 0x25c   :  { %v3265_v15 = vsel %vm1768_vm3, %v3263_v26, %v3209_v31  ;;  %v3221_v28 = vrot.slane %v11852_v7, 4  ;;  %v7235_v49 = vunpack.i.l.bf16 %v11656_v45  ;;  %7508 = vrot.lane.b32.xlu0 %v10524_v36, %s7760_s18  ;;  %v7231_v63 = vunpack.i.h.bf16 %v11664_v60 }
 0x25d   :  { %4614 = vmatmul.mubr.f32.gmra.mrb[136].mxu0 %v3265_v15  ;;  %v7230_v13 = vunpack.i.l.bf16 %v11664_v60  ;;  %v3506_v31 = vrot.slane %v11784_v39, 2  ;;  %v14366_v26 = vrot.slane %v11709_v46, 6  ;;  %v11871_v15 = vpop.f32.mrb[73].mxu0  ;;  %v11875_v45 = vadd.f32 %v4983_v2, %v4875_v17  ;;  %v11903_v6 = vpop.permute.xlu0 %7268 }
 0x25e   :  { %14367 = vst [vmem:[#allocation36_spill] sm:$0xff] %v11871_v15  ;;  %v11879_v20 = vsel %vm1179_vm8, %v7221_v0, %v7236_v33  ;;  %v11883_v60 = vsel %vm1179_vm8, %v7236_v33, %v7235_v49  ;;  %v11893_v2 = vpop.permute.xlu1 %7273 }
 0x25f   :  { %v3538_v41 = vsel %vm1762_vm1, %v11715_v43, %v14366_v26  ;;  %7513 = vrot.lane.b32.xlu1 %v10047_v27, %s7760_s18  ;;  %14368 = vst [vmem:[#allocation37_spill] sm:$0xff] %v11875_v45  ;;  %v11891_v17 = vsel %vm1342_vm7, %v7230_v13, %v7231_v63  ;;  %v11897_v0 = vsel %vm1342_vm7, %v7226_v52, %v7230_v13  ;;  %v14369_v63 = vrot.slane %v11715_v43, 6 }
 0x260   :  { %v3540_v9 = vsel %vm1765_vm2, %v3538_v41, %v3501_v44  ;;  %v4876_v44 = vmul.f32 %v11118_v30, %v11118_v30  ;;  %v3505_v41 = vrot.slane %v11788_v14, 2  ;;  %v3517_v15 = vrot.slane %v11897_v0, 4  ;;  %v11917_v14 = vpop.f32.mrb[74].mxu0  ;;  %7518 = vrot.lane.b32.xlu0 %v7988_v54, %s7760_s18 }
 0x261   :  { %v3542_v33 = vsel %vm1768_vm3, %v3540_v9, %v3506_v31  ;;  %v3537_v26 = vsel %vm1762_vm1, %v11698_v24, %v14369_v63  ;;  %v14370_v52 = vrot.slane %v11709_v46, 4  ;;  %v4984_v9 = vmul.f32 %v11127_v19, %v11127_v19  ;;  %v11927_v43 = vpop.f32.mrb[75].mxu0 }
 0x262   :  { %4697 = vmatprep.mubr.f32.mxu1 %v3542_v33  ;;  %v7246_v30 = vunpack.i.h.bf16 %v11718_v59  ;;  %v7245_v24 = vunpack.i.l.bf16 %v11718_v59  ;;  %v14125_v46 = vunpack.i.h.bf16 %v11729_v16  ;;  %v7240_v19 = vunpack.i.l.bf16 %v11729_v16  ;;  %14371 = vst [vmem:[#allocation49_spill] sm:$0xff] %v11927_v43  ;;  %v11959_v43 = vpop.permute.xlu0 %7278 }
 0x263   :  { %v3539_v13 = vsel %vm1765_vm2, %v3537_v26, %v14370_v52  ;;  %7523 = vrot.lane.b32.xlu1 %v14194_v56, %s7760_s18  ;;  %v11929_v26 = vadd.f32 %v4984_v9, %v4876_v44  ;;  %v3226_v33 = vrot.slane %v11846_v48, 2  ;;  %v4877_v52 = vmul.f32 %v11177_v32, %v11177_v32 }
 0x264   :  { %v3541_v31 = vsel %vm1768_vm3, %v3539_v13, %v3505_v41  ;;  %v14373_v41 = vrot.slane %v11766_v40, 6  ;;  %v11940_v59 = vsel %vm1407_vm9, %v7245_v24, %v7246_v30  ;;  %v11946_v44 = vsel %vm1179_vm8, %v7240_v19, %v14125_v46  ;;  %7528 = vrot.lane.b32.xlu0 %v7862_v25, %s7760_s18 }
 0x265   :  { %4698 = vmatmul.mubr.f32.gmra.mrb[2].mxu1 %v3541_v31  ;;  %14372 = vst [vmem:[#allocation50_spill] sm:$0xff] %v11929_v26  ;;  %v11950_v13 = vsel %vm1179_vm8, %v7235_v49, %v7240_v19  ;;  %v11953_v31 = vpop.permute.xlu1 %7283  ;;  %v3225_v46 = vrot.slane %v11852_v7, 2  ;;  %v14374_v49 = vrot.slane %v11770_v51, 6  ;;  %v11966_v19 = vpop.f32.mrb[76].mxu0  ;;  %v4985_v32 = vmul.f32 %v11184_v21, %v11184_v21 }
 0x266   :  { %v3268_v63 = vsel %vm1762_vm1, %v11770_v51, %v14373_v41  ;;  %v3237_v26 = vrot.slane %v11950_v13, 4  ;;  %v3522_v21 = vrot.slane %v11891_v17, 2 }
 0x267   :  { %v3270_v9 = vsel %vm1765_vm2, %v3268_v63, %v3221_v28  ;;  %v3267_v28 = vsel %vm1762_vm1, %v11705_v12, %v14374_v49  ;;  %v14375_v63 = vrot.slane %v11766_v40, 4  ;;  %7533 = vrot.lane.b32.xlu1 %v11745_v42, %s7761_s19  ;;  %v7251_v12 = vunpack.i.h.bf16 %v11780_v61 }
 0x268   :  { %v3272_v45 = vsel %vm1768_vm3, %v3270_v9, %v3226_v33  ;;  %v7256_v33 = vunpack.i.h.bf16 %v11772_v4  ;;  %v11975_v9 = vpop.f32.mrb[77].mxu0  ;;  %v7250_v40 = vunpack.i.l.bf16 %v11780_v61  ;;  %v11985_v7 = vadd.f32 %v4985_v32, %v4877_v52  ;;  %7538 = vrot.lane.b32.xlu0 %v11775_v18, %s7761_s19 }
 0x269   :  { %4619 = vmatprep.mubr.f32.mxu0 %v3272_v45  ;;  %v3269_v41 = vsel %vm1765_vm2, %v3267_v28, %v14375_v63  ;;  %v14126_v45 = vunpack.i.l.bf16 %v11772_v4  ;;  %v14377_v49 = vrot.slane %v11826_v5, 6  ;;  %v3521_v28 = vrot.slane %v11897_v0, 2 }
 0x26a   :  { %v3271_v51 = vsel %vm1768_vm3, %v3269_v41, %v3225_v46  ;;  %14376 = vst [vmem:[#allocation51_spill] sm:$0xff] %v11985_v7  ;;  %v4878_v41 = vmul.f32 %v11234_v55, %v11234_v55  ;;  %v12002_v17 = vsel %vm1407_vm9, %v7246_v30, %v7251_v12  ;;  %v12006_v52 = vsel %vm1407_vm9, %v7250_v40, %v7245_v24  ;;  %v12012_v55 = vpop.permute.xlu1 %7293 }
 0x26b   :  { %4620 = vmatmul.mubr.f32.gmra.mrb[138].mxu0 %v3271_v51  ;;  %v3544_v46 = vsel %vm1762_vm1, %v11830_v57, %v14377_v49  ;;  %v11998_v61 = vsel %vm1407_vm9, %v7251_v12, %v14126_v45  ;;  %v12010_v32 = vsel %vm1407_vm9, %v7256_v33, %v7250_v40  ;;  %v3557_v0 = vrot.slane %v12002_v17, 4  ;;  %v12021_v12 = vpop.permute.xlu0 %7288  ;;  %v12027_v45 = vpop.f32.mrb[78].mxu0  ;;  %7543 = vrot.lane.b32.xlu1 %v11791_v8, %s7761_s19 }
 0x26c   :  { %v3546_v51 = vsel %vm1765_vm2, %v3544_v46, %v3517_v15  ;;  %v14378_v49 = vrot.slane %v11830_v57, 6  ;;  %v14379_v33 = vrot.slane %v11826_v5, 4  ;;  %v4986_v15 = vmul.f32 %v11239_v11, %v11239_v11  ;;  %v12034_v46 = vpop.f32.mrb[79].mxu0  ;;  %7548 = vrot.lane.b32.xlu0 %v10573_v10, %s7761_s19 }
 0x26d   :  { %v3548_v24 = vsel %vm1768_vm3, %v3546_v51, %v3522_v21  ;;  %v7266_v57 = vunpack.i.h.bf16 %v11837_v3  ;;  %v7261_v5 = vunpack.i.h.bf16 %v11848_v53  ;;  %v7260_v21 = vunpack.i.l.bf16 %v11848_v53 }
 0x26e   :  { %v3543_v30 = vsel %vm1762_vm1, %v11784_v39, %v14378_v49  ;;  %4703 = vmatprep.mubr.f32.mxu1 %v3548_v24  ;;  %v7265_v39 = vunpack.i.l.bf16 %v11837_v3  ;;  %v3242_v51 = vrot.slane %v11946_v44, 2  ;;  %v12047_v3 = vadd.f32 %v4986_v15, %v4878_v41 }
 0x26f   :  { %v3545_v40 = vsel %vm1765_vm2, %v3543_v30, %v14379_v33  ;;  %v4879_v53 = vmul.f32 %v11290_v58, %v11290_v58  ;;  %v12062_v24 = vsel %vm1179_vm8, %v7260_v21, %v7261_v5  ;;  %v14382_v41 = vunpack.i.h.bf16 %v11729_v16  ;;  %7553 = vrot.lane.b32.xlu1 %v10524_v36, %s7761_s19 }
 0x270   :  { %v3547_v63 = vsel %vm1768_vm3, %v3545_v40, %v3521_v28  ;;  %v14380_v28 = vrot.slane %v11883_v60, 6  ;;  %14381 = vst [vmem:[#allocation52_spill] sm:$0xff] %v12047_v3  ;;  %v12058_v30 = vsel %vm1179_vm8, %v7261_v5, %v7265_v39  ;;  %v12077_v5 = vpop.permute.xlu0 %7298  ;;  %v3241_v16 = vrot.slane %v11950_v13, 2  ;;  %7558 = vrot.lane.b32.xlu0 %v10047_v27, %s7761_s19 }
 0x271   :  { %4704 = vmatmul.mubr.f32.gmra.mrb[4].mxu1 %v3547_v63  ;;  %v12051_v63 = vsel %vm1179_vm8, %v7265_v39, %v7266_v57  ;;  %v12068_v33 = vsel %vm1179_vm8, %v14382_v41, %v7260_v21  ;;  %v3253_v58 = vrot.slane %v12058_v30, 4  ;;  %v3248_v57 = vrot.slane %v12062_v24, 6 }
 0x272   :  { %v3274_v11 = vsel %vm1762_vm1, %v11879_v20, %v14380_v28  ;;  %v14383_v21 = vrot.slane %v11879_v20, 6  ;;  %v12084_v28 = vpop.f32.mrb[80].mxu0  ;;  %v4987_v41 = vmul.f32 %v11298_v50, %v11298_v50  ;;  %v7275_v39 = vunpack.i.l.bf16 %v11893_v2 }
 0x273   :  { %v3276_v49 = vsel %vm1765_vm2, %v3274_v11, %v3237_v26  ;;  %v12071_v26 = vpop.permute.xlu1 %7303  ;;  %v14384_v11 = vrot.slane %v11883_v60, 4  ;;  %v12093_v15 = vpop.f32.mrb[81].mxu0  ;;  %v7270_v60 = vunpack.i.l.bf16 %v11903_v6  ;;  %v3562_v50 = vrot.slane %v11998_v61, 2  ;;  %7563 = vrot.lane.b32.xlu1 %v7988_v54, %s7761_s19 }
 0x274   :  { %v3278_v40 = vsel %vm1768_vm3, %v3276_v49, %v3242_v51  ;;  %v3273_v51 = vsel %vm1762_vm1, %v11846_v48, %v14383_v21  ;;  %v7271_v48 = vunpack.i.h.bf16 %v11903_v6  ;;  %v12103_v13 = vadd.f32 %v4987_v41, %v4879_v53  ;;  %7568 = vrot.lane.b32.xlu0 %v14194_v56, %s7761_s19 }
 0x275   :  { %4625 = vmatprep.mubr.f32.mxu0 %v3278_v40  ;;  %v3275_v49 = vsel %vm1765_vm2, %v3273_v51, %v14384_v11  ;;  %v14127_v40 = vunpack.i.h.bf16 %v11893_v2  ;;  %v14386_v21 = vrot.slane %v11940_v59, 6  ;;  %v4880_v11 = vmul.f32 %v11338_v38, %v11338_v38 }
 0x276   :  { %v3277_v20 = vsel %vm1768_vm3, %v3275_v49, %v3241_v16  ;;  %14385 = vst [vmem:[#allocation53_spill] sm:$0xff] %v12103_v13  ;;  %v12119_v6 = vsel %vm1407_vm9, %v7271_v48, %v7275_v39  ;;  %v12123_v53 = vsel %vm1407_vm9, %v7270_v60, %v7271_v48  ;;  %v14387_v49 = vunpack.i.l.bf16 %v11772_v4  ;;  %v12138_v48 = vpop.permute.xlu0 %7308 }
 0x277   :  { %4626 = vmatmul.mubr.f32.gmra.mrb[140].mxu0 %v3277_v20  ;;  %v12109_v16 = vsel %vm1407_vm9, %v7275_v39, %v14127_v40  ;;  %v3614_v51 = vsel %vm1762_vm1, %v12006_v52, %v14386_v21  ;;  %v12132_v21 = vpop.permute.xlu1 %7313  ;;  %v3568_v39 = vrot.slane %v12123_v53, 6  ;;  %v3561_v3 = vrot.slane %v12002_v17, 2  ;;  %7573 = vrot.lane.b32.xlu1 %v7862_v25, %s7761_s19 }
 0x278   :  { %v12129_v41 = vsel %vm1407_vm9, %v14387_v49, %v7270_v60  ;;  %v3616_v20 = vsel %vm1765_vm2, %v3614_v51, %v3557_v0  ;;  %v14388_v60 = vrot.slane %v12006_v52, 6  ;;  %v12146_v51 = vpop.f32.mrb[82].mxu0  ;;  %v14389_v49 = vrot.slane %v11940_v59, 4  ;;  %7578 = vrot.lane.b32.xlu0 %v11745_v42, %s7762_s21 }
 0x279   :  { %v3618_v4 = vsel %vm1768_vm3, %v3616_v20, %v3562_v50  ;;  %v4988_v13 = vmul.f32 %v11345_v37, %v11345_v37  ;;  %v7286_v38 = vunpack.i.h.bf16 %v11953_v31  ;;  %v12154_v50 = vpop.f32.mrb[83].mxu0  ;;  %v7285_v52 = vunpack.i.l.bf16 %v11953_v31 }
 0x27a   :  { %v3613_v0 = vsel %vm1762_vm1, %v12010_v32, %v14388_v60  ;;  %4709 = vmatprep.mubr.f32.mxu1 %v3618_v4  ;;  %v7281_v59 = vunpack.i.h.bf16 %v11959_v43  ;;  %v7280_v32 = vunpack.i.l.bf16 %v11959_v43  ;;  %v3280_v20 = vsel %vm1762_vm1, %v12068_v33, %v3248_v57 }
 0x27b   :  { %v3615_v40 = vsel %vm1765_vm2, %v3613_v0, %v14389_v49  ;;  %v12164_v37 = vadd.f32 %v4988_v13, %v4880_v11  ;;  %v12176_v4 = vpop.permute.xlu1 %7323  ;;  %v3282_v43 = vsel %vm1765_vm2, %v3280_v20, %v3253_v58  ;;  %v12190_v11 = vpop.f32.mrb[84].mxu0  ;;  %v4989_v58 = vmul.f32 %v11401_v62, %v11401_v62  ;;  %7583 = vrot.lane.b32.xlu1 %v11775_v18, %s7762_s21 }
 0x27c   :  { %v3617_v17 = vsel %vm1768_vm3, %v3615_v40, %v3561_v3  ;;  %v4881_v3 = vmul.f32 %v11393_v47, %v11393_v47  ;;  %v3258_v40 = vrot.slane %v12051_v63, 2  ;;  %v12172_v31 = vsel %vm1234_vm10, %v7281_v59, %v7286_v38  ;;  %v12188_v63 = vpop.permute.xlu0 %7318  ;;  %7588 = vrot.lane.b32.xlu0 %v11791_v8, %s7762_s21 }
 0x27d   :  { %4710 = vmatmul.mubr.f32.gmra.mrb[6].mxu1 %v3617_v17  ;;  %14390 = vst [vmem:[#allocation54_spill] sm:$0xff] %v12164_v37  ;;  %v12181_v13 = vsel %vm1234_vm10, %v7280_v32, %v7281_v59  ;;  %v12185_v47 = vsel %vm1234_vm10, %v7285_v52, %v7280_v32  ;;  %v12198_v59 = vpop.f32.mrb[85].mxu0  ;;  %v3257_v32 = vrot.slane %v12058_v30, 2  ;;  %v14391_v20 = vrot.slane %v12068_v33, 6 }
 0x27e   :  { %v3284_v17 = vsel %vm1768_vm3, %v3282_v43, %v3258_v40  ;;  %v7296_v40 = vunpack.i.h.bf16 %v12012_v55  ;;  %v14392_v43 = vrot.slane %v12062_v24, 4  ;;  %v7291_v60 = vunpack.i.h.bf16 %v12021_v12 }
 0x27f   :  { %4631 = vmatprep.mubr.f32.mxu0 %v3284_v17  ;;  %v3279_v49 = vsel %vm1762_vm1, %v11946_v44, %v14391_v20  ;;  %v7295_v17 = vunpack.i.l.bf16 %v12012_v55  ;;  %v7290_v0 = vunpack.i.l.bf16 %v12021_v12  ;;  %v12216_v62 = vadd.f32 %v4989_v58, %v4881_v3  ;;  %7593 = vrot.lane.b32.xlu1 %v10573_v10, %s7762_s21 }
 0x280   :  { %v3281_v57 = vsel %vm1765_vm2, %v3279_v49, %v14392_v43  ;;  %v1245_v33 = vsel %vm1234_vm10, %v7296_v40, %v7285_v52  ;;  %v4882_v44 = vmul.f32 %v11428_v22, %v11428_v22  ;;  %v14394_v12 = vunpack.i.h.bf16 %v11893_v2  ;;  %v12247_v2 = vpop.f32.mrb[86].mxu0  ;;  %7598 = vrot.lane.b32.xlu0 %v10524_v36, %s7762_s21 }
 0x281   :  { %14393 = vst [vmem:[#allocation55_spill] sm:$0xff] %v12216_v62  ;;  %v3283_v30 = vsel %vm1768_vm3, %v3281_v57, %v3257_v32  ;;  %v12225_v24 = vsel %vm1234_vm10, %v7286_v38, %v7295_v17  ;;  %v12229_v55 = vsel %vm1407_vm9, %v7290_v0, %v7291_v60  ;;  %v3578_v52 = vrot.slane %v12109_v16, 2  ;;  %v12238_v57 = vpop.permute.xlu1 %7333  ;;  %v12245_v32 = vpop.permute.xlu0 %7328 }
 0x282   :  { %4632 = vmatmul.mubr.f32.gmra.mrb[142].mxu0 %v3283_v30  ;;  %v12235_v3 = vsel %vm1407_vm9, %v14394_v12, %v7290_v0  ;;  %v3620_v58 = vsel %vm1762_vm1, %v12129_v41, %v3568_v39  ;;  %v14395_v0 = vrot.slane %v12119_v6, 4  ;;  %v4990_v40 = vmul.f32 %v11438_v35, %v11438_v35  ;;  %v12254_v43 = vpop.f32.mrb[87].mxu0 }
 0x283   :  { %v3577_v12 = vrot.slane %v12119_v6, 2  ;;  %v14396_v38 = vrot.slane %v12129_v41, 6  ;;  %v7306_v22 = vunpack.i.h.bf16 %v12071_v26  ;;  %v14398_v35 = vrot.slane %v12123_v53, 4  ;;  %7603 = vrot.lane.b32.xlu1 %v10047_v27, %s7762_s21 }
 0x284   :  { %v3622_v20 = vsel %vm1765_vm2, %v3620_v58, %v14395_v0  ;;  %v12265_v58 = vadd.f32 %v4990_v40, %v4882_v44  ;;  %v7305_v6 = vunpack.i.l.bf16 %v12071_v26  ;;  %v7301_v41 = vunpack.i.h.bf16 %v12077_v5  ;;  %v14399_v0 = vld [vmem:[#allocation42_spill] sm:$0xff]  ;;  %v14400_v44 = vld [vmem:[#allocation43_spill] sm:$0xff]  ;;  %v12290_v40 = vpop.f32.mrb[88].mxu0  ;;  %7608 = vrot.lane.b32.xlu0 %v7988_v54, %s7762_s21 }
 0x285   :  { %v3624_v30 = vsel %vm1768_vm3, %v3622_v20, %v3578_v52  ;;  %v3619_v39 = vsel %vm1762_vm1, %v11998_v61, %v14396_v38  ;;  %v7300_v38 = vunpack.i.l.bf16 %v12077_v5  ;;  %v4883_v18 = vmul.f32 %v14399_v0, %v14399_v0  ;;  %v12288_v42 = vpop.permute.xlu1 %7343 }
 0x286   :  { %4715 = vmatprep.mubr.f32.mxu1 %v3624_v30  ;;  %14397 = vst [vmem:[#allocation56_spill] sm:$0xff] %v12265_v58  ;;  %v3621_v52 = vsel %vm1765_vm2, %v3619_v39, %v14398_v35  ;;  %v12280_v53 = vsel %vm1234_vm10, %v7305_v6, %v7306_v22  ;;  %v12284_v26 = vsel %vm1234_vm10, %v7295_v17, %v7305_v6  ;;  %v12299_v35 = vpop.permute.xlu0 %7338  ;;  %v12301_v17 = vpop.f32.mrb[89].mxu0  ;;  %v14402_v0 = vrot.slane %v12181_v13, 6 }
 0x287   :  { %v3623_v61 = vsel %vm1768_vm3, %v3621_v52, %v3577_v12  ;;  %v4991_v20 = vmul.f32 %v14400_v44, %v14400_v44  ;;  %v12297_v39 = vsel %vm1407_vm9, %v7300_v38, %v7301_v41  ;;  %v12305_v52 = vsel %vm1407_vm9, %v7291_v60, %v7300_v38  ;;  %7613 = vrot.lane.b32.xlu1 %v14194_v56, %s7762_s21 }
 0x288   :  { %4716 = vmatmul.mubr.f32.gmra.mrb[8].mxu1 %v3623_v61  ;;  %v3298_v61 = vrot.slane %v12225_v24, 2  ;;  %v3350_v44 = vsel %vm1762_vm1, %v12185_v47, %v14402_v0  ;;  %v3589_v12 = vrot.slane %v12305_v52, 4  ;;  %v14403_v60 = vrot.slane %v12172_v31, 4  ;;  %7618 = vrot.lane.b32.xlu0 %v7862_v25, %s7762_s21 }
 0x289   :  { %v12309_v6 = vadd.f32 %v4991_v20, %v4883_v18  ;;  %v7316_v10 = vunpack.i.h.bf16 %v12132_v21  ;;  %v7315_v18 = vunpack.i.l.bf16 %v12132_v21  ;;  %v7311_v5 = vunpack.i.h.bf16 %v12138_v48 }
 0x28a   :  { %v3352_v38 = vsel %vm1765_vm2, %v3350_v44, %v14403_v60  ;;  %v7310_v30 = vunpack.i.l.bf16 %v12138_v48  ;;  %v3297_v0 = vrot.slane %v12172_v31, 2  ;;  %v14404_v60 = vrot.slane %v12185_v47, 6  ;;  %v14407_v48 = vld [vmem:[#allocation32_spill] sm:$0xff] }
 0x28b   :  { %14401 = vst [vmem:[#allocation42_spill] sm:$0xff] %v12309_v6  ;;  %v3354_v20 = vsel %vm1768_vm3, %v3352_v38, %v3298_v61  ;;  %v12330_v8 = vsel %vm1407_vm9, %v7315_v18, %v7316_v10  ;;  %v12334_v44 = vsel %vm1407_vm9, %v7301_v41, %v7315_v18  ;;  %v14405_v61 = vld [vmem:[#allocation44_spill] sm:$0xff]  ;;  %v12348_v6 = vpop.permute.xlu1 %7353  ;;  %v12357_v18 = vpop.permute.xlu0 %7348  ;;  %v4992_v31 = vmul.f32 %v14407_v48, %v14407_v48 }
 0x28c   :  { %4637 = vmatprep.mubr.f32.mxu0 %v3354_v20  ;;  %v3349_v21 = vsel %vm1762_vm1, %v1245_v33, %v14404_v60  ;;  %v4884_v38 = vmul.f32 %v14405_v61, %v14405_v61  ;;  %v12346_v49 = vsel %vm1234_vm10, %v7310_v30, %v7311_v5  ;;  %v12352_v47 = vsel %vm1234_vm10, %v7306_v22, %v7310_v30  ;;  %v12359_v60 = vpop.f32.mrb[90].mxu0 }
 0x28d   :  { %v14406_v33 = vrot.slane %v12181_v13, 4  ;;  %v3309_v61 = vrot.slane %v12352_v47, 4  ;;  %v7326_v58 = vunpack.i.h.bf16 %v12176_v4  ;;  %v12366_v62 = vpop.f32.mrb[91].mxu0  ;;  %v7325_v13 = vunpack.i.l.bf16 %v12176_v4 }
 0x28e   :  { %v7321_v22 = vunpack.i.h.bf16 %v12188_v63  ;;  %v7320_v30 = vunpack.i.l.bf16 %v12188_v63  ;;  %v14409_v48 = vrot.slane %v12229_v55, 6  ;;  %v3593_v4 = vrot.slane %v12305_v52, 2  ;;  %v14413_v52 = vld [vmem:[#allocation33_spill] sm:$0xff] }
 0x28f   :  { %v3351_v41 = vsel %vm1765_vm2, %v3349_v21, %v14406_v33  ;;  %v3594_v21 = vrot.slane %v12297_v39, 2  ;;  %v14410_v33 = vld [vmem:[#allocation19_spill] sm:$0xff]  ;;  %v12387_v63 = vsel %vm1234_vm10, %v7325_v13, %v7326_v58  ;;  %v12412_v37 = vpop.permute.xlu0 %7358  ;;  %v4993_v7 = vmul.f32 %v14413_v52, %v14413_v52 }
 0x290   :  { %v3353_v20 = vsel %vm1768_vm3, %v3351_v41, %v3297_v0  ;;  %v12376_v0 = vadd.f32 %v4992_v31, %v4884_v38  ;;  %v4885_v27 = vmul.f32 %v14410_v33, %v14410_v33  ;;  %v12391_v41 = vsel %vm1234_vm10, %v7311_v5, %v7325_v13 }
 0x291   :  { %4638 = vmatmul.mubr.f32.gmra.mrb[144].mxu0 %v3353_v20  ;;  %v3626_v20 = vsel %vm1762_vm1, %v12235_v3, %v14409_v48  ;;  %v12395_v36 = vsel %vm1407_vm9, %v7320_v30, %v7321_v22  ;;  %v12399_v38 = vsel %vm1407_vm9, %v7316_v10, %v7320_v30  ;;  %v14411_v13 = vrot.slane %v12235_v3, 6 }
 0x292   :  { %14408 = vst [vmem:[#allocation43_spill] sm:$0xff] %v12376_v0  ;;  %v3605_v33 = vrot.slane %v12399_v38, 4  ;;  %v12405_v0 = vpop.permute.xlu1 %7363  ;;  %v3628_v5 = vsel %vm1765_vm2, %v3626_v20, %v3589_v12  ;;  %v14412_v31 = vrot.slane %v12229_v55, 4  ;;  %v7336_v3 = vunpack.i.h.bf16 %v12238_v57 }
 0x293   :  { %v3625_v22 = vsel %vm1762_vm1, %v12109_v16, %v14411_v13  ;;  %v3630_v30 = vsel %vm1768_vm3, %v3628_v5, %v3594_v21  ;;  %v7335_v21 = vunpack.i.l.bf16 %v12238_v57  ;;  %v14128_v55 = vunpack.i.h.bf16 %v12245_v32  ;;  %v14416_v5 = vld [vmem:[#allocation24_spill] sm:$0xff]  ;;  %v12471_v13 = vpop.permute.xlu0 %7368 }
 0x294   :  { %v3627_v48 = vsel %vm1765_vm2, %v3625_v22, %v14412_v31  ;;  %4721 = vmatprep.mubr.f32.mxu1 %v3630_v30  ;;  %v12433_v20 = vadd.f32 %v4993_v7, %v4885_v27  ;;  %v7330_v31 = vunpack.i.l.bf16 %v12245_v32  ;;  %v3314_v52 = vrot.slane %v12346_v49, 2 }
 0x295   :  { %v3629_v16 = vsel %vm1768_vm3, %v3627_v48, %v3593_v4  ;;  %v14415_v4 = vrot.slane %v12280_v53, 6  ;;  %v12443_v57 = vsel %vm1461_vm11, %v7335_v21, %v7336_v3  ;;  %v4886_v54 = vmul.f32 %v14416_v5, %v14416_v5 }
 0x296   :  { %4722 = vmatmul.mubr.f32.gmra.mrb[10].mxu1 %v3629_v16  ;;  %14414 = vst [vmem:[#allocation44_spill] sm:$0xff] %v12433_v20  ;;  %v3313_v7 = vrot.slane %v12352_v47, 2  ;;  %v12455_v22 = vsel %vm1234_vm10, %v7330_v31, %v14128_v55  ;;  %v12459_v30 = vsel %vm1234_vm10, %v7326_v58, %v7330_v31  ;;  %v14419_v58 = vrot.slane %v12280_v53, 4  ;;  %v14420_v55 = vld [vmem:[#allocation46_spill] sm:$0xff] }
 0x297   :  { %v3356_v56 = vsel %vm1762_vm1, %v12284_v26, %v14415_v4  ;;  %v3325_v47 = vrot.slane %v12459_v30, 4  ;;  %v4994_v20 = vmul.f32 %v14420_v55, %v14420_v55  ;;  %v3610_v53 = vrot.slane %v12395_v36, 2 }
 0x298   :  { %v12414_v10 = vpop.f32.mrb[92].mxu0  ;;  %v3358_v48 = vsel %vm1765_vm2, %v3356_v56, %v3309_v61  ;;  %v12461_v61 = vpop.permute.xlu1 %7373  ;;  %v14418_v56 = vrot.slane %v12284_v26, 6  ;;  %v14422_v55 = vrot.slane %v12330_v8, 6 }
 0x299   :  { %v12423_v12 = vpop.f32.mrb[93].mxu0  ;;  %v3360_v4 = vsel %vm1768_vm3, %v3358_v48, %v3314_v52  ;;  %v14129_v52 = vunpack.i.l.bf16 %v12288_v42  ;;  %v7340_v48 = vunpack.i.l.bf16 %v12299_v35 }
 0x29a   :  { %v3355_v5 = vsel %vm1762_vm1, %v12225_v24, %v14418_v56  ;;  %4643 = vmatprep.mubr.f32.mxu0 %v3360_v4  ;;  %v7341_v24 = vunpack.i.h.bf16 %v12299_v35  ;;  %v12488_v4 = vadd.f32 %v4994_v20, %v4886_v54  ;;  %v3632_v56 = vsel %vm1762_vm1, %v12334_v44, %v14422_v55 }
 0x29b   :  { %v3357_v31 = vsel %vm1765_vm2, %v3355_v5, %v14419_v58  ;;  %v14423_v5 = vld [vmem:[#allocation47_spill] sm:$0xff]  ;;  %v3609_v58 = vrot.slane %v12399_v38, 2  ;;  %v12509_v36 = vsel %vm1461_vm11, %v7340_v48, %v7335_v21  ;;  %v14425_v55 = vrot.slane %v12330_v8, 4 }
 0x29c   :  { %v12463_v16 = vpop.f32.mrb[94].mxu0  ;;  %v3359_v26 = vsel %vm1768_vm3, %v3357_v31, %v3313_v7  ;;  %14421 = vst [vmem:[#allocation19_spill] sm:$0xff] %v12488_v4  ;;  %v4887_v7 = vmul.f32 %v14423_v5, %v14423_v5  ;;  %v12501_v25 = vsel %vm1461_vm11, %v7341_v24, %v14129_v52  ;;  %v12505_v35 = vsel %vm1461_vm11, %v7336_v3, %v7341_v24  ;;  %v12522_v24 = vpop.permute.xlu1 %7383 }
 0x29d   :  { %14417 = vst [vmem:[#allocation32_spill] sm:$0xff] %v12463_v16  ;;  %v12473_v27 = vpop.f32.mrb[95].mxu0  ;;  %v7346_v16 = vunpack.i.h.bf16 %v12288_v42  ;;  %4644 = vmatmul.mubr.f32.gmra.mrb[146].mxu0 %v3359_v26  ;;  %v3645_v38 = vrot.slane %v12505_v35, 4  ;;  %v3639_v54 = vrot.slane %v12509_v36, 6  ;;  %v3634_v31 = vsel %vm1765_vm2, %v3632_v56, %v3605_v33  ;;  %v12531_v4 = vpop.permute.xlu0 %7378 }
 0x29e   :  { %v14424_v26 = vrot.slane %v12334_v44, 6  ;;  %v3636_v21 = vsel %vm1768_vm3, %v3634_v31, %v3610_v53  ;;  %v7356_v52 = vunpack.i.h.bf16 %v12348_v6  ;;  %v7355_v44 = vunpack.i.l.bf16 %v12348_v6 }
 0x29f   :  { %v12513_v20 = vsel %vm1461_vm11, %v7346_v16, %v7340_v48  ;;  %v14426_v48 = vld [vmem:[#allocation48_spill] sm:$0xff]  ;;  %4727 = vmatprep.mubr.f32.mxu1 %v3636_v21  ;;  %v7351_v53 = vunpack.i.h.bf16 %v12357_v18  ;;  %v7350_v8 = vunpack.i.l.bf16 %v12357_v18 }
 0x2a0   :  { %v3631_v3 = vsel %vm1762_vm1, %v12297_v39, %v14424_v26  ;;  %v4995_v5 = vmul.f32 %v14426_v48, %v14426_v48  ;;  %v3330_v26 = vrot.slane %v12455_v22, 2  ;;  %v12552_v6 = vsel %vm1234_vm10, %v7355_v44, %v7356_v52 }
 0x2a1   :  { %v3633_v16 = vsel %vm1765_vm2, %v3631_v3, %v14425_v55  ;;  %v14429_v3 = vrot.slane %v12387_v63, 6  ;;  %v14430_v55 = vld [vmem:[#allocation13_spill] sm:$0xff]  ;;  %v12556_v18 = vsel %vm1234_vm10, %v7351_v53, %v7355_v44 }
 0x2a2   :  { %v3635_v39 = vsel %vm1768_vm3, %v3633_v16, %v3609_v58  ;;  %v12541_v31 = vadd.f32 %v4995_v5, %v4887_v7  ;;  %v4888_v58 = vmul.f32 %v14430_v55, %v14430_v55  ;;  %v12560_v7 = vsel %vm1234_vm10, %v7350_v8, %v7351_v53 }
 0x2a3   :  { %v12533_v33 = vpop.f32.mrb[96].mxu0  ;;  %4728 = vmatmul.mubr.f32.gmra.mrb[12].mxu1 %v3635_v39  ;;  %v3362_v21 = vsel %vm1762_vm1, %v12391_v41, %v14429_v3  ;;  %v14431_v16 = vunpack.i.h.bf16 %v12245_v32  ;;  %v3341_v5 = vrot.slane %v12556_v18, 4  ;;  %v3336_v52 = vrot.slane %v12560_v7, 6 }
 0x2a4   :  { %v12539_v56 = vpop.f32.mrb[97].mxu0  ;;  %14428 = vst [vmem:[#allocation24_spill] sm:$0xff] %v12541_v31  ;;  %v3364_v44 = vsel %vm1765_vm2, %v3362_v21, %v3325_v47  ;;  %v3329_v55 = vrot.slane %v12459_v30, 2  ;;  %v14432_v53 = vrot.slane %v12391_v41, 6  ;;  %v14433_v31 = vld [vmem:[#allocation14_spill] sm:$0xff]  ;;  %v14130_v47 = vunpack.i.h.bf16 %v12405_v0  ;;  %v12588_v21 = vpop.permute.xlu0 %7388 }
 0x2a5   :  { %14427 = vst [vmem:[#allocation33_spill] sm:$0xff] %v12539_v56  ;;  %v12566_v48 = vsel %vm1234_vm10, %v14431_v16, %v7350_v8  ;;  %v4996_v8 = vmul.f32 %v14433_v31, %v14433_v31  ;;  %v12580_v16 = vpop.permute.xlu1 %7393  ;;  %v3366_v39 = vsel %vm1768_vm3, %v3364_v44, %v3330_v26  ;;  %v14434_v56 = vrot.slane %v12387_v63, 4 }
 0x2a6   :  { %v3361_v32 = vsel %vm1762_vm1, %v12346_v49, %v14432_v53  ;;  %v7365_v30 = vunpack.i.l.bf16 %v12405_v0  ;;  %4649 = vmatprep.mubr.f32.mxu0 %v3366_v39  ;;  %v7361_v53 = vunpack.i.h.bf16 %v12412_v37  ;;  %v7360_v26 = vunpack.i.l.bf16 %v12412_v37 }
 0x2a7   :  { %v3363_v3 = vsel %vm1765_vm2, %v3361_v32, %v14434_v56  ;;  %v12593_v31 = vadd.f32 %v4996_v8, %v4888_v58  ;;  %v3650_v44 = vrot.slane %v12501_v25, 2  ;;  %v14436_v39 = vrot.slane %v12443_v57, 6 }
 0x2a8   :  { %v12590_v41 = vpop.f32.mrb[98].mxu0  ;;  %v3365_v49 = vsel %vm1768_vm3, %v3363_v3, %v3329_v55  ;;  %v12603_v56 = vsel %vm1461_vm11, %v7365_v30, %v14130_v47  ;;  %v4889_v3 = vmul.f32 %v11813_v29, %v11813_v29  ;;  %v12614_v37 = vsel %vm1461_vm11, %v7361_v53, %v7365_v30 }
 0x2a9   :  { %14435 = vst [vmem:[#allocation46_spill] sm:$0xff] %v12593_v31  ;;  %v12597_v63 = vpop.f32.mrb[99].mxu0  ;;  %4650 = vmatmul.mubr.f32.gmra.mrb[148].mxu0 %v3365_v49  ;;  %v3702_v58 = vsel %vm1762_vm1, %v12509_v36, %v14436_v39  ;;  %v12618_v55 = vsel %vm1461_vm11, %v7360_v26, %v7361_v53  ;;  %v14437_v32 = vunpack.i.l.bf16 %v12288_v42  ;;  %v3661_v36 = vrot.slane %v12614_v37, 4 }
 0x2aa   :  { %v3704_v49 = vsel %vm1765_vm2, %v3702_v58, %v3645_v38  ;;  %v3656_v39 = vrot.slane %v12618_v55, 6  ;;  %v3649_v53 = vrot.slane %v12505_v35, 2  ;;  %v3701_v42 = vsel %vm1762_vm1, %v12513_v20, %v3639_v54  ;;  %v12645_v35 = vpop.permute.xlu0 %7398 }
 0x2ab   :  { %v12624_v8 = vsel %vm1461_vm11, %v14437_v32, %v7360_v26  ;;  %v3706_v47 = vsel %vm1768_vm3, %v3704_v49, %v3650_v44  ;;  %v4997_v26 = vmul.f32 %v11822_v1, %v11822_v1  ;;  %v12637_v32 = vpop.permute.xlu1 %7403  ;;  %v14438_v38 = vrot.slane %v12443_v57, 4 }
 0x2ac   :  { %4733 = vmatprep.mubr.f32.mxu1 %v3706_v47  ;;  %v7376_v29 = vunpack.i.h.bf16 %v12461_v61  ;;  %v7375_v30 = vunpack.i.l.bf16 %v12461_v61  ;;  %v7371_v1 = vunpack.i.h.bf16 %v12471_v13  ;;  %v7370_v47 = vunpack.i.l.bf16 %v12471_v13 }
 0x2ad   :  { %v3703_v58 = vsel %vm1765_vm2, %v3701_v42, %v14438_v38  ;;  %v12648_v54 = vadd.f32 %v4997_v26, %v4889_v3  ;;  %v4890_v57 = vmul.f32 %v11860_v23, %v11860_v23  ;;  %v3346_v61 = vrot.slane %v12552_v6, 2  ;;  %v14440_v42 = vld [vmem:[#allocation36_spill] sm:$0xff] }
 0x2ae   :  { %v3705_v20 = vsel %vm1768_vm3, %v3703_v58, %v3649_v53  ;;  %v12652_v44 = vpop.f32.mrb[100].mxu0  ;;  %v3368_v49 = vsel %vm1762_vm1, %v12566_v48, %v3336_v52  ;;  %v4998_v53 = vmul.f32 %v14440_v42, %v14440_v42  ;;  %v12665_v26 = vsel %vm1288_vm12, %v7371_v1, %v7376_v29 }
 0x2af   :  { %14439 = vst [vmem:[#allocation47_spill] sm:$0xff] %v12648_v54  ;;  %4734 = vmatmul.mubr.f32.gmra.mrb[14].mxu1 %v3705_v20  ;;  %v12661_v3 = vpop.f32.mrb[101].mxu0  ;;  %v12669_v13 = vsel %vm1288_vm12, %v7370_v47, %v7371_v1  ;;  %v12673_v23 = vsel %vm1288_vm12, %v7375_v30, %v7370_v47  ;;  %v3370_v6 = vsel %vm1765_vm2, %v3368_v49, %v3341_v5  ;;  %v3345_v1 = vrot.slane %v12556_v18, 2  ;;  %v5178_v5 = vld [vmem:[#allocation7] sm:$0xff]  ;;  %v5179_v49 = vld [vmem:[#allocation7 + $0x8] sm:$0xff]  ;;  %v12688_v52 = vpop.permute.xlu1 %7413 }
 0x2b0   :  { %v3376_v58 = vrot.slane %v12669_v13, 6  ;;  %v3372_v42 = vsel %vm1768_vm3, %v3370_v6, %v3346_v61  ;;  %v12681_v54 = vadd.f32 %v4998_v53, %v4890_v57  ;;  %v14442_v31 = vrot.slane %v12566_v48, 6  ;;  %v12696_v53 = vpop.permute.xlu0 %7408 }
 0x2b1   :  { %4655 = vmatprep.mubr.f32.mxu0 %v3372_v42  ;;  %v14443_v38 = vrot.slane %v12560_v7, 4  ;;  %v7386_v61 = vunpack.i.h.bf16 %v12522_v24  ;;  %v7385_v57 = vunpack.i.l.bf16 %v12522_v24  ;;  %v7381_v18 = vunpack.i.h.bf16 %v12531_v4 }
 0x2b2   :  { %14441 = vst [vmem:[#allocation48_spill] sm:$0xff] %v12681_v54  ;;  %v3367_v47 = vsel %vm1762_vm1, %v12455_v22, %v14442_v31  ;;  %v7380_v22 = vunpack.i.l.bf16 %v12531_v4  ;;  %v4891_v31 = vmul.f32 %v11917_v14, %v11917_v14  ;;  %v3666_v6 = vrot.slane %v12603_v56, 2 }
 0x2b3   :  { %v3369_v20 = vsel %vm1765_vm2, %v3367_v47, %v14443_v38  ;;  %v12707_v38 = vsel %vm1288_vm12, %v7376_v29, %v7385_v57  ;;  %v1299_v24 = vsel %vm1288_vm12, %v7386_v61, %v7375_v30  ;;  %v6307_v42 = vpack.c.bf16 %v5179_v49, %v5178_v5 }
 0x2b4   :  { %v3371_v48 = vsel %vm1768_vm3, %v3369_v20, %v3345_v1  ;;  %v12703_v7 = vpop.f32.mrb[102].mxu0  ;;  %v3708_v20 = vsel %vm1762_vm1, %v12624_v8, %v3656_v39  ;;  %v12717_v14 = vsel %vm1461_vm11, %v7380_v22, %v7381_v18  ;;  %v14444_v1 = vunpack.i.h.bf16 %v12405_v0 }
 0x2b5   :  { %4656 = vmatmul.mubr.f32.gmra.mrb[150].mxu0 %v3371_v48  ;;  %v12713_v4 = vpop.f32.mrb[103].mxu0  ;;  %v3710_v29 = vsel %vm1765_vm2, %v3708_v20, %v3661_v36  ;;  %v14445_v48 = vld [vmem:[#allocation49_spill] sm:$0xff]  ;;  %6308 = vmatprep.subr.bf16.mxu1 %v6307_v42  ;;  %v7396_v20 = vunpack.i.h.bf16 %v12580_v16  ;;  %v14448_v49 = vrot.slane %v12618_v55, 4  ;;  %v3386_v55 = vrot.slane %v12707_v38, 2 }
 0x2b6   :  { %v12723_v47 = vsel %vm1461_vm11, %v14444_v1, %v7380_v22  ;;  %v4999_v30 = vmul.f32 %v14445_v48, %v14445_v48  ;;  %v3712_v61 = vsel %vm1768_vm3, %v3710_v29, %v3666_v6  ;;  %v3665_v22 = vrot.slane %v12614_v37, 2  ;;  %6310 = vmatpush3.bf16.msra.mxu1 %v6307_v42  ;;  %v12740_v48 = vpop.permute.xlu1 %7423 }
 0x2b7   :  { %4739 = vmatprep.mubr.f32.mxu1 %v3712_v61  ;;  %v14447_v1 = vrot.slane %v12624_v8, 6  ;;  %v7395_v29 = vunpack.i.l.bf16 %v12580_v16  ;;  %v7390_v37 = vunpack.i.l.bf16 %v12588_v21  ;;  %v5000_v42 = vmul.f32 %v11975_v9, %v11975_v9 }
 0x2b8   :  { %v12732_v0 = vadd.f32 %v4999_v30, %v4891_v31  ;;  %v7391_v31 = vunpack.i.h.bf16 %v12588_v21  ;;  %v12748_v30 = vpop.permute.xlu0 %7418  ;;  %v14457_v54 = vrot.slane %v12723_v47, 6 }
 0x2b9   :  { %v3707_v36 = vsel %vm1762_vm1, %v12501_v25, %v14447_v1  ;;  %v4892_v25 = vmul.f32 %v11966_v19, %v11966_v19  ;;  %v12760_v16 = vsel %vm1288_vm12, %v7395_v29, %v7396_v20  ;;  %v12764_v21 = vsel %vm1288_vm12, %v7385_v57, %v7395_v29 }
 0x2ba   :  { %14446 = vst [vmem:[#allocation13_spill] sm:$0xff] %v12732_v0  ;;  %v3709_v6 = vsel %vm1765_vm2, %v3707_v36, %v14448_v49  ;;  %v12768_v49 = vsel %vm1461_vm11, %v7390_v37, %v7391_v31  ;;  %v12772_v19 = vsel %vm1461_vm11, %v7381_v18, %v7390_v37  ;;  %v3438_v29 = vsel %vm1762_vm1, %v12673_v23, %v3376_v58 }
 0x2bb   :  { %v3711_v8 = vsel %vm1768_vm3, %v3709_v6, %v3665_v22  ;;  %v3677_v6 = vrot.slane %v12772_v19, 4  ;;  %v12780_v57 = vadd.f32 %v5000_v42, %v4892_v25  ;;  %v7406_v18 = vunpack.i.h.bf16 %v12637_v32  ;;  %v12794_v42 = vpop.permute.xlu1 %7433 }
 0x2bc   :  { %v12756_v61 = vpop.f32.mrb[104].mxu0  ;;  %4740 = vmatmul.mubr.f32.gmra.mrb[16].mxu1 %v3711_v8  ;;  %v7405_v37 = vunpack.i.l.bf16 %v12637_v32  ;;  %v14450_v8 = vrot.slane %v12665_v26, 4  ;;  %v7401_v1 = vunpack.i.h.bf16 %v12645_v35  ;;  %v7400_v36 = vunpack.i.l.bf16 %v12645_v35  ;;  %v12808_v5 = vpop.permute.xlu0 %7428 }
 0x2bd   :  { %v12774_v9 = vpop.f32.mrb[105].mxu0  ;;  %14449 = vst [vmem:[#allocation14_spill] sm:$0xff] %v12780_v57  ;;  %v3385_v25 = vrot.slane %v12665_v26, 2  ;;  %v7416_v26 = vunpack.i.h.bf16 %v12688_v52  ;;  %v4894_v0 = vmul.f32 %v12084_v28, %v12084_v28  ;;  %v7425_v28 = vunpack.i.l.bf16 %v12740_v48 }
 0x2be   :  { %v3440_v22 = vsel %vm1765_vm2, %v3438_v29, %v14450_v8  ;;  %v12799_v58 = vsel %vm1461_vm11, %v7405_v37, %v7406_v18  ;;  %v12803_v32 = vsel %vm1461_vm11, %v7391_v31, %v7405_v37  ;;  %v14451_v29 = vrot.slane %v12673_v23, 6 }
 0x2bf   :  { %v3442_v39 = vsel %vm1768_vm3, %v3440_v22, %v3386_v55  ;;  %v12815_v22 = vsel %vm1288_vm12, %v7400_v36, %v7401_v1  ;;  %v12819_v31 = vsel %vm1288_vm12, %v7396_v20, %v7400_v36  ;;  %v14452_v23 = vrot.slane %v12669_v13, 4 }
 0x2c0   :  { %v3437_v8 = vsel %vm1762_vm1, %v1299_v24, %v14451_v29  ;;  %4661 = vmatprep.mubr.f32.mxu0 %v3442_v39  ;;  %v4893_v39 = vmul.f32 %v12027_v45, %v12027_v45  ;;  %v5001_v37 = vmul.f32 %v12034_v46, %v12034_v46  ;;  %v3397_v55 = vrot.slane %v12819_v31, 4 }
 0x2c1   :  { %v3439_v24 = vsel %vm1765_vm2, %v3437_v8, %v14452_v23  ;;  %v12828_v29 = vpop.f32.mrb[106].mxu0  ;;  %v7415_v20 = vunpack.i.l.bf16 %v12688_v52  ;;  %v7411_v45 = vunpack.i.h.bf16 %v12696_v53  ;;  %v7410_v8 = vunpack.i.l.bf16 %v12696_v53  ;;  %v12854_v53 = vpop.permute.xlu1 %7443 }
 0x2c2   :  { %14453 = vst [vmem:[#allocation36_spill] sm:$0xff] %v12828_v29  ;;  %v3441_v35 = vsel %vm1768_vm3, %v3439_v24, %v3385_v25  ;;  %v12834_v36 = vpop.f32.mrb[107].mxu0  ;;  %v12836_v13 = vadd.f32 %v5001_v37, %v4893_v39  ;;  %v3682_v46 = vrot.slane %v12768_v49, 2  ;;  %v14456_v52 = vrot.slane %v12717_v14, 6  ;;  %v5180_v39 = vld [vmem:[#allocation7 + $0x10] sm:$0xff]  ;;  %v5181_v37 = vld [vmem:[#allocation7 + $0x18] sm:$0xff] }
 0x2c3   :  { %14454 = vst [vmem:[#allocation49_spill] sm:$0xff] %v12834_v36  ;;  %4662 = vmatmul.mubr.f32.gmra.mrb[152].mxu0 %v3441_v35  ;;  %v12843_v23 = vsel %vm1288_vm12, %v7415_v20, %v7416_v26  ;;  %v12847_v25 = vsel %vm1288_vm12, %v7401_v1, %v7415_v20  ;;  %v3681_v24 = vrot.slane %v12772_v19, 2  ;;  %v12861_v1 = vsel %vm1461_vm11, %v7410_v8, %v7411_v45  ;;  %v12863_v20 = vpop.permute.xlu0 %7438 }
 0x2c4   :  { %14455 = vst [vmem:[#allocation57_spill] sm:$0xff] %v12836_v13  ;;  %v3714_v35 = vsel %vm1762_vm1, %v12723_v47, %v14456_v52  ;;  %v12867_v52 = vsel %vm1461_vm11, %v7406_v18, %v7410_v8  ;;  %v3713_v13 = vsel %vm1762_vm1, %v12603_v56, %v14457_v54  ;;  %v14458_v36 = vrot.slane %v12717_v14, 4 }
 0x2c5   :  { %v3716_v19 = vsel %vm1765_vm2, %v3714_v35, %v3677_v6  ;;  %v3693_v57 = vrot.slane %v12867_v52, 4  ;;  %v6311_v18 = vpack.c.bf16 %v5181_v37, %v5180_v39  ;;  %v7426_v56 = vunpack.i.h.bf16 %v12740_v48 }
 0x2c6   :  { %v3718_v45 = vsel %vm1768_vm3, %v3716_v19, %v3682_v46  ;;  %v3715_v29 = vsel %vm1765_vm2, %v3713_v13, %v14458_v36  ;;  %v7421_v14 = vunpack.i.h.bf16 %v12748_v30  ;;  %v7420_v6 = vunpack.i.l.bf16 %v12748_v30 }
 0x2c7   :  { %v12881_v8 = vpop.f32.mrb[108].mxu0  ;;  %4745 = vmatprep.mubr.f32.mxu1 %v3718_v45  ;;  %v3717_v47 = vsel %vm1768_vm3, %v3715_v29, %v3681_v24  ;;  %6312 = vmatprep.subr.bf16.mxu1 %v6311_v18  ;;  %v5002_v36 = vmul.f32 %v12093_v15, %v12093_v15  ;;  %v3402_v13 = vrot.slane %v12815_v22, 2  ;;  %v12896_v29 = vsel %vm1515_vm13, %v7425_v28, %v7426_v56  ;;  %v12907_v15 = vpop.permute.xlu1 %7453 }
 0x2c8   :  { %v12887_v54 = vpop.f32.mrb[109].mxu0  ;;  %4746 = vmatmul.mubr.f32.gmra.mrb[18].mxu1 %v3717_v47  ;;  %v14459_v46 = vrot.slane %v12760_v16, 6  ;;  %v3401_v35 = vrot.slane %v12819_v31, 2  ;;  %v14460_v24 = vrot.slane %v12764_v21, 6  ;;  %v12913_v19 = vsel %vm1288_vm12, %v7420_v6, %v7421_v14  ;;  %v12919_v31 = vpop.permute.xlu0 %7448 }
 0x2c9   :  { %6314 = vmatpush3.bf16.msra.mxu1 %v6311_v18  ;;  %v12917_v45 = vsel %vm1288_vm12, %v7416_v26, %v7420_v6  ;;  %v12922_v18 = vadd.f32 %v5002_v36, %v4894_v0  ;;  %v14461_v47 = vrot.slane %v12760_v16, 4  ;;  %v7436_v39 = vunpack.i.h.bf16 %v12794_v42 }
 0x2ca   :  { %v3444_v48 = vsel %vm1762_vm1, %v12764_v21, %v14459_v46  ;;  %v3443_v30 = vsel %vm1762_vm1, %v12707_v38, %v14460_v24  ;;  %v3413_v21 = vrot.slane %v12917_v45, 4  ;;  %v7435_v26 = vunpack.i.l.bf16 %v12794_v42 }
 0x2cb   :  { %v3446_v38 = vsel %vm1765_vm2, %v3444_v48, %v3397_v55  ;;  %v3445_v46 = vsel %vm1765_vm2, %v3443_v30, %v14461_v47  ;;  %v7431_v6 = vunpack.i.h.bf16 %v12808_v5  ;;  %v7430_v0 = vunpack.i.l.bf16 %v12808_v5 }
 0x2cc   :  { %v3448_v24 = vsel %vm1768_vm3, %v3446_v38, %v3402_v13  ;;  %v3447_v37 = vsel %vm1768_vm3, %v3445_v46, %v3401_v35  ;;  %v4895_v55 = vmul.f32 %v12146_v51, %v12146_v51  ;;  %v3698_v16 = vrot.slane %v12861_v1, 2 }
 0x2cd   :  { %4667 = vmatprep.mubr.f32.mxu0 %v3448_v24  ;;  %v12937_v36 = vpop.f32.mrb[110].mxu0  ;;  %v14462_v13 = vrot.slane %v12799_v58, 6  ;;  %v5003_v35 = vmul.f32 %v12154_v50, %v12154_v50  ;;  %v3697_v30 = vrot.slane %v12867_v52, 2  ;;  %v14463_v5 = vrot.slane %v12803_v32, 6 }
 0x2ce   :  { %4668 = vmatmul.mubr.f32.gmra.mrb[154].mxu0 %v3447_v37  ;;  %v12950_v38 = vpop.f32.mrb[111].mxu0  ;;  %v12956_v1 = vsel %vm1515_vm13, %v7431_v6, %v7435_v26  ;;  %v12960_v37 = vsel %vm1515_vm13, %v7426_v56, %v7431_v6  ;;  %v12964_v50 = vsel %vm1515_vm13, %v7430_v0, %v7425_v28  ;;  %v12977_v56 = vpop.permute.xlu0 %7458  ;;  %v14465_v28 = vrot.slane %v12799_v58, 4 }
 0x2cf   :  { %v3720_v48 = vsel %vm1762_vm1, %v12803_v32, %v14462_v13  ;;  %v3719_v51 = vsel %vm1762_vm1, %v12768_v49, %v14463_v5  ;;  %v12968_v32 = vsel %vm1515_vm13, %v7436_v39, %v7430_v0  ;;  %v12970_v49 = vpop.permute.xlu1 %7463  ;;  %v3733_v52 = vrot.slane %v12960_v37, 4 }
 0x2d0   :  { %v3722_v46 = vsel %vm1765_vm2, %v3720_v48, %v3693_v57  ;;  %v12975_v24 = vadd.f32 %v5003_v35, %v4895_v55  ;;  %v3721_v13 = vsel %vm1765_vm2, %v3719_v51, %v14465_v28  ;;  %v7446_v39 = vunpack.i.h.bf16 %v12854_v53 }
 0x2d1   :  { %v3724_v6 = vsel %vm1768_vm3, %v3722_v46, %v3698_v16  ;;  %v7445_v0 = vunpack.i.l.bf16 %v12854_v53  ;;  %v3723_v5 = vsel %vm1768_vm3, %v3721_v13, %v3697_v30  ;;  %v7441_v47 = vunpack.i.h.bf16 %v12863_v20 }
 0x2d2   :  { %14464 = vst [vmem:[#allocation58_spill] sm:$0xff] %v12975_v24  ;;  %4751 = vmatprep.mubr.f32.mxu1 %v3724_v6  ;;  %v7440_v57 = vunpack.i.l.bf16 %v12863_v20  ;;  %v4896_v55 = vmul.f32 %v12190_v11, %v12190_v11  ;;  %v3418_v16 = vrot.slane %v12913_v19, 2  ;;  %v14466_v48 = vrot.slane %v12843_v23, 6 }
 0x2d3   :  { %4752 = vmatmul.mubr.f32.gmra.mrb[20].mxu1 %v3723_v5  ;;  %v12992_v58 = vsel %vm1288_vm12, %v7445_v0, %v7446_v39  ;;  %v5004_v35 = vmul.f32 %v12198_v59, %v12198_v59  ;;  %v13003_v20 = vsel %vm1288_vm12, %v7441_v47, %v7445_v0  ;;  %v13018_v13 = vpop.permute.xlu1 %7473  ;;  %v14469_v6 = vrot.slane %v12843_v23, 4 }
 0x2d4   :  { %v3450_v53 = vsel %vm1762_vm1, %v12847_v25, %v14466_v48  ;;  %v13007_v11 = vsel %vm1288_vm12, %v7440_v57, %v7441_v47  ;;  %v13011_v30 = vsel %vm1288_vm12, %v7421_v14, %v7440_v57  ;;  %v3429_v46 = vrot.slane %v13003_v20, 4  ;;  %v5182_v57 = vld [vmem:[#allocation7 + $0x20] sm:$0xff]  ;;  %v5183_v48 = vld [vmem:[#allocation7 + $0x28] sm:$0xff] }
 0x2d5   :  { %v3452_v51 = vsel %vm1765_vm2, %v3450_v53, %v3413_v21  ;;  %v3424_v59 = vrot.slane %v13007_v11, 6  ;;  %v13023_v0 = vadd.f32 %v5004_v35, %v4896_v55  ;;  %v3417_v14 = vrot.slane %v12917_v45, 2  ;;  %v13030_v53 = vpop.permute.xlu0 %7468 }
 0x2d6   :  { %v3454_v47 = vsel %vm1768_vm3, %v3452_v51, %v3418_v16  ;;  %v14468_v21 = vrot.slane %v12847_v25, 6  ;;  %v14131_v55 = vunpack.i.h.bf16 %v12907_v15  ;;  %v7455_v45 = vunpack.i.l.bf16 %v12907_v15 }
 0x2d7   :  { %14467 = vst [vmem:[#allocation59_spill] sm:$0xff] %v13023_v0  ;;  %4673 = vmatprep.mubr.f32.mxu0 %v3454_v47  ;;  %v7451_v25 = vunpack.i.h.bf16 %v12919_v31  ;;  %v4897_v51 = vmul.f32 %v12247_v2, %v12247_v2  ;;  %v14470_v47 = vrot.slane %v12896_v29, 6  ;;  %v5005_v42 = vmul.f32 %v12254_v43, %v12254_v43 }
 0x2d8   :  { %v3449_v5 = vsel %vm1762_vm1, %v12815_v22, %v14468_v21  ;;  %v7450_v22 = vunpack.i.l.bf16 %v12919_v31  ;;  %v3738_v21 = vrot.slane %v12956_v1, 2  ;;  %v13049_v23 = vsel %vm1515_vm13, %v7455_v45, %v14131_v55 }
 0x2d9   :  { %v3451_v16 = vsel %vm1765_vm2, %v3449_v5, %v14469_v6  ;;  %v13053_v6 = vsel %vm1515_vm13, %v7451_v25, %v7455_v45  ;;  %v3790_v31 = vsel %vm1762_vm1, %v12964_v50, %v14470_v47  ;;  %v13075_v47 = vpop.permute.xlu1 %7483  ;;  %v7465_v43 = vunpack.i.l.bf16 %v12970_v49 }
 0x2da   :  { %v3453_v35 = vsel %vm1768_vm3, %v3451_v16, %v3417_v14  ;;  %v6315_v14 = vpack.c.bf16 %v5183_v48, %v5182_v57  ;;  %v13062_v5 = vsel %vm1515_vm13, %v7450_v22, %v7451_v25  ;;  %v13068_v16 = vsel %vm1515_vm13, %v7435_v26, %v7450_v22 }
 0x2db   :  { %4674 = vmatmul.mubr.f32.gmra.mrb[156].mxu0 %v3453_v35  ;;  %v3792_v45 = vsel %vm1765_vm2, %v3790_v31, %v3733_v52  ;;  %v3744_v55 = vrot.slane %v13062_v5, 6  ;;  %v3737_v26 = vrot.slane %v12960_v37, 2  ;;  %v14471_v52 = vrot.slane %v12964_v50, 6 }
 0x2dc   :  { %v13020_v39 = vpop.f32.mrb[112].mxu0  ;;  %v3794_v48 = vsel %vm1768_vm3, %v3792_v45, %v3738_v21  ;;  %6316 = vmatprep.subr.bf16.mxu1 %v6315_v14  ;;  %v7466_v31 = vunpack.i.h.bf16 %v12970_v49  ;;  %v13087_v21 = vpop.permute.xlu0 %7478  ;;  %v14472_v57 = vrot.slane %v12896_v29, 4  ;;  %v7461_v37 = vunpack.i.h.bf16 %v12977_v56  ;;  %v14474_v49 = vld [vmem:[#allocation39_spill] sm:$0xff] }
 0x2dd   :  { %v13032_v28 = vpop.f32.mrb[113].mxu0  ;;  %4757 = vmatprep.mubr.f32.mxu1 %v3794_v48  ;;  %v3789_v22 = vsel %vm1762_vm1, %v12968_v32, %v14471_v52  ;;  %6318 = vmatpush3.bf16.msra.mxu1 %v6315_v14  ;;  %v7460_v50 = vunpack.i.l.bf16 %v12977_v56  ;;  %v13097_v35 = vadd.f32 %v5005_v42, %v4897_v51  ;;  %v4898_v14 = vmul.f32 %v12290_v40, %v12290_v40 }
 0x2de   :  { %v3791_v48 = vsel %vm1765_vm2, %v3789_v22, %v14472_v57  ;;  %v5006_v52 = vmul.f32 %v12301_v17, %v12301_v17  ;;  %v13106_v29 = vsel %vm1342_vm7, %v7466_v31, %v7465_v43  ;;  %v14475_v57 = vunpack.i.h.bf16 %v14474_v49 }
 0x2df   :  { %14473 = vst [vmem:[#allocation60_spill] sm:$0xff] %v13097_v35  ;;  %v3793_v32 = vsel %vm1768_vm3, %v3791_v48, %v3737_v26  ;;  %v13116_v51 = vsel %vm1342_vm7, %v7460_v50, %v7461_v37  ;;  %v13120_v40 = vsel %vm1342_vm7, %v7465_v43, %v7460_v50  ;;  %v3434_v48 = vrot.slane %v12992_v58, 2  ;;  %v13134_v50 = vpop.permute.xlu1 %7493 }
 0x2e0   :  { %4758 = vmatmul.mubr.f32.gmra.mrb[22].mxu1 %v3793_v32  ;;  %v13112_v56 = vsel %vm1342_vm7, %v7461_v37, %v14475_v57  ;;  %v3464_v26 = vrot.slane %v13116_v51, 6  ;;  %v13126_v31 = vadd.f32 %v5006_v52, %v4898_v14  ;;  %v3456_v37 = vsel %vm1762_vm1, %v13011_v30, %v3424_v59  ;;  %v13147_v59 = vpop.permute.xlu0 %7488 }
 0x2e1   :  { %v3469_v17 = vrot.slane %v13112_v56, 4  ;;  %v3433_v43 = vrot.slane %v13003_v20, 2  ;;  %v3458_v49 = vsel %vm1765_vm2, %v3456_v37, %v3429_v46  ;;  %v14477_v14 = vrot.slane %v13011_v30, 6 }
 0x2e2   :  { %v13077_v25 = vpop.f32.mrb[114].mxu0  ;;  %14476 = vst [vmem:[#allocation39_spill] sm:$0xff] %v13126_v31  ;;  %v7476_v52 = vunpack.i.h.bf16 %v13018_v13  ;;  %v7475_v57 = vunpack.i.l.bf16 %v13018_v13  ;;  %v3460_v42 = vsel %vm1768_vm3, %v3458_v49, %v3434_v48  ;;  %v14478_v2 = vrot.slane %v13007_v11, 4 }
 0x2e3   :  { %v13089_v45 = vpop.f32.mrb[115].mxu0  ;;  %v3455_v58 = vsel %vm1762_vm1, %v12913_v19, %v14477_v14  ;;  %v7471_v46 = vunpack.i.h.bf16 %v13030_v53  ;;  %v7470_v30 = vunpack.i.l.bf16 %v13030_v53  ;;  %4679 = vmatprep.mubr.f32.mxu0 %v3460_v42  ;;  %v4899_v37 = vmul.f32 %v12359_v60, %v12359_v60 }
 0x2e4   :  { %v3457_v20 = vsel %vm1765_vm2, %v3455_v58, %v14478_v2  ;;  %v13160_v13 = vsel %vm1515_vm13, %v7475_v57, %v7476_v52  ;;  %v3754_v48 = vrot.slane %v13049_v23, 2  ;;  %v14479_v2 = vunpack.i.h.bf16 %v12907_v15 }
 0x2e5   :  { %v3459_v19 = vsel %vm1768_vm3, %v3457_v20, %v3433_v43  ;;  %v13167_v11 = vsel %vm1515_vm13, %v7471_v46, %v7475_v57  ;;  %v13171_v53 = vsel %vm1515_vm13, %v7470_v30, %v7471_v46  ;;  %v3796_v60 = vsel %vm1762_vm1, %v13068_v16, %v3744_v55 }
 0x2e6   :  { %4680 = vmatmul.mubr.f32.gmra.mrb[158].mxu0 %v3459_v19  ;;  %v13177_v42 = vsel %vm1515_vm13, %v14479_v2, %v7470_v30  ;;  %v3765_v43 = vrot.slane %v13167_v11, 4  ;;  %v3760_v14 = vrot.slane %v13171_v53, 6  ;;  %v14480_v57 = vrot.slane %v13053_v6, 4  ;;  %v13195_v19 = vpop.permute.xlu1 %7503 }
 0x2e7   :  { %v5007_v15 = vmul.f32 %v12366_v62, %v12366_v62  ;;  %v3753_v46 = vrot.slane %v13053_v6, 2  ;;  %v14481_v30 = vrot.slane %v13068_v16, 6  ;;  %v14482_v58 = vrot.slane %v13062_v5, 4  ;;  %v13203_v62 = vpop.permute.xlu0 %7498 }
 0x2e8   :  { %v13136_v32 = vpop.f32.mrb[116].mxu0  ;;  %v3798_v20 = vsel %vm1765_vm2, %v3796_v60, %v14480_v57  ;;  %v7486_v60 = vunpack.i.h.bf16 %v13075_v47  ;;  %v7485_v57 = vunpack.i.l.bf16 %v13075_v47  ;;  %v4900_v47 = vmul.f32 %v12414_v10, %v12414_v10  ;;  %v5184_v10 = vld [vmem:[#allocation7 + $0x30] sm:$0xff] }
 0x2e9   :  { %v13149_v22 = vpop.f32.mrb[117].mxu0  ;;  %v3795_v55 = vsel %vm1762_vm1, %v12956_v1, %v14481_v30  ;;  %v3800_v2 = vsel %vm1768_vm3, %v3798_v20, %v3754_v48  ;;  %v13207_v16 = vadd.f32 %v5007_v15, %v4899_v37  ;;  %v7481_v30 = vunpack.i.h.bf16 %v13087_v21  ;;  %v14484_v20 = vld [vmem:[#allocation20_spill] sm:$0xff] }
 0x2ea   :  { %v3797_v49 = vsel %vm1765_vm2, %v3795_v55, %v14482_v58  ;;  %4763 = vmatprep.mubr.f32.mxu1 %v3800_v2  ;;  %v7480_v48 = vunpack.i.l.bf16 %v13087_v21  ;;  %v13216_v58 = vsel %vm1515_vm13, %v7485_v57, %v7486_v60  ;;  %v3474_v55 = vrot.slane %v14484_v20, 2  ;;  %v5185_v2 = vld [vmem:[#allocation7 + $0x38] sm:$0xff] }
 0x2eb   :  { %14483 = vst [vmem:[#allocation61_spill] sm:$0xff] %v13207_v16  ;;  %v3799_v1 = vsel %vm1768_vm3, %v3797_v49, %v3753_v46  ;;  %v3526_v37 = vsel %vm1762_vm1, %v13120_v40, %v3464_v26  ;;  %v13225_v49 = vsel %vm1515_vm13, %v7481_v30, %v7485_v57  ;;  %v14486_v26 = vrot.slane %v13116_v51, 4 }
 0x2ec   :  { %4764 = vmatmul.mubr.f32.gmra.mrb[24].mxu1 %v3799_v1  ;;  %v13229_v21 = vsel %vm1515_vm13, %v7480_v48, %v7481_v30  ;;  %v13233_v15 = vsel %vm1515_vm13, %v7476_v52, %v7480_v48  ;;  %v3528_v46 = vsel %vm1765_vm2, %v3526_v37, %v3469_v17  ;;  %v3781_v60 = vrot.slane %v13225_v49, 4  ;;  %v13248_v37 = vpop.permute.xlu1 %7513 }
 0x2ed   :  { %v3776_v1 = vrot.slane %v13229_v21, 6  ;;  %v3530_v20 = vsel %vm1768_vm3, %v3528_v46, %v3474_v55  ;;  %v5008_v30 = vmul.f32 %v12423_v12, %v12423_v12  ;;  %v3473_v52 = vrot.slane %v13112_v56, 2  ;;  %v13255_v12 = vpop.permute.xlu0 %7508 }
 0x2ee   :  { %v14485_v48 = vrot.slane %v13120_v40, 6  ;;  %4685 = vmatprep.mubr.f32.mxu0 %v3530_v20  ;;  %v6319_v57 = vpack.c.bf16 %v5185_v2, %v5184_v10  ;;  %v7496_v55 = vunpack.i.h.bf16 %v13134_v50  ;;  %v7495_v46 = vunpack.i.l.bf16 %v13134_v50  ;;  %v14488_v2 = vld [vmem:[#allocation32_spill] sm:$0xff] }
 0x2ef   :  { %v13205_v6 = vpop.f32.mrb[118].mxu0  ;;  %v13259_v40 = vadd.f32 %v5008_v30, %v4900_v47  ;;  %v7491_v20 = vunpack.i.h.bf16 %v13147_v59  ;;  %v7490_v10 = vunpack.i.l.bf16 %v13147_v59  ;;  %v4901_v50 = vmul.f32 %v14488_v2, %v14488_v2 }
 0x2f0   :  { %v13212_v5 = vpop.f32.mrb[119].mxu0  ;;  %v3525_v17 = vsel %vm1762_vm1, %v13106_v29, %v14485_v48  ;;  %6320 = vmatprep.subr.bf16.mxu1 %v6319_v57  ;;  %v3802_v47 = vsel %vm1762_vm1, %v13177_v42, %v3760_v14  ;;  %v3769_v59 = vrot.slane %v13167_v11, 2  ;;  %v13295_v2 = vpop.permute.xlu1 %7523 }
 0x2f1   :  { %v3527_v16 = vsel %vm1765_vm2, %v3525_v17, %v14486_v26  ;;  %14487 = vst [vmem:[#allocation20_spill] sm:$0xff] %v13259_v40  ;;  %v3770_v26 = vrot.slane %v13160_v13, 2  ;;  %6322 = vmatpush3.bf16.msra.mxu1 %v6319_v57  ;;  %v3804_v30 = vsel %vm1765_vm2, %v3802_v47, %v3765_v43  ;;  %v13283_v17 = vsel %vm1572_vm14, %v7490_v10, %v7491_v20 }
 0x2f2   :  { %v3529_v29 = vsel %vm1768_vm3, %v3527_v16, %v3473_v52  ;;  %v13274_v16 = vsel %vm1572_vm14, %v7491_v20, %v7496_v55  ;;  %v5009_v52 = vmul.f32 %v12473_v27, %v12473_v27  ;;  %v13287_v14 = vsel %vm1572_vm14, %v7495_v46, %v7490_v10 }
 0x2f3   :  { %4686 = vmatmul.mubr.f32.gmra.mrb[160].mxu0 %v3529_v29  ;;  %v3821_v48 = vrot.slane %v13274_v16, 4  ;;  %v3806_v57 = vsel %vm1768_vm3, %v3804_v30, %v3770_v26  ;;  %v3816_v43 = vrot.slane %v13283_v17, 6  ;;  %v14490_v20 = vrot.slane %v13177_v42, 6  ;;  %v13304_v29 = vpop.permute.xlu0 %7518 }
 0x2f4   :  { %4769 = vmatprep.mubr.f32.mxu1 %v3806_v57  ;;  %v13293_v11 = vadd.f32 %v5009_v52, %v4901_v50  ;;  %v7506_v10 = vunpack.i.h.bf16 %v13195_v19  ;;  %v7505_v26 = vunpack.i.l.bf16 %v13195_v19  ;;  %v7501_v30 = vunpack.i.h.bf16 %v13203_v62 }
 0x2f5   :  { %v13257_v56 = vpop.f32.mrb[120].mxu0  ;;  %v3801_v47 = vsel %vm1762_vm1, %v13049_v23, %v14490_v20  ;;  %v14491_v50 = vrot.slane %v13171_v53, 4  ;;  %v7500_v57 = vunpack.i.l.bf16 %v13203_v62  ;;  %v3786_v42 = vrot.slane %v13216_v58, 2 }
 0x2f6   :  { %v13264_v51 = vpop.f32.mrb[121].mxu0  ;;  %14489 = vst [vmem:[#allocation32_spill] sm:$0xff] %v13293_v11  ;;  %v3808_v23 = vsel %vm1762_vm1, %v13233_v15, %v3776_v1  ;;  %v13320_v27 = vsel %vm1572_vm14, %v7505_v26, %v7506_v10  ;;  %v1587_v53 = vsel %vm1572_vm14, %v7501_v30, %v7495_v46  ;;  %v3785_v46 = vrot.slane %v13225_v49, 2  ;;  %v13349_v49 = vpop.permute.xlu1 %7533 }
 0x2f7   :  { %v3803_v52 = vsel %vm1765_vm2, %v3801_v47, %v14491_v50  ;;  %v3810_v47 = vsel %vm1765_vm2, %v3808_v23, %v3781_v60  ;;  %v13329_v1 = vsel %vm1572_vm14, %v7500_v57, %v7505_v26  ;;  %v14492_v60 = vrot.slane %v13233_v15, 6  ;;  %v5186_v23 = vld [vmem:[#allocation7 + $0x40] sm:$0xff] }
 0x2f8   :  { %v3805_v19 = vsel %vm1768_vm3, %v3803_v52, %v3769_v59  ;;  %v13333_v59 = vsel %vm1572_vm14, %v7496_v55, %v7500_v57  ;;  %v3812_v52 = vsel %vm1768_vm3, %v3810_v47, %v3786_v42  ;;  %v14493_v26 = vrot.slane %v13229_v21, 4 }
 0x2f9   :  { %4770 = vmatmul.mubr.f32.gmra.mrb[26].mxu1 %v3805_v19  ;;  %v3807_v30 = vsel %vm1762_vm1, %v13160_v13, %v14492_v60  ;;  %v5187_v19 = vld [vmem:[#allocation7 + $0x48] sm:$0xff]  ;;  %v4902_v55 = vmul.f32 %v12533_v33, %v12533_v33  ;;  %v7516_v57 = vunpack.i.h.bf16 %v13248_v37  ;;  %v7515_v42 = vunpack.i.l.bf16 %v13248_v37  ;;  %v7529_v60 = vpop.permute.xlu0 %7528 }
 0x2fa   :  { %4775 = vmatprep.mubr.f32.mxu1 %v3812_v52  ;;  %v3809_v58 = vsel %vm1765_vm2, %v3807_v30, %v14493_v26  ;;  %v7511_v13 = vunpack.i.h.bf16 %v13255_v12  ;;  %v7510_v47 = vunpack.i.l.bf16 %v13255_v12  ;;  %v14494_v52 = vld [vmem:[#allocation33_spill] sm:$0xff]  ;;  %v3826_v30 = vrot.slane %v13333_v59, 2 }
 0x2fb   :  { %v3811_v15 = vsel %vm1768_vm3, %v3809_v58, %v3785_v46  ;;  %v5010_v21 = vmul.f32 %v14494_v52, %v14494_v52  ;;  %v13358_v33 = vsel %vm1572_vm14, %v7515_v42, %v7516_v57  ;;  %v3878_v37 = vsel %vm1762_vm1, %v13287_v14, %v3816_v43 }
 0x2fc   :  { %v13306_v40 = vpop.f32.mrb[122].mxu0  ;;  %v6323_v26 = vpack.c.bf16 %v5187_v19, %v5186_v23  ;;  %v13369_v52 = vsel %vm1572_vm14, %v7511_v13, %v7515_v42  ;;  %v1580_v43 = vsel %vm1572_vm14, %v7506_v10, %v7510_v47  ;;  %v3880_v19 = vsel %vm1765_vm2, %v3878_v37, %v3821_v48  ;;  %v13391_v48 = vpop.permute.xlu1 %7543 }
 0x2fd   :  { %v13315_v20 = vpop.f32.mrb[123].mxu0  ;;  %4776 = vmatmul.mubr.f32.gmra.mrb[28].mxu1 %v3811_v15  ;;  %v13373_v15 = vsel %vm1572_vm14, %v7510_v47, %v7511_v13  ;;  %v13380_v23 = vadd.f32 %v5010_v21, %v4902_v55  ;;  %v3837_v12 = vrot.slane %v1580_v43, 4  ;;  %v3882_v42 = vsel %vm1768_vm3, %v3880_v19, %v3826_v30 }
 0x2fe   :  { %6324 = vmatprep.subr.bf16.mxu1 %v6323_v26  ;;  %v7526_v46 = vunpack.i.h.bf16 %v13295_v2  ;;  %v7525_v13 = vunpack.i.l.bf16 %v13295_v2  ;;  %4781 = vmatprep.mubr.f32.mxu1 %v3882_v42  ;;  %v7521_v11 = vunpack.i.h.bf16 %v13304_v29  ;;  %v7520_v62 = vunpack.i.l.bf16 %v13304_v29  ;;  %v7539_v29 = vpop.permute.xlu0 %7538 }
 0x2ff   :  { %14495 = vst [vmem:[#allocation33_spill] sm:$0xff] %v13380_v23  ;;  %6326 = vmatpush3.bf16.msra.mxu1 %v6323_v26  ;;  %v4903_v10 = vmul.f32 %v12590_v41, %v12590_v41  ;;  %v3825_v55 = vrot.slane %v13274_v16, 2  ;;  %v14496_v21 = vrot.slane %v13287_v14, 6  ;;  %v5011_v30 = vmul.f32 %v12597_v63, %v12597_v63 }
 0x300   :  { %v13395_v47 = vsel %vm1572_vm14, %v7525_v13, %v7526_v46  ;;  %v13407_v37 = vsel %vm1572_vm14, %v7521_v11, %v7525_v13  ;;  %v13411_v26 = vsel %vm1572_vm14, %v7520_v62, %v7521_v11  ;;  %v13418_v63 = vsel %vm1572_vm14, %v7516_v57, %v7520_v62 }
 0x301   :  { %v3877_v2 = vsel %vm1762_vm1, %v1587_v53, %v14496_v21  ;;  %v14497_v19 = vrot.slane %v13283_v17, 4  ;;  %v13423_v21 = vadd.f32 %v5011_v30, %v4903_v10  ;;  %v3853_v16 = vrot.slane %v13418_v63, 4 }
 0x302   :  { %v13363_v58 = vpop.f32.mrb[124].mxu0  ;;  %v7536_v41 = vunpack.i.h.bf16 %v13349_v49  ;;  %v7535_v53 = vunpack.i.l.bf16 %v13349_v49  ;;  %v7531_v23 = vunpack.i.h.bf16 %v7529_v60  ;;  %v7530_v62 = vunpack.i.l.bf16 %v7529_v60 }
 0x303   :  { %v13375_v50 = vpop.f32.mrb[125].mxu0  ;;  %v3879_v42 = vsel %vm1765_vm2, %v3877_v2, %v14497_v19  ;;  %14498 = vst [vmem:[#allocation62_spill] sm:$0xff] %v13423_v21  ;;  %v4904_v17 = vmul.f32 %v12652_v44, %v12652_v44  ;;  %v3842_v57 = vrot.slane %v13373_v15, 2  ;;  %v14499_v2 = vrot.slane %v13320_v27, 6  ;;  %v13444_v19 = vpop.permute.xlu1 %7553 }
 0x304   :  { %v3881_v11 = vsel %vm1768_vm3, %v3879_v42, %v3825_v55  ;;  %v13436_v10 = vsel %vm1626_vm15, %v7535_v53, %v7536_v41  ;;  %v5012_v49 = vmul.f32 %v12661_v3, %v12661_v3  ;;  %v3841_v30 = vrot.slane %v1580_v43, 2  ;;  %v7549_v21 = vpop.permute.xlu0 %7548 }
 0x305   :  { %4782 = vmatmul.mubr.f32.gmra.mrb[30].mxu1 %v3881_v11  ;;  %v3884_v55 = vsel %vm1762_vm1, %v13329_v1, %v14499_v2  ;;  %v1588_v42 = vsel %vm1572_vm14, %v7530_v62, %v7531_v23  ;;  %v13452_v11 = vsel %vm1572_vm14, %v7526_v46, %v7530_v62  ;;  %v14501_v43 = vrot.slane %v13329_v1, 6 }
 0x306   :  { %v3869_v2 = vrot.slane %v13452_v11, 4  ;;  %v3886_v31 = vsel %vm1765_vm2, %v3884_v55, %v3837_v12  ;;  %v13456_v3 = vadd.f32 %v5012_v49, %v4904_v17  ;;  %v14502_v23 = vrot.slane %v13320_v27, 4 }
 0x307   :  { %v3883_v60 = vsel %vm1762_vm1, %v13333_v59, %v14501_v43  ;;  %v3888_v44 = vsel %vm1768_vm3, %v3886_v31, %v3842_v57  ;;  %v7546_v46 = vunpack.i.h.bf16 %v13391_v48  ;;  %v7545_v62 = vunpack.i.l.bf16 %v13391_v48 }
 0x308   :  { %v13413_v14 = vpop.f32.mrb[126].mxu0  ;;  %14500 = vst [vmem:[#allocation63_spill] sm:$0xff] %v13456_v3  ;;  %v3885_v35 = vsel %vm1765_vm2, %v3883_v60, %v14502_v23  ;;  %4787 = vmatprep.mubr.f32.mxu1 %v3888_v44  ;;  %v7541_v17 = vunpack.i.h.bf16 %v7539_v29  ;;  %v7540_v55 = vunpack.i.l.bf16 %v7539_v29  ;;  %v4905_v1 = vmul.f32 %v12703_v7, %v12703_v7  ;;  %v7559_v43 = vpop.permute.xlu0 %7558 }
 0x309   :  { %v13425_v13 = vpop.f32.mrb[127].mxu0  ;;  %v3887_v12 = vsel %vm1768_vm3, %v3885_v35, %v3841_v30  ;;  %v3858_v59 = vrot.slane %v13411_v26, 2  ;;  %v14503_v31 = vrot.slane %v13358_v33, 6  ;;  %v5013_v57 = vmul.f32 %v12713_v4, %v12713_v4  ;;  %v13495_v30 = vpop.permute.xlu1 %7563 }
 0x30a   :  { %4788 = vmatmul.mubr.f32.gmra.mrb[32].mxu1 %v3887_v12  ;;  %v3857_v48 = vrot.slane %v13418_v63, 2  ;;  %v13481_v35 = vsel %vm1626_vm15, %v7541_v17, %v7545_v62  ;;  %v13485_v7 = vsel %vm1626_vm15, %v7536_v41, %v7541_v17  ;;  %v13489_v29 = vsel %vm1626_vm15, %v7540_v55, %v7535_v53 }
 0x30b   :  { %v3890_v27 = vsel %vm1762_vm1, %v13369_v52, %v14503_v31  ;;  %v13493_v49 = vsel %vm1626_vm15, %v7546_v46, %v7540_v55  ;;  %v3909_v63 = vrot.slane %v13485_v7, 4  ;;  %v13502_v41 = vadd.f32 %v5013_v57, %v4905_v1 }
 0x30c   :  { %v3892_v44 = vsel %vm1765_vm2, %v3890_v27, %v3853_v16  ;;  %v14505_v46 = vrot.slane %v13369_v52, 6  ;;  %v7556_v17 = vunpack.i.h.bf16 %v13444_v19  ;;  %v7555_v55 = vunpack.i.l.bf16 %v13444_v19 }
 0x30d   :  { %14504 = vst [vmem:[#allocation64_spill] sm:$0xff] %v13502_v41  ;;  %v3894_v53 = vsel %vm1768_vm3, %v3892_v44, %v3858_v59  ;;  %v14506_v31 = vrot.slane %v13358_v33, 4  ;;  %v7551_v1 = vunpack.i.h.bf16 %v7549_v21  ;;  %v7550_v27 = vunpack.i.l.bf16 %v7549_v21 }
 0x30e   :  { %v3889_v12 = vsel %vm1762_vm1, %v13373_v15, %v14505_v46  ;;  %4793 = vmatprep.mubr.f32.mxu1 %v3894_v53  ;;  %v4906_v57 = vmul.f32 %v12756_v61, %v12756_v61  ;;  %v13521_v52 = vsel %vm1626_vm15, %v7555_v55, %v7556_v17  ;;  %v3874_v15 = vrot.slane %v1588_v42, 2  ;;  %v5189_v53 = vld [vmem:[#allocation7 + $0x58] sm:$0xff] }
 0x30f   :  { %v13497_v4 = vpop.f32.mrb[128].mxu0  ;;  %v3891_v16 = vsel %vm1765_vm2, %v3889_v12, %v14506_v31  ;;  %v14507_v44 = vrot.slane %v13395_v47, 6  ;;  %v13529_v33 = vsel %vm1626_vm15, %v7551_v1, %v7555_v55  ;;  %v13533_v61 = vsel %vm1626_vm15, %v7550_v27, %v7551_v1 }
 0x310   :  { %v13504_v23 = vpop.f32.mrb[129].mxu0  ;;  %v3893_v59 = vsel %vm1768_vm3, %v3891_v16, %v3857_v48  ;;  %v13537_v21 = vsel %vm1626_vm15, %v7545_v62, %v7550_v27  ;;  %v5188_v48 = vld [vmem:[#allocation7 + $0x50] sm:$0xff]  ;;  %v3925_v46 = vrot.slane %v13529_v33, 4  ;;  %v3920_v31 = vrot.slane %v13533_v61, 6  ;;  %v7574_v16 = vpop.permute.xlu1 %7573 }
 0x311   :  { %v3896_v19 = vsel %vm1762_vm1, %v13407_v37, %v14507_v44  ;;  %4794 = vmatmul.mubr.f32.gmra.mrb[34].mxu1 %v3893_v59  ;;  %v5014_v59 = vmul.f32 %v12774_v9, %v12774_v9  ;;  %v3873_v62 = vrot.slane %v13452_v11, 2  ;;  %v7569_v44 = vpop.permute.xlu0 %7568  ;;  %v14509_v12 = vrot.slane %v13395_v47, 4 }
 0x312   :  { %v3898_v42 = vsel %vm1765_vm2, %v3896_v19, %v3869_v2  ;;  %v14508_v2 = vrot.slane %v13407_v37, 6  ;;  %v6327_v60 = vpack.c.bf16 %v5189_v53, %v5188_v48  ;;  %v7565_v9 = vunpack.i.l.bf16 %v13495_v30 }
 0x313   :  { %v3900_v1 = vsel %vm1768_vm3, %v3898_v42, %v3874_v15  ;;  %v7566_v15 = vunpack.i.h.bf16 %v13495_v30  ;;  %v13561_v11 = vadd.f32 %v5014_v59, %v4906_v57  ;;  %v3914_v48 = vrot.slane %v13481_v35, 2 }
 0x314   :  { %v3895_v27 = vsel %vm1762_vm1, %v13411_v26, %v14508_v2  ;;  %4799 = vmatprep.mubr.f32.mxu1 %v3900_v1  ;;  %v7561_v26 = vunpack.i.h.bf16 %v7559_v43  ;;  %v7560_v2 = vunpack.i.l.bf16 %v7559_v43  ;;  %6328 = vmatprep.subr.bf16.mxu1 %v6327_v60  ;;  %v14511_v53 = vrot.slane %v13436_v10, 6 }
 0x315   :  { %v3897_v55 = vsel %vm1765_vm2, %v3895_v27, %v14509_v12  ;;  %14510 = vst [vmem:[#allocation65_spill] sm:$0xff] %v13561_v11  ;;  %v13566_v47 = vsel %vm1626_vm15, %v7565_v9, %v7566_v15  ;;  %v14512_v12 = vld [vmem:[#allocation36_spill] sm:$0xff]  ;;  %6330 = vmatpush3.bf16.msra.mxu1 %v6327_v60  ;;  %v7579_v11 = vpop.permute.xlu0 %7578  ;;  %v7576_v3 = vunpack.i.h.bf16 %v7574_v16  ;;  %v7575_v0 = vunpack.i.l.bf16 %v7574_v16 }
 0x316   :  { %v13552_v19 = vpop.f32.mrb[130].mxu0  ;;  %v3899_v37 = vsel %vm1768_vm3, %v3897_v55, %v3873_v62  ;;  %v3966_v30 = vsel %vm1762_vm1, %v13489_v29, %v14511_v53  ;;  %v4907_v57 = vmul.f32 %v14512_v12, %v14512_v12  ;;  %v13577_v43 = vsel %vm1626_vm15, %v7561_v26, %v7565_v9  ;;  %v13594_v53 = vpop.permute.xlu1 %7583 }
 0x317   :  { %v13559_v42 = vpop.f32.mrb[131].mxu0  ;;  %4800 = vmatmul.mubr.f32.gmra.mrb[36].mxu1 %v3899_v37  ;;  %v13581_v55 = vsel %vm1626_vm15, %v7560_v2, %v7561_v26  ;;  %v13585_v1 = vsel %vm1626_vm15, %v7556_v17, %v7560_v2  ;;  %v3968_v59 = vsel %vm1765_vm2, %v3966_v30, %v3909_v63  ;;  %v3941_v27 = vrot.slane %v13577_v43, 4  ;;  %v14514_v30 = vld [vmem:[#allocation49_spill] sm:$0xff] }
 0x318   :  { %v3936_v37 = vrot.slane %v13581_v55, 6  ;;  %v3970_v12 = vsel %vm1768_vm3, %v3968_v59, %v3914_v48  ;;  %v3913_v17 = vrot.slane %v13485_v7, 2  ;;  %v14513_v63 = vrot.slane %v13489_v29, 6 }
 0x319   :  { %v5015_v60 = vmul.f32 %v14514_v30, %v14514_v30  ;;  %4805 = vmatprep.mubr.f32.mxu1 %v3970_v12  ;;  %v14515_v9 = vrot.slane %v13436_v10, 4  ;;  %v7571_v24 = vunpack.i.h.bf16 %v7569_v44  ;;  %v7570_v29 = vunpack.i.l.bf16 %v7569_v44  ;;  %v7589_v30 = vpop.permute.xlu0 %7588 }
 0x31a   :  { %v3965_v2 = vsel %vm1762_vm1, %v13493_v49, %v14513_v63  ;;  %v4908_v49 = vmul.f32 %v12881_v8, %v12881_v8  ;;  %v13616_v59 = vsel %vm1626_vm15, %v7575_v0, %v7576_v3  ;;  %v3930_v16 = vrot.slane %v13521_v52, 2  ;;  %v13639_v12 = vpop.permute.xlu1 %7593 }
 0x31b   :  { %v13588_v62 = vpop.f32.mrb[132].mxu0  ;;  %v3967_v41 = vsel %vm1765_vm2, %v3965_v2, %v14515_v9  ;;  %v13610_v7 = vadd.f32 %v5015_v60, %v4907_v57  ;;  %v13620_v10 = vsel %vm1626_vm15, %v7571_v24, %v7575_v0  ;;  %v13628_v44 = vsel %vm1626_vm15, %v7570_v29, %v7571_v24 }
 0x31c   :  { %v13596_v26 = vpop.f32.mrb[133].mxu0  ;;  %v3969_v48 = vsel %vm1768_vm3, %v3967_v41, %v3913_v17  ;;  %v3972_v41 = vsel %vm1762_vm1, %v13537_v21, %v3920_v31  ;;  %v3957_v57 = vrot.slane %v13620_v10, 4  ;;  %v13632_v8 = vsel %vm1626_vm15, %v7566_v15, %v7570_v29 }
 0x31d   :  { %4806 = vmatmul.mubr.f32.gmra.mrb[38].mxu1 %v3969_v48  ;;  %v3974_v3 = vsel %vm1765_vm2, %v3972_v41, %v3925_v46  ;;  %v3952_v60 = vrot.slane %v13628_v44, 6  ;;  %v5016_v24 = vmul.f32 %v12887_v54, %v12887_v54  ;;  %v3929_v15 = vrot.slane %v13529_v33, 2 }
 0x31e   :  { %v3976_v31 = vsel %vm1768_vm3, %v3974_v3, %v3930_v16  ;;  %v14516_v46 = vrot.slane %v13537_v21, 6  ;;  %v7586_v2 = vunpack.i.h.bf16 %v13594_v53  ;;  %v14517_v29 = vrot.slane %v13533_v61, 4 }
 0x31f   :  { %4811 = vmatprep.mubr.f32.mxu1 %v3976_v31  ;;  %v7585_v41 = vunpack.i.l.bf16 %v13594_v53  ;;  %v7581_v54 = vunpack.i.h.bf16 %v7579_v11  ;;  %v13658_v33 = vadd.f32 %v5016_v24, %v4908_v49  ;;  %v7580_v3 = vunpack.i.l.bf16 %v7579_v11  ;;  %v5190_v24 = vld [vmem:[#allocation7 + $0x60] sm:$0xff] }
 0x320   :  { %v3971_v63 = vsel %vm1762_vm1, %v13481_v35, %v14516_v46  ;;  %v4909_v35 = vmul.f32 %v12937_v36, %v12937_v36  ;;  %v3946_v61 = vrot.slane %v13566_v47, 2  ;;  %v3978_v53 = vsel %vm1762_vm1, %v13585_v1, %v3936_v37  ;;  %v5191_v46 = vld [vmem:[#allocation7 + $0x68] sm:$0xff] }
 0x321   :  { %v3973_v16 = vsel %vm1765_vm2, %v3971_v63, %v14517_v29  ;;  %v13665_v31 = vsel %vm1680_vm0, %v7581_v54, %v7586_v2  ;;  %v5017_v49 = vmul.f32 %v12950_v38, %v12950_v38  ;;  %v13675_v36 = vsel %vm1680_vm0, %v7580_v3, %v7581_v54  ;;  %v7599_v29 = vpop.permute.xlu0 %7598 }
 0x322   :  { %v13641_v17 = vpop.f32.mrb[134].mxu0  ;;  %v3975_v21 = vsel %vm1768_vm3, %v3973_v16, %v3929_v15  ;;  %v13679_v15 = vsel %vm1680_vm0, %v7585_v41, %v7580_v3  ;;  %v3980_v63 = vsel %vm1765_vm2, %v3978_v53, %v3941_v27  ;;  %v3992_v37 = vrot.slane %v13675_v36, 6 }
 0x323   :  { %v13651_v48 = vpop.f32.mrb[135].mxu0  ;;  %4812 = vmatmul.mubr.f32.gmra.mrb[40].mxu1 %v3975_v21  ;;  %v3982_v16 = vsel %vm1768_vm3, %v3980_v63, %v3946_v61  ;;  %v13686_v21 = vpop.permute.xlu1 %7603  ;;  %v13690_v54 = vadd.f32 %v5017_v49, %v4909_v35  ;;  %v3945_v3 = vrot.slane %v13577_v43, 2  ;;  %v14518_v9 = vrot.slane %v13585_v1, 6 }
 0x324   :  { %4817 = vmatprep.mubr.f32.mxu1 %v3982_v16  ;;  %v6331_v53 = vpack.c.bf16 %v5191_v46, %v5190_v24  ;;  %v14519_v61 = vrot.slane %v13581_v55, 4  ;;  %v7596_v38 = vunpack.i.h.bf16 %v13639_v12  ;;  %v7595_v35 = vunpack.i.l.bf16 %v13639_v12 }
 0x325   :  { %v3977_v27 = vsel %vm1762_vm1, %v13521_v52, %v14518_v9  ;;  %v7591_v49 = vunpack.i.h.bf16 %v7589_v30  ;;  %v7590_v1 = vunpack.i.l.bf16 %v7589_v30  ;;  %v3962_v16 = vrot.slane %v13616_v59, 2 }
 0x326   :  { %v3979_v63 = vsel %vm1765_vm2, %v3977_v27, %v14519_v61  ;;  %6332 = vmatprep.subr.bf16.mxu1 %v6331_v53  ;;  %v3984_v52 = vsel %vm1762_vm1, %v13632_v8, %v3952_v60  ;;  %v13710_v55 = vsel %vm1680_vm0, %v7595_v35, %v7596_v38  ;;  %v3961_v24 = vrot.slane %v13620_v10, 2 }
 0x327   :  { %v3981_v43 = vsel %vm1768_vm3, %v3979_v63, %v3945_v3  ;;  %v1695_v9 = vsel %vm1680_vm0, %v7591_v49, %v7585_v41  ;;  %v3986_v12 = vsel %vm1765_vm2, %v3984_v52, %v3957_v57  ;;  %6334 = vmatpush3.bf16.msra.mxu1 %v6331_v53  ;;  %v13720_v60 = vsel %vm1680_vm0, %v7590_v1, %v7595_v35  ;;  %v7614_v53 = vpop.permute.xlu1 %7613 }
 0x328   :  { %v13688_v11 = vpop.f32.mrb[0].mxu1  ;;  %4818 = vmatmul.mubr.f32.gmra.mrb[42].mxu1 %v3981_v43  ;;  %v13724_v46 = vsel %vm1680_vm0, %v7586_v2, %v7590_v1  ;;  %v3988_v41 = vsel %vm1768_vm3, %v3986_v12, %v3962_v16  ;;  %v14520_v57 = vrot.slane %v13632_v8, 6  ;;  %v4910_v27 = vmul.f32 %v13020_v39, %v13020_v39  ;;  %v7609_v43 = vpop.permute.xlu0 %7608 }
 0x329   :  { %v13697_v0 = vpop.f32.mrb[1].mxu1  ;;  %4823 = vmatprep.mubr.f32.mxu1 %v3988_v41  ;;  %v14521_v61 = vrot.slane %v13628_v44, 4  ;;  %v7606_v2 = vunpack.i.h.bf16 %v13686_v21  ;;  %v7605_v35 = vunpack.i.l.bf16 %v13686_v21  ;;  %v7601_v49 = vunpack.i.h.bf16 %v7599_v29 }
 0x32a   :  { %v3983_v10 = vsel %vm1762_vm1, %v13566_v47, %v14520_v57  ;;  %v7600_v1 = vunpack.i.l.bf16 %v7599_v29  ;;  %v5018_v47 = vmul.f32 %v13032_v28, %v13032_v28  ;;  %v4002_v39 = vrot.slane %v13724_v46, 2 }
 0x32b   :  { %v3985_v63 = vsel %vm1765_vm2, %v3983_v10, %v14521_v61  ;;  %v13745_v44 = vsel %vm1680_vm0, %v7605_v35, %v7606_v2  ;;  %v13749_v16 = vsel %vm1680_vm0, %v7601_v49, %v7605_v35  ;;  %v4054_v21 = vsel %vm1762_vm1, %v13679_v15, %v3992_v37 }
 0x32c   :  { %v3987_v8 = vsel %vm1768_vm3, %v3985_v63, %v3961_v24  ;;  %v7616_v52 = vunpack.i.h.bf16 %v7614_v53  ;;  %v4024_v29 = vrot.slane %v13745_v44, 6  ;;  %v13758_v24 = vsel %vm1680_vm0, %v7600_v1, %v7601_v49 }
 0x32d   :  { %4824 = vmatmul.mubr.f32.gmra.mrb[44].mxu1 %v3987_v8  ;;  %v1688_v57 = vsel %vm1680_vm0, %v7596_v38, %v7600_v1  ;;  %v13764_v10 = vadd.f32 %v5018_v47, %v4910_v27  ;;  %v14522_v37 = vrot.slane %v13665_v31, 4  ;;  %v7615_v63 = vunpack.i.l.bf16 %v7614_v53  ;;  %v7619_v47 = vpop.permute.xlu0 %7618 }
 0x32e   :  { %v4013_v8 = vrot.slane %v1688_v57, 4  ;;  %v7611_v28 = vunpack.i.h.bf16 %v7609_v43  ;;  %v7610_v49 = vunpack.i.l.bf16 %v7609_v43  ;;  %v4911_v38 = vmul.f32 %v13077_v25, %v13077_v25 }
 0x32f   :  { %v4056_v61 = vsel %vm1765_vm2, %v4054_v21, %v14522_v37  ;;  %v13774_v59 = vsel %vm1680_vm0, %v7615_v63, %v7616_v52  ;;  %v4001_v27 = vrot.slane %v13665_v31, 2  ;;  %v14523_v1 = vrot.slane %v13679_v15, 6 }
 0x330   :  { %v13760_v41 = vpop.f32.mrb[136].mxu0  ;;  %v4058_v12 = vsel %vm1768_vm3, %v4056_v61, %v4002_v39  ;;  %v4040_v21 = vrot.slane %v13774_v59, 6  ;;  %v4044_v39 = vrot.slane %v13774_v59, 4  ;;  %v1682_v43 = vsel %vm1680_vm0, %v7611_v28, %v7615_v63  ;;  %v5192_v61 = vld [vmem:[#allocation7 + $0x70] sm:$0xff] }
 0x331   :  { %v13769_v35 = vpop.f32.mrb[137].mxu0  ;;  %4829 = vmatprep.mubr.f32.mxu1 %v4058_v12  ;;  %v4053_v53 = vsel %vm1762_vm1, %v1695_v9, %v14523_v1  ;;  %v1683_v12 = vsel %vm1680_vm0, %v7610_v49, %v7611_v28  ;;  %v4039_v37 = vrot.slane %v1682_v43, 6  ;;  %v1684_v25 = vsel %vm1680_vm0, %v7606_v2, %v7610_v49  ;;  %v5193_v1 = vld [vmem:[#allocation7 + $0x78] sm:$0xff] }
 0x332   :  { %v14524_v31 = vrot.slane %v13675_v36, 4  ;;  %v5019_v9 = vmul.f32 %v13089_v45, %v13089_v45  ;;  %v4029_v59 = vrot.slane %v1684_v25, 4  ;;  %v7621_v63 = vunpack.i.h.bf16 %v7619_v47 }
 0x333   :  { %v7620_v30 = vunpack.i.l.bf16 %v7619_v47  ;;  %v4912_v2 = vmul.f32 %v13136_v32, %v13136_v32  ;;  %v4018_v36 = vrot.slane %v13758_v24, 2  ;;  %v14526_v49 = vrot.slane %v13710_v55, 6 }
 0x334   :  { %v4055_v15 = vsel %vm1765_vm2, %v4053_v53, %v14524_v31  ;;  %v13796_v28 = vadd.f32 %v5019_v9, %v4911_v38  ;;  %v6335_v38 = vpack.c.bf16 %v5193_v1, %v5192_v61  ;;  %v14527_v34 = vrot.slane %v13720_v60, 6 }
 0x335   :  { %v4057_v3 = vsel %vm1768_vm3, %v4055_v15, %v4001_v27  ;;  %v4060_v45 = vsel %vm1762_vm1, %v13720_v60, %v14526_v49  ;;  %v1696_v53 = vsel %vm1680_vm0, %v7620_v30, %v7621_v63  ;;  %v1697_v27 = vsel %vm1680_vm0, %v7616_v52, %v7620_v30 }
 0x336   :  { %4830 = vmatmul.mubr.f32.gmra.mrb[46].mxu1 %v4057_v3  ;;  %14525 = vst [vmem:[#allocation36_spill] sm:$0xff] %v13796_v28  ;;  %v4062_v3 = vsel %vm1765_vm2, %v4060_v45, %v4013_v8  ;;  %v4045_v31 = vrot.slane %v1697_v27, 4  ;;  %v4049_v32 = vrot.slane %v1697_v27, 2  ;;  %v4050_v15 = vrot.slane %v1696_v53, 2  ;;  %6336 = vmatprep.subr.bf16.mxu1 %v6335_v38 }
 0x337   :  { %v4064_v9 = vsel %vm1768_vm3, %v4062_v3, %v4018_v36  ;;  %v5020_v63 = vmul.f32 %v13149_v22, %v13149_v22  ;;  %v4017_v49 = vrot.slane %v1688_v57, 2  ;;  %v4059_v30 = vsel %vm1762_vm1, %v13724_v46, %v14527_v34  ;;  %6338 = vmatpush3.bf16.msra.mxu1 %v6335_v38 }
 0x338   :  { %v13810_v47 = vpop.f32.mrb[2].mxu1  ;;  %4835 = vmatprep.mubr.f32.mxu1 %v4064_v9  ;;  %v4913_v52 = vmul.f32 %v13205_v6, %v13205_v6  ;;  %v14528_v8 = vrot.slane %v13710_v55, 4  ;;  %v4034_v1 = vrot.slane %v1683_v12, 2  ;;  %v4066_v36 = vsel %vm1762_vm1, %v13749_v16, %v4024_v29 }
 0x339   :  { %v13813_v28 = vpop.f32.mrb[3].mxu1  ;;  %v5021_v22 = vmul.f32 %v13212_v5, %v13212_v5  ;;  %v13830_v57 = vadd.f32 %v5020_v63, %v4912_v2  ;;  %v4068_v46 = vsel %vm1765_vm2, %v4066_v36, %v4029_v59  ;;  %v4033_v45 = vrot.slane %v1684_v25, 2 }
 0x33a   :  { %v4061_v61 = vsel %vm1765_vm2, %v4059_v30, %v14528_v8  ;;  %v4070_v6 = vsel %vm1768_vm3, %v4068_v46, %v4034_v1  ;;  %v14529_v53 = vrot.slane %v13749_v16, 6  ;;  %v4914_v5 = vmul.f32 %v13257_v56, %v13257_v56 }
 0x33b   :  { %v4063_v60 = vsel %vm1768_vm3, %v4061_v61, %v4017_v49  ;;  %v13835_v55 = vadd.f32 %v5021_v22, %v4913_v52  ;;  %v14530_v2 = vrot.slane %v13745_v44, 4  ;;  %v4072_v25 = vsel %vm1762_vm1, %v1682_v43, %v4040_v21 }
 0x33c   :  { %4836 = vmatmul.mubr.f32.gmra.mrb[48].mxu1 %v4063_v60  ;;  %v4065_v29 = vsel %vm1762_vm1, %v13758_v24, %v14529_v53  ;;  %v5022_v59 = vmul.f32 %v13264_v51, %v13264_v51  ;;  %v4071_v3 = vsel %vm1762_vm1, %v1683_v12, %v4039_v37  ;;  %v4074_v24 = vsel %vm1765_vm2, %v4072_v25, %v4045_v31  ;;  %v14535_v25 = vld [vmem:[#allocation31_spill] sm:$0xff] }
 0x33d   :  { %4841 = vmatprep.mubr.f32.mxu1 %v4070_v6  ;;  %v4067_v27 = vsel %vm1765_vm2, %v4065_v29, %v14530_v2  ;;  %v4073_v9 = vsel %vm1765_vm2, %v4071_v3, %v4044_v39  ;;  %v4915_v56 = vmul.f32 %v13306_v40, %v13306_v40  ;;  %v4076_v63 = vsel %vm1768_vm3, %v4074_v24, %v4050_v15 }
 0x33e   :  { %v4621_v38 = vpop.f32.mrb[138].mxu0  ;;  %v4069_v16 = vsel %vm1768_vm3, %v4067_v27, %v4033_v45  ;;  %v13856_v49 = vadd.f32 %v5022_v59, %v4914_v5  ;;  %v4075_v21 = vsel %vm1768_vm3, %v4073_v9, %v4049_v32  ;;  %v5023_v51 = vmul.f32 %v13315_v20, %v13315_v20  ;;  %v14532_v45 = vld [vmem:[#allocation28_spill] sm:$0xff]  ;;  %v14534_v27 = vld [vmem:[#allocation30_spill] sm:$0xff] }
 0x33f   :  { %v4623_v44 = vpop.f32.mrb[139].mxu0  ;;  %v4916_v43 = vmul.f32 %v13363_v58, %v13363_v58  ;;  %v5024_v39 = vmul.f32 %v13375_v50, %v13375_v50  ;;  %v4917_v40 = vmul.f32 %v13413_v14, %v13413_v14  ;;  %v5025_v12 = vmul.f32 %v13425_v13, %v13425_v13  ;;  %v14537_v9 = vld [vmem:[#allocation18_spill] sm:$0xff] }
 0x340   :  { %4842 = vmatmul.mubr.f32.gmra.mrb[50].mxu1 %v4069_v16  ;;  %v13869_v37 = vadd.f32 %v5023_v51, %v4915_v56  ;;  %v4918_v31 = vmul.f32 %v13497_v4, %v13497_v4  ;;  %v5026_v20 = vmul.f32 %v13504_v23, %v13504_v23  ;;  %v4919_v58 = vmul.f32 %v13552_v19, %v13552_v19 }
 0x341   :  { %4847 = vmatprep.mubr.f32.mxu1 %v4076_v63  ;;  %v13877_v32 = vadd.f32 %v5024_v39, %v4916_v43  ;;  %v13879_v50 = vadd.f32 %v5025_v12, %v4917_v40  ;;  %v5027_v14 = vmul.f32 %v13559_v42, %v13559_v42  ;;  %v4920_v13 = vmul.f32 %v13588_v62, %v13588_v62  ;;  %v14538_v63 = vld [vmem:[#allocation15_spill] sm:$0xff] }
 0x342   :  { %v13885_v34 = vadd.f32 %v5026_v20, %v4918_v31  ;;  %v5028_v4 = vmul.f32 %v13596_v26, %v13596_v26  ;;  %v4921_v23 = vmul.f32 %v13641_v17, %v13641_v17  ;;  %v5029_v19 = vmul.f32 %v13651_v48, %v13651_v48  ;;  %v14531_v26 = vld [vmem:[#allocation27_spill] sm:$0xff]  ;;  %v14541_v31 = vld [vmem:[#allocation25_spill] sm:$0xff] }
 0x343   :  { %v13893_v52 = vadd.f32 %v5027_v14, %v4919_v58  ;;  %v4935_v42 = vmul.f32 %v13688_v11, %v13688_v11  ;;  %v5043_v62 = vmul.f32 %v13697_v0, %v13697_v0  ;;  %v4922_v8 = vmul.f32 %v13760_v41, %v13760_v41  ;;  %v14540_v40 = vld [vmem:[#allocation23_spill] sm:$0xff]  ;;  %v14542_v58 = vld [vmem:[#allocation26_spill] sm:$0xff] }
 0x344   :  { %v4705_v15 = vpop.f32.mrb[4].mxu1  ;;  %4848 = vmatmul.mubr.f32.gmra.mrb[52].mxu1 %v4075_v21  ;;  %v13902_v61 = vadd.f32 %v5028_v4, %v4920_v13  ;;  %v13904_v17 = vadd.f32 %v5029_v19, %v4921_v23  ;;  %v5030_v48 = vmul.f32 %v13769_v35, %v13769_v35  ;;  %v4936_v1 = vmul.f32 %v13810_v47, %v13810_v47  ;;  %v14533_v35 = vld [vmem:[#allocation29_spill] sm:$0xff]  ;;  %v14539_v21 = vld [vmem:[#allocation22_spill] sm:$0xff]  ;;  %v14544_v19 = vld [vmem:[#allocation40_spill] sm:$0xff] }
 0x345   :  { %v4707_v30 = vpop.f32.mrb[5].mxu1  ;;  %6081 = vmatprep.mubr.f32.mxu1 %v14531_v26  ;;  %v13910_v36 = vadd.f32 %v5043_v62, %v4935_v42  ;;  %v5044_v0 = vmul.f32 %v13813_v28, %v13813_v28  ;;  %v4923_v11 = vmul.f32 %v4621_v38, %v4621_v38  ;;  %v5031_v22 = vmul.f32 %v4623_v44, %v4623_v44  ;;  %v14536_v38 = vld [vmem:[#allocation34_spill] sm:$0xff]  ;;  %v14545_v42 = vld [vmem:[#allocation41_spill] sm:$0xff] }
 0x346   :  { %v13914_v41 = vadd.f32 %v5030_v48, %v4922_v8  ;;  %v4937_v60 = vmul.f32 %v4705_v15, %v4705_v15  ;;  %v5045_v46 = vmul.f32 %v4707_v30, %v4707_v30  ;;  %v14543_v13 = vld [vmem:[#allocation38_spill] sm:$0xff]  ;;  %v14546_v62 = vld [vmem:[#allocation45_spill] sm:$0xff] }
 0x347   :  { %v13917_v6 = vadd.f32 %v5044_v0, %v4936_v1  ;;  %v13919_v53 = vadd.f32 %v5031_v22, %v4923_v11  ;;  %v14547_v8 = vld [vmem:[#allocation21_spill] sm:$0xff]  ;;  %v14548_v11 = vld [vmem:[#allocation35_spill] sm:$0xff] }
 0x348   :  { %6082 = vmatmul.mubr.f32.vlgmr.msra.gmra.mrb[54].mxu1 %v14532_v45  ;;  %v13922_v47 = vadd.f32 %v5045_v46, %v4937_v60  ;;  %v14549_v22 = vld [vmem:[#allocation17_spill] sm:$0xff]  ;;  %v14550_v46 = vld [vmem:[#allocation12_spill] sm:$0xff] }
 0x349   :  { %6084 = vmatprep.mubr.f32.mxu1 %v14533_v35  ;;  %v14551_v35 = vld [vmem:[#allocation16_spill] sm:$0xff] }
 0x34a   :  { %v4627_v29 = vpop.f32.mrb[140].mxu0 }
 0x34b   :  { %v4924_v5 = vmul.f32 %v4627_v29, %v4627_v29  ;;  %v4629_v2 = vpop.f32.mrb[141].mxu0 }
 0x34c   :  { %v5032_v28 = vmul.f32 %v4629_v2, %v4629_v2  ;;  %6085 = vmatmul.mubr.f32.gmra.mrb[56].mxu1 %v14534_v27 }
 0x34d   :  { %6087 = vmatprep.mubr.f32.mxu1 %v14535_v25  ;;  %v14553_v25 = vld [vmem:[#allocation50_spill] sm:$0xff] }
 0x34e   :  { %v13926_v59 = vadd.f32 %v5032_v28, %v4924_v5  ;;  %v14552_v28 = vld [vmem:[#allocation37_spill] sm:$0xff] }
 0x350   :  { %v4711_v3 = vpop.f32.mrb[6].mxu1  ;;  %6088 = vmatmul.mubr.f32.gmra.mrb[58].mxu1 %v14536_v38 }
 0x351   :  { %v4938_v16 = vmul.f32 %v4711_v3, %v4711_v3  ;;  %v4713_v24 = vpop.f32.mrb[7].mxu1  ;;  %6090 = vmatprep.mubr.f32.mxu1 %v14537_v9 }
 0x352   :  { %v5046_v56 = vmul.f32 %v4713_v24, %v4713_v24  ;;  %v14554_v24 = vld [vmem:[#allocation51_spill] sm:$0xff] }
 0x354   :  { %v13930_v44 = vadd.f32 %v5046_v56, %v4938_v16  ;;  %6091 = vmatmul.mubr.f32.gmra.mrb[60].mxu1 %v14538_v63  ;;  %v14555_v56 = vld [vmem:[#allocation52_spill] sm:$0xff] }
 0x355   :  { %6093 = vmatprep.mubr.f32.mxu1 %v14539_v21  ;;  %v4633_v51 = vpop.f32.mrb[142].mxu0 }
 0x356   :  { %v4925_v43 = vmul.f32 %v4633_v51, %v4633_v51  ;;  %v4635_v39 = vpop.f32.mrb[143].mxu0  ;;  %v14556_v51 = vld [vmem:[#allocation53_spill] sm:$0xff] }
 0x357   :  { %v5033_v12 = vmul.f32 %v4635_v39, %v4635_v39 }
 0x358   :  { %6094 = vmatmul.mubr.f32.gmra.mrb[62].mxu1 %v14540_v40  ;;  %v14557_v40 = vld [vmem:[#allocation54_spill] sm:$0xff] }
 0x359   :  { %6096 = vmatprep.mubr.f32.mxu1 %v14541_v31  ;;  %v13936_v20 = vadd.f32 %v5033_v12, %v4925_v43 }
 0x35b   :  { %v4717_v14 = vpop.f32.mrb[8].mxu1 }
 0x35c   :  { %6097 = vmatmul.mubr.f32.gmra.mrb[64].mxu1 %v14542_v58  ;;  %v4939_v15 = vmul.f32 %v4717_v14, %v4717_v14  ;;  %v4719_v4 = vpop.f32.mrb[9].mxu1  ;;  %v14558_v58 = vld [vmem:[#allocation55_spill] sm:$0xff]  ;;  %v14559_v14 = vld [vmem:[#allocation56_spill] sm:$0xff] }
 0x35d   :  { %6099 = vmatprep.mubr.f32.mxu1 %v14543_v13  ;;  %v5047_v23 = vmul.f32 %v4719_v4, %v4719_v4 }
 0x35f   :  { %v13941_v30 = vadd.f32 %v5047_v23, %v4939_v15 }
 0x360   :  { %6100 = vmatmul.mubr.f32.gmra.mrb[66].mxu1 %v14544_v19  ;;  %v14560_v19 = vld [vmem:[#allocation42_spill] sm:$0xff] }
 0x361   :  { %6102 = vmatprep.mubr.f32.mxu1 %v14545_v42  ;;  %v14561_v42 = vld [vmem:[#allocation43_spill] sm:$0xff] }
 0x364   :  { %6103 = vmatmul.mubr.f32.gmra.mrb[68].mxu1 %v14546_v62  ;;  %v4639_v26 = vpop.f32.mrb[144].mxu0 }
 0x365   :  { %6105 = vmatprep.mubr.f32.mxu1 %v14547_v8  ;;  %v4926_v48 = vmul.f32 %v4639_v26, %v4639_v26  ;;  %v4641_v1 = vpop.f32.mrb[145].mxu0  ;;  %v14562_v26 = vld [vmem:[#allocation44_spill] sm:$0xff] }
 0x366   :  { %v5034_v0 = vmul.f32 %v4641_v1, %v4641_v1 }
 0x368   :  { %6106 = vmatmul.mubr.f32.gmra.mrb[70].mxu1 %v14548_v11  ;;  %v13948_v60 = vadd.f32 %v5034_v0, %v4926_v48  ;;  %v14563_v0 = vld [vmem:[#allocation19_spill] sm:$0xff] }
 0x369   :  { %6108 = vmatprep.mubr.f32.mxu1 %v14549_v22  ;;  %v4723_v45 = vpop.f32.mrb[10].mxu1 }
 0x36a   :  { %v4940_v29 = vmul.f32 %v4723_v45, %v4723_v45  ;;  %v4725_v5 = vpop.f32.mrb[11].mxu1  ;;  %v14565_v45 = vld [vmem:[#allocation46_spill] sm:$0xff] }
 0x36b   :  { %v5048_v2 = vmul.f32 %v4725_v5, %v4725_v5 }
 0x36c   :  { %6109 = vmatmul.mubr.f32.gmra.mrb[72].mxu1 %v14550_v46  ;;  %v14564_v46 = vld [vmem:[#allocation24_spill] sm:$0xff] }
 0x36d   :  { %6111 = vmatprep.mubr.f32.mxu1 %v14551_v35  ;;  %v13953_v27 = vadd.f32 %v5048_v2, %v4940_v29 }
 0x370   :  { %6112 = vmatmul.mubr.f32.gmra.mrb[74].mxu1 %v14552_v28  ;;  %v4645_v3 = vpop.f32.mrb[146].mxu0  ;;  %v14566_v28 = vld [vmem:[#allocation47_spill] sm:$0xff] }
 0x371   :  { %6114 = vmatprep.mubr.f32.mxu1 %v14553_v25  ;;  %v4927_v38 = vmul.f32 %v4645_v3, %v4645_v3  ;;  %v4647_v16 = vpop.f32.mrb[147].mxu0  ;;  %v14567_v25 = vld [vmem:[#allocation48_spill] sm:$0xff] }
 0x372   :  { %v5035_v9 = vmul.f32 %v4647_v16, %v4647_v16  ;;  %v14568_v16 = vld [vmem:[#allocation13_spill] sm:$0xff] }
 0x374   :  { %6115 = vmatmul.mubr.f32.gmra.mrb[76].mxu1 %v14554_v24  ;;  %v13958_v63 = vadd.f32 %v5035_v9, %v4927_v38 }
 0x375   :  { %6117 = vmatprep.mubr.f32.mxu1 %v14555_v56  ;;  %v14569_v56 = vld [vmem:[#allocation14_spill] sm:$0xff] }
 0x376   :  { %v4729_v21 = vpop.f32.mrb[12].mxu1 }
 0x377   :  { %v4941_v43 = vmul.f32 %v4729_v21, %v4729_v21  ;;  %v4731_v39 = vpop.f32.mrb[13].mxu1 }
 0x378   :  { %6118 = vmatmul.mubr.f32.gmra.mrb[78].mxu1 %v14556_v51  ;;  %v5049_v12 = vmul.f32 %v4731_v39, %v4731_v39 }
 0x379   :  { %6120 = vmatprep.mubr.f32.mxu1 %v14557_v40  ;;  %v14571_v40 = vld [vmem:[#allocation58_spill] sm:$0xff] }
 0x37a   :  { %v13962_v31 = vadd.f32 %v5049_v12, %v4941_v43  ;;  %v14570_v43 = vld [vmem:[#allocation57_spill] sm:$0xff] }
 0x37c   :  { %6121 = vmatmul.mubr.f32.gmra.mrb[80].mxu1 %v14558_v58  ;;  %v4651_v13 = vpop.f32.mrb[148].mxu0 }
 0x37d   :  { %6123 = vmatprep.mubr.f32.mxu1 %v14559_v14  ;;  %v4928_v15 = vmul.f32 %v4651_v13, %v4651_v13  ;;  %v4653_v4 = vpop.f32.mrb[149].mxu0  ;;  %v14572_v14 = vld [vmem:[#allocation59_spill] sm:$0xff] }
 0x37e   :  { %v5036_v23 = vmul.f32 %v4653_v4, %v4653_v4  ;;  %v14573_v4 = vld [vmem:[#allocation60_spill] sm:$0xff] }
 0x380   :  { %6124 = vmatmul.mubr.f32.gmra.mrb[82].mxu1 %v14560_v19  ;;  %v13968_v62 = vadd.f32 %v5036_v23, %v4928_v15  ;;  %v14574_v23 = vld [vmem:[#allocation39_spill] sm:$0xff] }
 0x381   :  { %6126 = vmatprep.mubr.f32.mxu1 %v14561_v42 }
 0x382   :  { %v4735_v8 = vpop.f32.mrb[14].mxu1 }
 0x383   :  { %v4942_v48 = vmul.f32 %v4735_v8, %v4735_v8  ;;  %v4737_v1 = vpop.f32.mrb[15].mxu1 }
 0x384   :  { %6127 = vmatmul.mubr.f32.gmra.mrb[84].mxu1 %v14562_v26  ;;  %v5050_v11 = vmul.f32 %v4737_v1, %v4737_v1 }
 0x385   :  { %6129 = vmatprep.mubr.f32.mxu1 %v14563_v0 }
 0x386   :  { %v13972_v22 = vadd.f32 %v5050_v11, %v4942_v48  ;;  %v14575_v48 = vld [vmem:[#allocation61_spill] sm:$0xff]  ;;  %v14577_v11 = vld [vmem:[#allocation32_spill] sm:$0xff] }
 0x388   :  { %6130 = vmatmul.mubr.f32.gmra.mrb[86].mxu1 %v14564_v46  ;;  %v4657_v35 = vpop.f32.mrb[150].mxu0 }
 0x389   :  { %6132 = vmatprep.mubr.f32.mxu1 %v14565_v45  ;;  %v4929_v29 = vmul.f32 %v4657_v35, %v4657_v35  ;;  %v4659_v5 = vpop.f32.mrb[151].mxu0  ;;  %v14578_v35 = vld [vmem:[#allocation33_spill] sm:$0xff] }
 0x38a   :  { %v5037_v2 = vmul.f32 %v4659_v5, %v4659_v5 }
 0x38c   :  { %6133 = vmatmul.mubr.f32.gmra.mrb[88].mxu1 %v14566_v28  ;;  %v13978_v3 = vadd.f32 %v5037_v2, %v4929_v29  ;;  %v14579_v2 = vld [vmem:[#allocation62_spill] sm:$0xff] }
 0x38d   :  { %6135 = vmatprep.mubr.f32.mxu1 %v14567_v25  ;;  %v14580_v25 = vld [vmem:[#allocation63_spill] sm:$0xff] }
 0x38f   :  { %v4741_v38 = vpop.f32.mrb[16].mxu1 }
 0x390   :  { %6136 = vmatmul.mubr.f32.gmra.mrb[90].mxu1 %v14568_v16  ;;  %v4943_v24 = vmul.f32 %v4741_v38, %v4741_v38  ;;  %v4743_v9 = vpop.f32.mrb[17].mxu1 }
 0x391   :  { %6138 = vmatprep.mubr.f32.mxu1 %v14569_v56  ;;  %v5051_v21 = vmul.f32 %v4743_v9, %v4743_v9  ;;  %v14581_v9 = vld [vmem:[#allocation64_spill] sm:$0xff] }
 0x393   :  { %v13982_v51 = vadd.f32 %v5051_v21, %v4943_v24  ;;  %v14582_v21 = vld [vmem:[#allocation65_spill] sm:$0xff] }
 0x394   :  { %6139 = vmatmul.mubr.f32.gmra.mrb[92].mxu1 %v14570_v43 }
 0x395   :  { %6141 = vmatprep.mubr.f32.mxu1 %v12922_v18  ;;  %v14576_v18 = vld [vmem:[#allocation20_spill] sm:$0xff] }
 0x396   :  { %v4663_v39 = vpop.f32.mrb[152].mxu0 }
 0x397   :  { %v4930_v12 = vmul.f32 %v4663_v39, %v4663_v39  ;;  %v4665_v58 = vpop.f32.mrb[153].mxu0 }
 0x398   :  { %6142 = vmatmul.mubr.f32.gmra.mrb[94].mxu1 %v14571_v40  ;;  %v5038_v13 = vmul.f32 %v4665_v58, %v4665_v58 }
 0x399   :  { %6144 = vmatprep.mubr.f32.mxu1 %v14572_v14 }
 0x39a   :  { %v13988_v15 = vadd.f32 %v5038_v13, %v4930_v12 }
 0x39b   :  { %v4747_v19 = vpop.f32.mrb[18].mxu1 }
 0x39c   :  { %6145 = vmatmul.mubr.f32.gmra.mrb[96].mxu1 %v14573_v4  ;;  %v4944_v42 = vmul.f32 %v4747_v19, %v4747_v19  ;;  %v4749_v8 = vpop.f32.mrb[19].mxu1  ;;  %v14583_v19 = vld [vmem:[#allocation36_spill] sm:$0xff] }
 0x39d   :  { %6147 = vmatprep.mubr.f32.mxu1 %v14574_v23  ;;  %v5052_v26 = vmul.f32 %v4749_v8, %v4749_v8 }
 0x39f   :  { %v13994_v1 = vadd.f32 %v5052_v26, %v4944_v42 }
 0x3a0   :  { %6148 = vmatmul.mubr.f32.gmra.mrb[98].mxu1 %v14575_v48 }
 0x3a1   :  { %6150 = vmatprep.mubr.f32.mxu1 %v14576_v18  ;;  %v4669_v0 = vpop.f32.mrb[154].mxu0 }
 0x3a2   :  { %v4931_v46 = vmul.f32 %v4669_v0, %v4669_v0  ;;  %v4671_v45 = vpop.f32.mrb[155].mxu0 }
 0x3a3   :  { %v5039_v29 = vmul.f32 %v4671_v45, %v4671_v45 }
 0x3a4   :  { %6151 = vmatmul.mubr.f32.gmra.mrb[100].mxu1 %v14577_v11 }
 0x3a5   :  { %6153 = vmatprep.mubr.f32.mxu1 %v14578_v35  ;;  %v13998_v5 = vadd.f32 %v5039_v29, %v4931_v46 }
 0x3a6   :  { %v4753_v28 = vpop.f32.mrb[20].mxu1 }
 0x3a7   :  { %v4945_v38 = vmul.f32 %v4753_v28, %v4753_v28  ;;  %v4755_v16 = vpop.f32.mrb[21].mxu1 }
 0x3a8   :  { %6154 = vmatmul.mubr.f32.gmra.mrb[102].mxu1 %v14579_v2  ;;  %v5053_v24 = vmul.f32 %v4755_v16, %v4755_v16 }
 0x3a9   :  { %6156 = vmatprep.mubr.f32.mxu1 %v14580_v25 }
 0x3aa   :  { %v14003_v56 = vadd.f32 %v5053_v24, %v4945_v38 }
 0x3ac   :  { %6157 = vmatmul.mubr.f32.gmra.mrb[104].mxu1 %v14581_v9 }
 0x3ad   :  { %6159 = vmatprep.mubr.f32.mxu1 %v14582_v21 }
 0x3ae   :  { %v4675_v43 = vpop.f32.mrb[156].mxu0 }
 0x3af   :  { %v4932_v39 = vmul.f32 %v4675_v43, %v4675_v43  ;;  %v4677_v40 = vpop.f32.mrb[157].mxu0 }
 0x3b0   :  { %6160 = vmatmul.mubr.f32.gmra.mrb[106].mxu1 %v13610_v7  ;;  %v5040_v12 = vmul.f32 %v4677_v40, %v4677_v40 }
 0x3b1   :  { %6162 = vmatprep.mubr.f32.mxu1 %v13658_v33 }
 0x3b2   :  { %v5148_v58 = vadd.f32 %v5040_v12, %v4932_v39 }
 0x3b3   :  { %v4759_v14 = vpop.f32.mrb[22].mxu1 }
 0x3b4   :  { %6163 = vmatmul.mubr.f32.gmra.mrb[108].mxu1 %v13690_v54  ;;  %v4946_v13 = vmul.f32 %v4759_v14, %v4759_v14  ;;  %v4761_v4 = vpop.f32.mrb[23].mxu1 }
 0x3b5   :  { %6165 = vmatprep.mubr.f32.mxu1 %v13764_v10  ;;  %v5054_v23 = vmul.f32 %v4761_v4, %v4761_v4 }
 0x3b7   :  { %v14011_v42 = vadd.f32 %v5054_v23, %v4946_v13 }
 0x3b8   :  { %6166 = vmatmul.mubr.f32.gmra.mrb[110].mxu1 %v14583_v19 }
 0x3b9   :  { %6168 = vmatprep.mubr.f32.mxu1 %v13830_v57  ;;  %v4681_v8 = vpop.f32.mrb[158].mxu0 }
 0x3ba   :  { %v4933_v7 = vmul.f32 %v4681_v8, %v4681_v8  ;;  %v4683_v26 = vpop.f32.mrb[159].mxu0 }
 0x3bb   :  { %v5041_v33 = vmul.f32 %v4683_v26, %v4683_v26 }
 0x3bc   :  { %6169 = vmatmul.mubr.f32.gmra.mrb[112].mxu1 %v13835_v55 }
 0x3bd   :  { %6171 = vmatprep.mubr.f32.mxu1 %v13856_v49  ;;  %v5149_v54 = vadd.f32 %v5041_v33, %v4933_v7 }
 0x3bf   :  { %v4765_v48 = vpop.f32.mrb[24].mxu1 }
 0x3c0   :  { %6172 = vmatmul.mubr.f32.gmra.mrb[114].mxu1 %v13869_v37  ;;  %v4947_v10 = vmul.f32 %v4765_v48, %v4765_v48  ;;  %v4767_v18 = vpop.f32.mrb[25].mxu1 }
 0x3c1   :  { %6174 = vmatprep.mubr.f32.mxu1 %v13877_v32  ;;  %v5055_v0 = vmul.f32 %v4767_v18, %v4767_v18 }
 0x3c3   :  { %v14018_v11 = vadd.f32 %v5055_v0, %v4947_v10 }
 0x3c4   :  { %6175 = vmatmul.mubr.f32.gmra.mrb[116].mxu1 %v13879_v50 }
 0x3c5   :  { %6177 = vmatprep.mubr.f32.mxu1 %v13885_v34 }
 0x3c6   :  { %v4687_v57 = vpop.f32.mrb[160].mxu0 }
 0x3c7   :  { %v4934_v55 = vmul.f32 %v4687_v57, %v4687_v57  ;;  %v4689_v46 = vpop.f32.mrb[161].mxu0 }
 0x3c8   :  { %v5042_v45 = vmul.f32 %v4689_v46, %v4689_v46  ;;  %6178 = vmatmul.mubr.f32.gmra.mrb[118].mxu1 %v13893_v52 }
 0x3c9   :  { %6180 = vmatprep.mubr.f32.mxu1 %v13902_v61 }
 0x3ca   :  { %v5150_v49 = vadd.f32 %v5042_v45, %v4934_v55 }
 0x3cc   :  { %6181 = vmatmul.mubr.f32.gmra.mrb[120].mxu1 %v13904_v17  ;;  %v4771_v37 = vpop.f32.mrb[26].mxu1 }
 0x3cd   :  { %6183 = vmatprep.mubr.f32.mxu1 %v13914_v41  ;;  %v4948_v32 = vmul.f32 %v4771_v37, %v4771_v37  ;;  %v4773_v35 = vpop.f32.mrb[27].mxu1 }
 0x3ce   :  { %v5056_v29 = vmul.f32 %v4773_v35, %v4773_v35 }
 0x3d0   :  { %6184 = vmatmul.mubr.f32.gmra.mrb[122].mxu1 %v13919_v53  ;;  %v14027_v50 = vadd.f32 %v5056_v29, %v4948_v32  ;;  %v4777_v34 = vpop.f32.mrb[28].mxu1 }
 0x3d1   :  { %6186 = vmatprep.mubr.f32.mxu1 %v13926_v59  ;;  %v4949_v2 = vmul.f32 %v4777_v34, %v4777_v34  ;;  %v4779_v52 = vpop.f32.mrb[29].mxu1 }
 0x3d2   :  { %v5057_v28 = vmul.f32 %v4779_v52, %v4779_v52 }
 0x3d4   :  { %6187 = vmatmul.mubr.f32.gmra.mrb[124].mxu1 %v13936_v20  ;;  %v14031_v61 = vadd.f32 %v5057_v28, %v4949_v2 }
 0x3d5   :  { %6189 = vmatprep.mubr.f32.mxu1 %v13948_v60 }
 0x3d8   :  { %6190 = vmatmul.mubr.f32.gmra.mrb[126].mxu1 %v13958_v63  ;;  %v4783_v17 = vpop.f32.mrb[30].mxu1 }
 0x3d9   :  { %6192 = vmatprep.mubr.f32.mxu1 %v13968_v62  ;;  %v4950_v41 = vmul.f32 %v4783_v17, %v4783_v17  ;;  %v4785_v53 = vpop.f32.mrb[31].mxu1 }
 0x3da   :  { %v5058_v25 = vmul.f32 %v4785_v53, %v4785_v53 }
 0x3dc   :  { %6193 = vmatmul.mubr.f32.gmra.mrb[128].mxu1 %v13978_v3  ;;  %v5166_v59 = vadd.f32 %v5058_v25, %v4950_v41 }
 0x3dd   :  { %6195 = vmatprep.mubr.f32.mxu1 %v13988_v15  ;;  %v4789_v38 = vpop.f32.mrb[32].mxu1 }
 0x3de   :  { %v4951_v20 = vmul.f32 %v4789_v38, %v4789_v38  ;;  %v4791_v16 = vpop.f32.mrb[33].mxu1 }
 0x3df   :  { %v5059_v60 = vmul.f32 %v4791_v16, %v4791_v16 }
 0x3e0   :  { %6196 = vmatmul.mubr.f32.gmra.mrb[130].mxu1 %v13998_v5 }
 0x3e1   :  { %6198 = vmatprep.mubr.f32.mxu1 %v5148_v58  ;;  %v5167_v24 = vadd.f32 %v5059_v60, %v4951_v20 }
 0x3e4   :  { %6199 = vmatmul.mubr.f32.gmra.mrb[132].mxu1 %v5149_v54  ;;  %v4795_v63 = vpop.f32.mrb[34].mxu1 }
 0x3e5   :  { %6201 = vmatprep.mubr.f32.mxu1 %v5150_v49  ;;  %v4952_v62 = vmul.f32 %v4795_v63, %v4795_v63  ;;  %v4797_v9 = vpop.f32.mrb[35].mxu1 }
 0x3e6   :  { %v5060_v21 = vmul.f32 %v4797_v9, %v4797_v9 }
 0x3e8   :  { %6202 = vmatmul.mubr.f32.gmra.mrb[134].mxu1 %v13910_v36  ;;  %v5168_v3 = vadd.f32 %v5060_v21, %v4952_v62 }
 0x3e9   :  { %6204 = vmatprep.mubr.f32.mxu1 %v13917_v6 }
 0x3ea   :  { %v4801_v15 = vpop.f32.mrb[36].mxu1 }
 0x3eb   :  { %v4953_v43 = vmul.f32 %v4801_v15, %v4801_v15  ;;  %v4803_v39 = vpop.f32.mrb[37].mxu1 }
 0x3ec   :  { %6205 = vmatmul.mubr.f32.gmra.mrb[136].mxu1 %v13922_v47  ;;  %v5061_v5 = vmul.f32 %v4803_v39, %v4803_v39 }
 0x3ed   :  { %6207 = vmatprep.mubr.f32.mxu1 %v13930_v44 }
 0x3ee   :  { %v5169_v40 = vadd.f32 %v5061_v5, %v4953_v43 }
 0x3f0   :  { %6208 = vmatmul.mubr.f32.gmra.mrb[138].mxu1 %v13941_v30  ;;  %v4807_v12 = vpop.f32.mrb[38].mxu1 }
 0x3f1   :  { %6210 = vmatprep.mubr.f32.mxu1 %v13953_v27  ;;  %v4954_v58 = vmul.f32 %v4807_v12, %v4807_v12  ;;  %v4809_v14 = vpop.f32.mrb[39].mxu1 }
 0x3f2   :  { %v5062_v36 = vmul.f32 %v4809_v14, %v4809_v14 }
 0x3f4   :  { %6211 = vmatmul.mubr.f32.gmra.mrb[140].mxu1 %v13962_v31  ;;  %v5170_v6 = vadd.f32 %v5062_v36, %v4954_v58 }
 0x3f5   :  { %6213 = vmatprep.mubr.f32.mxu1 %v13972_v22 }
 0x3f6   :  { %v4813_v13 = vpop.f32.mrb[40].mxu1 }
 0x3f7   :  { %v4955_v4 = vmul.f32 %v4813_v13, %v4813_v13  ;;  %v4815_v47 = vpop.f32.mrb[41].mxu1 }
 0x3f8   :  { %6214 = vmatmul.mubr.f32.gmra.mrb[142].mxu1 %v13982_v51  ;;  %v5063_v44 = vmul.f32 %v4815_v47, %v4815_v47 }
 0x3f9   :  { %6216 = vmatprep.mubr.f32.mxu1 %v13994_v1 }
 0x3fa   :  { %v5171_v30 = vadd.f32 %v5063_v44, %v4955_v4 }
 0x3fb   :  { %v4819_v27 = vpop.f32.mrb[42].mxu1 }
 0x3fc   :  { %6217 = vmatmul.mubr.f32.gmra.mrb[144].mxu1 %v14003_v56  ;;  %v4956_v23 = vmul.f32 %v4819_v27, %v4819_v27  ;;  %v4821_v19 = vpop.f32.mrb[43].mxu1 }
 0x3fd   :  { %6219 = vmatprep.mubr.f32.mxu1 %v14011_v42  ;;  %v5064_v31 = vmul.f32 %v4821_v19, %v4821_v19 }
 0x3ff   :  { %v5172_v22 = vadd.f32 %v5064_v31, %v4956_v23 }
 0x400   :  { %6220 = vmatmul.mubr.f32.gmra.mrb[146].mxu1 %v14018_v11  ;;  %v4825_v8 = vpop.f32.mrb[44].mxu1 }
 0x401   :  { %6222 = vmatprep.mubr.f32.mxu1 %v14027_v50  ;;  %v4957_v7 = vmul.f32 %v4825_v8, %v4825_v8  ;;  %v4827_v51 = vpop.f32.mrb[45].mxu1 }
 0x402   :  { %v5065_v26 = vmul.f32 %v4827_v51, %v4827_v51 }
 0x404   :  { %6223 = vmatmul.mubr.f32.gmra.mrb[148].mxu1 %v14031_v61  ;;  %v5173_v1 = vadd.f32 %v5065_v26, %v4957_v7 }
 0x405   :  { %6225 = vmatprep.mubr.f32.mxu1 %v5166_v59 }
 0x408   :  { %6226 = vmatmul.mubr.f32.gmra.mrb[150].mxu1 %v5167_v24 }
 0x409   :  { %6228 = vmatprep.mubr.f32.mxu1 %v5168_v3  ;;  %v4831_v56 = vpop.f32.mrb[46].mxu1 }
 0x40a   :  { %v4958_v42 = vmul.f32 %v4831_v56, %v4831_v56  ;;  %v4833_v33 = vpop.f32.mrb[47].mxu1 }
 0x40b   :  { %v5066_v54 = vmul.f32 %v4833_v33, %v4833_v33 }
 0x40c   :  { %6229 = vmatmul.mubr.f32.gmra.mrb[152].mxu1 %v5169_v40 }
 0x40d   :  { %v5174_v48 = vadd.f32 %v5066_v54, %v4958_v42  ;;  %6231 = vmatprep.mubr.f32.mxu1 %v5170_v6 }
 0x40f   :  { %v4837_v10 = vpop.f32.mrb[48].mxu1 }
 0x410   :  { %v4959_v18 = vmul.f32 %v4837_v10, %v4837_v10  ;;  %v4839_v0 = vpop.f32.mrb[49].mxu1  ;;  %6232 = vmatmul.mubr.f32.gmra.mrb[154].mxu1 %v5171_v30 }
 0x411   :  { %v5067_v11 = vmul.f32 %v4839_v0, %v4839_v0  ;;  %6234 = vmatprep.mubr.f32.mxu1 %v5172_v22 }
 0x413   :  { %v5175_v57 = vadd.f32 %v5067_v11, %v4959_v18  ;;  %v4843_v55 = vpop.f32.mrb[50].mxu1 }
 0x414   :  { %v4960_v46 = vmul.f32 %v4843_v55, %v4843_v55  ;;  %v4845_v45 = vpop.f32.mrb[51].mxu1  ;;  %6235 = vmatmul.mubr.f32.gmra.mrb[156].mxu1 %v5173_v1 }
 0x415   :  { %v5068_v49 = vmul.f32 %v4845_v45, %v4845_v45  ;;  %6237 = vmatprep.mubr.f32.mxu1 %v5174_v48 }
 0x417   :  { %v5176_v37 = vadd.f32 %v5068_v49, %v4960_v46  ;;  %v4849_v32 = vpop.f32.mrb[52].mxu1 }
 0x418   :  { %v4961_v35 = vmul.f32 %v4849_v32, %v4849_v32  ;;  %v4851_v29 = vpop.f32.mrb[53].mxu1  ;;  %6238 = vmatmul.mubr.f32.gmra.mrb[158].mxu1 %v5175_v57 }
 0x419   :  { %v5069_v50 = vmul.f32 %v4851_v29, %v4851_v29  ;;  %6240 = vmatprep.mubr.f32.mxu1 %v5176_v37 }
 0x41b   :  { %v5177_v34 = vadd.f32 %v5069_v50, %v4961_v35  ;;  %v6083_v2 = vpop.f32.mrb[54].mxu1 }
 0x41c   :  { %5800 = vst [vmem:[#allocation8 + $0x8] sm:$0xff] %v6083_v2  ;;  %v5260_v52 = vpop.f32.mrb[55].mxu1 }
 0x41d   :  { %5799 = vst [vmem:[#allocation8] sm:$0xff] %v5260_v52  ;;  %6241 = vmatmul.mubr.f32.gmra.mrb[160].mxu1 %v5177_v34 }
 0x41f   :  { %v6086_v28 = vpop.f32.mrb[56].mxu1 }
 0x420   :  { %5802 = vst [vmem:[#allocation8 + $0x18] sm:$0xff] %v6086_v28  ;;  %v5270_v61 = vpop.f32.mrb[57].mxu1 }
 0x421   :  { %5801 = vst [vmem:[#allocation8 + $0x10] sm:$0xff] %v5270_v61 }
 0x423   :  { %v6089_v17 = vpop.f32.mrb[58].mxu1 }
 0x424   :  { %5804 = vst [vmem:[#allocation8 + $0x28] sm:$0xff] %v6089_v17  ;;  %v5280_v41 = vpop.f32.mrb[59].mxu1 }
 0x425   :  { %5803 = vst [vmem:[#allocation8 + $0x20] sm:$0xff] %v5280_v41 }
 0x427   :  { %v6092_v53 = vpop.f32.mrb[60].mxu1 }
 0x428   :  { %5806 = vst [vmem:[#allocation8 + $0x38] sm:$0xff] %v6092_v53  ;;  %v5290_v25 = vpop.f32.mrb[61].mxu1 }
 0x429   :  { %5805 = vst [vmem:[#allocation8 + $0x30] sm:$0xff] %v5290_v25 }
 0x42b   :  { %v6095_v59 = vpop.f32.mrb[62].mxu1 }
 0x42c   :  { %5808 = vst [vmem:[#allocation8 + $0x48] sm:$0xff] %v6095_v59  ;;  %v5300_v38 = vpop.f32.mrb[63].mxu1 }
 0x42d   :  { %5807 = vst [vmem:[#allocation8 + $0x40] sm:$0xff] %v5300_v38 }
 0x42f   :  { %v6098_v20 = vpop.f32.mrb[64].mxu1 }
 0x430   :  { %5810 = vst [vmem:[#allocation8 + $0x58] sm:$0xff] %v6098_v20  ;;  %v5310_v16 = vpop.f32.mrb[65].mxu1 }
 0x431   :  { %5809 = vst [vmem:[#allocation8 + $0x50] sm:$0xff] %v5310_v16 }
 0x433   :  { %v6101_v60 = vpop.f32.mrb[66].mxu1 }
 0x434   :  { %5812 = vst [vmem:[#allocation8 + $0x68] sm:$0xff] %v6101_v60  ;;  %v5320_v24 = vpop.f32.mrb[67].mxu1 }
 0x435   :  { %5811 = vst [vmem:[#allocation8 + $0x60] sm:$0xff] %v5320_v24 }
 0x437   :  { %v6104_v63 = vpop.f32.mrb[68].mxu1 }
 0x438   :  { %5814 = vst [vmem:[#allocation8 + $0x78] sm:$0xff] %v6104_v63  ;;  %v5330_v62 = vpop.f32.mrb[69].mxu1 }
 0x439   :  { %5813 = vst [vmem:[#allocation8 + $0x70] sm:$0xff] %v5330_v62 }
 0x43b   :  { %v6107_v9 = vpop.f32.mrb[70].mxu1 }
 0x43c   :  { %5816 = vst [vmem:[#allocation8 + $0x88] sm:$0xff] %v6107_v9  ;;  %v5340_v21 = vpop.f32.mrb[71].mxu1 }
 0x43d   :  { %5815 = vst [vmem:[#allocation8 + $0x80] sm:$0xff] %v5340_v21 }
 0x43f   :  { %v6110_v3 = vpop.f32.mrb[72].mxu1 }
 0x440   :  { %5818 = vst [vmem:[#allocation8 + $0x98] sm:$0xff] %v6110_v3  ;;  %v5350_v15 = vpop.f32.mrb[73].mxu1 }
 0x441   :  { %5817 = vst [vmem:[#allocation8 + $0x90] sm:$0xff] %v5350_v15 }
 0x443   :  { %v6113_v43 = vpop.f32.mrb[74].mxu1 }
 0x444   :  { %5820 = vst [vmem:[#allocation8 + $0xa8] sm:$0xff] %v6113_v43  ;;  %v5360_v39 = vpop.f32.mrb[75].mxu1 }
 0x445   :  { %5819 = vst [vmem:[#allocation8 + $0xa0] sm:$0xff] %v5360_v39 }
 0x447   :  { %v6116_v5 = vpop.f32.mrb[76].mxu1 }
 0x448   :  { %5822 = vst [vmem:[#allocation8 + $0xb8] sm:$0xff] %v6116_v5  ;;  %v5370_v40 = vpop.f32.mrb[77].mxu1 }
 0x449   :  { %5821 = vst [vmem:[#allocation8 + $0xb0] sm:$0xff] %v5370_v40 }
 0x44b   :  { %v6119_v12 = vpop.f32.mrb[78].mxu1 }
 0x44c   :  { %5824 = vst [vmem:[#allocation8 + $0xc8] sm:$0xff] %v6119_v12  ;;  %v5380_v58 = vpop.f32.mrb[79].mxu1 }
 0x44d   :  { %5823 = vst [vmem:[#allocation8 + $0xc0] sm:$0xff] %v5380_v58 }
 0x44f   :  { %v6122_v14 = vpop.f32.mrb[80].mxu1 }
 0x450   :  { %5826 = vst [vmem:[#allocation8 + $0xd8] sm:$0xff] %v6122_v14  ;;  %v5390_v36 = vpop.f32.mrb[81].mxu1 }
 0x451   :  { %5825 = vst [vmem:[#allocation8 + $0xd0] sm:$0xff] %v5390_v36 }
 0x453   :  { %v6125_v6 = vpop.f32.mrb[82].mxu1 }
 0x454   :  { %5828 = vst [vmem:[#allocation8 + $0xe8] sm:$0xff] %v6125_v6  ;;  %v5400_v13 = vpop.f32.mrb[83].mxu1 }
 0x455   :  { %5827 = vst [vmem:[#allocation8 + $0xe0] sm:$0xff] %v5400_v13 }
 0x457   :  { %v6128_v4 = vpop.f32.mrb[84].mxu1 }
 0x458   :  { %5830 = vst [vmem:[#allocation8 + $0xf8] sm:$0xff] %v6128_v4  ;;  %v5410_v47 = vpop.f32.mrb[85].mxu1 }
 0x459   :  { %5829 = vst [vmem:[#allocation8 + $0xf0] sm:$0xff] %v5410_v47 }
 0x45b   :  { %v6131_v44 = vpop.f32.mrb[86].mxu1 }
 0x45c   :  { %5832 = vst [vmem:[#allocation8 + $0x108] sm:$0xff] %v6131_v44  ;;  %v5420_v30 = vpop.f32.mrb[87].mxu1 }
 0x45d   :  { %5831 = vst [vmem:[#allocation8 + $0x100] sm:$0xff] %v5420_v30 }
 0x45f   :  { %v6134_v27 = vpop.f32.mrb[88].mxu1 }
 0x460   :  { %5834 = vst [vmem:[#allocation8 + $0x118] sm:$0xff] %v6134_v27  ;;  %v5430_v23 = vpop.f32.mrb[89].mxu1 }
 0x461   :  { %5833 = vst [vmem:[#allocation8 + $0x110] sm:$0xff] %v5430_v23 }
 0x463   :  { %v6137_v19 = vpop.f32.mrb[90].mxu1 }
 0x464   :  { %5836 = vst [vmem:[#allocation8 + $0x128] sm:$0xff] %v6137_v19  ;;  %v5440_v31 = vpop.f32.mrb[91].mxu1 }
 0x465   :  { %5835 = vst [vmem:[#allocation8 + $0x120] sm:$0xff] %v5440_v31 }
 0x467   :  { %v6140_v22 = vpop.f32.mrb[92].mxu1 }
 0x468   :  { %5838 = vst [vmem:[#allocation8 + $0x138] sm:$0xff] %v6140_v22  ;;  %v5450_v8 = vpop.f32.mrb[93].mxu1 }
 0x469   :  { %5837 = vst [vmem:[#allocation8 + $0x130] sm:$0xff] %v5450_v8 }
 0x46b   :  { %v6143_v7 = vpop.f32.mrb[94].mxu1 }
 0x46c   :  { %5840 = vst [vmem:[#allocation8 + $0x148] sm:$0xff] %v6143_v7  ;;  %v5460_v51 = vpop.f32.mrb[95].mxu1 }
 0x46d   :  { %5839 = vst [vmem:[#allocation8 + $0x140] sm:$0xff] %v5460_v51 }
 0x46f   :  { %v6146_v26 = vpop.f32.mrb[96].mxu1 }
 0x470   :  { %5842 = vst [vmem:[#allocation8 + $0x158] sm:$0xff] %v6146_v26  ;;  %v5470_v1 = vpop.f32.mrb[97].mxu1 }
 0x471   :  { %5841 = vst [vmem:[#allocation8 + $0x150] sm:$0xff] %v5470_v1 }
 0x473   :  { %v6149_v56 = vpop.f32.mrb[98].mxu1 }
 0x474   :  { %5844 = vst [vmem:[#allocation8 + $0x168] sm:$0xff] %v6149_v56  ;;  %v5480_v42 = vpop.f32.mrb[99].mxu1 }
 0x475   :  { %5843 = vst [vmem:[#allocation8 + $0x160] sm:$0xff] %v5480_v42 }
 0x477   :  { %v6152_v33 = vpop.f32.mrb[100].mxu1 }
 0x478   :  { %5846 = vst [vmem:[#allocation8 + $0x178] sm:$0xff] %v6152_v33  ;;  %v5490_v54 = vpop.f32.mrb[101].mxu1 }
 0x479   :  { %5845 = vst [vmem:[#allocation8 + $0x170] sm:$0xff] %v5490_v54 }
 0x47b   :  { %v6155_v48 = vpop.f32.mrb[102].mxu1 }
 0x47c   :  { %5848 = vst [vmem:[#allocation8 + $0x188] sm:$0xff] %v6155_v48  ;;  %v5500_v10 = vpop.f32.mrb[103].mxu1 }
 0x47d   :  { %5847 = vst [vmem:[#allocation8 + $0x180] sm:$0xff] %v5500_v10 }
 0x47f   :  { %v6158_v18 = vpop.f32.mrb[104].mxu1 }
 0x480   :  { %5850 = vst [vmem:[#allocation8 + $0x198] sm:$0xff] %v6158_v18  ;;  %v5510_v0 = vpop.f32.mrb[105].mxu1 }
 0x481   :  { %5849 = vst [vmem:[#allocation8 + $0x190] sm:$0xff] %v5510_v0 }
 0x483   :  { %v6161_v11 = vpop.f32.mrb[106].mxu1 }
 0x484   :  { %5852 = vst [vmem:[#allocation8 + $0x1a8] sm:$0xff] %v6161_v11  ;;  %v5520_v57 = vpop.f32.mrb[107].mxu1 }
 0x485   :  { %5851 = vst [vmem:[#allocation8 + $0x1a0] sm:$0xff] %v5520_v57 }
 0x487   :  { %v6164_v55 = vpop.f32.mrb[108].mxu1 }
 0x488   :  { %5854 = vst [vmem:[#allocation8 + $0x1b8] sm:$0xff] %v6164_v55  ;;  %v5530_v46 = vpop.f32.mrb[109].mxu1 }
 0x489   :  { %5853 = vst [vmem:[#allocation8 + $0x1b0] sm:$0xff] %v5530_v46 }
 0x48b   :  { %v6167_v45 = vpop.f32.mrb[110].mxu1 }
 0x48c   :  { %5856 = vst [vmem:[#allocation8 + $0x1c8] sm:$0xff] %v6167_v45  ;;  %v5540_v49 = vpop.f32.mrb[111].mxu1 }
 0x48d   :  { %5855 = vst [vmem:[#allocation8 + $0x1c0] sm:$0xff] %v5540_v49 }
 0x48f   :  { %v6170_v37 = vpop.f32.mrb[112].mxu1 }
 0x490   :  { %5858 = vst [vmem:[#allocation8 + $0x1d8] sm:$0xff] %v6170_v37  ;;  %v5550_v32 = vpop.f32.mrb[113].mxu1 }
 0x491   :  { %5857 = vst [vmem:[#allocation8 + $0x1d0] sm:$0xff] %v5550_v32 }
 0x493   :  { %v6173_v35 = vpop.f32.mrb[114].mxu1 }
 0x494   :  { %5860 = vst [vmem:[#allocation8 + $0x1e8] sm:$0xff] %v6173_v35  ;;  %v5560_v29 = vpop.f32.mrb[115].mxu1 }
 0x495   :  { %5859 = vst [vmem:[#allocation8 + $0x1e0] sm:$0xff] %v5560_v29 }
 0x497   :  { %v6176_v50 = vpop.f32.mrb[116].mxu1 }
 0x498   :  { %5862 = vst [vmem:[#allocation8 + $0x1f8] sm:$0xff] %v6176_v50  ;;  %v5570_v34 = vpop.f32.mrb[117].mxu1 }
 0x499   :  { %5861 = vst [vmem:[#allocation8 + $0x1f0] sm:$0xff] %v5570_v34 }
 0x49b   :  { %v6179_v2 = vpop.f32.mrb[118].mxu1 }
 0x49c   :  { %5864 = vst [vmem:[#allocation8 + $0x208] sm:$0xff] %v6179_v2  ;;  %v5580_v52 = vpop.f32.mrb[119].mxu1 }
 0x49d   :  { %5863 = vst [vmem:[#allocation8 + $0x200] sm:$0xff] %v5580_v52 }
 0x49f   :  { %v6182_v28 = vpop.f32.mrb[120].mxu1 }
 0x4a0   :  { %5866 = vst [vmem:[#allocation8 + $0x218] sm:$0xff] %v6182_v28  ;;  %v5590_v61 = vpop.f32.mrb[121].mxu1 }
 0x4a1   :  { %5865 = vst [vmem:[#allocation8 + $0x210] sm:$0xff] %v5590_v61 }
 0x4a3   :  { %v6185_v17 = vpop.f32.mrb[122].mxu1 }
 0x4a4   :  { %5868 = vst [vmem:[#allocation8 + $0x228] sm:$0xff] %v6185_v17  ;;  %v5600_v41 = vpop.f32.mrb[123].mxu1 }
 0x4a5   :  { %5867 = vst [vmem:[#allocation8 + $0x220] sm:$0xff] %v5600_v41 }
 0x4a7   :  { %v6188_v53 = vpop.f32.mrb[124].mxu1 }
 0x4a8   :  { %5870 = vst [vmem:[#allocation8 + $0x238] sm:$0xff] %v6188_v53  ;;  %v5610_v25 = vpop.f32.mrb[125].mxu1 }
 0x4a9   :  { %5869 = vst [vmem:[#allocation8 + $0x230] sm:$0xff] %v5610_v25 }
 0x4ab   :  { %v6191_v59 = vpop.f32.mrb[126].mxu1 }
 0x4ac   :  { %5872 = vst [vmem:[#allocation8 + $0x248] sm:$0xff] %v6191_v59  ;;  %v5620_v38 = vpop.f32.mrb[127].mxu1 }
 0x4ad   :  { %5871 = vst [vmem:[#allocation8 + $0x240] sm:$0xff] %v5620_v38 }
 0x4af   :  { %v6194_v20 = vpop.f32.mrb[128].mxu1 }
 0x4b0   :  { %5874 = vst [vmem:[#allocation8 + $0x258] sm:$0xff] %v6194_v20  ;;  %v5630_v16 = vpop.f32.mrb[129].mxu1 }
 0x4b1   :  { %5873 = vst [vmem:[#allocation8 + $0x250] sm:$0xff] %v5630_v16 }
 0x4b3   :  { %v6197_v60 = vpop.f32.mrb[130].mxu1 }
 0x4b4   :  { %5876 = vst [vmem:[#allocation8 + $0x268] sm:$0xff] %v6197_v60  ;;  %v5640_v24 = vpop.f32.mrb[131].mxu1 }
 0x4b5   :  { %5875 = vst [vmem:[#allocation8 + $0x260] sm:$0xff] %v5640_v24 }
 0x4b7   :  { %v6200_v63 = vpop.f32.mrb[132].mxu1 }
 0x4b8   :  { %5878 = vst [vmem:[#allocation8 + $0x278] sm:$0xff] %v6200_v63  ;;  %v5650_v62 = vpop.f32.mrb[133].mxu1 }
 0x4b9   :  { %5877 = vst [vmem:[#allocation8 + $0x270] sm:$0xff] %v5650_v62 }
 0x4bb   :  { %v6203_v9 = vpop.f32.mrb[134].mxu1 }
 0x4bc   :  { %5880 = vst [vmem:[#allocation8 + $0x288] sm:$0xff] %v6203_v9  ;;  %v5660_v21 = vpop.f32.mrb[135].mxu1 }
 0x4bd   :  { %5879 = vst [vmem:[#allocation8 + $0x280] sm:$0xff] %v5660_v21 }
 0x4bf   :  { %v6206_v3 = vpop.f32.mrb[136].mxu1 }
 0x4c0   :  { %5882 = vst [vmem:[#allocation8 + $0x298] sm:$0xff] %v6206_v3  ;;  %v5670_v15 = vpop.f32.mrb[137].mxu1 }
 0x4c1   :  { %5881 = vst [vmem:[#allocation8 + $0x290] sm:$0xff] %v5670_v15 }
 0x4c3   :  { %v6209_v43 = vpop.f32.mrb[138].mxu1 }
 0x4c4   :  { %5884 = vst [vmem:[#allocation8 + $0x2a8] sm:$0xff] %v6209_v43  ;;  %v5680_v39 = vpop.f32.mrb[139].mxu1 }
 0x4c5   :  { %5883 = vst [vmem:[#allocation8 + $0x2a0] sm:$0xff] %v5680_v39 }
 0x4c7   :  { %v6212_v5 = vpop.f32.mrb[140].mxu1 }
 0x4c8   :  { %5886 = vst [vmem:[#allocation8 + $0x2b8] sm:$0xff] %v6212_v5  ;;  %v5690_v40 = vpop.f32.mrb[141].mxu1 }
 0x4c9   :  { %5885 = vst [vmem:[#allocation8 + $0x2b0] sm:$0xff] %v5690_v40 }
 0x4cb   :  { %v6215_v12 = vpop.f32.mrb[142].mxu1 }
 0x4cc   :  { %5888 = vst [vmem:[#allocation8 + $0x2c8] sm:$0xff] %v6215_v12  ;;  %v5700_v58 = vpop.f32.mrb[143].mxu1 }
 0x4cd   :  { %5887 = vst [vmem:[#allocation8 + $0x2c0] sm:$0xff] %v5700_v58 }
 0x4cf   :  { %v6218_v14 = vpop.f32.mrb[144].mxu1 }
 0x4d0   :  { %5890 = vst [vmem:[#allocation8 + $0x2d8] sm:$0xff] %v6218_v14  ;;  %v5710_v36 = vpop.f32.mrb[145].mxu1 }
 0x4d1   :  { %5889 = vst [vmem:[#allocation8 + $0x2d0] sm:$0xff] %v5710_v36 }
 0x4d3   :  { %v6221_v6 = vpop.f32.mrb[146].mxu1 }
 0x4d4   :  { %5892 = vst [vmem:[#allocation8 + $0x2e8] sm:$0xff] %v6221_v6  ;;  %v5720_v13 = vpop.f32.mrb[147].mxu1 }
 0x4d5   :  { %5891 = vst [vmem:[#allocation8 + $0x2e0] sm:$0xff] %v5720_v13 }
 0x4d7   :  { %v6224_v4 = vpop.f32.mrb[148].mxu1 }
 0x4d8   :  { %5894 = vst [vmem:[#allocation8 + $0x2f8] sm:$0xff] %v6224_v4  ;;  %v5730_v47 = vpop.f32.mrb[149].mxu1 }
 0x4d9   :  { %5893 = vst [vmem:[#allocation8 + $0x2f0] sm:$0xff] %v5730_v47 }
 0x4db   :  { %v6227_v44 = vpop.f32.mrb[150].mxu1 }
 0x4dc   :  { %5896 = vst [vmem:[#allocation8 + $0x308] sm:$0xff] %v6227_v44  ;;  %v5740_v30 = vpop.f32.mrb[151].mxu1 }
 0x4dd   :  { %5895 = vst [vmem:[#allocation8 + $0x300] sm:$0xff] %v5740_v30 }
 0x4df   :  { %v6230_v27 = vpop.f32.mrb[152].mxu1 }
 0x4e0   :  { %5898 = vst [vmem:[#allocation8 + $0x318] sm:$0xff] %v6230_v27  ;;  %v5750_v23 = vpop.f32.mrb[153].mxu1 }
 0x4e1   :  { %5897 = vst [vmem:[#allocation8 + $0x310] sm:$0xff] %v5750_v23 }
 0x4e3   :  { %v6233_v19 = vpop.f32.mrb[154].mxu1 }
 0x4e4   :  { %5900 = vst [vmem:[#allocation8 + $0x328] sm:$0xff] %v6233_v19  ;;  %v5760_v31 = vpop.f32.mrb[155].mxu1 }
 0x4e5   :  { %5899 = vst [vmem:[#allocation8 + $0x320] sm:$0xff] %v5760_v31 }
 0x4e7   :  { %v6236_v22 = vpop.f32.mrb[156].mxu1 }
 0x4e8   :  { %5902 = vst [vmem:[#allocation8 + $0x338] sm:$0xff] %v6236_v22  ;;  %v5770_v8 = vpop.f32.mrb[157].mxu1 }
 0x4e9   :  { %5901 = vst [vmem:[#allocation8 + $0x330] sm:$0xff] %v5770_v8 }
 0x4eb   :  { %v6239_v7 = vpop.f32.mrb[158].mxu1 }
 0x4ec   :  { %5904 = vst [vmem:[#allocation8 + $0x348] sm:$0xff] %v6239_v7  ;;  %v5780_v51 = vpop.f32.mrb[159].mxu1 }
 0x4ed   :  { %5903 = vst [vmem:[#allocation8 + $0x340] sm:$0xff] %v5780_v51 }
 0x4f0   :  { %v6242_v26 = vpop.f32.mrb[160].mxu1 }
 0x4f1   :  { %5906 = vst [vmem:[#allocation8 + $0x358] sm:$0xff] %v6242_v26  ;;  %v5790_v1 = vpop.f32.mrb[161].mxu1 }
 0x4f2   :  { %5905 = vst [vmem:[#allocation8 + $0x350] sm:$0xff] %v5790_v1 }
 0x4f3   :  { %7711 = shalt.err (!%p7708_p0)
}
 0x4f4   :  { %s7712_s26 = scalar_lea.hbm %s14072_s3, 13824 }
 0x4f5   :  { %p7713_p1 = scmp.ne.s32.totalorder %s14072_s3, %s7712_s26  ;;  %p7716_p2 = scmp.lt.u32.totalorder %s7712_s26, %s14072_s3 }
 0x4f7   :  { %p7718_p3 = pnand %p7716_p2, %p7713_p1 }
 0x4f9   :  { %7721 = shalt.err (!%p7718_p3)
}
 0x4fa   :  { %5918 = dma.vmem_to_hbm [thread:$0]  %s5913_s2, 13824, %s14072_s3, [#allocation4], %s7733_s0, %s7733_s0, %s7734_s20  }
 0x4fb   :  { %7726 = dma.done.wait [#allocation4], 13824  }
 0x4fc   :  { %7727 = vsyncadd [#allocation4], 4294953472 }
 0x4fd   :  { %5922 = vsyncpa [#allocation3], 1 }
 0x4fe   :  { %5923 = vsyncpa [#allocation6], 1 }
 0x4ff   :  { %5924 = vsyncpa [#allocation4], 1 }

</bundles_post_ra>
